<compile_context>
chip_gen: v5e
topology: v5e:2x2
jax: 0.10.0
libtpu: 0.0.40
codegen_flags: <defaults>
</compile_context>

<pallas_src>
import numpy as np
import jax
import jax.numpy as jnp
from jax.experimental import pallas as pl
from jax.experimental.pallas import tpu as pltpu

# ---------------- model hyper-parameters (Seq2SeqAttrs) ----------------
NUM_NODES = 8
RNN_UNITS = 16
INPUT_DIM = 2
OUTPUT_DIM = 1
SEQ_LEN = 4
HORIZON = 4                      # GMSDR.forward's final reshape requires horizon == seq_len
NUM_RNN_LAYERS = 2
MAX_DIFFUSION_STEP = 2
PRE_K = 3
PRE_V = 2
BATCH = 2

NUM_SUPPORTS = 1                                   # filter_type == "laplacian"
NUM_MATRICES = NUM_SUPPORTS * MAX_DIFFUSION_STEP + 1
NUM_CHUNKS = 1 + PRE_V                             # [inputs, h[K-1], ..., h[K-pre_v]]
NUM_CELLS = 2 * NUM_RNN_LAYERS                     # enc layer 0/1, dec layer 0/1
F32 = jnp.float32


# ---------------- graph support (host-side setup, plain numpy) ----------------
def calculate_scaled_laplacian(adj, lambda_max=None):
    # undirected symmetrization + normalized Laplacian + rescale to [-1, 1]
    adj = np.maximum(adj, adj.T)
    d = adj.sum(1)
    d_inv_sqrt = np.power(d, -0.5)
    d_inv_sqrt[np.isinf(d_inv_sqrt)] = 0.0
    lap = np.eye(adj.shape[0]) - (d_inv_sqrt[:, None] * adj) * d_inv_sqrt[None, :]
    if lambda_max is None:
        lambda_max = float(np.linalg.eigvalsh(lap).max())
    lap = (2.0 / lambda_max) * lap - np.eye(adj.shape[0])
    return lap.astype(np.float32)


# ---------------- fused Pallas kernel ----------------
def gmsdr_fused_kernel(x_ref, cheb_ref, wg_ref, bg_ref, r_ref, attw_ref, attb_ref,
                       encw_ref, encb_ref, projw_ref, projb_ref, out_ref):
    """grid = (BATCH,). One grid step = the full GMSDR forward for one batch element.

    All recurrence (hx_k per layer, encoder outputs) is carried as traced values through the
    fully unrolled time loop; the only ref traffic is the weight loads and the final output
    block store.
    """
    # Precomputed Chebyshev polynomials T_1(S) .. T_max(S), each (N, N)
    cheb = [cheb_ref[m] for m in range(MAX_DIFFUSION_STEP)]

    def cell_step(x_nd, hk, cell):
        """One GMSDRCell. x_nd: (N, D). hk: python list [oldest, ..., newest] of PRE_K (N, D)
        hidden states. Returns (new hidden (N, D), FIFO-updated hk list)."""
        # gconv feature chunks [inputs, h[K-1], ..., h[K-pre_v]] -> (N, C*D) = (8, 48): single vreg
        chunks = [x_nd] + [hk[PRE_K - v] for v in range(1, PRE_V + 1)]
        x0 = jnp.concatenate(chunks, axis=-1)

        # graph conv: identity term + per-matrix Chebyshev terms. Wg is split per diffusion
        # matrix host-side so the (N, M*C*D) concat is never materialized, and the T_m matmuls
        # are independent (no serialized recurrence on the MXU result path).
        conv = jnp.dot(x0, wg_ref[cell, 0], preferred_element_type=F32)
        for m in range(1, NUM_MATRICES):
            xm = jnp.dot(cheb[m - 1], x0, preferred_element_type=F32)
            conv = conv + jnp.dot(xm, wg_ref[cell, m], preferred_element_type=F32)
        conv = conv + bg_ref[cell]                        # gconv bias (bias_start = 1.0)
        conv = jnp.where(conv > 0, conv, 0.01 * conv)     # leaky_relu

        # new_states_k = hx_k + R ; output_k = new_states_k + conv    (per memory slot k)
        outs = [hk[k] + r_ref[cell, k] + conv for k in range(PRE_K)]

        # attention over the K memory slots (attlinear + exact softmax over K scalars)
        attw = attw_ref[cell]
        logits = []
        for k in range(PRE_K):
            w = outs[k] * attw                            # (N, D)
            s = jnp.sum(jnp.sum(w, axis=-1, keepdims=True), axis=-2, keepdims=True)
            logits.append(s + attb_ref[cell])             # (1, 1)
        lmax = logits[0]
        for k in range(1, PRE_K):
            lmax = jnp.maximum(lmax, logits[k])
        exps = [jnp.exp(logits[k] - lmax) for k in range(PRE_K)]
        den = exps[0]
        for k in range(1, PRE_K):
            den = den + exps[k]
        inv = 1.0 / den                                   # exact divide (scalar, review note)
        hx = outs[0] * (exps[0] * inv)
        for k in range(1, PRE_K):
            hx = hx + outs[k] * (exps[k] * inv)           # (N, D)

        # FIFO update of hx_k: pure python list shift (zero in-kernel compute)
        return hx, hk[1:] + [hx]
        # TODO(synk): GMSDRCell declares parameters W and b that are unused in its forward
        # pass, and GMSDR.out (Linear) is never called; both are intentionally omitted.

    enc_w = encw_ref[...]
    enc_b = encb_ref[...]

    zeros = jnp.zeros((NUM_NODES, RNN_UNITS), dtype=F32)
    hk_state = [[zeros for _ in range(PRE_K)] for _ in range(NUM_RNN_LAYERS)]

    # ---- encoder: SEQ_LEN unrolled steps ----
    enc_outputs = []
    for t in range(SEQ_LEN):
        x_raw = x_ref[0, t]                                                   # (N, input_dim)
        h = jnp.dot(x_raw, enc_w, preferred_element_type=F32) + enc_b
        for layer in range(NUM_RNN_LAYERS):
            h, hk_state[layer] = cell_step(h, hk_state[layer], layer)         # enc cells 0..L-1
        enc_outputs.append(h)

    # ---- decoder: HORIZON unrolled steps (consumes stacked encoder outputs; hx_k carried) ----
    proj_w = projw_ref[...]
    proj_b = projb_ref[...]
    for d in range(HORIZON):
        h = enc_outputs[d]
        for layer in range(NUM_RNN_LAYERS):
            h, hk_state[layer] = cell_step(h, hk_state[layer],
                                           NUM_RNN_LAYERS + layer)            # dec cells L..2L-1
        out_ref[0, d] = jnp.dot(h, proj_w, preferred_element_type=F32) + proj_b   # (N, 1)


# ---------------- pallas_call wrapper ----------------
def _full_spec(shape):
    nd = len(shape)
    return pl.BlockSpec(shape, lambda b: (0,) * nd)


def gmsdr_forward(history_data, params):
    # history_data: (B, L, N, C) — matches torch's transpose/reshape into per-step (B, N, C)
    in_specs = [
        # whole per-batch history slab, fetched once per grid step (no per-time-step DMAs)
        pl.BlockSpec((1, SEQ_LEN, NUM_NODES, INPUT_DIM), lambda b: (b, 0, 0, 0)),
        _full_spec((MAX_DIFFUSION_STEP, NUM_NODES, NUM_NODES)),            # T_1(S)..T_max(S)
        _full_spec((NUM_CELLS, NUM_MATRICES,
                    NUM_CHUNKS * RNN_UNITS, RNN_UNITS)),                   # Wg (per-matrix blocks)
        _full_spec((NUM_CELLS, 1, RNN_UNITS)),                             # bg
        _full_spec((NUM_CELLS, PRE_K, NUM_NODES, RNN_UNITS)),              # R
        _full_spec((NUM_CELLS, NUM_NODES, RNN_UNITS)),                     # attW
        _full_spec((NUM_CELLS, 1, 1)),                                     # attb
        _full_spec((INPUT_DIM, RNN_UNITS)),                                # encoder mlp weight
        _full_spec((1, RNN_UNITS)),                                        # encoder mlp bias
        _full_spec((RNN_UNITS, OUTPUT_DIM)),                               # decoder projection w
        _full_spec((1, OUTPUT_DIM)),                                       # decoder projection b
    ]
    out_spec = pl.BlockSpec((1, HORIZON, NUM_NODES, OUTPUT_DIM), lambda b: (b, 0, 0, 0))
    out_shape = jax.ShapeDtypeStruct((BATCH, HORIZON, NUM_NODES, OUTPUT_DIM), F32)

    out = pl.pallas_call(
        gmsdr_fused_kernel,
        grid_spec=pltpu.PrefetchScalarGridSpec(
            num_scalar_prefetch=0,
            grid=(BATCH,),
            in_specs=in_specs,
            out_specs=out_spec,
        ),
        out_shape=out_shape,
        compiler_params=pltpu.CompilerParams(dimension_semantics=("parallel",)),
    )(history_data, params["cheb"], params["Wg"], params["bg"], params["R"],
      params["attW"], params["attb"], params["enc_w"], params["enc_b"],
      params["proj_w"], params["proj_b"])

    # already (B, horizon, N, output_dim) == torch's outputs.transpose(0,1).reshape(B, L, N, -1)
    return out


# ---------------- parameters (deterministic synthetic init) ----------------
def init_params(key):
    keys = jax.random.split(key, 64)
    kit = iter(keys)

    def nrm(shape, scale=0.1):
        return (scale * jax.random.normal(next(kit), shape)).astype(F32)

    rng = np.random.RandomState(0)
    adj = np.abs(rng.rand(NUM_NODES, NUM_NODES))
    S = calculate_scaled_laplacian(adj, lambda_max=None)        # (N, N)

    # precompute Chebyshev polynomials T_1(S)..T_max(S) host-side (no in-kernel recurrence)
    chebs = []
    if MAX_DIFFUSION_STEP >= 1:
        chebs.append(S)
    tk0, tk1 = np.eye(NUM_NODES, dtype=np.float32), S
    for _ in range(2, MAX_DIFFUSION_STEP + 1):
        tk2 = (2.0 * S @ tk1 - tk0).astype(np.float32)
        chebs.append(tk2)
        tk0, tk1 = tk1, tk2
    cheb = jnp.asarray(np.stack(chebs), dtype=F32)              # (max_step, N, N)

    def cell_params():
        fin = NUM_CHUNKS * RNN_UNITS
        # torch gconv weight has shape (fin * num_matrices, D) with row index f*M + m where
        # f = c*D + d_in; rearrange to per-diffusion-matrix blocks (M, C*D, D) so
        # conv = sum_m (T_m(S) @ x0) @ Wg[m] reproduces the per-(matrix, chunk) accumulation.
        wg_t = nrm((fin * NUM_MATRICES, RNN_UNITS))
        wg = jnp.transpose(
            wg_t.reshape(NUM_CHUNKS, RNN_UNITS, NUM_MATRICES, RNN_UNITS),
            (2, 0, 1, 3)).reshape(NUM_MATRICES, NUM_CHUNKS * RNN_UNITS, RNN_UNITS)
        return {
            "Wg": wg,
            "bg": jnp.full((1, RNN_UNITS), 1.0, F32),      # gconv bias_start = 1.0
            "R": nrm((PRE_K, NUM_NODES, RNN_UNITS)),
            "attW": nrm((NUM_NODES, RNN_UNITS)),           # attlinear.weight (1, N*D) reshaped
            "attb": nrm((1, 1)),
        }

    # cells stacked as [enc layer 0, enc layer 1, dec layer 0, dec layer 1]
    cells = [cell_params() for _ in range(NUM_CELLS)]

    def stack(name):
        return jnp.stack([c[name] for c in cells])

    return {
        "cheb": cheb,               # (2, 8, 8)
        "Wg": stack("Wg"),          # (4, 3, 48, 16)
        "bg": stack("bg"),          # (4, 1, 16)
        "R": stack("R"),            # (4, 3, 8, 16)
        "attW": stack("attW"),      # (4, 8, 16)
        "attb": stack("attb"),      # (4, 1, 1)
        "enc_w": nrm((INPUT_DIM, RNN_UNITS)),   # encoder.mlp: Linear(input_dim, D)
        "enc_b": nrm((1, RNN_UNITS)),
        "proj_w": nrm((RNN_UNITS, OUTPUT_DIM)), # decoder.projection_layer
        "proj_b": nrm((1, OUTPUT_DIM)),
    }


if __name__ == "__main__":
    key = jax.random.PRNGKey(0)
    pkey, dkey = jax.random.split(key)
    params = init_params(pkey)
    history = jax.random.normal(dkey, (BATCH, SEQ_LEN, NUM_NODES, INPUT_DIM), dtype=F32)

    fwd = jax.jit(lambda h: gmsdr_forward(h, params))
    out = fwd(history)
    out = jax.block_until_ready(out)

    assert out.shape == (BATCH, SEQ_LEN, NUM_NODES, OUTPUT_DIM), out.shape
    assert bool(jnp.all(jnp.isfinite(out)))
    print("KERNEL_OK")
</pallas_src>

<mosaic_0001>
module attributes {stable_mosaic.version = 11 : i64} {
  func.func @gmsdr_fused_kernel(%arg0: i32, %arg1: memref<1x4x8x2xf32, #tpu.memory_space<vmem>>, %arg2: memref<2x8x8xf32, #tpu.memory_space<vmem>>, %arg3: memref<4x3x48x16xf32, #tpu.memory_space<vmem>>, %arg4: memref<4x1x16xf32, #tpu.memory_space<vmem>>, %arg5: memref<4x3x8x16xf32, #tpu.memory_space<vmem>>, %arg6: memref<4x8x16xf32, #tpu.memory_space<vmem>>, %arg7: memref<4x1x1xf32, #tpu.memory_space<vmem>>, %arg8: memref<2x16xf32, #tpu.memory_space<vmem>>, %arg9: memref<1x16xf32, #tpu.memory_space<vmem>>, %arg10: memref<16x1xf32, #tpu.memory_space<vmem>>, %arg11: memref<1x1xf32, #tpu.memory_space<vmem>>, %arg12: memref<1x4x8x1xf32, #tpu.memory_space<vmem>>) attributes {dimension_semantics = [#tpu.dimension_semantics<parallel>], iteration_bounds = array<i64: 2>, scalar_prefetch = 0 : i64, scratch_operands = 0 : i64, tpu.core_type = #tpu.core_type<tc>, window_params = [{transform_indices = @transform_0, window_bounds = array<i64: 1, 4, 8, 2>}, {pipeline_mode = #tpu.pipeline_mode<synchronous>, transform_indices = @transform_1, window_bounds = array<i64: 2, 8, 8>}, {pipeline_mode = #tpu.pipeline_mode<synchronous>, transform_indices = @transform_2, window_bounds = array<i64: 4, 3, 48, 16>}, {pipeline_mode = #tpu.pipeline_mode<synchronous>, transform_indices = @transform_3, window_bounds = array<i64: 4, 1, 16>}, {pipeline_mode = #tpu.pipeline_mode<synchronous>, transform_indices = @transform_4, window_bounds = array<i64: 4, 3, 8, 16>}, {pipeline_mode = #tpu.pipeline_mode<synchronous>, transform_indices = @transform_5, window_bounds = array<i64: 4, 8, 16>}, {pipeline_mode = #tpu.pipeline_mode<synchronous>, transform_indices = @transform_6, window_bounds = array<i64: 4, 1, 1>}, {pipeline_mode = #tpu.pipeline_mode<synchronous>, transform_indices = @transform_7, window_bounds = array<i64: 2, 16>}, {pipeline_mode = #tpu.pipeline_mode<synchronous>, transform_indices = @transform_8, window_bounds = array<i64: 1, 16>}, {pipeline_mode = #tpu.pipeline_mode<synchronous>, transform_indices = @transform_9, window_bounds = array<i64: 16, 1>}, {pipeline_mode = #tpu.pipeline_mode<synchronous>, transform_indices = @transform_10, window_bounds = array<i64: 1, 1>}, {transform_indices = @transform_11, window_bounds = array<i64: 1, 4, 8, 1>}]} {
    %c0 = arith.constant 0 : index
    %c0_0 = arith.constant 0 : index
    %c0_1 = arith.constant 0 : index
    %0 = vector.load %arg2[%c0, %c0_0, %c0_1] : memref<2x8x8xf32, #tpu.memory_space<vmem>>, vector<1x8x8xf32>
    %1 = vector.shape_cast %0 : vector<1x8x8xf32> to vector<8x8xf32>
    %c1 = arith.constant 1 : index
    %c0_2 = arith.constant 0 : index
    %c0_3 = arith.constant 0 : index
    %2 = vector.load %arg2[%c1, %c0_2, %c0_3] : memref<2x8x8xf32, #tpu.memory_space<vmem>>, vector<1x8x8xf32>
    %3 = vector.shape_cast %2 : vector<1x8x8xf32> to vector<8x8xf32>
    %c0_4 = arith.constant 0 : index
    %c0_5 = arith.constant 0 : index
    %4 = vector.load %arg8[%c0_4, %c0_5] : memref<2x16xf32, #tpu.memory_space<vmem>>, vector<2x16xf32>
    %c0_6 = arith.constant 0 : index
    %c0_7 = arith.constant 0 : index
    %5 = vector.load %arg9[%c0_6, %c0_7] : memref<1x16xf32, #tpu.memory_space<vmem>>, vector<1x16xf32>
    %cst = arith.constant 0.000000e+00 : f32
    %6 = vector.broadcast %cst : f32 to vector<8x16xf32>
    %c0_8 = arith.constant 0 : index
    %c0_9 = arith.constant 0 : index
    %c0_10 = arith.constant 0 : index
    %c0_11 = arith.constant 0 : index
    %7 = vector.load %arg1[%c0_8, %c0_9, %c0_10, %c0_11] : memref<1x4x8x2xf32, #tpu.memory_space<vmem>>, vector<1x1x8x2xf32>
    %8 = vector.shape_cast %7 : vector<1x1x8x2xf32> to vector<8x2xf32>
    %cst_12 = arith.constant dense<0.000000e+00> : vector<8x16xf32>
    %9 = tpu.matmul %8, %4, %cst_12 {dimension_numbers = #tpu.dot_dimension_numbers<[1], [0], [0], [1], [0, 0, 1, 1], [], []>} : vector<8x2xf32>, vector<2x16xf32>, vector<8x16xf32> -> vector<8x16xf32>
    %10 = vector.broadcast %5 : vector<1x16xf32> to vector<8x16xf32>
    %11 = arith.addf %9, %10 : vector<8x16xf32>
    %12 = tpu.concatenate %11, %6, %6 in 1 : vector<8x16xf32>, vector<8x16xf32>, vector<8x16xf32> -> vector<8x48xf32>
    %c0_13 = arith.constant 0 : index
    %c0_14 = arith.constant 0 : index
    %c0_15 = arith.constant 0 : index
    %c0_16 = arith.constant 0 : index
    %13 = vector.load %arg3[%c0_13, %c0_14, %c0_15, %c0_16] : memref<4x3x48x16xf32, #tpu.memory_space<vmem>>, vector<1x1x48x16xf32>
    %14 = vector.shape_cast %13 : vector<1x1x48x16xf32> to vector<48x16xf32>
    %cst_17 = arith.constant dense<0.000000e+00> : vector<8x16xf32>
    %15 = tpu.matmul %12, %14, %cst_17 {dimension_numbers = #tpu.dot_dimension_numbers<[1], [0], [0], [1], [0, 0, 1, 1], [], []>} : vector<8x48xf32>, vector<48x16xf32>, vector<8x16xf32> -> vector<8x16xf32>
    %cst_18 = arith.constant dense<0.000000e+00> : vector<8x48xf32>
    %16 = tpu.matmul %1, %12, %cst_18 {dimension_numbers = #tpu.dot_dimension_numbers<[1], [0], [0], [1], [0, 0, 1, 1], [], []>} : vector<8x8xf32>, vector<8x48xf32>, vector<8x48xf32> -> vector<8x48xf32>
    %c0_19 = arith.constant 0 : index
    %c1_20 = arith.constant 1 : index
    %c0_21 = arith.constant 0 : index
    %c0_22 = arith.constant 0 : index
    %17 = vector.load %arg3[%c0_19, %c1_20, %c0_21, %c0_22] : memref<4x3x48x16xf32, #tpu.memory_space<vmem>>, vector<1x1x48x16xf32>
    %18 = vector.shape_cast %17 : vector<1x1x48x16xf32> to vector<48x16xf32>
    %cst_23 = arith.constant dense<0.000000e+00> : vector<8x16xf32>
    %19 = tpu.matmul %16, %18, %cst_23 {dimension_numbers = #tpu.dot_dimension_numbers<[1], [0], [0], [1], [0, 0, 1, 1], [], []>} : vector<8x48xf32>, vector<48x16xf32>, vector<8x16xf32> -> vector<8x16xf32>
    %20 = arith.addf %15, %19 : vector<8x16xf32>
    %cst_24 = arith.constant dense<0.000000e+00> : vector<8x48xf32>
    %21 = tpu.matmul %3, %12, %cst_24 {dimension_numbers = #tpu.dot_dimension_numbers<[1], [0], [0], [1], [0, 0, 1, 1], [], []>} : vector<8x8xf32>, vector<8x48xf32>, vector<8x48xf32> -> vector<8x48xf32>
    %c0_25 = arith.constant 0 : index
    %c2 = arith.constant 2 : index
    %c0_26 = arith.constant 0 : index
    %c0_27 = arith.constant 0 : index
    %22 = vector.load %arg3[%c0_25, %c2, %c0_26, %c0_27] : memref<4x3x48x16xf32, #tpu.memory_space<vmem>>, vector<1x1x48x16xf32>
    %23 = vector.shape_cast %22 : vector<1x1x48x16xf32> to vector<48x16xf32>
    %cst_28 = arith.constant dense<0.000000e+00> : vector<8x16xf32>
    %24 = tpu.matmul %21, %23, %cst_28 {dimension_numbers = #tpu.dot_dimension_numbers<[1], [0], [0], [1], [0, 0, 1, 1], [], []>} : vector<8x48xf32>, vector<48x16xf32>, vector<8x16xf32> -> vector<8x16xf32>
    %25 = arith.addf %20, %24 : vector<8x16xf32>
    %c0_29 = arith.constant 0 : index
    %c0_30 = arith.constant 0 : index
    %c0_31 = arith.constant 0 : index
    %26 = vector.load %arg4[%c0_29, %c0_30, %c0_31] : memref<4x1x16xf32, #tpu.memory_space<vmem>>, vector<1x1x16xf32>
    %27 = vector.shape_cast %26 : vector<1x1x16xf32> to vector<1x16xf32>
    %28 = vector.broadcast %27 : vector<1x16xf32> to vector<8x16xf32>
    %29 = arith.addf %25, %28 : vector<8x16xf32>
    %cst_32 = arith.constant 0.000000e+00 : f32
    %30 = vector.broadcast %cst_32 : f32 to vector<8x16xf32>
    %31 = arith.cmpf ogt, %29, %30 : vector<8x16xf32>
    %cst_33 = arith.constant 0.00999999977 : f32
    %32 = vector.broadcast %cst_33 : f32 to vector<8x16xf32>
    %33 = arith.mulf %32, %29 : vector<8x16xf32>
    %34 = arith.select %31, %29, %33 : vector<8x16xi1>, vector<8x16xf32>
    %c0_34 = arith.constant 0 : index
    %c0_35 = arith.constant 0 : index
    %c0_36 = arith.constant 0 : index
    %c0_37 = arith.constant 0 : index
    %35 = vector.load %arg5[%c0_34, %c0_35, %c0_36, %c0_37] : memref<4x3x8x16xf32, #tpu.memory_space<vmem>>, vector<1x1x8x16xf32>
    %36 = vector.shape_cast %35 : vector<1x1x8x16xf32> to vector<8x16xf32>
    %37 = arith.addf %6, %36 : vector<8x16xf32>
    %38 = arith.addf %37, %34 : vector<8x16xf32>
    %c0_38 = arith.constant 0 : index
    %c1_39 = arith.constant 1 : index
    %c0_40 = arith.constant 0 : index
    %c0_41 = arith.constant 0 : index
    %39 = vector.load %arg5[%c0_38, %c1_39, %c0_40, %c0_41] : memref<4x3x8x16xf32, #tpu.memory_space<vmem>>, vector<1x1x8x16xf32>
    %40 = vector.shape_cast %39 : vector<1x1x8x16xf32> to vector<8x16xf32>
    %41 = arith.addf %6, %40 : vector<8x16xf32>
    %42 = arith.addf %41, %34 : vector<8x16xf32>
    %c0_42 = arith.constant 0 : index
    %c2_43 = arith.constant 2 : index
    %c0_44 = arith.constant 0 : index
    %c0_45 = arith.constant 0 : index
    %43 = vector.load %arg5[%c0_42, %c2_43, %c0_44, %c0_45] : memref<4x3x8x16xf32, #tpu.memory_space<vmem>>, vector<1x1x8x16xf32>
    %44 = vector.shape_cast %43 : vector<1x1x8x16xf32> to vector<8x16xf32>
    %45 = arith.addf %6, %44 : vector<8x16xf32>
    %46 = arith.addf %45, %34 : vector<8x16xf32>
    %c0_46 = arith.constant 0 : index
    %c0_47 = arith.constant 0 : index
    %c0_48 = arith.constant 0 : index
    %47 = vector.load %arg6[%c0_46, %c0_47, %c0_48] : memref<4x8x16xf32, #tpu.memory_space<vmem>>, vector<1x8x16xf32>
    %48 = vector.shape_cast %47 : vector<1x8x16xf32> to vector<8x16xf32>
    %49 = arith.mulf %38, %48 : vector<8x16xf32>
    %cst_49 = arith.constant dense<0.000000e+00> : vector<8xf32>
    %50 = vector.multi_reduction <add>, %49, %cst_49 [1] : vector<8x16xf32> to vector<8xf32>
    %51 = vector.shape_cast %50 : vector<8xf32> to vector<8x1xf32>
    %cst_50 = arith.constant dense<0.000000e+00> : vector<1xf32>
    %52 = vector.multi_reduction <add>, %51, %cst_50 [0] : vector<8x1xf32> to vector<1xf32>
    %53 = vector.shape_cast %52 : vector<1xf32> to vector<1x1xf32>
    %c0_51 = arith.constant 0 : index
    %c0_52 = arith.constant 0 : index
    %c0_53 = arith.constant 0 : index
    %54 = vector.load %arg7[%c0_51, %c0_52, %c0_53] : memref<4x1x1xf32, #tpu.memory_space<vmem>>, vector<1x1x1xf32>
    %55 = vector.shape_cast %54 : vector<1x1x1xf32> to vector<1x1xf32>
    %56 = arith.addf %53, %55 : vector<1x1xf32>
    %57 = arith.mulf %42, %48 : vector<8x16xf32>
    %cst_54 = arith.constant dense<0.000000e+00> : vector<8xf32>
    %58 = vector.multi_reduction <add>, %57, %cst_54 [1] : vector<8x16xf32> to vector<8xf32>
    %59 = vector.shape_cast %58 : vector<8xf32> to vector<8x1xf32>
    %cst_55 = arith.constant dense<0.000000e+00> : vector<1xf32>
    %60 = vector.multi_reduction <add>, %59, %cst_55 [0] : vector<8x1xf32> to vector<1xf32>
    %61 = vector.shape_cast %60 : vector<1xf32> to vector<1x1xf32>
    %c0_56 = arith.constant 0 : index
    %c0_57 = arith.constant 0 : index
    %c0_58 = arith.constant 0 : index
    %62 = vector.load %arg7[%c0_56, %c0_57, %c0_58] : memref<4x1x1xf32, #tpu.memory_space<vmem>>, vector<1x1x1xf32>
    %63 = vector.shape_cast %62 : vector<1x1x1xf32> to vector<1x1xf32>
    %64 = arith.addf %61, %63 : vector<1x1xf32>
    %65 = arith.mulf %46, %48 : vector<8x16xf32>
    %cst_59 = arith.constant dense<0.000000e+00> : vector<8xf32>
    %66 = vector.multi_reduction <add>, %65, %cst_59 [1] : vector<8x16xf32> to vector<8xf32>
    %67 = vector.shape_cast %66 : vector<8xf32> to vector<8x1xf32>
    %cst_60 = arith.constant dense<0.000000e+00> : vector<1xf32>
    %68 = vector.multi_reduction <add>, %67, %cst_60 [0] : vector<8x1xf32> to vector<1xf32>
    %69 = vector.shape_cast %68 : vector<1xf32> to vector<1x1xf32>
    %c0_61 = arith.constant 0 : index
    %c0_62 = arith.constant 0 : index
    %c0_63 = arith.constant 0 : index
    %70 = vector.load %arg7[%c0_61, %c0_62, %c0_63] : memref<4x1x1xf32, #tpu.memory_space<vmem>>, vector<1x1x1xf32>
    %71 = vector.shape_cast %70 : vector<1x1x1xf32> to vector<1x1xf32>
    %72 = arith.addf %69, %71 : vector<1x1xf32>
    %73 = arith.maximumf %56, %64 : vector<1x1xf32>
    %74 = arith.maximumf %73, %72 : vector<1x1xf32>
    %75 = arith.subf %56, %74 : vector<1x1xf32>
    %76 = math.exp %75 : vector<1x1xf32>
    %77 = arith.subf %64, %74 : vector<1x1xf32>
    %78 = math.exp %77 : vector<1x1xf32>
    %79 = arith.subf %72, %74 : vector<1x1xf32>
    %80 = math.exp %79 : vector<1x1xf32>
    %81 = arith.addf %76, %78 : vector<1x1xf32>
    %82 = arith.addf %81, %80 : vector<1x1xf32>
    %cst_64 = arith.constant 1.000000e+00 : f32
    %83 = vector.broadcast %cst_64 : f32 to vector<1x1xf32>
    %84 = arith.divf %83, %82 : vector<1x1xf32>
    %85 = arith.mulf %76, %84 : vector<1x1xf32>
    %86 = vector.broadcast %85 : vector<1x1xf32> to vector<8x16xf32>
    %87 = arith.mulf %38, %86 : vector<8x16xf32>
    %88 = arith.mulf %78, %84 : vector<1x1xf32>
    %89 = vector.broadcast %88 : vector<1x1xf32> to vector<8x16xf32>
    %90 = arith.mulf %42, %89 : vector<8x16xf32>
    %91 = arith.addf %87, %90 : vector<8x16xf32>
    %92 = arith.mulf %80, %84 : vector<1x1xf32>
    %93 = vector.broadcast %92 : vector<1x1xf32> to vector<8x16xf32>
    %94 = arith.mulf %46, %93 : vector<8x16xf32>
    %95 = arith.addf %91, %94 : vector<8x16xf32>
    %96 = tpu.concatenate %95, %6, %6 in 1 : vector<8x16xf32>, vector<8x16xf32>, vector<8x16xf32> -> vector<8x48xf32>
    %c1_65 = arith.constant 1 : index
    %c0_66 = arith.constant 0 : index
    %c0_67 = arith.constant 0 : index
    %c0_68 = arith.constant 0 : index
    %97 = vector.load %arg3[%c1_65, %c0_66, %c0_67, %c0_68] : memref<4x3x48x16xf32, #tpu.memory_space<vmem>>, vector<1x1x48x16xf32>
    %98 = vector.shape_cast %97 : vector<1x1x48x16xf32> to vector<48x16xf32>
    %cst_69 = arith.constant dense<0.000000e+00> : vector<8x16xf32>
    %99 = tpu.matmul %96, %98, %cst_69 {dimension_numbers = #tpu.dot_dimension_numbers<[1], [0], [0], [1], [0, 0, 1, 1], [], []>} : vector<8x48xf32>, vector<48x16xf32>, vector<8x16xf32> -> vector<8x16xf32>
    %cst_70 = arith.constant dense<0.000000e+00> : vector<8x48xf32>
    %100 = tpu.matmul %1, %96, %cst_70 {dimension_numbers = #tpu.dot_dimension_numbers<[1], [0], [0], [1], [0, 0, 1, 1], [], []>} : vector<8x8xf32>, vector<8x48xf32>, vector<8x48xf32> -> vector<8x48xf32>
    %c1_71 = arith.constant 1 : index
    %c1_72 = arith.constant 1 : index
    %c0_73 = arith.constant 0 : index
    %c0_74 = arith.constant 0 : index
    %101 = vector.load %arg3[%c1_71, %c1_72, %c0_73, %c0_74] : memref<4x3x48x16xf32, #tpu.memory_space<vmem>>, vector<1x1x48x16xf32>
    %102 = vector.shape_cast %101 : vector<1x1x48x16xf32> to vector<48x16xf32>
    %cst_75 = arith.constant dense<0.000000e+00> : vector<8x16xf32>
    %103 = tpu.matmul %100, %102, %cst_75 {dimension_numbers = #tpu.dot_dimension_numbers<[1], [0], [0], [1], [0, 0, 1, 1], [], []>} : vector<8x48xf32>, vector<48x16xf32>, vector<8x16xf32> -> vector<8x16xf32>
    %104 = arith.addf %99, %103 : vector<8x16xf32>
    %cst_76 = arith.constant dense<0.000000e+00> : vector<8x48xf32>
    %105 = tpu.matmul %3, %96, %cst_76 {dimension_numbers = #tpu.dot_dimension_numbers<[1], [0], [0], [1], [0, 0, 1, 1], [], []>} : vector<8x8xf32>, vector<8x48xf32>, vector<8x48xf32> -> vector<8x48xf32>
    %c1_77 = arith.constant 1 : index
    %c2_78 = arith.constant 2 : index
    %c0_79 = arith.constant 0 : index
    %c0_80 = arith.constant 0 : index
    %106 = vector.load %arg3[%c1_77, %c2_78, %c0_79, %c0_80] : memref<4x3x48x16xf32, #tpu.memory_space<vmem>>, vector<1x1x48x16xf32>
    %107 = vector.shape_cast %106 : vector<1x1x48x16xf32> to vector<48x16xf32>
    %cst_81 = arith.constant dense<0.000000e+00> : vector<8x16xf32>
    %108 = tpu.matmul %105, %107, %cst_81 {dimension_numbers = #tpu.dot_dimension_numbers<[1], [0], [0], [1], [0, 0, 1, 1], [], []>} : vector<8x48xf32>, vector<48x16xf32>, vector<8x16xf32> -> vector<8x16xf32>
    %109 = arith.addf %104, %108 : vector<8x16xf32>
    %c1_82 = arith.constant 1 : index
    %c0_83 = arith.constant 0 : index
    %c0_84 = arith.constant 0 : index
    %110 = vector.load %arg4[%c1_82, %c0_83, %c0_84] : memref<4x1x16xf32, #tpu.memory_space<vmem>>, vector<1x1x16xf32>
    %111 = vector.shape_cast %110 : vector<1x1x16xf32> to vector<1x16xf32>
    %112 = vector.broadcast %111 : vector<1x16xf32> to vector<8x16xf32>
    %113 = arith.addf %109, %112 : vector<8x16xf32>
    %cst_85 = arith.constant 0.000000e+00 : f32
    %114 = vector.broadcast %cst_85 : f32 to vector<8x16xf32>
    %115 = arith.cmpf ogt, %113, %114 : vector<8x16xf32>
    %cst_86 = arith.constant 0.00999999977 : f32
    %116 = vector.broadcast %cst_86 : f32 to vector<8x16xf32>
    %117 = arith.mulf %116, %113 : vector<8x16xf32>
    %118 = arith.select %115, %113, %117 : vector<8x16xi1>, vector<8x16xf32>
    %c1_87 = arith.constant 1 : index
    %c0_88 = arith.constant 0 : index
    %c0_89 = arith.constant 0 : index
    %c0_90 = arith.constant 0 : index
    %119 = vector.load %arg5[%c1_87, %c0_88, %c0_89, %c0_90] : memref<4x3x8x16xf32, #tpu.memory_space<vmem>>, vector<1x1x8x16xf32>
    %120 = vector.shape_cast %119 : vector<1x1x8x16xf32> to vector<8x16xf32>
    %121 = arith.addf %6, %120 : vector<8x16xf32>
    %122 = arith.addf %121, %118 : vector<8x16xf32>
    %c1_91 = arith.constant 1 : index
    %c1_92 = arith.constant 1 : index
    %c0_93 = arith.constant 0 : index
    %c0_94 = arith.constant 0 : index
    %123 = vector.load %arg5[%c1_91, %c1_92, %c0_93, %c0_94] : memref<4x3x8x16xf32, #tpu.memory_space<vmem>>, vector<1x1x8x16xf32>
    %124 = vector.shape_cast %123 : vector<1x1x8x16xf32> to vector<8x16xf32>
    %125 = arith.addf %6, %124 : vector<8x16xf32>
    %126 = arith.addf %125, %118 : vector<8x16xf32>
    %c1_95 = arith.constant 1 : index
    %c2_96 = arith.constant 2 : index
    %c0_97 = arith.constant 0 : index
    %c0_98 = arith.constant 0 : index
    %127 = vector.load %arg5[%c1_95, %c2_96, %c0_97, %c0_98] : memref<4x3x8x16xf32, #tpu.memory_space<vmem>>, vector<1x1x8x16xf32>
    %128 = vector.shape_cast %127 : vector<1x1x8x16xf32> to vector<8x16xf32>
    %129 = arith.addf %6, %128 : vector<8x16xf32>
    %130 = arith.addf %129, %118 : vector<8x16xf32>
    %c1_99 = arith.constant 1 : index
    %c0_100 = arith.constant 0 : index
    %c0_101 = arith.constant 0 : index
    %131 = vector.load %arg6[%c1_99, %c0_100, %c0_101] : memref<4x8x16xf32, #tpu.memory_space<vmem>>, vector<1x8x16xf32>
    %132 = vector.shape_cast %131 : vector<1x8x16xf32> to vector<8x16xf32>
    %133 = arith.mulf %122, %132 : vector<8x16xf32>
    %cst_102 = arith.constant dense<0.000000e+00> : vector<8xf32>
    %134 = vector.multi_reduction <add>, %133, %cst_102 [1] : vector<8x16xf32> to vector<8xf32>
    %135 = vector.shape_cast %134 : vector<8xf32> to vector<8x1xf32>
    %cst_103 = arith.constant dense<0.000000e+00> : vector<1xf32>
    %136 = vector.multi_reduction <add>, %135, %cst_103 [0] : vector<8x1xf32> to vector<1xf32>
    %137 = vector.shape_cast %136 : vector<1xf32> to vector<1x1xf32>
    %c1_104 = arith.constant 1 : index
    %c0_105 = arith.constant 0 : index
    %c0_106 = arith.constant 0 : index
    %138 = vector.load %arg7[%c1_104, %c0_105, %c0_106] : memref<4x1x1xf32, #tpu.memory_space<vmem>>, vector<1x1x1xf32>
    %139 = vector.shape_cast %138 : vector<1x1x1xf32> to vector<1x1xf32>
    %140 = arith.addf %137, %139 : vector<1x1xf32>
    %141 = arith.mulf %126, %132 : vector<8x16xf32>
    %cst_107 = arith.constant dense<0.000000e+00> : vector<8xf32>
    %142 = vector.multi_reduction <add>, %141, %cst_107 [1] : vector<8x16xf32> to vector<8xf32>
    %143 = vector.shape_cast %142 : vector<8xf32> to vector<8x1xf32>
    %cst_108 = arith.constant dense<0.000000e+00> : vector<1xf32>
    %144 = vector.multi_reduction <add>, %143, %cst_108 [0] : vector<8x1xf32> to vector<1xf32>
    %145 = vector.shape_cast %144 : vector<1xf32> to vector<1x1xf32>
    %c1_109 = arith.constant 1 : index
    %c0_110 = arith.constant 0 : index
    %c0_111 = arith.constant 0 : index
    %146 = vector.load %arg7[%c1_109, %c0_110, %c0_111] : memref<4x1x1xf32, #tpu.memory_space<vmem>>, vector<1x1x1xf32>
    %147 = vector.shape_cast %146 : vector<1x1x1xf32> to vector<1x1xf32>
    %148 = arith.addf %145, %147 : vector<1x1xf32>
    %149 = arith.mulf %130, %132 : vector<8x16xf32>
    %cst_112 = arith.constant dense<0.000000e+00> : vector<8xf32>
    %150 = vector.multi_reduction <add>, %149, %cst_112 [1] : vector<8x16xf32> to vector<8xf32>
    %151 = vector.shape_cast %150 : vector<8xf32> to vector<8x1xf32>
    %cst_113 = arith.constant dense<0.000000e+00> : vector<1xf32>
    %152 = vector.multi_reduction <add>, %151, %cst_113 [0] : vector<8x1xf32> to vector<1xf32>
    %153 = vector.shape_cast %152 : vector<1xf32> to vector<1x1xf32>
    %c1_114 = arith.constant 1 : index
    %c0_115 = arith.constant 0 : index
    %c0_116 = arith.constant 0 : index
    %154 = vector.load %arg7[%c1_114, %c0_115, %c0_116] : memref<4x1x1xf32, #tpu.memory_space<vmem>>, vector<1x1x1xf32>
    %155 = vector.shape_cast %154 : vector<1x1x1xf32> to vector<1x1xf32>
    %156 = arith.addf %153, %155 : vector<1x1xf32>
    %157 = arith.maximumf %140, %148 : vector<1x1xf32>
    %158 = arith.maximumf %157, %156 : vector<1x1xf32>
    %159 = arith.subf %140, %158 : vector<1x1xf32>
    %160 = math.exp %159 : vector<1x1xf32>
    %161 = arith.subf %148, %158 : vector<1x1xf32>
    %162 = math.exp %161 : vector<1x1xf32>
    %163 = arith.subf %156, %158 : vector<1x1xf32>
    %164 = math.exp %163 : vector<1x1xf32>
    %165 = arith.addf %160, %162 : vector<1x1xf32>
    %166 = arith.addf %165, %164 : vector<1x1xf32>
    %cst_117 = arith.constant 1.000000e+00 : f32
    %167 = vector.broadcast %cst_117 : f32 to vector<1x1xf32>
    %168 = arith.divf %167, %166 : vector<1x1xf32>
    %169 = arith.mulf %160, %168 : vector<1x1xf32>
    %170 = vector.broadcast %169 : vector<1x1xf32> to vector<8x16xf32>
    %171 = arith.mulf %122, %170 : vector<8x16xf32>
    %172 = arith.mulf %162, %168 : vector<1x1xf32>
    %173 = vector.broadcast %172 : vector<1x1xf32> to vector<8x16xf32>
    %174 = arith.mulf %126, %173 : vector<8x16xf32>
    %175 = arith.addf %171, %174 : vector<8x16xf32>
    %176 = arith.mulf %164, %168 : vector<1x1xf32>
    %177 = vector.broadcast %176 : vector<1x1xf32> to vector<8x16xf32>
    %178 = arith.mulf %130, %177 : vector<8x16xf32>
    %179 = arith.addf %175, %178 : vector<8x16xf32>
    %c0_118 = arith.constant 0 : index
    %c1_119 = arith.constant 1 : index
    %c0_120 = arith.constant 0 : index
    %c0_121 = arith.constant 0 : index
    %180 = vector.load %arg1[%c0_118, %c1_119, %c0_120, %c0_121] : memref<1x4x8x2xf32, #tpu.memory_space<vmem>>, vector<1x1x8x2xf32>
    %181 = vector.shape_cast %180 : vector<1x1x8x2xf32> to vector<8x2xf32>
    %cst_122 = arith.constant dense<0.000000e+00> : vector<8x16xf32>
    %182 = tpu.matmul %181, %4, %cst_122 {dimension_numbers = #tpu.dot_dimension_numbers<[1], [0], [0], [1], [0, 0, 1, 1], [], []>} : vector<8x2xf32>, vector<2x16xf32>, vector<8x16xf32> -> vector<8x16xf32>
    %183 = vector.broadcast %5 : vector<1x16xf32> to vector<8x16xf32>
    %184 = arith.addf %182, %183 : vector<8x16xf32>
    %185 = tpu.concatenate %184, %95, %6 in 1 : vector<8x16xf32>, vector<8x16xf32>, vector<8x16xf32> -> vector<8x48xf32>
    %c0_123 = arith.constant 0 : index
    %c0_124 = arith.constant 0 : index
    %c0_125 = arith.constant 0 : index
    %c0_126 = arith.constant 0 : index
    %186 = vector.load %arg3[%c0_123, %c0_124, %c0_125, %c0_126] : memref<4x3x48x16xf32, #tpu.memory_space<vmem>>, vector<1x1x48x16xf32>
    %187 = vector.shape_cast %186 : vector<1x1x48x16xf32> to vector<48x16xf32>
    %cst_127 = arith.constant dense<0.000000e+00> : vector<8x16xf32>
    %188 = tpu.matmul %185, %187, %cst_127 {dimension_numbers = #tpu.dot_dimension_numbers<[1], [0], [0], [1], [0, 0, 1, 1], [], []>} : vector<8x48xf32>, vector<48x16xf32>, vector<8x16xf32> -> vector<8x16xf32>
    %cst_128 = arith.constant dense<0.000000e+00> : vector<8x48xf32>
    %189 = tpu.matmul %1, %185, %cst_128 {dimension_numbers = #tpu.dot_dimension_numbers<[1], [0], [0], [1], [0, 0, 1, 1], [], []>} : vector<8x8xf32>, vector<8x48xf32>, vector<8x48xf32> -> vector<8x48xf32>
    %c0_129 = arith.constant 0 : index
    %c1_130 = arith.constant 1 : index
    %c0_131 = arith.constant 0 : index
    %c0_132 = arith.constant 0 : index
    %190 = vector.load %arg3[%c0_129, %c1_130, %c0_131, %c0_132] : memref<4x3x48x16xf32, #tpu.memory_space<vmem>>, vector<1x1x48x16xf32>
    %191 = vector.shape_cast %190 : vector<1x1x48x16xf32> to vector<48x16xf32>
    %cst_133 = arith.constant dense<0.000000e+00> : vector<8x16xf32>
    %192 = tpu.matmul %189, %191, %cst_133 {dimension_numbers = #tpu.dot_dimension_numbers<[1], [0], [0], [1], [0, 0, 1, 1], [], []>} : vector<8x48xf32>, vector<48x16xf32>, vector<8x16xf32> -> vector<8x16xf32>
    %193 = arith.addf %188, %192 : vector<8x16xf32>
    %cst_134 = arith.constant dense<0.000000e+00> : vector<8x48xf32>
    %194 = tpu.matmul %3, %185, %cst_134 {dimension_numbers = #tpu.dot_dimension_numbers<[1], [0], [0], [1], [0, 0, 1, 1], [], []>} : vector<8x8xf32>, vector<8x48xf32>, vector<8x48xf32> -> vector<8x48xf32>
    %c0_135 = arith.constant 0 : index
    %c2_136 = arith.constant 2 : index
    %c0_137 = arith.constant 0 : index
    %c0_138 = arith.constant 0 : index
    %195 = vector.load %arg3[%c0_135, %c2_136, %c0_137, %c0_138] : memref<4x3x48x16xf32, #tpu.memory_space<vmem>>, vector<1x1x48x16xf32>
    %196 = vector.shape_cast %195 : vector<1x1x48x16xf32> to vector<48x16xf32>
    %cst_139 = arith.constant dense<0.000000e+00> : vector<8x16xf32>
    %197 = tpu.matmul %194, %196, %cst_139 {dimension_numbers = #tpu.dot_dimension_numbers<[1], [0], [0], [1], [0, 0, 1, 1], [], []>} : vector<8x48xf32>, vector<48x16xf32>, vector<8x16xf32> -> vector<8x16xf32>
    %198 = arith.addf %193, %197 : vector<8x16xf32>
    %c0_140 = arith.constant 0 : index
    %c0_141 = arith.constant 0 : index
    %c0_142 = arith.constant 0 : index
    %199 = vector.load %arg4[%c0_140, %c0_141, %c0_142] : memref<4x1x16xf32, #tpu.memory_space<vmem>>, vector<1x1x16xf32>
    %200 = vector.shape_cast %199 : vector<1x1x16xf32> to vector<1x16xf32>
    %201 = vector.broadcast %200 : vector<1x16xf32> to vector<8x16xf32>
    %202 = arith.addf %198, %201 : vector<8x16xf32>
    %cst_143 = arith.constant 0.000000e+00 : f32
    %203 = vector.broadcast %cst_143 : f32 to vector<8x16xf32>
    %204 = arith.cmpf ogt, %202, %203 : vector<8x16xf32>
    %cst_144 = arith.constant 0.00999999977 : f32
    %205 = vector.broadcast %cst_144 : f32 to vector<8x16xf32>
    %206 = arith.mulf %205, %202 : vector<8x16xf32>
    %207 = arith.select %204, %202, %206 : vector<8x16xi1>, vector<8x16xf32>
    %c0_145 = arith.constant 0 : index
    %c0_146 = arith.constant 0 : index
    %c0_147 = arith.constant 0 : index
    %c0_148 = arith.constant 0 : index
    %208 = vector.load %arg5[%c0_145, %c0_146, %c0_147, %c0_148] : memref<4x3x8x16xf32, #tpu.memory_space<vmem>>, vector<1x1x8x16xf32>
    %209 = vector.shape_cast %208 : vector<1x1x8x16xf32> to vector<8x16xf32>
    %210 = arith.addf %6, %209 : vector<8x16xf32>
    %211 = arith.addf %210, %207 : vector<8x16xf32>
    %c0_149 = arith.constant 0 : index
    %c1_150 = arith.constant 1 : index
    %c0_151 = arith.constant 0 : index
    %c0_152 = arith.constant 0 : index
    %212 = vector.load %arg5[%c0_149, %c1_150, %c0_151, %c0_152] : memref<4x3x8x16xf32, #tpu.memory_space<vmem>>, vector<1x1x8x16xf32>
    %213 = vector.shape_cast %212 : vector<1x1x8x16xf32> to vector<8x16xf32>
    %214 = arith.addf %6, %213 : vector<8x16xf32>
    %215 = arith.addf %214, %207 : vector<8x16xf32>
    %c0_153 = arith.constant 0 : index
    %c2_154 = arith.constant 2 : index
    %c0_155 = arith.constant 0 : index
    %c0_156 = arith.constant 0 : index
    %216 = vector.load %arg5[%c0_153, %c2_154, %c0_155, %c0_156] : memref<4x3x8x16xf32, #tpu.memory_space<vmem>>, vector<1x1x8x16xf32>
    %217 = vector.shape_cast %216 : vector<1x1x8x16xf32> to vector<8x16xf32>
    %218 = arith.addf %95, %217 : vector<8x16xf32>
    %219 = arith.addf %218, %207 : vector<8x16xf32>
    %c0_157 = arith.constant 0 : index
    %c0_158 = arith.constant 0 : index
    %c0_159 = arith.constant 0 : index
    %220 = vector.load %arg6[%c0_157, %c0_158, %c0_159] : memref<4x8x16xf32, #tpu.memory_space<vmem>>, vector<1x8x16xf32>
    %221 = vector.shape_cast %220 : vector<1x8x16xf32> to vector<8x16xf32>
    %222 = arith.mulf %211, %221 : vector<8x16xf32>
    %cst_160 = arith.constant dense<0.000000e+00> : vector<8xf32>
    %223 = vector.multi_reduction <add>, %222, %cst_160 [1] : vector<8x16xf32> to vector<8xf32>
    %224 = vector.shape_cast %223 : vector<8xf32> to vector<8x1xf32>
    %cst_161 = arith.constant dense<0.000000e+00> : vector<1xf32>
    %225 = vector.multi_reduction <add>, %224, %cst_161 [0] : vector<8x1xf32> to vector<1xf32>
    %226 = vector.shape_cast %225 : vector<1xf32> to vector<1x1xf32>
    %c0_162 = arith.constant 0 : index
    %c0_163 = arith.constant 0 : index
    %c0_164 = arith.constant 0 : index
    %227 = vector.load %arg7[%c0_162, %c0_163, %c0_164] : memref<4x1x1xf32, #tpu.memory_space<vmem>>, vector<1x1x1xf32>
    %228 = vector.shape_cast %227 : vector<1x1x1xf32> to vector<1x1xf32>
    %229 = arith.addf %226, %228 : vector<1x1xf32>
    %230 = arith.mulf %215, %221 : vector<8x16xf32>
    %cst_165 = arith.constant dense<0.000000e+00> : vector<8xf32>
    %231 = vector.multi_reduction <add>, %230, %cst_165 [1] : vector<8x16xf32> to vector<8xf32>
    %232 = vector.shape_cast %231 : vector<8xf32> to vector<8x1xf32>
    %cst_166 = arith.constant dense<0.000000e+00> : vector<1xf32>
    %233 = vector.multi_reduction <add>, %232, %cst_166 [0] : vector<8x1xf32> to vector<1xf32>
    %234 = vector.shape_cast %233 : vector<1xf32> to vector<1x1xf32>
    %c0_167 = arith.constant 0 : index
    %c0_168 = arith.constant 0 : index
    %c0_169 = arith.constant 0 : index
    %235 = vector.load %arg7[%c0_167, %c0_168, %c0_169] : memref<4x1x1xf32, #tpu.memory_space<vmem>>, vector<1x1x1xf32>
    %236 = vector.shape_cast %235 : vector<1x1x1xf32> to vector<1x1xf32>
    %237 = arith.addf %234, %236 : vector<1x1xf32>
    %238 = arith.mulf %219, %221 : vector<8x16xf32>
    %cst_170 = arith.constant dense<0.000000e+00> : vector<8xf32>
    %239 = vector.multi_reduction <add>, %238, %cst_170 [1] : vector<8x16xf32> to vector<8xf32>
    %240 = vector.shape_cast %239 : vector<8xf32> to vector<8x1xf32>
    %cst_171 = arith.constant dense<0.000000e+00> : vector<1xf32>
    %241 = vector.multi_reduction <add>, %240, %cst_171 [0] : vector<8x1xf32> to vector<1xf32>
    %242 = vector.shape_cast %241 : vector<1xf32> to vector<1x1xf32>
    %c0_172 = arith.constant 0 : index
    %c0_173 = arith.constant 0 : index
    %c0_174 = arith.constant 0 : index
    %243 = vector.load %arg7[%c0_172, %c0_173, %c0_174] : memref<4x1x1xf32, #tpu.memory_space<vmem>>, vector<1x1x1xf32>
    %244 = vector.shape_cast %243 : vector<1x1x1xf32> to vector<1x1xf32>
    %245 = arith.addf %242, %244 : vector<1x1xf32>
    %246 = arith.maximumf %229, %237 : vector<1x1xf32>
    %247 = arith.maximumf %246, %245 : vector<1x1xf32>
    %248 = arith.subf %229, %247 : vector<1x1xf32>
    %249 = math.exp %248 : vector<1x1xf32>
    %250 = arith.subf %237, %247 : vector<1x1xf32>
    %251 = math.exp %250 : vector<1x1xf32>
    %252 = arith.subf %245, %247 : vector<1x1xf32>
    %253 = math.exp %252 : vector<1x1xf32>
    %254 = arith.addf %249, %251 : vector<1x1xf32>
    %255 = arith.addf %254, %253 : vector<1x1xf32>
    %cst_175 = arith.constant 1.000000e+00 : f32
    %256 = vector.broadcast %cst_175 : f32 to vector<1x1xf32>
    %257 = arith.divf %256, %255 : vector<1x1xf32>
    %258 = arith.mulf %249, %257 : vector<1x1xf32>
    %259 = vector.broadcast %258 : vector<1x1xf32> to vector<8x16xf32>
    %260 = arith.mulf %211, %259 : vector<8x16xf32>
    %261 = arith.mulf %251, %257 : vector<1x1xf32>
    %262 = vector.broadcast %261 : vector<1x1xf32> to vector<8x16xf32>
    %263 = arith.mulf %215, %262 : vector<8x16xf32>
    %264 = arith.addf %260, %263 : vector<8x16xf32>
    %265 = arith.mulf %253, %257 : vector<1x1xf32>
    %266 = vector.broadcast %265 : vector<1x1xf32> to vector<8x16xf32>
    %267 = arith.mulf %219, %266 : vector<8x16xf32>
    %268 = arith.addf %264, %267 : vector<8x16xf32>
    %269 = tpu.concatenate %268, %179, %6 in 1 : vector<8x16xf32>, vector<8x16xf32>, vector<8x16xf32> -> vector<8x48xf32>
    %c1_176 = arith.constant 1 : index
    %c0_177 = arith.constant 0 : index
    %c0_178 = arith.constant 0 : index
    %c0_179 = arith.constant 0 : index
    %270 = vector.load %arg3[%c1_176, %c0_177, %c0_178, %c0_179] : memref<4x3x48x16xf32, #tpu.memory_space<vmem>>, vector<1x1x48x16xf32>
    %271 = vector.shape_cast %270 : vector<1x1x48x16xf32> to vector<48x16xf32>
    %cst_180 = arith.constant dense<0.000000e+00> : vector<8x16xf32>
    %272 = tpu.matmul %269, %271, %cst_180 {dimension_numbers = #tpu.dot_dimension_numbers<[1], [0], [0], [1], [0, 0, 1, 1], [], []>} : vector<8x48xf32>, vector<48x16xf32>, vector<8x16xf32> -> vector<8x16xf32>
    %cst_181 = arith.constant dense<0.000000e+00> : vector<8x48xf32>
    %273 = tpu.matmul %1, %269, %cst_181 {dimension_numbers = #tpu.dot_dimension_numbers<[1], [0], [0], [1], [0, 0, 1, 1], [], []>} : vector<8x8xf32>, vector<8x48xf32>, vector<8x48xf32> -> vector<8x48xf32>
    %c1_182 = arith.constant 1 : index
    %c1_183 = arith.constant 1 : index
    %c0_184 = arith.constant 0 : index
    %c0_185 = arith.constant 0 : index
    %274 = vector.load %arg3[%c1_182, %c1_183, %c0_184, %c0_185] : memref<4x3x48x16xf32, #tpu.memory_space<vmem>>, vector<1x1x48x16xf32>
    %275 = vector.shape_cast %274 : vector<1x1x48x16xf32> to vector<48x16xf32>
    %cst_186 = arith.constant dense<0.000000e+00> : vector<8x16xf32>
    %276 = tpu.matmul %273, %275, %cst_186 {dimension_numbers = #tpu.dot_dimension_numbers<[1], [0], [0], [1], [0, 0, 1, 1], [], []>} : vector<8x48xf32>, vector<48x16xf32>, vector<8x16xf32> -> vector<8x16xf32>
    %277 = arith.addf %272, %276 : vector<8x16xf32>
    %cst_187 = arith.constant dense<0.000000e+00> : vector<8x48xf32>
    %278 = tpu.matmul %3, %269, %cst_187 {dimension_numbers = #tpu.dot_dimension_numbers<[1], [0], [0], [1], [0, 0, 1, 1], [], []>} : vector<8x8xf32>, vector<8x48xf32>, vector<8x48xf32> -> vector<8x48xf32>
    %c1_188 = arith.constant 1 : index
    %c2_189 = arith.constant 2 : index
    %c0_190 = arith.constant 0 : index
    %c0_191 = arith.constant 0 : index
    %279 = vector.load %arg3[%c1_188, %c2_189, %c0_190, %c0_191] : memref<4x3x48x16xf32, #tpu.memory_space<vmem>>, vector<1x1x48x16xf32>
    %280 = vector.shape_cast %279 : vector<1x1x48x16xf32> to vector<48x16xf32>
    %cst_192 = arith.constant dense<0.000000e+00> : vector<8x16xf32>
    %281 = tpu.matmul %278, %280, %cst_192 {dimension_numbers = #tpu.dot_dimension_numbers<[1], [0], [0], [1], [0, 0, 1, 1], [], []>} : vector<8x48xf32>, vector<48x16xf32>, vector<8x16xf32> -> vector<8x16xf32>
    %282 = arith.addf %277, %281 : vector<8x16xf32>
    %c1_193 = arith.constant 1 : index
    %c0_194 = arith.constant 0 : index
    %c0_195 = arith.constant 0 : index
    %283 = vector.load %arg4[%c1_193, %c0_194, %c0_195] : memref<4x1x16xf32, #tpu.memory_space<vmem>>, vector<1x1x16xf32>
    %284 = vector.shape_cast %283 : vector<1x1x16xf32> to vector<1x16xf32>
    %285 = vector.broadcast %284 : vector<1x16xf32> to vector<8x16xf32>
    %286 = arith.addf %282, %285 : vector<8x16xf32>
    %cst_196 = arith.constant 0.000000e+00 : f32
    %287 = vector.broadcast %cst_196 : f32 to vector<8x16xf32>
    %288 = arith.cmpf ogt, %286, %287 : vector<8x16xf32>
    %cst_197 = arith.constant 0.00999999977 : f32
    %289 = vector.broadcast %cst_197 : f32 to vector<8x16xf32>
    %290 = arith.mulf %289, %286 : vector<8x16xf32>
    %291 = arith.select %288, %286, %290 : vector<8x16xi1>, vector<8x16xf32>
    %c1_198 = arith.constant 1 : index
    %c0_199 = arith.constant 0 : index
    %c0_200 = arith.constant 0 : index
    %c0_201 = arith.constant 0 : index
    %292 = vector.load %arg5[%c1_198, %c0_199, %c0_200, %c0_201] : memref<4x3x8x16xf32, #tpu.memory_space<vmem>>, vector<1x1x8x16xf32>
    %293 = vector.shape_cast %292 : vector<1x1x8x16xf32> to vector<8x16xf32>
    %294 = arith.addf %6, %293 : vector<8x16xf32>
    %295 = arith.addf %294, %291 : vector<8x16xf32>
    %c1_202 = arith.constant 1 : index
    %c1_203 = arith.constant 1 : index
    %c0_204 = arith.constant 0 : index
    %c0_205 = arith.constant 0 : index
    %296 = vector.load %arg5[%c1_202, %c1_203, %c0_204, %c0_205] : memref<4x3x8x16xf32, #tpu.memory_space<vmem>>, vector<1x1x8x16xf32>
    %297 = vector.shape_cast %296 : vector<1x1x8x16xf32> to vector<8x16xf32>
    %298 = arith.addf %6, %297 : vector<8x16xf32>
    %299 = arith.addf %298, %291 : vector<8x16xf32>
    %c1_206 = arith.constant 1 : index
    %c2_207 = arith.constant 2 : index
    %c0_208 = arith.constant 0 : index
    %c0_209 = arith.constant 0 : index
    %300 = vector.load %arg5[%c1_206, %c2_207, %c0_208, %c0_209] : memref<4x3x8x16xf32, #tpu.memory_space<vmem>>, vector<1x1x8x16xf32>
    %301 = vector.shape_cast %300 : vector<1x1x8x16xf32> to vector<8x16xf32>
    %302 = arith.addf %179, %301 : vector<8x16xf32>
    %303 = arith.addf %302, %291 : vector<8x16xf32>
    %c1_210 = arith.constant 1 : index
    %c0_211 = arith.constant 0 : index
    %c0_212 = arith.constant 0 : index
    %304 = vector.load %arg6[%c1_210, %c0_211, %c0_212] : memref<4x8x16xf32, #tpu.memory_space<vmem>>, vector<1x8x16xf32>
    %305 = vector.shape_cast %304 : vector<1x8x16xf32> to vector<8x16xf32>
    %306 = arith.mulf %295, %305 : vector<8x16xf32>
    %cst_213 = arith.constant dense<0.000000e+00> : vector<8xf32>
    %307 = vector.multi_reduction <add>, %306, %cst_213 [1] : vector<8x16xf32> to vector<8xf32>
    %308 = vector.shape_cast %307 : vector<8xf32> to vector<8x1xf32>
    %cst_214 = arith.constant dense<0.000000e+00> : vector<1xf32>
    %309 = vector.multi_reduction <add>, %308, %cst_214 [0] : vector<8x1xf32> to vector<1xf32>
    %310 = vector.shape_cast %309 : vector<1xf32> to vector<1x1xf32>
    %c1_215 = arith.constant 1 : index
    %c0_216 = arith.constant 0 : index
    %c0_217 = arith.constant 0 : index
    %311 = vector.load %arg7[%c1_215, %c0_216, %c0_217] : memref<4x1x1xf32, #tpu.memory_space<vmem>>, vector<1x1x1xf32>
    %312 = vector.shape_cast %311 : vector<1x1x1xf32> to vector<1x1xf32>
    %313 = arith.addf %310, %312 : vector<1x1xf32>
    %314 = arith.mulf %299, %305 : vector<8x16xf32>
    %cst_218 = arith.constant dense<0.000000e+00> : vector<8xf32>
    %315 = vector.multi_reduction <add>, %314, %cst_218 [1] : vector<8x16xf32> to vector<8xf32>
    %316 = vector.shape_cast %315 : vector<8xf32> to vector<8x1xf32>
    %cst_219 = arith.constant dense<0.000000e+00> : vector<1xf32>
    %317 = vector.multi_reduction <add>, %316, %cst_219 [0] : vector<8x1xf32> to vector<1xf32>
    %318 = vector.shape_cast %317 : vector<1xf32> to vector<1x1xf32>
    %c1_220 = arith.constant 1 : index
    %c0_221 = arith.constant 0 : index
    %c0_222 = arith.constant 0 : index
    %319 = vector.load %arg7[%c1_220, %c0_221, %c0_222] : memref<4x1x1xf32, #tpu.memory_space<vmem>>, vector<1x1x1xf32>
    %320 = vector.shape_cast %319 : vector<1x1x1xf32> to vector<1x1xf32>
    %321 = arith.addf %318, %320 : vector<1x1xf32>
    %322 = arith.mulf %303, %305 : vector<8x16xf32>
    %cst_223 = arith.constant dense<0.000000e+00> : vector<8xf32>
    %323 = vector.multi_reduction <add>, %322, %cst_223 [1] : vector<8x16xf32> to vector<8xf32>
    %324 = vector.shape_cast %323 : vector<8xf32> to vector<8x1xf32>
    %cst_224 = arith.constant dense<0.000000e+00> : vector<1xf32>
    %325 = vector.multi_reduction <add>, %324, %cst_224 [0] : vector<8x1xf32> to vector<1xf32>
    %326 = vector.shape_cast %325 : vector<1xf32> to vector<1x1xf32>
    %c1_225 = arith.constant 1 : index
    %c0_226 = arith.constant 0 : index
    %c0_227 = arith.constant 0 : index
    %327 = vector.load %arg7[%c1_225, %c0_226, %c0_227] : memref<4x1x1xf32, #tpu.memory_space<vmem>>, vector<1x1x1xf32>
    %328 = vector.shape_cast %327 : vector<1x1x1xf32> to vector<1x1xf32>
    %329 = arith.addf %326, %328 : vector<1x1xf32>
    %330 = arith.maximumf %313, %321 : vector<1x1xf32>
    %331 = arith.maximumf %330, %329 : vector<1x1xf32>
    %332 = arith.subf %313, %331 : vector<1x1xf32>
    %333 = math.exp %332 : vector<1x1xf32>
    %334 = arith.subf %321, %331 : vector<1x1xf32>
    %335 = math.exp %334 : vector<1x1xf32>
    %336 = arith.subf %329, %331 : vector<1x1xf32>
    %337 = math.exp %336 : vector<1x1xf32>
    %338 = arith.addf %333, %335 : vector<1x1xf32>
    %339 = arith.addf %338, %337 : vector<1x1xf32>
    %cst_228 = arith.constant 1.000000e+00 : f32
    %340 = vector.broadcast %cst_228 : f32 to vector<1x1xf32>
    %341 = arith.divf %340, %339 : vector<1x1xf32>
    %342 = arith.mulf %333, %341 : vector<1x1xf32>
    %343 = vector.broadcast %342 : vector<1x1xf32> to vector<8x16xf32>
    %344 = arith.mulf %295, %343 : vector<8x16xf32>
    %345 = arith.mulf %335, %341 : vector<1x1xf32>
    %346 = vector.broadcast %345 : vector<1x1xf32> to vector<8x16xf32>
    %347 = arith.mulf %299, %346 : vector<8x16xf32>
    %348 = arith.addf %344, %347 : vector<8x16xf32>
    %349 = arith.mulf %337, %341 : vector<1x1xf32>
    %350 = vector.broadcast %349 : vector<1x1xf32> to vector<8x16xf32>
    %351 = arith.mulf %303, %350 : vector<8x16xf32>
    %352 = arith.addf %348, %351 : vector<8x16xf32>
    %c0_229 = arith.constant 0 : index
    %c2_230 = arith.constant 2 : index
    %c0_231 = arith.constant 0 : index
    %c0_232 = arith.constant 0 : index
    %353 = vector.load %arg1[%c0_229, %c2_230, %c0_231, %c0_232] : memref<1x4x8x2xf32, #tpu.memory_space<vmem>>, vector<1x1x8x2xf32>
    %354 = vector.shape_cast %353 : vector<1x1x8x2xf32> to vector<8x2xf32>
    %cst_233 = arith.constant dense<0.000000e+00> : vector<8x16xf32>
    %355 = tpu.matmul %354, %4, %cst_233 {dimension_numbers = #tpu.dot_dimension_numbers<[1], [0], [0], [1], [0, 0, 1, 1], [], []>} : vector<8x2xf32>, vector<2x16xf32>, vector<8x16xf32> -> vector<8x16xf32>
    %356 = vector.broadcast %5 : vector<1x16xf32> to vector<8x16xf32>
    %357 = arith.addf %355, %356 : vector<8x16xf32>
    %358 = tpu.concatenate %357, %268, %95 in 1 : vector<8x16xf32>, vector<8x16xf32>, vector<8x16xf32> -> vector<8x48xf32>
    %c0_234 = arith.constant 0 : index
    %c0_235 = arith.constant 0 : index
    %c0_236 = arith.constant 0 : index
    %c0_237 = arith.constant 0 : index
    %359 = vector.load %arg3[%c0_234, %c0_235, %c0_236, %c0_237] : memref<4x3x48x16xf32, #tpu.memory_space<vmem>>, vector<1x1x48x16xf32>
    %360 = vector.shape_cast %359 : vector<1x1x48x16xf32> to vector<48x16xf32>
    %cst_238 = arith.constant dense<0.000000e+00> : vector<8x16xf32>
    %361 = tpu.matmul %358, %360, %cst_238 {dimension_numbers = #tpu.dot_dimension_numbers<[1], [0], [0], [1], [0, 0, 1, 1], [], []>} : vector<8x48xf32>, vector<48x16xf32>, vector<8x16xf32> -> vector<8x16xf32>
    %cst_239 = arith.constant dense<0.000000e+00> : vector<8x48xf32>
    %362 = tpu.matmul %1, %358, %cst_239 {dimension_numbers = #tpu.dot_dimension_numbers<[1], [0], [0], [1], [0, 0, 1, 1], [], []>} : vector<8x8xf32>, vector<8x48xf32>, vector<8x48xf32> -> vector<8x48xf32>
    %c0_240 = arith.constant 0 : index
    %c1_241 = arith.constant 1 : index
    %c0_242 = arith.constant 0 : index
    %c0_243 = arith.constant 0 : index
    %363 = vector.load %arg3[%c0_240, %c1_241, %c0_242, %c0_243] : memref<4x3x48x16xf32, #tpu.memory_space<vmem>>, vector<1x1x48x16xf32>
    %364 = vector.shape_cast %363 : vector<1x1x48x16xf32> to vector<48x16xf32>
    %cst_244 = arith.constant dense<0.000000e+00> : vector<8x16xf32>
    %365 = tpu.matmul %362, %364, %cst_244 {dimension_numbers = #tpu.dot_dimension_numbers<[1], [0], [0], [1], [0, 0, 1, 1], [], []>} : vector<8x48xf32>, vector<48x16xf32>, vector<8x16xf32> -> vector<8x16xf32>
    %366 = arith.addf %361, %365 : vector<8x16xf32>
    %cst_245 = arith.constant dense<0.000000e+00> : vector<8x48xf32>
    %367 = tpu.matmul %3, %358, %cst_245 {dimension_numbers = #tpu.dot_dimension_numbers<[1], [0], [0], [1], [0, 0, 1, 1], [], []>} : vector<8x8xf32>, vector<8x48xf32>, vector<8x48xf32> -> vector<8x48xf32>
    %c0_246 = arith.constant 0 : index
    %c2_247 = arith.constant 2 : index
    %c0_248 = arith.constant 0 : index
    %c0_249 = arith.constant 0 : index
    %368 = vector.load %arg3[%c0_246, %c2_247, %c0_248, %c0_249] : memref<4x3x48x16xf32, #tpu.memory_space<vmem>>, vector<1x1x48x16xf32>
    %369 = vector.shape_cast %368 : vector<1x1x48x16xf32> to vector<48x16xf32>
    %cst_250 = arith.constant dense<0.000000e+00> : vector<8x16xf32>
    %370 = tpu.matmul %367, %369, %cst_250 {dimension_numbers = #tpu.dot_dimension_numbers<[1], [0], [0], [1], [0, 0, 1, 1], [], []>} : vector<8x48xf32>, vector<48x16xf32>, vector<8x16xf32> -> vector<8x16xf32>
    %371 = arith.addf %366, %370 : vector<8x16xf32>
    %c0_251 = arith.constant 0 : index
    %c0_252 = arith.constant 0 : index
    %c0_253 = arith.constant 0 : index
    %372 = vector.load %arg4[%c0_251, %c0_252, %c0_253] : memref<4x1x16xf32, #tpu.memory_space<vmem>>, vector<1x1x16xf32>
    %373 = vector.shape_cast %372 : vector<1x1x16xf32> to vector<1x16xf32>
    %374 = vector.broadcast %373 : vector<1x16xf32> to vector<8x16xf32>
    %375 = arith.addf %371, %374 : vector<8x16xf32>
    %cst_254 = arith.constant 0.000000e+00 : f32
    %376 = vector.broadcast %cst_254 : f32 to vector<8x16xf32>
    %377 = arith.cmpf ogt, %375, %376 : vector<8x16xf32>
    %cst_255 = arith.constant 0.00999999977 : f32
    %378 = vector.broadcast %cst_255 : f32 to vector<8x16xf32>
    %379 = arith.mulf %378, %375 : vector<8x16xf32>
    %380 = arith.select %377, %375, %379 : vector<8x16xi1>, vector<8x16xf32>
    %c0_256 = arith.constant 0 : index
    %c0_257 = arith.constant 0 : index
    %c0_258 = arith.constant 0 : index
    %c0_259 = arith.constant 0 : index
    %381 = vector.load %arg5[%c0_256, %c0_257, %c0_258, %c0_259] : memref<4x3x8x16xf32, #tpu.memory_space<vmem>>, vector<1x1x8x16xf32>
    %382 = vector.shape_cast %381 : vector<1x1x8x16xf32> to vector<8x16xf32>
    %383 = arith.addf %6, %382 : vector<8x16xf32>
    %384 = arith.addf %383, %380 : vector<8x16xf32>
    %c0_260 = arith.constant 0 : index
    %c1_261 = arith.constant 1 : index
    %c0_262 = arith.constant 0 : index
    %c0_263 = arith.constant 0 : index
    %385 = vector.load %arg5[%c0_260, %c1_261, %c0_262, %c0_263] : memref<4x3x8x16xf32, #tpu.memory_space<vmem>>, vector<1x1x8x16xf32>
    %386 = vector.shape_cast %385 : vector<1x1x8x16xf32> to vector<8x16xf32>
    %387 = arith.addf %95, %386 : vector<8x16xf32>
    %388 = arith.addf %387, %380 : vector<8x16xf32>
    %c0_264 = arith.constant 0 : index
    %c2_265 = arith.constant 2 : index
    %c0_266 = arith.constant 0 : index
    %c0_267 = arith.constant 0 : index
    %389 = vector.load %arg5[%c0_264, %c2_265, %c0_266, %c0_267] : memref<4x3x8x16xf32, #tpu.memory_space<vmem>>, vector<1x1x8x16xf32>
    %390 = vector.shape_cast %389 : vector<1x1x8x16xf32> to vector<8x16xf32>
    %391 = arith.addf %268, %390 : vector<8x16xf32>
    %392 = arith.addf %391, %380 : vector<8x16xf32>
    %c0_268 = arith.constant 0 : index
    %c0_269 = arith.constant 0 : index
    %c0_270 = arith.constant 0 : index
    %393 = vector.load %arg6[%c0_268, %c0_269, %c0_270] : memref<4x8x16xf32, #tpu.memory_space<vmem>>, vector<1x8x16xf32>
    %394 = vector.shape_cast %393 : vector<1x8x16xf32> to vector<8x16xf32>
    %395 = arith.mulf %384, %394 : vector<8x16xf32>
    %cst_271 = arith.constant dense<0.000000e+00> : vector<8xf32>
    %396 = vector.multi_reduction <add>, %395, %cst_271 [1] : vector<8x16xf32> to vector<8xf32>
    %397 = vector.shape_cast %396 : vector<8xf32> to vector<8x1xf32>
    %cst_272 = arith.constant dense<0.000000e+00> : vector<1xf32>
    %398 = vector.multi_reduction <add>, %397, %cst_272 [0] : vector<8x1xf32> to vector<1xf32>
    %399 = vector.shape_cast %398 : vector<1xf32> to vector<1x1xf32>
    %c0_273 = arith.constant 0 : index
    %c0_274 = arith.constant 0 : index
    %c0_275 = arith.constant 0 : index
    %400 = vector.load %arg7[%c0_273, %c0_274, %c0_275] : memref<4x1x1xf32, #tpu.memory_space<vmem>>, vector<1x1x1xf32>
    %401 = vector.shape_cast %400 : vector<1x1x1xf32> to vector<1x1xf32>
    %402 = arith.addf %399, %401 : vector<1x1xf32>
    %403 = arith.mulf %388, %394 : vector<8x16xf32>
    %cst_276 = arith.constant dense<0.000000e+00> : vector<8xf32>
    %404 = vector.multi_reduction <add>, %403, %cst_276 [1] : vector<8x16xf32> to vector<8xf32>
    %405 = vector.shape_cast %404 : vector<8xf32> to vector<8x1xf32>
    %cst_277 = arith.constant dense<0.000000e+00> : vector<1xf32>
    %406 = vector.multi_reduction <add>, %405, %cst_277 [0] : vector<8x1xf32> to vector<1xf32>
    %407 = vector.shape_cast %406 : vector<1xf32> to vector<1x1xf32>
    %c0_278 = arith.constant 0 : index
    %c0_279 = arith.constant 0 : index
    %c0_280 = arith.constant 0 : index
    %408 = vector.load %arg7[%c0_278, %c0_279, %c0_280] : memref<4x1x1xf32, #tpu.memory_space<vmem>>, vector<1x1x1xf32>
    %409 = vector.shape_cast %408 : vector<1x1x1xf32> to vector<1x1xf32>
    %410 = arith.addf %407, %409 : vector<1x1xf32>
    %411 = arith.mulf %392, %394 : vector<8x16xf32>
    %cst_281 = arith.constant dense<0.000000e+00> : vector<8xf32>
    %412 = vector.multi_reduction <add>, %411, %cst_281 [1] : vector<8x16xf32> to vector<8xf32>
    %413 = vector.shape_cast %412 : vector<8xf32> to vector<8x1xf32>
    %cst_282 = arith.constant dense<0.000000e+00> : vector<1xf32>
    %414 = vector.multi_reduction <add>, %413, %cst_282 [0] : vector<8x1xf32> to vector<1xf32>
    %415 = vector.shape_cast %414 : vector<1xf32> to vector<1x1xf32>
    %c0_283 = arith.constant 0 : index
    %c0_284 = arith.constant 0 : index
    %c0_285 = arith.constant 0 : index
    %416 = vector.load %arg7[%c0_283, %c0_284, %c0_285] : memref<4x1x1xf32, #tpu.memory_space<vmem>>, vector<1x1x1xf32>
    %417 = vector.shape_cast %416 : vector<1x1x1xf32> to vector<1x1xf32>
    %418 = arith.addf %415, %417 : vector<1x1xf32>
    %419 = arith.maximumf %402, %410 : vector<1x1xf32>
    %420 = arith.maximumf %419, %418 : vector<1x1xf32>
    %421 = arith.subf %402, %420 : vector<1x1xf32>
    %422 = math.exp %421 : vector<1x1xf32>
    %423 = arith.subf %410, %420 : vector<1x1xf32>
    %424 = math.exp %423 : vector<1x1xf32>
    %425 = arith.subf %418, %420 : vector<1x1xf32>
    %426 = math.exp %425 : vector<1x1xf32>
    %427 = arith.addf %422, %424 : vector<1x1xf32>
    %428 = arith.addf %427, %426 : vector<1x1xf32>
    %cst_286 = arith.constant 1.000000e+00 : f32
    %429 = vector.broadcast %cst_286 : f32 to vector<1x1xf32>
    %430 = arith.divf %429, %428 : vector<1x1xf32>
    %431 = arith.mulf %422, %430 : vector<1x1xf32>
    %432 = vector.broadcast %431 : vector<1x1xf32> to vector<8x16xf32>
    %433 = arith.mulf %384, %432 : vector<8x16xf32>
    %434 = arith.mulf %424, %430 : vector<1x1xf32>
    %435 = vector.broadcast %434 : vector<1x1xf32> to vector<8x16xf32>
    %436 = arith.mulf %388, %435 : vector<8x16xf32>
    %437 = arith.addf %433, %436 : vector<8x16xf32>
    %438 = arith.mulf %426, %430 : vector<1x1xf32>
    %439 = vector.broadcast %438 : vector<1x1xf32> to vector<8x16xf32>
    %440 = arith.mulf %392, %439 : vector<8x16xf32>
    %441 = arith.addf %437, %440 : vector<8x16xf32>
    %442 = tpu.concatenate %441, %352, %179 in 1 : vector<8x16xf32>, vector<8x16xf32>, vector<8x16xf32> -> vector<8x48xf32>
    %c1_287 = arith.constant 1 : index
    %c0_288 = arith.constant 0 : index
    %c0_289 = arith.constant 0 : index
    %c0_290 = arith.constant 0 : index
    %443 = vector.load %arg3[%c1_287, %c0_288, %c0_289, %c0_290] : memref<4x3x48x16xf32, #tpu.memory_space<vmem>>, vector<1x1x48x16xf32>
    %444 = vector.shape_cast %443 : vector<1x1x48x16xf32> to vector<48x16xf32>
    %cst_291 = arith.constant dense<0.000000e+00> : vector<8x16xf32>
    %445 = tpu.matmul %442, %444, %cst_291 {dimension_numbers = #tpu.dot_dimension_numbers<[1], [0], [0], [1], [0, 0, 1, 1], [], []>} : vector<8x48xf32>, vector<48x16xf32>, vector<8x16xf32> -> vector<8x16xf32>
    %cst_292 = arith.constant dense<0.000000e+00> : vector<8x48xf32>
    %446 = tpu.matmul %1, %442, %cst_292 {dimension_numbers = #tpu.dot_dimension_numbers<[1], [0], [0], [1], [0, 0, 1, 1], [], []>} : vector<8x8xf32>, vector<8x48xf32>, vector<8x48xf32> -> vector<8x48xf32>
    %c1_293 = arith.constant 1 : index
    %c1_294 = arith.constant 1 : index
    %c0_295 = arith.constant 0 : index
    %c0_296 = arith.constant 0 : index
    %447 = vector.load %arg3[%c1_293, %c1_294, %c0_295, %c0_296] : memref<4x3x48x16xf32, #tpu.memory_space<vmem>>, vector<1x1x48x16xf32>
    %448 = vector.shape_cast %447 : vector<1x1x48x16xf32> to vector<48x16xf32>
    %cst_297 = arith.constant dense<0.000000e+00> : vector<8x16xf32>
    %449 = tpu.matmul %446, %448, %cst_297 {dimension_numbers = #tpu.dot_dimension_numbers<[1], [0], [0], [1], [0, 0, 1, 1], [], []>} : vector<8x48xf32>, vector<48x16xf32>, vector<8x16xf32> -> vector<8x16xf32>
    %450 = arith.addf %445, %449 : vector<8x16xf32>
    %cst_298 = arith.constant dense<0.000000e+00> : vector<8x48xf32>
    %451 = tpu.matmul %3, %442, %cst_298 {dimension_numbers = #tpu.dot_dimension_numbers<[1], [0], [0], [1], [0, 0, 1, 1], [], []>} : vector<8x8xf32>, vector<8x48xf32>, vector<8x48xf32> -> vector<8x48xf32>
    %c1_299 = arith.constant 1 : index
    %c2_300 = arith.constant 2 : index
    %c0_301 = arith.constant 0 : index
    %c0_302 = arith.constant 0 : index
    %452 = vector.load %arg3[%c1_299, %c2_300, %c0_301, %c0_302] : memref<4x3x48x16xf32, #tpu.memory_space<vmem>>, vector<1x1x48x16xf32>
    %453 = vector.shape_cast %452 : vector<1x1x48x16xf32> to vector<48x16xf32>
    %cst_303 = arith.constant dense<0.000000e+00> : vector<8x16xf32>
    %454 = tpu.matmul %451, %453, %cst_303 {dimension_numbers = #tpu.dot_dimension_numbers<[1], [0], [0], [1], [0, 0, 1, 1], [], []>} : vector<8x48xf32>, vector<48x16xf32>, vector<8x16xf32> -> vector<8x16xf32>
    %455 = arith.addf %450, %454 : vector<8x16xf32>
    %c1_304 = arith.constant 1 : index
    %c0_305 = arith.constant 0 : index
    %c0_306 = arith.constant 0 : index
    %456 = vector.load %arg4[%c1_304, %c0_305, %c0_306] : memref<4x1x16xf32, #tpu.memory_space<vmem>>, vector<1x1x16xf32>
    %457 = vector.shape_cast %456 : vector<1x1x16xf32> to vector<1x16xf32>
    %458 = vector.broadcast %457 : vector<1x16xf32> to vector<8x16xf32>
    %459 = arith.addf %455, %458 : vector<8x16xf32>
    %cst_307 = arith.constant 0.000000e+00 : f32
    %460 = vector.broadcast %cst_307 : f32 to vector<8x16xf32>
    %461 = arith.cmpf ogt, %459, %460 : vector<8x16xf32>
    %cst_308 = arith.constant 0.00999999977 : f32
    %462 = vector.broadcast %cst_308 : f32 to vector<8x16xf32>
    %463 = arith.mulf %462, %459 : vector<8x16xf32>
    %464 = arith.select %461, %459, %463 : vector<8x16xi1>, vector<8x16xf32>
    %c1_309 = arith.constant 1 : index
    %c0_310 = arith.constant 0 : index
    %c0_311 = arith.constant 0 : index
    %c0_312 = arith.constant 0 : index
    %465 = vector.load %arg5[%c1_309, %c0_310, %c0_311, %c0_312] : memref<4x3x8x16xf32, #tpu.memory_space<vmem>>, vector<1x1x8x16xf32>
    %466 = vector.shape_cast %465 : vector<1x1x8x16xf32> to vector<8x16xf32>
    %467 = arith.addf %6, %466 : vector<8x16xf32>
    %468 = arith.addf %467, %464 : vector<8x16xf32>
    %c1_313 = arith.constant 1 : index
    %c1_314 = arith.constant 1 : index
    %c0_315 = arith.constant 0 : index
    %c0_316 = arith.constant 0 : index
    %469 = vector.load %arg5[%c1_313, %c1_314, %c0_315, %c0_316] : memref<4x3x8x16xf32, #tpu.memory_space<vmem>>, vector<1x1x8x16xf32>
    %470 = vector.shape_cast %469 : vector<1x1x8x16xf32> to vector<8x16xf32>
    %471 = arith.addf %179, %470 : vector<8x16xf32>
    %472 = arith.addf %471, %464 : vector<8x16xf32>
    %c1_317 = arith.constant 1 : index
    %c2_318 = arith.constant 2 : index
    %c0_319 = arith.constant 0 : index
    %c0_320 = arith.constant 0 : index
    %473 = vector.load %arg5[%c1_317, %c2_318, %c0_319, %c0_320] : memref<4x3x8x16xf32, #tpu.memory_space<vmem>>, vector<1x1x8x16xf32>
    %474 = vector.shape_cast %473 : vector<1x1x8x16xf32> to vector<8x16xf32>
    %475 = arith.addf %352, %474 : vector<8x16xf32>
    %476 = arith.addf %475, %464 : vector<8x16xf32>
    %c1_321 = arith.constant 1 : index
    %c0_322 = arith.constant 0 : index
    %c0_323 = arith.constant 0 : index
    %477 = vector.load %arg6[%c1_321, %c0_322, %c0_323] : memref<4x8x16xf32, #tpu.memory_space<vmem>>, vector<1x8x16xf32>
    %478 = vector.shape_cast %477 : vector<1x8x16xf32> to vector<8x16xf32>
    %479 = arith.mulf %468, %478 : vector<8x16xf32>
    %cst_324 = arith.constant dense<0.000000e+00> : vector<8xf32>
    %480 = vector.multi_reduction <add>, %479, %cst_324 [1] : vector<8x16xf32> to vector<8xf32>
    %481 = vector.shape_cast %480 : vector<8xf32> to vector<8x1xf32>
    %cst_325 = arith.constant dense<0.000000e+00> : vector<1xf32>
    %482 = vector.multi_reduction <add>, %481, %cst_325 [0] : vector<8x1xf32> to vector<1xf32>
    %483 = vector.shape_cast %482 : vector<1xf32> to vector<1x1xf32>
    %c1_326 = arith.constant 1 : index
    %c0_327 = arith.constant 0 : index
    %c0_328 = arith.constant 0 : index
    %484 = vector.load %arg7[%c1_326, %c0_327, %c0_328] : memref<4x1x1xf32, #tpu.memory_space<vmem>>, vector<1x1x1xf32>
    %485 = vector.shape_cast %484 : vector<1x1x1xf32> to vector<1x1xf32>
    %486 = arith.addf %483, %485 : vector<1x1xf32>
    %487 = arith.mulf %472, %478 : vector<8x16xf32>
    %cst_329 = arith.constant dense<0.000000e+00> : vector<8xf32>
    %488 = vector.multi_reduction <add>, %487, %cst_329 [1] : vector<8x16xf32> to vector<8xf32>
    %489 = vector.shape_cast %488 : vector<8xf32> to vector<8x1xf32>
    %cst_330 = arith.constant dense<0.000000e+00> : vector<1xf32>
    %490 = vector.multi_reduction <add>, %489, %cst_330 [0] : vector<8x1xf32> to vector<1xf32>
    %491 = vector.shape_cast %490 : vector<1xf32> to vector<1x1xf32>
    %c1_331 = arith.constant 1 : index
    %c0_332 = arith.constant 0 : index
    %c0_333 = arith.constant 0 : index
    %492 = vector.load %arg7[%c1_331, %c0_332, %c0_333] : memref<4x1x1xf32, #tpu.memory_space<vmem>>, vector<1x1x1xf32>
    %493 = vector.shape_cast %492 : vector<1x1x1xf32> to vector<1x1xf32>
    %494 = arith.addf %491, %493 : vector<1x1xf32>
    %495 = arith.mulf %476, %478 : vector<8x16xf32>
    %cst_334 = arith.constant dense<0.000000e+00> : vector<8xf32>
    %496 = vector.multi_reduction <add>, %495, %cst_334 [1] : vector<8x16xf32> to vector<8xf32>
    %497 = vector.shape_cast %496 : vector<8xf32> to vector<8x1xf32>
    %cst_335 = arith.constant dense<0.000000e+00> : vector<1xf32>
    %498 = vector.multi_reduction <add>, %497, %cst_335 [0] : vector<8x1xf32> to vector<1xf32>
    %499 = vector.shape_cast %498 : vector<1xf32> to vector<1x1xf32>
    %c1_336 = arith.constant 1 : index
    %c0_337 = arith.constant 0 : index
    %c0_338 = arith.constant 0 : index
    %500 = vector.load %arg7[%c1_336, %c0_337, %c0_338] : memref<4x1x1xf32, #tpu.memory_space<vmem>>, vector<1x1x1xf32>
    %501 = vector.shape_cast %500 : vector<1x1x1xf32> to vector<1x1xf32>
    %502 = arith.addf %499, %501 : vector<1x1xf32>
    %503 = arith.maximumf %486, %494 : vector<1x1xf32>
    %504 = arith.maximumf %503, %502 : vector<1x1xf32>
    %505 = arith.subf %486, %504 : vector<1x1xf32>
    %506 = math.exp %505 : vector<1x1xf32>
    %507 = arith.subf %494, %504 : vector<1x1xf32>
    %508 = math.exp %507 : vector<1x1xf32>
    %509 = arith.subf %502, %504 : vector<1x1xf32>
    %510 = math.exp %509 : vector<1x1xf32>
    %511 = arith.addf %506, %508 : vector<1x1xf32>
    %512 = arith.addf %511, %510 : vector<1x1xf32>
    %cst_339 = arith.constant 1.000000e+00 : f32
    %513 = vector.broadcast %cst_339 : f32 to vector<1x1xf32>
    %514 = arith.divf %513, %512 : vector<1x1xf32>
    %515 = arith.mulf %506, %514 : vector<1x1xf32>
    %516 = vector.broadcast %515 : vector<1x1xf32> to vector<8x16xf32>
    %517 = arith.mulf %468, %516 : vector<8x16xf32>
    %518 = arith.mulf %508, %514 : vector<1x1xf32>
    %519 = vector.broadcast %518 : vector<1x1xf32> to vector<8x16xf32>
    %520 = arith.mulf %472, %519 : vector<8x16xf32>
    %521 = arith.addf %517, %520 : vector<8x16xf32>
    %522 = arith.mulf %510, %514 : vector<1x1xf32>
    %523 = vector.broadcast %522 : vector<1x1xf32> to vector<8x16xf32>
    %524 = arith.mulf %476, %523 : vector<8x16xf32>
    %525 = arith.addf %521, %524 : vector<8x16xf32>
    %c0_340 = arith.constant 0 : index
    %c3 = arith.constant 3 : index
    %c0_341 = arith.constant 0 : index
    %c0_342 = arith.constant 0 : index
    %526 = vector.load %arg1[%c0_340, %c3, %c0_341, %c0_342] : memref<1x4x8x2xf32, #tpu.memory_space<vmem>>, vector<1x1x8x2xf32>
    %527 = vector.shape_cast %526 : vector<1x1x8x2xf32> to vector<8x2xf32>
    %cst_343 = arith.constant dense<0.000000e+00> : vector<8x16xf32>
    %528 = tpu.matmul %527, %4, %cst_343 {dimension_numbers = #tpu.dot_dimension_numbers<[1], [0], [0], [1], [0, 0, 1, 1], [], []>} : vector<8x2xf32>, vector<2x16xf32>, vector<8x16xf32> -> vector<8x16xf32>
    %529 = vector.broadcast %5 : vector<1x16xf32> to vector<8x16xf32>
    %530 = arith.addf %528, %529 : vector<8x16xf32>
    %531 = tpu.concatenate %530, %441, %268 in 1 : vector<8x16xf32>, vector<8x16xf32>, vector<8x16xf32> -> vector<8x48xf32>
    %c0_344 = arith.constant 0 : index
    %c0_345 = arith.constant 0 : index
    %c0_346 = arith.constant 0 : index
    %c0_347 = arith.constant 0 : index
    %532 = vector.load %arg3[%c0_344, %c0_345, %c0_346, %c0_347] : memref<4x3x48x16xf32, #tpu.memory_space<vmem>>, vector<1x1x48x16xf32>
    %533 = vector.shape_cast %532 : vector<1x1x48x16xf32> to vector<48x16xf32>
    %cst_348 = arith.constant dense<0.000000e+00> : vector<8x16xf32>
    %534 = tpu.matmul %531, %533, %cst_348 {dimension_numbers = #tpu.dot_dimension_numbers<[1], [0], [0], [1], [0, 0, 1, 1], [], []>} : vector<8x48xf32>, vector<48x16xf32>, vector<8x16xf32> -> vector<8x16xf32>
    %cst_349 = arith.constant dense<0.000000e+00> : vector<8x48xf32>
    %535 = tpu.matmul %1, %531, %cst_349 {dimension_numbers = #tpu.dot_dimension_numbers<[1], [0], [0], [1], [0, 0, 1, 1], [], []>} : vector<8x8xf32>, vector<8x48xf32>, vector<8x48xf32> -> vector<8x48xf32>
    %c0_350 = arith.constant 0 : index
    %c1_351 = arith.constant 1 : index
    %c0_352 = arith.constant 0 : index
    %c0_353 = arith.constant 0 : index
    %536 = vector.load %arg3[%c0_350, %c1_351, %c0_352, %c0_353] : memref<4x3x48x16xf32, #tpu.memory_space<vmem>>, vector<1x1x48x16xf32>
    %537 = vector.shape_cast %536 : vector<1x1x48x16xf32> to vector<48x16xf32>
    %cst_354 = arith.constant dense<0.000000e+00> : vector<8x16xf32>
    %538 = tpu.matmul %535, %537, %cst_354 {dimension_numbers = #tpu.dot_dimension_numbers<[1], [0], [0], [1], [0, 0, 1, 1], [], []>} : vector<8x48xf32>, vector<48x16xf32>, vector<8x16xf32> -> vector<8x16xf32>
    %539 = arith.addf %534, %538 : vector<8x16xf32>
    %cst_355 = arith.constant dense<0.000000e+00> : vector<8x48xf32>
    %540 = tpu.matmul %3, %531, %cst_355 {dimension_numbers = #tpu.dot_dimension_numbers<[1], [0], [0], [1], [0, 0, 1, 1], [], []>} : vector<8x8xf32>, vector<8x48xf32>, vector<8x48xf32> -> vector<8x48xf32>
    %c0_356 = arith.constant 0 : index
    %c2_357 = arith.constant 2 : index
    %c0_358 = arith.constant 0 : index
    %c0_359 = arith.constant 0 : index
    %541 = vector.load %arg3[%c0_356, %c2_357, %c0_358, %c0_359] : memref<4x3x48x16xf32, #tpu.memory_space<vmem>>, vector<1x1x48x16xf32>
    %542 = vector.shape_cast %541 : vector<1x1x48x16xf32> to vector<48x16xf32>
    %cst_360 = arith.constant dense<0.000000e+00> : vector<8x16xf32>
    %543 = tpu.matmul %540, %542, %cst_360 {dimension_numbers = #tpu.dot_dimension_numbers<[1], [0], [0], [1], [0, 0, 1, 1], [], []>} : vector<8x48xf32>, vector<48x16xf32>, vector<8x16xf32> -> vector<8x16xf32>
    %544 = arith.addf %539, %543 : vector<8x16xf32>
    %c0_361 = arith.constant 0 : index
    %c0_362 = arith.constant 0 : index
    %c0_363 = arith.constant 0 : index
    %545 = vector.load %arg4[%c0_361, %c0_362, %c0_363] : memref<4x1x16xf32, #tpu.memory_space<vmem>>, vector<1x1x16xf32>
    %546 = vector.shape_cast %545 : vector<1x1x16xf32> to vector<1x16xf32>
    %547 = vector.broadcast %546 : vector<1x16xf32> to vector<8x16xf32>
    %548 = arith.addf %544, %547 : vector<8x16xf32>
    %cst_364 = arith.constant 0.000000e+00 : f32
    %549 = vector.broadcast %cst_364 : f32 to vector<8x16xf32>
    %550 = arith.cmpf ogt, %548, %549 : vector<8x16xf32>
    %cst_365 = arith.constant 0.00999999977 : f32
    %551 = vector.broadcast %cst_365 : f32 to vector<8x16xf32>
    %552 = arith.mulf %551, %548 : vector<8x16xf32>
    %553 = arith.select %550, %548, %552 : vector<8x16xi1>, vector<8x16xf32>
    %c0_366 = arith.constant 0 : index
    %c0_367 = arith.constant 0 : index
    %c0_368 = arith.constant 0 : index
    %c0_369 = arith.constant 0 : index
    %554 = vector.load %arg5[%c0_366, %c0_367, %c0_368, %c0_369] : memref<4x3x8x16xf32, #tpu.memory_space<vmem>>, vector<1x1x8x16xf32>
    %555 = vector.shape_cast %554 : vector<1x1x8x16xf32> to vector<8x16xf32>
    %556 = arith.addf %95, %555 : vector<8x16xf32>
    %557 = arith.addf %556, %553 : vector<8x16xf32>
    %c0_370 = arith.constant 0 : index
    %c1_371 = arith.constant 1 : index
    %c0_372 = arith.constant 0 : index
    %c0_373 = arith.constant 0 : index
    %558 = vector.load %arg5[%c0_370, %c1_371, %c0_372, %c0_373] : memref<4x3x8x16xf32, #tpu.memory_space<vmem>>, vector<1x1x8x16xf32>
    %559 = vector.shape_cast %558 : vector<1x1x8x16xf32> to vector<8x16xf32>
    %560 = arith.addf %268, %559 : vector<8x16xf32>
    %561 = arith.addf %560, %553 : vector<8x16xf32>
    %c0_374 = arith.constant 0 : index
    %c2_375 = arith.constant 2 : index
    %c0_376 = arith.constant 0 : index
    %c0_377 = arith.constant 0 : index
    %562 = vector.load %arg5[%c0_374, %c2_375, %c0_376, %c0_377] : memref<4x3x8x16xf32, #tpu.memory_space<vmem>>, vector<1x1x8x16xf32>
    %563 = vector.shape_cast %562 : vector<1x1x8x16xf32> to vector<8x16xf32>
    %564 = arith.addf %441, %563 : vector<8x16xf32>
    %565 = arith.addf %564, %553 : vector<8x16xf32>
    %c0_378 = arith.constant 0 : index
    %c0_379 = arith.constant 0 : index
    %c0_380 = arith.constant 0 : index
    %566 = vector.load %arg6[%c0_378, %c0_379, %c0_380] : memref<4x8x16xf32, #tpu.memory_space<vmem>>, vector<1x8x16xf32>
    %567 = vector.shape_cast %566 : vector<1x8x16xf32> to vector<8x16xf32>
    %568 = arith.mulf %557, %567 : vector<8x16xf32>
    %cst_381 = arith.constant dense<0.000000e+00> : vector<8xf32>
    %569 = vector.multi_reduction <add>, %568, %cst_381 [1] : vector<8x16xf32> to vector<8xf32>
    %570 = vector.shape_cast %569 : vector<8xf32> to vector<8x1xf32>
    %cst_382 = arith.constant dense<0.000000e+00> : vector<1xf32>
    %571 = vector.multi_reduction <add>, %570, %cst_382 [0] : vector<8x1xf32> to vector<1xf32>
    %572 = vector.shape_cast %571 : vector<1xf32> to vector<1x1xf32>
    %c0_383 = arith.constant 0 : index
    %c0_384 = arith.constant 0 : index
    %c0_385 = arith.constant 0 : index
    %573 = vector.load %arg7[%c0_383, %c0_384, %c0_385] : memref<4x1x1xf32, #tpu.memory_space<vmem>>, vector<1x1x1xf32>
    %574 = vector.shape_cast %573 : vector<1x1x1xf32> to vector<1x1xf32>
    %575 = arith.addf %572, %574 : vector<1x1xf32>
    %576 = arith.mulf %561, %567 : vector<8x16xf32>
    %cst_386 = arith.constant dense<0.000000e+00> : vector<8xf32>
    %577 = vector.multi_reduction <add>, %576, %cst_386 [1] : vector<8x16xf32> to vector<8xf32>
    %578 = vector.shape_cast %577 : vector<8xf32> to vector<8x1xf32>
    %cst_387 = arith.constant dense<0.000000e+00> : vector<1xf32>
    %579 = vector.multi_reduction <add>, %578, %cst_387 [0] : vector<8x1xf32> to vector<1xf32>
    %580 = vector.shape_cast %579 : vector<1xf32> to vector<1x1xf32>
    %c0_388 = arith.constant 0 : index
    %c0_389 = arith.constant 0 : index
    %c0_390 = arith.constant 0 : index
    %581 = vector.load %arg7[%c0_388, %c0_389, %c0_390] : memref<4x1x1xf32, #tpu.memory_space<vmem>>, vector<1x1x1xf32>
    %582 = vector.shape_cast %581 : vector<1x1x1xf32> to vector<1x1xf32>
    %583 = arith.addf %580, %582 : vector<1x1xf32>
    %584 = arith.mulf %565, %567 : vector<8x16xf32>
    %cst_391 = arith.constant dense<0.000000e+00> : vector<8xf32>
    %585 = vector.multi_reduction <add>, %584, %cst_391 [1] : vector<8x16xf32> to vector<8xf32>
    %586 = vector.shape_cast %585 : vector<8xf32> to vector<8x1xf32>
    %cst_392 = arith.constant dense<0.000000e+00> : vector<1xf32>
    %587 = vector.multi_reduction <add>, %586, %cst_392 [0] : vector<8x1xf32> to vector<1xf32>
    %588 = vector.shape_cast %587 : vector<1xf32> to vector<1x1xf32>
    %c0_393 = arith.constant 0 : index
    %c0_394 = arith.constant 0 : index
    %c0_395 = arith.constant 0 : index
    %589 = vector.load %arg7[%c0_393, %c0_394, %c0_395] : memref<4x1x1xf32, #tpu.memory_space<vmem>>, vector<1x1x1xf32>
    %590 = vector.shape_cast %589 : vector<1x1x1xf32> to vector<1x1xf32>
    %591 = arith.addf %588, %590 : vector<1x1xf32>
    %592 = arith.maximumf %575, %583 : vector<1x1xf32>
    %593 = arith.maximumf %592, %591 : vector<1x1xf32>
    %594 = arith.subf %575, %593 : vector<1x1xf32>
    %595 = math.exp %594 : vector<1x1xf32>
    %596 = arith.subf %583, %593 : vector<1x1xf32>
    %597 = math.exp %596 : vector<1x1xf32>
    %598 = arith.subf %591, %593 : vector<1x1xf32>
    %599 = math.exp %598 : vector<1x1xf32>
    %600 = arith.addf %595, %597 : vector<1x1xf32>
    %601 = arith.addf %600, %599 : vector<1x1xf32>
    %cst_396 = arith.constant 1.000000e+00 : f32
    %602 = vector.broadcast %cst_396 : f32 to vector<1x1xf32>
    %603 = arith.divf %602, %601 : vector<1x1xf32>
    %604 = arith.mulf %595, %603 : vector<1x1xf32>
    %605 = vector.broadcast %604 : vector<1x1xf32> to vector<8x16xf32>
    %606 = arith.mulf %557, %605 : vector<8x16xf32>
    %607 = arith.mulf %597, %603 : vector<1x1xf32>
    %608 = vector.broadcast %607 : vector<1x1xf32> to vector<8x16xf32>
    %609 = arith.mulf %561, %608 : vector<8x16xf32>
    %610 = arith.addf %606, %609 : vector<8x16xf32>
    %611 = arith.mulf %599, %603 : vector<1x1xf32>
    %612 = vector.broadcast %611 : vector<1x1xf32> to vector<8x16xf32>
    %613 = arith.mulf %565, %612 : vector<8x16xf32>
    %614 = arith.addf %610, %613 : vector<8x16xf32>
    %615 = tpu.concatenate %614, %525, %352 in 1 : vector<8x16xf32>, vector<8x16xf32>, vector<8x16xf32> -> vector<8x48xf32>
    %c1_397 = arith.constant 1 : index
    %c0_398 = arith.constant 0 : index
    %c0_399 = arith.constant 0 : index
    %c0_400 = arith.constant 0 : index
    %616 = vector.load %arg3[%c1_397, %c0_398, %c0_399, %c0_400] : memref<4x3x48x16xf32, #tpu.memory_space<vmem>>, vector<1x1x48x16xf32>
    %617 = vector.shape_cast %616 : vector<1x1x48x16xf32> to vector<48x16xf32>
    %cst_401 = arith.constant dense<0.000000e+00> : vector<8x16xf32>
    %618 = tpu.matmul %615, %617, %cst_401 {dimension_numbers = #tpu.dot_dimension_numbers<[1], [0], [0], [1], [0, 0, 1, 1], [], []>} : vector<8x48xf32>, vector<48x16xf32>, vector<8x16xf32> -> vector<8x16xf32>
    %cst_402 = arith.constant dense<0.000000e+00> : vector<8x48xf32>
    %619 = tpu.matmul %1, %615, %cst_402 {dimension_numbers = #tpu.dot_dimension_numbers<[1], [0], [0], [1], [0, 0, 1, 1], [], []>} : vector<8x8xf32>, vector<8x48xf32>, vector<8x48xf32> -> vector<8x48xf32>
    %c1_403 = arith.constant 1 : index
    %c1_404 = arith.constant 1 : index
    %c0_405 = arith.constant 0 : index
    %c0_406 = arith.constant 0 : index
    %620 = vector.load %arg3[%c1_403, %c1_404, %c0_405, %c0_406] : memref<4x3x48x16xf32, #tpu.memory_space<vmem>>, vector<1x1x48x16xf32>
    %621 = vector.shape_cast %620 : vector<1x1x48x16xf32> to vector<48x16xf32>
    %cst_407 = arith.constant dense<0.000000e+00> : vector<8x16xf32>
    %622 = tpu.matmul %619, %621, %cst_407 {dimension_numbers = #tpu.dot_dimension_numbers<[1], [0], [0], [1], [0, 0, 1, 1], [], []>} : vector<8x48xf32>, vector<48x16xf32>, vector<8x16xf32> -> vector<8x16xf32>
    %623 = arith.addf %618, %622 : vector<8x16xf32>
    %cst_408 = arith.constant dense<0.000000e+00> : vector<8x48xf32>
    %624 = tpu.matmul %3, %615, %cst_408 {dimension_numbers = #tpu.dot_dimension_numbers<[1], [0], [0], [1], [0, 0, 1, 1], [], []>} : vector<8x8xf32>, vector<8x48xf32>, vector<8x48xf32> -> vector<8x48xf32>
    %c1_409 = arith.constant 1 : index
    %c2_410 = arith.constant 2 : index
    %c0_411 = arith.constant 0 : index
    %c0_412 = arith.constant 0 : index
    %625 = vector.load %arg3[%c1_409, %c2_410, %c0_411, %c0_412] : memref<4x3x48x16xf32, #tpu.memory_space<vmem>>, vector<1x1x48x16xf32>
    %626 = vector.shape_cast %625 : vector<1x1x48x16xf32> to vector<48x16xf32>
    %cst_413 = arith.constant dense<0.000000e+00> : vector<8x16xf32>
    %627 = tpu.matmul %624, %626, %cst_413 {dimension_numbers = #tpu.dot_dimension_numbers<[1], [0], [0], [1], [0, 0, 1, 1], [], []>} : vector<8x48xf32>, vector<48x16xf32>, vector<8x16xf32> -> vector<8x16xf32>
    %628 = arith.addf %623, %627 : vector<8x16xf32>
    %c1_414 = arith.constant 1 : index
    %c0_415 = arith.constant 0 : index
    %c0_416 = arith.constant 0 : index
    %629 = vector.load %arg4[%c1_414, %c0_415, %c0_416] : memref<4x1x16xf32, #tpu.memory_space<vmem>>, vector<1x1x16xf32>
    %630 = vector.shape_cast %629 : vector<1x1x16xf32> to vector<1x16xf32>
    %631 = vector.broadcast %630 : vector<1x16xf32> to vector<8x16xf32>
    %632 = arith.addf %628, %631 : vector<8x16xf32>
    %cst_417 = arith.constant 0.000000e+00 : f32
    %633 = vector.broadcast %cst_417 : f32 to vector<8x16xf32>
    %634 = arith.cmpf ogt, %632, %633 : vector<8x16xf32>
    %cst_418 = arith.constant 0.00999999977 : f32
    %635 = vector.broadcast %cst_418 : f32 to vector<8x16xf32>
    %636 = arith.mulf %635, %632 : vector<8x16xf32>
    %637 = arith.select %634, %632, %636 : vector<8x16xi1>, vector<8x16xf32>
    %c1_419 = arith.constant 1 : index
    %c0_420 = arith.constant 0 : index
    %c0_421 = arith.constant 0 : index
    %c0_422 = arith.constant 0 : index
    %638 = vector.load %arg5[%c1_419, %c0_420, %c0_421, %c0_422] : memref<4x3x8x16xf32, #tpu.memory_space<vmem>>, vector<1x1x8x16xf32>
    %639 = vector.shape_cast %638 : vector<1x1x8x16xf32> to vector<8x16xf32>
    %640 = arith.addf %179, %639 : vector<8x16xf32>
    %641 = arith.addf %640, %637 : vector<8x16xf32>
    %c1_423 = arith.constant 1 : index
    %c1_424 = arith.constant 1 : index
    %c0_425 = arith.constant 0 : index
    %c0_426 = arith.constant 0 : index
    %642 = vector.load %arg5[%c1_423, %c1_424, %c0_425, %c0_426] : memref<4x3x8x16xf32, #tpu.memory_space<vmem>>, vector<1x1x8x16xf32>
    %643 = vector.shape_cast %642 : vector<1x1x8x16xf32> to vector<8x16xf32>
    %644 = arith.addf %352, %643 : vector<8x16xf32>
    %645 = arith.addf %644, %637 : vector<8x16xf32>
    %c1_427 = arith.constant 1 : index
    %c2_428 = arith.constant 2 : index
    %c0_429 = arith.constant 0 : index
    %c0_430 = arith.constant 0 : index
    %646 = vector.load %arg5[%c1_427, %c2_428, %c0_429, %c0_430] : memref<4x3x8x16xf32, #tpu.memory_space<vmem>>, vector<1x1x8x16xf32>
    %647 = vector.shape_cast %646 : vector<1x1x8x16xf32> to vector<8x16xf32>
    %648 = arith.addf %525, %647 : vector<8x16xf32>
    %649 = arith.addf %648, %637 : vector<8x16xf32>
    %c1_431 = arith.constant 1 : index
    %c0_432 = arith.constant 0 : index
    %c0_433 = arith.constant 0 : index
    %650 = vector.load %arg6[%c1_431, %c0_432, %c0_433] : memref<4x8x16xf32, #tpu.memory_space<vmem>>, vector<1x8x16xf32>
    %651 = vector.shape_cast %650 : vector<1x8x16xf32> to vector<8x16xf32>
    %652 = arith.mulf %641, %651 : vector<8x16xf32>
    %cst_434 = arith.constant dense<0.000000e+00> : vector<8xf32>
    %653 = vector.multi_reduction <add>, %652, %cst_434 [1] : vector<8x16xf32> to vector<8xf32>
    %654 = vector.shape_cast %653 : vector<8xf32> to vector<8x1xf32>
    %cst_435 = arith.constant dense<0.000000e+00> : vector<1xf32>
    %655 = vector.multi_reduction <add>, %654, %cst_435 [0] : vector<8x1xf32> to vector<1xf32>
    %656 = vector.shape_cast %655 : vector<1xf32> to vector<1x1xf32>
    %c1_436 = arith.constant 1 : index
    %c0_437 = arith.constant 0 : index
    %c0_438 = arith.constant 0 : index
    %657 = vector.load %arg7[%c1_436, %c0_437, %c0_438] : memref<4x1x1xf32, #tpu.memory_space<vmem>>, vector<1x1x1xf32>
    %658 = vector.shape_cast %657 : vector<1x1x1xf32> to vector<1x1xf32>
    %659 = arith.addf %656, %658 : vector<1x1xf32>
    %660 = arith.mulf %645, %651 : vector<8x16xf32>
    %cst_439 = arith.constant dense<0.000000e+00> : vector<8xf32>
    %661 = vector.multi_reduction <add>, %660, %cst_439 [1] : vector<8x16xf32> to vector<8xf32>
    %662 = vector.shape_cast %661 : vector<8xf32> to vector<8x1xf32>
    %cst_440 = arith.constant dense<0.000000e+00> : vector<1xf32>
    %663 = vector.multi_reduction <add>, %662, %cst_440 [0] : vector<8x1xf32> to vector<1xf32>
    %664 = vector.shape_cast %663 : vector<1xf32> to vector<1x1xf32>
    %c1_441 = arith.constant 1 : index
    %c0_442 = arith.constant 0 : index
    %c0_443 = arith.constant 0 : index
    %665 = vector.load %arg7[%c1_441, %c0_442, %c0_443] : memref<4x1x1xf32, #tpu.memory_space<vmem>>, vector<1x1x1xf32>
    %666 = vector.shape_cast %665 : vector<1x1x1xf32> to vector<1x1xf32>
    %667 = arith.addf %664, %666 : vector<1x1xf32>
    %668 = arith.mulf %649, %651 : vector<8x16xf32>
    %cst_444 = arith.constant dense<0.000000e+00> : vector<8xf32>
    %669 = vector.multi_reduction <add>, %668, %cst_444 [1] : vector<8x16xf32> to vector<8xf32>
    %670 = vector.shape_cast %669 : vector<8xf32> to vector<8x1xf32>
    %cst_445 = arith.constant dense<0.000000e+00> : vector<1xf32>
    %671 = vector.multi_reduction <add>, %670, %cst_445 [0] : vector<8x1xf32> to vector<1xf32>
    %672 = vector.shape_cast %671 : vector<1xf32> to vector<1x1xf32>
    %c1_446 = arith.constant 1 : index
    %c0_447 = arith.constant 0 : index
    %c0_448 = arith.constant 0 : index
    %673 = vector.load %arg7[%c1_446, %c0_447, %c0_448] : memref<4x1x1xf32, #tpu.memory_space<vmem>>, vector<1x1x1xf32>
    %674 = vector.shape_cast %673 : vector<1x1x1xf32> to vector<1x1xf32>
    %675 = arith.addf %672, %674 : vector<1x1xf32>
    %676 = arith.maximumf %659, %667 : vector<1x1xf32>
    %677 = arith.maximumf %676, %675 : vector<1x1xf32>
    %678 = arith.subf %659, %677 : vector<1x1xf32>
    %679 = math.exp %678 : vector<1x1xf32>
    %680 = arith.subf %667, %677 : vector<1x1xf32>
    %681 = math.exp %680 : vector<1x1xf32>
    %682 = arith.subf %675, %677 : vector<1x1xf32>
    %683 = math.exp %682 : vector<1x1xf32>
    %684 = arith.addf %679, %681 : vector<1x1xf32>
    %685 = arith.addf %684, %683 : vector<1x1xf32>
    %cst_449 = arith.constant 1.000000e+00 : f32
    %686 = vector.broadcast %cst_449 : f32 to vector<1x1xf32>
    %687 = arith.divf %686, %685 : vector<1x1xf32>
    %688 = arith.mulf %679, %687 : vector<1x1xf32>
    %689 = vector.broadcast %688 : vector<1x1xf32> to vector<8x16xf32>
    %690 = arith.mulf %641, %689 : vector<8x16xf32>
    %691 = arith.mulf %681, %687 : vector<1x1xf32>
    %692 = vector.broadcast %691 : vector<1x1xf32> to vector<8x16xf32>
    %693 = arith.mulf %645, %692 : vector<8x16xf32>
    %694 = arith.addf %690, %693 : vector<8x16xf32>
    %695 = arith.mulf %683, %687 : vector<1x1xf32>
    %696 = vector.broadcast %695 : vector<1x1xf32> to vector<8x16xf32>
    %697 = arith.mulf %649, %696 : vector<8x16xf32>
    %698 = arith.addf %694, %697 : vector<8x16xf32>
    %c0_450 = arith.constant 0 : index
    %c0_451 = arith.constant 0 : index
    %699 = vector.load %arg10[%c0_450, %c0_451] : memref<16x1xf32, #tpu.memory_space<vmem>>, vector<16x1xf32>
    %c0_452 = arith.constant 0 : index
    %c0_453 = arith.constant 0 : index
    %700 = vector.load %arg11[%c0_452, %c0_453] : memref<1x1xf32, #tpu.memory_space<vmem>>, vector<1x1xf32>
    %701 = tpu.concatenate %179, %614, %441 in 1 : vector<8x16xf32>, vector<8x16xf32>, vector<8x16xf32> -> vector<8x48xf32>
    %c2_454 = arith.constant 2 : index
    %c0_455 = arith.constant 0 : index
    %c0_456 = arith.constant 0 : index
    %c0_457 = arith.constant 0 : index
    %702 = vector.load %arg3[%c2_454, %c0_455, %c0_456, %c0_457] : memref<4x3x48x16xf32, #tpu.memory_space<vmem>>, vector<1x1x48x16xf32>
    %703 = vector.shape_cast %702 : vector<1x1x48x16xf32> to vector<48x16xf32>
    %cst_458 = arith.constant dense<0.000000e+00> : vector<8x16xf32>
    %704 = tpu.matmul %701, %703, %cst_458 {dimension_numbers = #tpu.dot_dimension_numbers<[1], [0], [0], [1], [0, 0, 1, 1], [], []>} : vector<8x48xf32>, vector<48x16xf32>, vector<8x16xf32> -> vector<8x16xf32>
    %cst_459 = arith.constant dense<0.000000e+00> : vector<8x48xf32>
    %705 = tpu.matmul %1, %701, %cst_459 {dimension_numbers = #tpu.dot_dimension_numbers<[1], [0], [0], [1], [0, 0, 1, 1], [], []>} : vector<8x8xf32>, vector<8x48xf32>, vector<8x48xf32> -> vector<8x48xf32>
    %c2_460 = arith.constant 2 : index
    %c1_461 = arith.constant 1 : index
    %c0_462 = arith.constant 0 : index
    %c0_463 = arith.constant 0 : index
    %706 = vector.load %arg3[%c2_460, %c1_461, %c0_462, %c0_463] : memref<4x3x48x16xf32, #tpu.memory_space<vmem>>, vector<1x1x48x16xf32>
    %707 = vector.shape_cast %706 : vector<1x1x48x16xf32> to vector<48x16xf32>
    %cst_464 = arith.constant dense<0.000000e+00> : vector<8x16xf32>
    %708 = tpu.matmul %705, %707, %cst_464 {dimension_numbers = #tpu.dot_dimension_numbers<[1], [0], [0], [1], [0, 0, 1, 1], [], []>} : vector<8x48xf32>, vector<48x16xf32>, vector<8x16xf32> -> vector<8x16xf32>
    %709 = arith.addf %704, %708 : vector<8x16xf32>
    %cst_465 = arith.constant dense<0.000000e+00> : vector<8x48xf32>
    %710 = tpu.matmul %3, %701, %cst_465 {dimension_numbers = #tpu.dot_dimension_numbers<[1], [0], [0], [1], [0, 0, 1, 1], [], []>} : vector<8x8xf32>, vector<8x48xf32>, vector<8x48xf32> -> vector<8x48xf32>
    %c2_466 = arith.constant 2 : index
    %c2_467 = arith.constant 2 : index
    %c0_468 = arith.constant 0 : index
    %c0_469 = arith.constant 0 : index
    %711 = vector.load %arg3[%c2_466, %c2_467, %c0_468, %c0_469] : memref<4x3x48x16xf32, #tpu.memory_space<vmem>>, vector<1x1x48x16xf32>
    %712 = vector.shape_cast %711 : vector<1x1x48x16xf32> to vector<48x16xf32>
    %cst_470 = arith.constant dense<0.000000e+00> : vector<8x16xf32>
    %713 = tpu.matmul %710, %712, %cst_470 {dimension_numbers = #tpu.dot_dimension_numbers<[1], [0], [0], [1], [0, 0, 1, 1], [], []>} : vector<8x48xf32>, vector<48x16xf32>, vector<8x16xf32> -> vector<8x16xf32>
    %714 = arith.addf %709, %713 : vector<8x16xf32>
    %c2_471 = arith.constant 2 : index
    %c0_472 = arith.constant 0 : index
    %c0_473 = arith.constant 0 : index
    %715 = vector.load %arg4[%c2_471, %c0_472, %c0_473] : memref<4x1x16xf32, #tpu.memory_space<vmem>>, vector<1x1x16xf32>
    %716 = vector.shape_cast %715 : vector<1x1x16xf32> to vector<1x16xf32>
    %717 = vector.broadcast %716 : vector<1x16xf32> to vector<8x16xf32>
    %718 = arith.addf %714, %717 : vector<8x16xf32>
    %cst_474 = arith.constant 0.000000e+00 : f32
    %719 = vector.broadcast %cst_474 : f32 to vector<8x16xf32>
    %720 = arith.cmpf ogt, %718, %719 : vector<8x16xf32>
    %cst_475 = arith.constant 0.00999999977 : f32
    %721 = vector.broadcast %cst_475 : f32 to vector<8x16xf32>
    %722 = arith.mulf %721, %718 : vector<8x16xf32>
    %723 = arith.select %720, %718, %722 : vector<8x16xi1>, vector<8x16xf32>
    %c2_476 = arith.constant 2 : index
    %c0_477 = arith.constant 0 : index
    %c0_478 = arith.constant 0 : index
    %c0_479 = arith.constant 0 : index
    %724 = vector.load %arg5[%c2_476, %c0_477, %c0_478, %c0_479] : memref<4x3x8x16xf32, #tpu.memory_space<vmem>>, vector<1x1x8x16xf32>
    %725 = vector.shape_cast %724 : vector<1x1x8x16xf32> to vector<8x16xf32>
    %726 = arith.addf %268, %725 : vector<8x16xf32>
    %727 = arith.addf %726, %723 : vector<8x16xf32>
    %c2_480 = arith.constant 2 : index
    %c1_481 = arith.constant 1 : index
    %c0_482 = arith.constant 0 : index
    %c0_483 = arith.constant 0 : index
    %728 = vector.load %arg5[%c2_480, %c1_481, %c0_482, %c0_483] : memref<4x3x8x16xf32, #tpu.memory_space<vmem>>, vector<1x1x8x16xf32>
    %729 = vector.shape_cast %728 : vector<1x1x8x16xf32> to vector<8x16xf32>
    %730 = arith.addf %441, %729 : vector<8x16xf32>
    %731 = arith.addf %730, %723 : vector<8x16xf32>
    %c2_484 = arith.constant 2 : index
    %c2_485 = arith.constant 2 : index
    %c0_486 = arith.constant 0 : index
    %c0_487 = arith.constant 0 : index
    %732 = vector.load %arg5[%c2_484, %c2_485, %c0_486, %c0_487] : memref<4x3x8x16xf32, #tpu.memory_space<vmem>>, vector<1x1x8x16xf32>
    %733 = vector.shape_cast %732 : vector<1x1x8x16xf32> to vector<8x16xf32>
    %734 = arith.addf %614, %733 : vector<8x16xf32>
    %735 = arith.addf %734, %723 : vector<8x16xf32>
    %c2_488 = arith.constant 2 : index
    %c0_489 = arith.constant 0 : index
    %c0_490 = arith.constant 0 : index
    %736 = vector.load %arg6[%c2_488, %c0_489, %c0_490] : memref<4x8x16xf32, #tpu.memory_space<vmem>>, vector<1x8x16xf32>
    %737 = vector.shape_cast %736 : vector<1x8x16xf32> to vector<8x16xf32>
    %738 = arith.mulf %727, %737 : vector<8x16xf32>
    %cst_491 = arith.constant dense<0.000000e+00> : vector<8xf32>
    %739 = vector.multi_reduction <add>, %738, %cst_491 [1] : vector<8x16xf32> to vector<8xf32>
    %740 = vector.shape_cast %739 : vector<8xf32> to vector<8x1xf32>
    %cst_492 = arith.constant dense<0.000000e+00> : vector<1xf32>
    %741 = vector.multi_reduction <add>, %740, %cst_492 [0] : vector<8x1xf32> to vector<1xf32>
    %742 = vector.shape_cast %741 : vector<1xf32> to vector<1x1xf32>
    %c2_493 = arith.constant 2 : index
    %c0_494 = arith.constant 0 : index
    %c0_495 = arith.constant 0 : index
    %743 = vector.load %arg7[%c2_493, %c0_494, %c0_495] : memref<4x1x1xf32, #tpu.memory_space<vmem>>, vector<1x1x1xf32>
    %744 = vector.shape_cast %743 : vector<1x1x1xf32> to vector<1x1xf32>
    %745 = arith.addf %742, %744 : vector<1x1xf32>
    %746 = arith.mulf %731, %737 : vector<8x16xf32>
    %cst_496 = arith.constant dense<0.000000e+00> : vector<8xf32>
    %747 = vector.multi_reduction <add>, %746, %cst_496 [1] : vector<8x16xf32> to vector<8xf32>
    %748 = vector.shape_cast %747 : vector<8xf32> to vector<8x1xf32>
    %cst_497 = arith.constant dense<0.000000e+00> : vector<1xf32>
    %749 = vector.multi_reduction <add>, %748, %cst_497 [0] : vector<8x1xf32> to vector<1xf32>
    %750 = vector.shape_cast %749 : vector<1xf32> to vector<1x1xf32>
    %c2_498 = arith.constant 2 : index
    %c0_499 = arith.constant 0 : index
    %c0_500 = arith.constant 0 : index
    %751 = vector.load %arg7[%c2_498, %c0_499, %c0_500] : memref<4x1x1xf32, #tpu.memory_space<vmem>>, vector<1x1x1xf32>
    %752 = vector.shape_cast %751 : vector<1x1x1xf32> to vector<1x1xf32>
    %753 = arith.addf %750, %752 : vector<1x1xf32>
    %754 = arith.mulf %735, %737 : vector<8x16xf32>
    %cst_501 = arith.constant dense<0.000000e+00> : vector<8xf32>
    %755 = vector.multi_reduction <add>, %754, %cst_501 [1] : vector<8x16xf32> to vector<8xf32>
    %756 = vector.shape_cast %755 : vector<8xf32> to vector<8x1xf32>
    %cst_502 = arith.constant dense<0.000000e+00> : vector<1xf32>
    %757 = vector.multi_reduction <add>, %756, %cst_502 [0] : vector<8x1xf32> to vector<1xf32>
    %758 = vector.shape_cast %757 : vector<1xf32> to vector<1x1xf32>
    %c2_503 = arith.constant 2 : index
    %c0_504 = arith.constant 0 : index
    %c0_505 = arith.constant 0 : index
    %759 = vector.load %arg7[%c2_503, %c0_504, %c0_505] : memref<4x1x1xf32, #tpu.memory_space<vmem>>, vector<1x1x1xf32>
    %760 = vector.shape_cast %759 : vector<1x1x1xf32> to vector<1x1xf32>
    %761 = arith.addf %758, %760 : vector<1x1xf32>
    %762 = arith.maximumf %745, %753 : vector<1x1xf32>
    %763 = arith.maximumf %762, %761 : vector<1x1xf32>
    %764 = arith.subf %745, %763 : vector<1x1xf32>
    %765 = math.exp %764 : vector<1x1xf32>
    %766 = arith.subf %753, %763 : vector<1x1xf32>
    %767 = math.exp %766 : vector<1x1xf32>
    %768 = arith.subf %761, %763 : vector<1x1xf32>
    %769 = math.exp %768 : vector<1x1xf32>
    %770 = arith.addf %765, %767 : vector<1x1xf32>
    %771 = arith.addf %770, %769 : vector<1x1xf32>
    %cst_506 = arith.constant 1.000000e+00 : f32
    %772 = vector.broadcast %cst_506 : f32 to vector<1x1xf32>
    %773 = arith.divf %772, %771 : vector<1x1xf32>
    %774 = arith.mulf %765, %773 : vector<1x1xf32>
    %775 = vector.broadcast %774 : vector<1x1xf32> to vector<8x16xf32>
    %776 = arith.mulf %727, %775 : vector<8x16xf32>
    %777 = arith.mulf %767, %773 : vector<1x1xf32>
    %778 = vector.broadcast %777 : vector<1x1xf32> to vector<8x16xf32>
    %779 = arith.mulf %731, %778 : vector<8x16xf32>
    %780 = arith.addf %776, %779 : vector<8x16xf32>
    %781 = arith.mulf %769, %773 : vector<1x1xf32>
    %782 = vector.broadcast %781 : vector<1x1xf32> to vector<8x16xf32>
    %783 = arith.mulf %735, %782 : vector<8x16xf32>
    %784 = arith.addf %780, %783 : vector<8x16xf32>
    %785 = tpu.concatenate %784, %698, %525 in 1 : vector<8x16xf32>, vector<8x16xf32>, vector<8x16xf32> -> vector<8x48xf32>
    %c3_507 = arith.constant 3 : index
    %c0_508 = arith.constant 0 : index
    %c0_509 = arith.constant 0 : index
    %c0_510 = arith.constant 0 : index
    %786 = vector.load %arg3[%c3_507, %c0_508, %c0_509, %c0_510] : memref<4x3x48x16xf32, #tpu.memory_space<vmem>>, vector<1x1x48x16xf32>
    %787 = vector.shape_cast %786 : vector<1x1x48x16xf32> to vector<48x16xf32>
    %cst_511 = arith.constant dense<0.000000e+00> : vector<8x16xf32>
    %788 = tpu.matmul %785, %787, %cst_511 {dimension_numbers = #tpu.dot_dimension_numbers<[1], [0], [0], [1], [0, 0, 1, 1], [], []>} : vector<8x48xf32>, vector<48x16xf32>, vector<8x16xf32> -> vector<8x16xf32>
    %cst_512 = arith.constant dense<0.000000e+00> : vector<8x48xf32>
    %789 = tpu.matmul %1, %785, %cst_512 {dimension_numbers = #tpu.dot_dimension_numbers<[1], [0], [0], [1], [0, 0, 1, 1], [], []>} : vector<8x8xf32>, vector<8x48xf32>, vector<8x48xf32> -> vector<8x48xf32>
    %c3_513 = arith.constant 3 : index
    %c1_514 = arith.constant 1 : index
    %c0_515 = arith.constant 0 : index
    %c0_516 = arith.constant 0 : index
    %790 = vector.load %arg3[%c3_513, %c1_514, %c0_515, %c0_516] : memref<4x3x48x16xf32, #tpu.memory_space<vmem>>, vector<1x1x48x16xf32>
    %791 = vector.shape_cast %790 : vector<1x1x48x16xf32> to vector<48x16xf32>
    %cst_517 = arith.constant dense<0.000000e+00> : vector<8x16xf32>
    %792 = tpu.matmul %789, %791, %cst_517 {dimension_numbers = #tpu.dot_dimension_numbers<[1], [0], [0], [1], [0, 0, 1, 1], [], []>} : vector<8x48xf32>, vector<48x16xf32>, vector<8x16xf32> -> vector<8x16xf32>
    %793 = arith.addf %788, %792 : vector<8x16xf32>
    %cst_518 = arith.constant dense<0.000000e+00> : vector<8x48xf32>
    %794 = tpu.matmul %3, %785, %cst_518 {dimension_numbers = #tpu.dot_dimension_numbers<[1], [0], [0], [1], [0, 0, 1, 1], [], []>} : vector<8x8xf32>, vector<8x48xf32>, vector<8x48xf32> -> vector<8x48xf32>
    %c3_519 = arith.constant 3 : index
    %c2_520 = arith.constant 2 : index
    %c0_521 = arith.constant 0 : index
    %c0_522 = arith.constant 0 : index
    %795 = vector.load %arg3[%c3_519, %c2_520, %c0_521, %c0_522] : memref<4x3x48x16xf32, #tpu.memory_space<vmem>>, vector<1x1x48x16xf32>
    %796 = vector.shape_cast %795 : vector<1x1x48x16xf32> to vector<48x16xf32>
    %cst_523 = arith.constant dense<0.000000e+00> : vector<8x16xf32>
    %797 = tpu.matmul %794, %796, %cst_523 {dimension_numbers = #tpu.dot_dimension_numbers<[1], [0], [0], [1], [0, 0, 1, 1], [], []>} : vector<8x48xf32>, vector<48x16xf32>, vector<8x16xf32> -> vector<8x16xf32>
    %798 = arith.addf %793, %797 : vector<8x16xf32>
    %c3_524 = arith.constant 3 : index
    %c0_525 = arith.constant 0 : index
    %c0_526 = arith.constant 0 : index
    %799 = vector.load %arg4[%c3_524, %c0_525, %c0_526] : memref<4x1x16xf32, #tpu.memory_space<vmem>>, vector<1x1x16xf32>
    %800 = vector.shape_cast %799 : vector<1x1x16xf32> to vector<1x16xf32>
    %801 = vector.broadcast %800 : vector<1x16xf32> to vector<8x16xf32>
    %802 = arith.addf %798, %801 : vector<8x16xf32>
    %cst_527 = arith.constant 0.000000e+00 : f32
    %803 = vector.broadcast %cst_527 : f32 to vector<8x16xf32>
    %804 = arith.cmpf ogt, %802, %803 : vector<8x16xf32>
    %cst_528 = arith.constant 0.00999999977 : f32
    %805 = vector.broadcast %cst_528 : f32 to vector<8x16xf32>
    %806 = arith.mulf %805, %802 : vector<8x16xf32>
    %807 = arith.select %804, %802, %806 : vector<8x16xi1>, vector<8x16xf32>
    %c3_529 = arith.constant 3 : index
    %c0_530 = arith.constant 0 : index
    %c0_531 = arith.constant 0 : index
    %c0_532 = arith.constant 0 : index
    %808 = vector.load %arg5[%c3_529, %c0_530, %c0_531, %c0_532] : memref<4x3x8x16xf32, #tpu.memory_space<vmem>>, vector<1x1x8x16xf32>
    %809 = vector.shape_cast %808 : vector<1x1x8x16xf32> to vector<8x16xf32>
    %810 = arith.addf %352, %809 : vector<8x16xf32>
    %811 = arith.addf %810, %807 : vector<8x16xf32>
    %c3_533 = arith.constant 3 : index
    %c1_534 = arith.constant 1 : index
    %c0_535 = arith.constant 0 : index
    %c0_536 = arith.constant 0 : index
    %812 = vector.load %arg5[%c3_533, %c1_534, %c0_535, %c0_536] : memref<4x3x8x16xf32, #tpu.memory_space<vmem>>, vector<1x1x8x16xf32>
    %813 = vector.shape_cast %812 : vector<1x1x8x16xf32> to vector<8x16xf32>
    %814 = arith.addf %525, %813 : vector<8x16xf32>
    %815 = arith.addf %814, %807 : vector<8x16xf32>
    %c3_537 = arith.constant 3 : index
    %c2_538 = arith.constant 2 : index
    %c0_539 = arith.constant 0 : index
    %c0_540 = arith.constant 0 : index
    %816 = vector.load %arg5[%c3_537, %c2_538, %c0_539, %c0_540] : memref<4x3x8x16xf32, #tpu.memory_space<vmem>>, vector<1x1x8x16xf32>
    %817 = vector.shape_cast %816 : vector<1x1x8x16xf32> to vector<8x16xf32>
    %818 = arith.addf %698, %817 : vector<8x16xf32>
    %819 = arith.addf %818, %807 : vector<8x16xf32>
    %c3_541 = arith.constant 3 : index
    %c0_542 = arith.constant 0 : index
    %c0_543 = arith.constant 0 : index
    %820 = vector.load %arg6[%c3_541, %c0_542, %c0_543] : memref<4x8x16xf32, #tpu.memory_space<vmem>>, vector<1x8x16xf32>
    %821 = vector.shape_cast %820 : vector<1x8x16xf32> to vector<8x16xf32>
    %822 = arith.mulf %811, %821 : vector<8x16xf32>
    %cst_544 = arith.constant dense<0.000000e+00> : vector<8xf32>
    %823 = vector.multi_reduction <add>, %822, %cst_544 [1] : vector<8x16xf32> to vector<8xf32>
    %824 = vector.shape_cast %823 : vector<8xf32> to vector<8x1xf32>
    %cst_545 = arith.constant dense<0.000000e+00> : vector<1xf32>
    %825 = vector.multi_reduction <add>, %824, %cst_545 [0] : vector<8x1xf32> to vector<1xf32>
    %826 = vector.shape_cast %825 : vector<1xf32> to vector<1x1xf32>
    %c3_546 = arith.constant 3 : index
    %c0_547 = arith.constant 0 : index
    %c0_548 = arith.constant 0 : index
    %827 = vector.load %arg7[%c3_546, %c0_547, %c0_548] : memref<4x1x1xf32, #tpu.memory_space<vmem>>, vector<1x1x1xf32>
    %828 = vector.shape_cast %827 : vector<1x1x1xf32> to vector<1x1xf32>
    %829 = arith.addf %826, %828 : vector<1x1xf32>
    %830 = arith.mulf %815, %821 : vector<8x16xf32>
    %cst_549 = arith.constant dense<0.000000e+00> : vector<8xf32>
    %831 = vector.multi_reduction <add>, %830, %cst_549 [1] : vector<8x16xf32> to vector<8xf32>
    %832 = vector.shape_cast %831 : vector<8xf32> to vector<8x1xf32>
    %cst_550 = arith.constant dense<0.000000e+00> : vector<1xf32>
    %833 = vector.multi_reduction <add>, %832, %cst_550 [0] : vector<8x1xf32> to vector<1xf32>
    %834 = vector.shape_cast %833 : vector<1xf32> to vector<1x1xf32>
    %c3_551 = arith.constant 3 : index
    %c0_552 = arith.constant 0 : index
    %c0_553 = arith.constant 0 : index
    %835 = vector.load %arg7[%c3_551, %c0_552, %c0_553] : memref<4x1x1xf32, #tpu.memory_space<vmem>>, vector<1x1x1xf32>
    %836 = vector.shape_cast %835 : vector<1x1x1xf32> to vector<1x1xf32>
    %837 = arith.addf %834, %836 : vector<1x1xf32>
    %838 = arith.mulf %819, %821 : vector<8x16xf32>
    %cst_554 = arith.constant dense<0.000000e+00> : vector<8xf32>
    %839 = vector.multi_reduction <add>, %838, %cst_554 [1] : vector<8x16xf32> to vector<8xf32>
    %840 = vector.shape_cast %839 : vector<8xf32> to vector<8x1xf32>
    %cst_555 = arith.constant dense<0.000000e+00> : vector<1xf32>
    %841 = vector.multi_reduction <add>, %840, %cst_555 [0] : vector<8x1xf32> to vector<1xf32>
    %842 = vector.shape_cast %841 : vector<1xf32> to vector<1x1xf32>
    %c3_556 = arith.constant 3 : index
    %c0_557 = arith.constant 0 : index
    %c0_558 = arith.constant 0 : index
    %843 = vector.load %arg7[%c3_556, %c0_557, %c0_558] : memref<4x1x1xf32, #tpu.memory_space<vmem>>, vector<1x1x1xf32>
    %844 = vector.shape_cast %843 : vector<1x1x1xf32> to vector<1x1xf32>
    %845 = arith.addf %842, %844 : vector<1x1xf32>
    %846 = arith.maximumf %829, %837 : vector<1x1xf32>
    %847 = arith.maximumf %846, %845 : vector<1x1xf32>
    %848 = arith.subf %829, %847 : vector<1x1xf32>
    %849 = math.exp %848 : vector<1x1xf32>
    %850 = arith.subf %837, %847 : vector<1x1xf32>
    %851 = math.exp %850 : vector<1x1xf32>
    %852 = arith.subf %845, %847 : vector<1x1xf32>
    %853 = math.exp %852 : vector<1x1xf32>
    %854 = arith.addf %849, %851 : vector<1x1xf32>
    %855 = arith.addf %854, %853 : vector<1x1xf32>
    %cst_559 = arith.constant 1.000000e+00 : f32
    %856 = vector.broadcast %cst_559 : f32 to vector<1x1xf32>
    %857 = arith.divf %856, %855 : vector<1x1xf32>
    %858 = arith.mulf %849, %857 : vector<1x1xf32>
    %859 = vector.broadcast %858 : vector<1x1xf32> to vector<8x16xf32>
    %860 = arith.mulf %811, %859 : vector<8x16xf32>
    %861 = arith.mulf %851, %857 : vector<1x1xf32>
    %862 = vector.broadcast %861 : vector<1x1xf32> to vector<8x16xf32>
    %863 = arith.mulf %815, %862 : vector<8x16xf32>
    %864 = arith.addf %860, %863 : vector<8x16xf32>
    %865 = arith.mulf %853, %857 : vector<1x1xf32>
    %866 = vector.broadcast %865 : vector<1x1xf32> to vector<8x16xf32>
    %867 = arith.mulf %819, %866 : vector<8x16xf32>
    %868 = arith.addf %864, %867 : vector<8x16xf32>
    %cst_560 = arith.constant dense<0.000000e+00> : vector<8x1xf32>
    %869 = tpu.matmul %868, %699, %cst_560 {dimension_numbers = #tpu.dot_dimension_numbers<[1], [0], [0], [1], [0, 0, 1, 1], [], []>} : vector<8x16xf32>, vector<16x1xf32>, vector<8x1xf32> -> vector<8x1xf32>
    %870 = vector.broadcast %700 : vector<1x1xf32> to vector<8x1xf32>
    %871 = arith.addf %869, %870 : vector<8x1xf32>
    %c0_561 = arith.constant 0 : index
    %c0_562 = arith.constant 0 : index
    %c0_563 = arith.constant 0 : index
    %c0_564 = arith.constant 0 : index
    %872 = vector.load %arg12[%c0_561, %c0_562, %c0_563, %c0_564] : memref<1x4x8x1xf32, #tpu.memory_space<vmem>>, vector<1x1x8x1xf32>
    %873 = vector.shape_cast %872 : vector<1x1x8x1xf32> to vector<8x1xf32>
    %874 = vector.shape_cast %871 : vector<8x1xf32> to vector<1x1x8x1xf32>
    tpu.vector_store %arg12[%c0_561, %c0_562, %c0_563, %c0_564], %874 {strides = array<i32>} : memref<1x4x8x1xf32, #tpu.memory_space<vmem>>, vector<1x1x8x1xf32>,
    %875 = tpu.concatenate %352, %784, %614 in 1 : vector<8x16xf32>, vector<8x16xf32>, vector<8x16xf32> -> vector<8x48xf32>
    %c2_565 = arith.constant 2 : index
    %c0_566 = arith.constant 0 : index
    %c0_567 = arith.constant 0 : index
    %c0_568 = arith.constant 0 : index
    %876 = vector.load %arg3[%c2_565, %c0_566, %c0_567, %c0_568] : memref<4x3x48x16xf32, #tpu.memory_space<vmem>>, vector<1x1x48x16xf32>
    %877 = vector.shape_cast %876 : vector<1x1x48x16xf32> to vector<48x16xf32>
    %cst_569 = arith.constant dense<0.000000e+00> : vector<8x16xf32>
    %878 = tpu.matmul %875, %877, %cst_569 {dimension_numbers = #tpu.dot_dimension_numbers<[1], [0], [0], [1], [0, 0, 1, 1], [], []>} : vector<8x48xf32>, vector<48x16xf32>, vector<8x16xf32> -> vector<8x16xf32>
    %cst_570 = arith.constant dense<0.000000e+00> : vector<8x48xf32>
    %879 = tpu.matmul %1, %875, %cst_570 {dimension_numbers = #tpu.dot_dimension_numbers<[1], [0], [0], [1], [0, 0, 1, 1], [], []>} : vector<8x8xf32>, vector<8x48xf32>, vector<8x48xf32> -> vector<8x48xf32>
    %c2_571 = arith.constant 2 : index
    %c1_572 = arith.constant 1 : index
    %c0_573 = arith.constant 0 : index
    %c0_574 = arith.constant 0 : index
    %880 = vector.load %arg3[%c2_571, %c1_572, %c0_573, %c0_574] : memref<4x3x48x16xf32, #tpu.memory_space<vmem>>, vector<1x1x48x16xf32>
    %881 = vector.shape_cast %880 : vector<1x1x48x16xf32> to vector<48x16xf32>
    %cst_575 = arith.constant dense<0.000000e+00> : vector<8x16xf32>
    %882 = tpu.matmul %879, %881, %cst_575 {dimension_numbers = #tpu.dot_dimension_numbers<[1], [0], [0], [1], [0, 0, 1, 1], [], []>} : vector<8x48xf32>, vector<48x16xf32>, vector<8x16xf32> -> vector<8x16xf32>
    %883 = arith.addf %878, %882 : vector<8x16xf32>
    %cst_576 = arith.constant dense<0.000000e+00> : vector<8x48xf32>
    %884 = tpu.matmul %3, %875, %cst_576 {dimension_numbers = #tpu.dot_dimension_numbers<[1], [0], [0], [1], [0, 0, 1, 1], [], []>} : vector<8x8xf32>, vector<8x48xf32>, vector<8x48xf32> -> vector<8x48xf32>
    %c2_577 = arith.constant 2 : index
    %c2_578 = arith.constant 2 : index
    %c0_579 = arith.constant 0 : index
    %c0_580 = arith.constant 0 : index
    %885 = vector.load %arg3[%c2_577, %c2_578, %c0_579, %c0_580] : memref<4x3x48x16xf32, #tpu.memory_space<vmem>>, vector<1x1x48x16xf32>
    %886 = vector.shape_cast %885 : vector<1x1x48x16xf32> to vector<48x16xf32>
    %cst_581 = arith.constant dense<0.000000e+00> : vector<8x16xf32>
    %887 = tpu.matmul %884, %886, %cst_581 {dimension_numbers = #tpu.dot_dimension_numbers<[1], [0], [0], [1], [0, 0, 1, 1], [], []>} : vector<8x48xf32>, vector<48x16xf32>, vector<8x16xf32> -> vector<8x16xf32>
    %888 = arith.addf %883, %887 : vector<8x16xf32>
    %c2_582 = arith.constant 2 : index
    %c0_583 = arith.constant 0 : index
    %c0_584 = arith.constant 0 : index
    %889 = vector.load %arg4[%c2_582, %c0_583, %c0_584] : memref<4x1x16xf32, #tpu.memory_space<vmem>>, vector<1x1x16xf32>
    %890 = vector.shape_cast %889 : vector<1x1x16xf32> to vector<1x16xf32>
    %891 = vector.broadcast %890 : vector<1x16xf32> to vector<8x16xf32>
    %892 = arith.addf %888, %891 : vector<8x16xf32>
    %cst_585 = arith.constant 0.000000e+00 : f32
    %893 = vector.broadcast %cst_585 : f32 to vector<8x16xf32>
    %894 = arith.cmpf ogt, %892, %893 : vector<8x16xf32>
    %cst_586 = arith.constant 0.00999999977 : f32
    %895 = vector.broadcast %cst_586 : f32 to vector<8x16xf32>
    %896 = arith.mulf %895, %892 : vector<8x16xf32>
    %897 = arith.select %894, %892, %896 : vector<8x16xi1>, vector<8x16xf32>
    %c2_587 = arith.constant 2 : index
    %c0_588 = arith.constant 0 : index
    %c0_589 = arith.constant 0 : index
    %c0_590 = arith.constant 0 : index
    %898 = vector.load %arg5[%c2_587, %c0_588, %c0_589, %c0_590] : memref<4x3x8x16xf32, #tpu.memory_space<vmem>>, vector<1x1x8x16xf32>
    %899 = vector.shape_cast %898 : vector<1x1x8x16xf32> to vector<8x16xf32>
    %900 = arith.addf %441, %899 : vector<8x16xf32>
    %901 = arith.addf %900, %897 : vector<8x16xf32>
    %c2_591 = arith.constant 2 : index
    %c1_592 = arith.constant 1 : index
    %c0_593 = arith.constant 0 : index
    %c0_594 = arith.constant 0 : index
    %902 = vector.load %arg5[%c2_591, %c1_592, %c0_593, %c0_594] : memref<4x3x8x16xf32, #tpu.memory_space<vmem>>, vector<1x1x8x16xf32>
    %903 = vector.shape_cast %902 : vector<1x1x8x16xf32> to vector<8x16xf32>
    %904 = arith.addf %614, %903 : vector<8x16xf32>
    %905 = arith.addf %904, %897 : vector<8x16xf32>
    %c2_595 = arith.constant 2 : index
    %c2_596 = arith.constant 2 : index
    %c0_597 = arith.constant 0 : index
    %c0_598 = arith.constant 0 : index
    %906 = vector.load %arg5[%c2_595, %c2_596, %c0_597, %c0_598] : memref<4x3x8x16xf32, #tpu.memory_space<vmem>>, vector<1x1x8x16xf32>
    %907 = vector.shape_cast %906 : vector<1x1x8x16xf32> to vector<8x16xf32>
    %908 = arith.addf %784, %907 : vector<8x16xf32>
    %909 = arith.addf %908, %897 : vector<8x16xf32>
    %c2_599 = arith.constant 2 : index
    %c0_600 = arith.constant 0 : index
    %c0_601 = arith.constant 0 : index
    %910 = vector.load %arg6[%c2_599, %c0_600, %c0_601] : memref<4x8x16xf32, #tpu.memory_space<vmem>>, vector<1x8x16xf32>
    %911 = vector.shape_cast %910 : vector<1x8x16xf32> to vector<8x16xf32>
    %912 = arith.mulf %901, %911 : vector<8x16xf32>
    %cst_602 = arith.constant dense<0.000000e+00> : vector<8xf32>
    %913 = vector.multi_reduction <add>, %912, %cst_602 [1] : vector<8x16xf32> to vector<8xf32>
    %914 = vector.shape_cast %913 : vector<8xf32> to vector<8x1xf32>
    %cst_603 = arith.constant dense<0.000000e+00> : vector<1xf32>
    %915 = vector.multi_reduction <add>, %914, %cst_603 [0] : vector<8x1xf32> to vector<1xf32>
    %916 = vector.shape_cast %915 : vector<1xf32> to vector<1x1xf32>
    %c2_604 = arith.constant 2 : index
    %c0_605 = arith.constant 0 : index
    %c0_606 = arith.constant 0 : index
    %917 = vector.load %arg7[%c2_604, %c0_605, %c0_606] : memref<4x1x1xf32, #tpu.memory_space<vmem>>, vector<1x1x1xf32>
    %918 = vector.shape_cast %917 : vector<1x1x1xf32> to vector<1x1xf32>
    %919 = arith.addf %916, %918 : vector<1x1xf32>
    %920 = arith.mulf %905, %911 : vector<8x16xf32>
    %cst_607 = arith.constant dense<0.000000e+00> : vector<8xf32>
    %921 = vector.multi_reduction <add>, %920, %cst_607 [1] : vector<8x16xf32> to vector<8xf32>
    %922 = vector.shape_cast %921 : vector<8xf32> to vector<8x1xf32>
    %cst_608 = arith.constant dense<0.000000e+00> : vector<1xf32>
    %923 = vector.multi_reduction <add>, %922, %cst_608 [0] : vector<8x1xf32> to vector<1xf32>
    %924 = vector.shape_cast %923 : vector<1xf32> to vector<1x1xf32>
    %c2_609 = arith.constant 2 : index
    %c0_610 = arith.constant 0 : index
    %c0_611 = arith.constant 0 : index
    %925 = vector.load %arg7[%c2_609, %c0_610, %c0_611] : memref<4x1x1xf32, #tpu.memory_space<vmem>>, vector<1x1x1xf32>
    %926 = vector.shape_cast %925 : vector<1x1x1xf32> to vector<1x1xf32>
    %927 = arith.addf %924, %926 : vector<1x1xf32>
    %928 = arith.mulf %909, %911 : vector<8x16xf32>
    %cst_612 = arith.constant dense<0.000000e+00> : vector<8xf32>
    %929 = vector.multi_reduction <add>, %928, %cst_612 [1] : vector<8x16xf32> to vector<8xf32>
    %930 = vector.shape_cast %929 : vector<8xf32> to vector<8x1xf32>
    %cst_613 = arith.constant dense<0.000000e+00> : vector<1xf32>
    %931 = vector.multi_reduction <add>, %930, %cst_613 [0] : vector<8x1xf32> to vector<1xf32>
    %932 = vector.shape_cast %931 : vector<1xf32> to vector<1x1xf32>
    %c2_614 = arith.constant 2 : index
    %c0_615 = arith.constant 0 : index
    %c0_616 = arith.constant 0 : index
    %933 = vector.load %arg7[%c2_614, %c0_615, %c0_616] : memref<4x1x1xf32, #tpu.memory_space<vmem>>, vector<1x1x1xf32>
    %934 = vector.shape_cast %933 : vector<1x1x1xf32> to vector<1x1xf32>
    %935 = arith.addf %932, %934 : vector<1x1xf32>
    %936 = arith.maximumf %919, %927 : vector<1x1xf32>
    %937 = arith.maximumf %936, %935 : vector<1x1xf32>
    %938 = arith.subf %919, %937 : vector<1x1xf32>
    %939 = math.exp %938 : vector<1x1xf32>
    %940 = arith.subf %927, %937 : vector<1x1xf32>
    %941 = math.exp %940 : vector<1x1xf32>
    %942 = arith.subf %935, %937 : vector<1x1xf32>
    %943 = math.exp %942 : vector<1x1xf32>
    %944 = arith.addf %939, %941 : vector<1x1xf32>
    %945 = arith.addf %944, %943 : vector<1x1xf32>
    %cst_617 = arith.constant 1.000000e+00 : f32
    %946 = vector.broadcast %cst_617 : f32 to vector<1x1xf32>
    %947 = arith.divf %946, %945 : vector<1x1xf32>
    %948 = arith.mulf %939, %947 : vector<1x1xf32>
    %949 = vector.broadcast %948 : vector<1x1xf32> to vector<8x16xf32>
    %950 = arith.mulf %901, %949 : vector<8x16xf32>
    %951 = arith.mulf %941, %947 : vector<1x1xf32>
    %952 = vector.broadcast %951 : vector<1x1xf32> to vector<8x16xf32>
    %953 = arith.mulf %905, %952 : vector<8x16xf32>
    %954 = arith.addf %950, %953 : vector<8x16xf32>
    %955 = arith.mulf %943, %947 : vector<1x1xf32>
    %956 = vector.broadcast %955 : vector<1x1xf32> to vector<8x16xf32>
    %957 = arith.mulf %909, %956 : vector<8x16xf32>
    %958 = arith.addf %954, %957 : vector<8x16xf32>
    %959 = tpu.concatenate %958, %868, %698 in 1 : vector<8x16xf32>, vector<8x16xf32>, vector<8x16xf32> -> vector<8x48xf32>
    %c3_618 = arith.constant 3 : index
    %c0_619 = arith.constant 0 : index
    %c0_620 = arith.constant 0 : index
    %c0_621 = arith.constant 0 : index
    %960 = vector.load %arg3[%c3_618, %c0_619, %c0_620, %c0_621] : memref<4x3x48x16xf32, #tpu.memory_space<vmem>>, vector<1x1x48x16xf32>
    %961 = vector.shape_cast %960 : vector<1x1x48x16xf32> to vector<48x16xf32>
    %cst_622 = arith.constant dense<0.000000e+00> : vector<8x16xf32>
    %962 = tpu.matmul %959, %961, %cst_622 {dimension_numbers = #tpu.dot_dimension_numbers<[1], [0], [0], [1], [0, 0, 1, 1], [], []>} : vector<8x48xf32>, vector<48x16xf32>, vector<8x16xf32> -> vector<8x16xf32>
    %cst_623 = arith.constant dense<0.000000e+00> : vector<8x48xf32>
    %963 = tpu.matmul %1, %959, %cst_623 {dimension_numbers = #tpu.dot_dimension_numbers<[1], [0], [0], [1], [0, 0, 1, 1], [], []>} : vector<8x8xf32>, vector<8x48xf32>, vector<8x48xf32> -> vector<8x48xf32>
    %c3_624 = arith.constant 3 : index
    %c1_625 = arith.constant 1 : index
    %c0_626 = arith.constant 0 : index
    %c0_627 = arith.constant 0 : index
    %964 = vector.load %arg3[%c3_624, %c1_625, %c0_626, %c0_627] : memref<4x3x48x16xf32, #tpu.memory_space<vmem>>, vector<1x1x48x16xf32>
    %965 = vector.shape_cast %964 : vector<1x1x48x16xf32> to vector<48x16xf32>
    %cst_628 = arith.constant dense<0.000000e+00> : vector<8x16xf32>
    %966 = tpu.matmul %963, %965, %cst_628 {dimension_numbers = #tpu.dot_dimension_numbers<[1], [0], [0], [1], [0, 0, 1, 1], [], []>} : vector<8x48xf32>, vector<48x16xf32>, vector<8x16xf32> -> vector<8x16xf32>
    %967 = arith.addf %962, %966 : vector<8x16xf32>
    %cst_629 = arith.constant dense<0.000000e+00> : vector<8x48xf32>
    %968 = tpu.matmul %3, %959, %cst_629 {dimension_numbers = #tpu.dot_dimension_numbers<[1], [0], [0], [1], [0, 0, 1, 1], [], []>} : vector<8x8xf32>, vector<8x48xf32>, vector<8x48xf32> -> vector<8x48xf32>
    %c3_630 = arith.constant 3 : index
    %c2_631 = arith.constant 2 : index
    %c0_632 = arith.constant 0 : index
    %c0_633 = arith.constant 0 : index
    %969 = vector.load %arg3[%c3_630, %c2_631, %c0_632, %c0_633] : memref<4x3x48x16xf32, #tpu.memory_space<vmem>>, vector<1x1x48x16xf32>
    %970 = vector.shape_cast %969 : vector<1x1x48x16xf32> to vector<48x16xf32>
    %cst_634 = arith.constant dense<0.000000e+00> : vector<8x16xf32>
    %971 = tpu.matmul %968, %970, %cst_634 {dimension_numbers = #tpu.dot_dimension_numbers<[1], [0], [0], [1], [0, 0, 1, 1], [], []>} : vector<8x48xf32>, vector<48x16xf32>, vector<8x16xf32> -> vector<8x16xf32>
    %972 = arith.addf %967, %971 : vector<8x16xf32>
    %c3_635 = arith.constant 3 : index
    %c0_636 = arith.constant 0 : index
    %c0_637 = arith.constant 0 : index
    %973 = vector.load %arg4[%c3_635, %c0_636, %c0_637] : memref<4x1x16xf32, #tpu.memory_space<vmem>>, vector<1x1x16xf32>
    %974 = vector.shape_cast %973 : vector<1x1x16xf32> to vector<1x16xf32>
    %975 = vector.broadcast %974 : vector<1x16xf32> to vector<8x16xf32>
    %976 = arith.addf %972, %975 : vector<8x16xf32>
    %cst_638 = arith.constant 0.000000e+00 : f32
    %977 = vector.broadcast %cst_638 : f32 to vector<8x16xf32>
    %978 = arith.cmpf ogt, %976, %977 : vector<8x16xf32>
    %cst_639 = arith.constant 0.00999999977 : f32
    %979 = vector.broadcast %cst_639 : f32 to vector<8x16xf32>
    %980 = arith.mulf %979, %976 : vector<8x16xf32>
    %981 = arith.select %978, %976, %980 : vector<8x16xi1>, vector<8x16xf32>
    %c3_640 = arith.constant 3 : index
    %c0_641 = arith.constant 0 : index
    %c0_642 = arith.constant 0 : index
    %c0_643 = arith.constant 0 : index
    %982 = vector.load %arg5[%c3_640, %c0_641, %c0_642, %c0_643] : memref<4x3x8x16xf32, #tpu.memory_space<vmem>>, vector<1x1x8x16xf32>
    %983 = vector.shape_cast %982 : vector<1x1x8x16xf32> to vector<8x16xf32>
    %984 = arith.addf %525, %983 : vector<8x16xf32>
    %985 = arith.addf %984, %981 : vector<8x16xf32>
    %c3_644 = arith.constant 3 : index
    %c1_645 = arith.constant 1 : index
    %c0_646 = arith.constant 0 : index
    %c0_647 = arith.constant 0 : index
    %986 = vector.load %arg5[%c3_644, %c1_645, %c0_646, %c0_647] : memref<4x3x8x16xf32, #tpu.memory_space<vmem>>, vector<1x1x8x16xf32>
    %987 = vector.shape_cast %986 : vector<1x1x8x16xf32> to vector<8x16xf32>
    %988 = arith.addf %698, %987 : vector<8x16xf32>
    %989 = arith.addf %988, %981 : vector<8x16xf32>
    %c3_648 = arith.constant 3 : index
    %c2_649 = arith.constant 2 : index
    %c0_650 = arith.constant 0 : index
    %c0_651 = arith.constant 0 : index
    %990 = vector.load %arg5[%c3_648, %c2_649, %c0_650, %c0_651] : memref<4x3x8x16xf32, #tpu.memory_space<vmem>>, vector<1x1x8x16xf32>
    %991 = vector.shape_cast %990 : vector<1x1x8x16xf32> to vector<8x16xf32>
    %992 = arith.addf %868, %991 : vector<8x16xf32>
    %993 = arith.addf %992, %981 : vector<8x16xf32>
    %c3_652 = arith.constant 3 : index
    %c0_653 = arith.constant 0 : index
    %c0_654 = arith.constant 0 : index
    %994 = vector.load %arg6[%c3_652, %c0_653, %c0_654] : memref<4x8x16xf32, #tpu.memory_space<vmem>>, vector<1x8x16xf32>
    %995 = vector.shape_cast %994 : vector<1x8x16xf32> to vector<8x16xf32>
    %996 = arith.mulf %985, %995 : vector<8x16xf32>
    %cst_655 = arith.constant dense<0.000000e+00> : vector<8xf32>
    %997 = vector.multi_reduction <add>, %996, %cst_655 [1] : vector<8x16xf32> to vector<8xf32>
    %998 = vector.shape_cast %997 : vector<8xf32> to vector<8x1xf32>
    %cst_656 = arith.constant dense<0.000000e+00> : vector<1xf32>
    %999 = vector.multi_reduction <add>, %998, %cst_656 [0] : vector<8x1xf32> to vector<1xf32>
    %1000 = vector.shape_cast %999 : vector<1xf32> to vector<1x1xf32>
    %c3_657 = arith.constant 3 : index
    %c0_658 = arith.constant 0 : index
    %c0_659 = arith.constant 0 : index
    %1001 = vector.load %arg7[%c3_657, %c0_658, %c0_659] : memref<4x1x1xf32, #tpu.memory_space<vmem>>, vector<1x1x1xf32>
    %1002 = vector.shape_cast %1001 : vector<1x1x1xf32> to vector<1x1xf32>
    %1003 = arith.addf %1000, %1002 : vector<1x1xf32>
    %1004 = arith.mulf %989, %995 : vector<8x16xf32>
    %cst_660 = arith.constant dense<0.000000e+00> : vector<8xf32>
    %1005 = vector.multi_reduction <add>, %1004, %cst_660 [1] : vector<8x16xf32> to vector<8xf32>
    %1006 = vector.shape_cast %1005 : vector<8xf32> to vector<8x1xf32>
    %cst_661 = arith.constant dense<0.000000e+00> : vector<1xf32>
    %1007 = vector.multi_reduction <add>, %1006, %cst_661 [0] : vector<8x1xf32> to vector<1xf32>
    %1008 = vector.shape_cast %1007 : vector<1xf32> to vector<1x1xf32>
    %c3_662 = arith.constant 3 : index
    %c0_663 = arith.constant 0 : index
    %c0_664 = arith.constant 0 : index
    %1009 = vector.load %arg7[%c3_662, %c0_663, %c0_664] : memref<4x1x1xf32, #tpu.memory_space<vmem>>, vector<1x1x1xf32>
    %1010 = vector.shape_cast %1009 : vector<1x1x1xf32> to vector<1x1xf32>
    %1011 = arith.addf %1008, %1010 : vector<1x1xf32>
    %1012 = arith.mulf %993, %995 : vector<8x16xf32>
    %cst_665 = arith.constant dense<0.000000e+00> : vector<8xf32>
    %1013 = vector.multi_reduction <add>, %1012, %cst_665 [1] : vector<8x16xf32> to vector<8xf32>
    %1014 = vector.shape_cast %1013 : vector<8xf32> to vector<8x1xf32>
    %cst_666 = arith.constant dense<0.000000e+00> : vector<1xf32>
    %1015 = vector.multi_reduction <add>, %1014, %cst_666 [0] : vector<8x1xf32> to vector<1xf32>
    %1016 = vector.shape_cast %1015 : vector<1xf32> to vector<1x1xf32>
    %c3_667 = arith.constant 3 : index
    %c0_668 = arith.constant 0 : index
    %c0_669 = arith.constant 0 : index
    %1017 = vector.load %arg7[%c3_667, %c0_668, %c0_669] : memref<4x1x1xf32, #tpu.memory_space<vmem>>, vector<1x1x1xf32>
    %1018 = vector.shape_cast %1017 : vector<1x1x1xf32> to vector<1x1xf32>
    %1019 = arith.addf %1016, %1018 : vector<1x1xf32>
    %1020 = arith.maximumf %1003, %1011 : vector<1x1xf32>
    %1021 = arith.maximumf %1020, %1019 : vector<1x1xf32>
    %1022 = arith.subf %1003, %1021 : vector<1x1xf32>
    %1023 = math.exp %1022 : vector<1x1xf32>
    %1024 = arith.subf %1011, %1021 : vector<1x1xf32>
    %1025 = math.exp %1024 : vector<1x1xf32>
    %1026 = arith.subf %1019, %1021 : vector<1x1xf32>
    %1027 = math.exp %1026 : vector<1x1xf32>
    %1028 = arith.addf %1023, %1025 : vector<1x1xf32>
    %1029 = arith.addf %1028, %1027 : vector<1x1xf32>
    %cst_670 = arith.constant 1.000000e+00 : f32
    %1030 = vector.broadcast %cst_670 : f32 to vector<1x1xf32>
    %1031 = arith.divf %1030, %1029 : vector<1x1xf32>
    %1032 = arith.mulf %1023, %1031 : vector<1x1xf32>
    %1033 = vector.broadcast %1032 : vector<1x1xf32> to vector<8x16xf32>
    %1034 = arith.mulf %985, %1033 : vector<8x16xf32>
    %1035 = arith.mulf %1025, %1031 : vector<1x1xf32>
    %1036 = vector.broadcast %1035 : vector<1x1xf32> to vector<8x16xf32>
    %1037 = arith.mulf %989, %1036 : vector<8x16xf32>
    %1038 = arith.addf %1034, %1037 : vector<8x16xf32>
    %1039 = arith.mulf %1027, %1031 : vector<1x1xf32>
    %1040 = vector.broadcast %1039 : vector<1x1xf32> to vector<8x16xf32>
    %1041 = arith.mulf %993, %1040 : vector<8x16xf32>
    %1042 = arith.addf %1038, %1041 : vector<8x16xf32>
    %cst_671 = arith.constant dense<0.000000e+00> : vector<8x1xf32>
    %1043 = tpu.matmul %1042, %699, %cst_671 {dimension_numbers = #tpu.dot_dimension_numbers<[1], [0], [0], [1], [0, 0, 1, 1], [], []>} : vector<8x16xf32>, vector<16x1xf32>, vector<8x1xf32> -> vector<8x1xf32>
    %1044 = vector.broadcast %700 : vector<1x1xf32> to vector<8x1xf32>
    %1045 = arith.addf %1043, %1044 : vector<8x1xf32>
    %c0_672 = arith.constant 0 : index
    %c1_673 = arith.constant 1 : index
    %c0_674 = arith.constant 0 : index
    %c0_675 = arith.constant 0 : index
    %1046 = vector.load %arg12[%c0_672, %c1_673, %c0_674, %c0_675] : memref<1x4x8x1xf32, #tpu.memory_space<vmem>>, vector<1x1x8x1xf32>
    %1047 = vector.shape_cast %1046 : vector<1x1x8x1xf32> to vector<8x1xf32>
    %1048 = vector.shape_cast %1045 : vector<8x1xf32> to vector<1x1x8x1xf32>
    tpu.vector_store %arg12[%c0_672, %c1_673, %c0_674, %c0_675], %1048 {strides = array<i32>} : memref<1x4x8x1xf32, #tpu.memory_space<vmem>>, vector<1x1x8x1xf32>,
    %1049 = tpu.concatenate %525, %958, %784 in 1 : vector<8x16xf32>, vector<8x16xf32>, vector<8x16xf32> -> vector<8x48xf32>
    %c2_676 = arith.constant 2 : index
    %c0_677 = arith.constant 0 : index
    %c0_678 = arith.constant 0 : index
    %c0_679 = arith.constant 0 : index
    %1050 = vector.load %arg3[%c2_676, %c0_677, %c0_678, %c0_679] : memref<4x3x48x16xf32, #tpu.memory_space<vmem>>, vector<1x1x48x16xf32>
    %1051 = vector.shape_cast %1050 : vector<1x1x48x16xf32> to vector<48x16xf32>
    %cst_680 = arith.constant dense<0.000000e+00> : vector<8x16xf32>
    %1052 = tpu.matmul %1049, %1051, %cst_680 {dimension_numbers = #tpu.dot_dimension_numbers<[1], [0], [0], [1], [0, 0, 1, 1], [], []>} : vector<8x48xf32>, vector<48x16xf32>, vector<8x16xf32> -> vector<8x16xf32>
    %cst_681 = arith.constant dense<0.000000e+00> : vector<8x48xf32>
    %1053 = tpu.matmul %1, %1049, %cst_681 {dimension_numbers = #tpu.dot_dimension_numbers<[1], [0], [0], [1], [0, 0, 1, 1], [], []>} : vector<8x8xf32>, vector<8x48xf32>, vector<8x48xf32> -> vector<8x48xf32>
    %c2_682 = arith.constant 2 : index
    %c1_683 = arith.constant 1 : index
    %c0_684 = arith.constant 0 : index
    %c0_685 = arith.constant 0 : index
    %1054 = vector.load %arg3[%c2_682, %c1_683, %c0_684, %c0_685] : memref<4x3x48x16xf32, #tpu.memory_space<vmem>>, vector<1x1x48x16xf32>
    %1055 = vector.shape_cast %1054 : vector<1x1x48x16xf32> to vector<48x16xf32>
    %cst_686 = arith.constant dense<0.000000e+00> : vector<8x16xf32>
    %1056 = tpu.matmul %1053, %1055, %cst_686 {dimension_numbers = #tpu.dot_dimension_numbers<[1], [0], [0], [1], [0, 0, 1, 1], [], []>} : vector<8x48xf32>, vector<48x16xf32>, vector<8x16xf32> -> vector<8x16xf32>
    %1057 = arith.addf %1052, %1056 : vector<8x16xf32>
    %cst_687 = arith.constant dense<0.000000e+00> : vector<8x48xf32>
    %1058 = tpu.matmul %3, %1049, %cst_687 {dimension_numbers = #tpu.dot_dimension_numbers<[1], [0], [0], [1], [0, 0, 1, 1], [], []>} : vector<8x8xf32>, vector<8x48xf32>, vector<8x48xf32> -> vector<8x48xf32>
    %c2_688 = arith.constant 2 : index
    %c2_689 = arith.constant 2 : index
    %c0_690 = arith.constant 0 : index
    %c0_691 = arith.constant 0 : index
    %1059 = vector.load %arg3[%c2_688, %c2_689, %c0_690, %c0_691] : memref<4x3x48x16xf32, #tpu.memory_space<vmem>>, vector<1x1x48x16xf32>
    %1060 = vector.shape_cast %1059 : vector<1x1x48x16xf32> to vector<48x16xf32>
    %cst_692 = arith.constant dense<0.000000e+00> : vector<8x16xf32>
    %1061 = tpu.matmul %1058, %1060, %cst_692 {dimension_numbers = #tpu.dot_dimension_numbers<[1], [0], [0], [1], [0, 0, 1, 1], [], []>} : vector<8x48xf32>, vector<48x16xf32>, vector<8x16xf32> -> vector<8x16xf32>
    %1062 = arith.addf %1057, %1061 : vector<8x16xf32>
    %c2_693 = arith.constant 2 : index
    %c0_694 = arith.constant 0 : index
    %c0_695 = arith.constant 0 : index
    %1063 = vector.load %arg4[%c2_693, %c0_694, %c0_695] : memref<4x1x16xf32, #tpu.memory_space<vmem>>, vector<1x1x16xf32>
    %1064 = vector.shape_cast %1063 : vector<1x1x16xf32> to vector<1x16xf32>
    %1065 = vector.broadcast %1064 : vector<1x16xf32> to vector<8x16xf32>
    %1066 = arith.addf %1062, %1065 : vector<8x16xf32>
    %cst_696 = arith.constant 0.000000e+00 : f32
    %1067 = vector.broadcast %cst_696 : f32 to vector<8x16xf32>
    %1068 = arith.cmpf ogt, %1066, %1067 : vector<8x16xf32>
    %cst_697 = arith.constant 0.00999999977 : f32
    %1069 = vector.broadcast %cst_697 : f32 to vector<8x16xf32>
    %1070 = arith.mulf %1069, %1066 : vector<8x16xf32>
    %1071 = arith.select %1068, %1066, %1070 : vector<8x16xi1>, vector<8x16xf32>
    %c2_698 = arith.constant 2 : index
    %c0_699 = arith.constant 0 : index
    %c0_700 = arith.constant 0 : index
    %c0_701 = arith.constant 0 : index
    %1072 = vector.load %arg5[%c2_698, %c0_699, %c0_700, %c0_701] : memref<4x3x8x16xf32, #tpu.memory_space<vmem>>, vector<1x1x8x16xf32>
    %1073 = vector.shape_cast %1072 : vector<1x1x8x16xf32> to vector<8x16xf32>
    %1074 = arith.addf %614, %1073 : vector<8x16xf32>
    %1075 = arith.addf %1074, %1071 : vector<8x16xf32>
    %c2_702 = arith.constant 2 : index
    %c1_703 = arith.constant 1 : index
    %c0_704 = arith.constant 0 : index
    %c0_705 = arith.constant 0 : index
    %1076 = vector.load %arg5[%c2_702, %c1_703, %c0_704, %c0_705] : memref<4x3x8x16xf32, #tpu.memory_space<vmem>>, vector<1x1x8x16xf32>
    %1077 = vector.shape_cast %1076 : vector<1x1x8x16xf32> to vector<8x16xf32>
    %1078 = arith.addf %784, %1077 : vector<8x16xf32>
    %1079 = arith.addf %1078, %1071 : vector<8x16xf32>
    %c2_706 = arith.constant 2 : index
    %c2_707 = arith.constant 2 : index
    %c0_708 = arith.constant 0 : index
    %c0_709 = arith.constant 0 : index
    %1080 = vector.load %arg5[%c2_706, %c2_707, %c0_708, %c0_709] : memref<4x3x8x16xf32, #tpu.memory_space<vmem>>, vector<1x1x8x16xf32>
    %1081 = vector.shape_cast %1080 : vector<1x1x8x16xf32> to vector<8x16xf32>
    %1082 = arith.addf %958, %1081 : vector<8x16xf32>
    %1083 = arith.addf %1082, %1071 : vector<8x16xf32>
    %c2_710 = arith.constant 2 : index
    %c0_711 = arith.constant 0 : index
    %c0_712 = arith.constant 0 : index
    %1084 = vector.load %arg6[%c2_710, %c0_711, %c0_712] : memref<4x8x16xf32, #tpu.memory_space<vmem>>, vector<1x8x16xf32>
    %1085 = vector.shape_cast %1084 : vector<1x8x16xf32> to vector<8x16xf32>
    %1086 = arith.mulf %1075, %1085 : vector<8x16xf32>
    %cst_713 = arith.constant dense<0.000000e+00> : vector<8xf32>
    %1087 = vector.multi_reduction <add>, %1086, %cst_713 [1] : vector<8x16xf32> to vector<8xf32>
    %1088 = vector.shape_cast %1087 : vector<8xf32> to vector<8x1xf32>
    %cst_714 = arith.constant dense<0.000000e+00> : vector<1xf32>
    %1089 = vector.multi_reduction <add>, %1088, %cst_714 [0] : vector<8x1xf32> to vector<1xf32>
    %1090 = vector.shape_cast %1089 : vector<1xf32> to vector<1x1xf32>
    %c2_715 = arith.constant 2 : index
    %c0_716 = arith.constant 0 : index
    %c0_717 = arith.constant 0 : index
    %1091 = vector.load %arg7[%c2_715, %c0_716, %c0_717] : memref<4x1x1xf32, #tpu.memory_space<vmem>>, vector<1x1x1xf32>
    %1092 = vector.shape_cast %1091 : vector<1x1x1xf32> to vector<1x1xf32>
    %1093 = arith.addf %1090, %1092 : vector<1x1xf32>
    %1094 = arith.mulf %1079, %1085 : vector<8x16xf32>
    %cst_718 = arith.constant dense<0.000000e+00> : vector<8xf32>
    %1095 = vector.multi_reduction <add>, %1094, %cst_718 [1] : vector<8x16xf32> to vector<8xf32>
    %1096 = vector.shape_cast %1095 : vector<8xf32> to vector<8x1xf32>
    %cst_719 = arith.constant dense<0.000000e+00> : vector<1xf32>
    %1097 = vector.multi_reduction <add>, %1096, %cst_719 [0] : vector<8x1xf32> to vector<1xf32>
    %1098 = vector.shape_cast %1097 : vector<1xf32> to vector<1x1xf32>
    %c2_720 = arith.constant 2 : index
    %c0_721 = arith.constant 0 : index
    %c0_722 = arith.constant 0 : index
    %1099 = vector.load %arg7[%c2_720, %c0_721, %c0_722] : memref<4x1x1xf32, #tpu.memory_space<vmem>>, vector<1x1x1xf32>
    %1100 = vector.shape_cast %1099 : vector<1x1x1xf32> to vector<1x1xf32>
    %1101 = arith.addf %1098, %1100 : vector<1x1xf32>
    %1102 = arith.mulf %1083, %1085 : vector<8x16xf32>
    %cst_723 = arith.constant dense<0.000000e+00> : vector<8xf32>
    %1103 = vector.multi_reduction <add>, %1102, %cst_723 [1] : vector<8x16xf32> to vector<8xf32>
    %1104 = vector.shape_cast %1103 : vector<8xf32> to vector<8x1xf32>
    %cst_724 = arith.constant dense<0.000000e+00> : vector<1xf32>
    %1105 = vector.multi_reduction <add>, %1104, %cst_724 [0] : vector<8x1xf32> to vector<1xf32>
    %1106 = vector.shape_cast %1105 : vector<1xf32> to vector<1x1xf32>
    %c2_725 = arith.constant 2 : index
    %c0_726 = arith.constant 0 : index
    %c0_727 = arith.constant 0 : index
    %1107 = vector.load %arg7[%c2_725, %c0_726, %c0_727] : memref<4x1x1xf32, #tpu.memory_space<vmem>>, vector<1x1x1xf32>
    %1108 = vector.shape_cast %1107 : vector<1x1x1xf32> to vector<1x1xf32>
    %1109 = arith.addf %1106, %1108 : vector<1x1xf32>
    %1110 = arith.maximumf %1093, %1101 : vector<1x1xf32>
    %1111 = arith.maximumf %1110, %1109 : vector<1x1xf32>
    %1112 = arith.subf %1093, %1111 : vector<1x1xf32>
    %1113 = math.exp %1112 : vector<1x1xf32>
    %1114 = arith.subf %1101, %1111 : vector<1x1xf32>
    %1115 = math.exp %1114 : vector<1x1xf32>
    %1116 = arith.subf %1109, %1111 : vector<1x1xf32>
    %1117 = math.exp %1116 : vector<1x1xf32>
    %1118 = arith.addf %1113, %1115 : vector<1x1xf32>
    %1119 = arith.addf %1118, %1117 : vector<1x1xf32>
    %cst_728 = arith.constant 1.000000e+00 : f32
    %1120 = vector.broadcast %cst_728 : f32 to vector<1x1xf32>
    %1121 = arith.divf %1120, %1119 : vector<1x1xf32>
    %1122 = arith.mulf %1113, %1121 : vector<1x1xf32>
    %1123 = vector.broadcast %1122 : vector<1x1xf32> to vector<8x16xf32>
    %1124 = arith.mulf %1075, %1123 : vector<8x16xf32>
    %1125 = arith.mulf %1115, %1121 : vector<1x1xf32>
    %1126 = vector.broadcast %1125 : vector<1x1xf32> to vector<8x16xf32>
    %1127 = arith.mulf %1079, %1126 : vector<8x16xf32>
    %1128 = arith.addf %1124, %1127 : vector<8x16xf32>
    %1129 = arith.mulf %1117, %1121 : vector<1x1xf32>
    %1130 = vector.broadcast %1129 : vector<1x1xf32> to vector<8x16xf32>
    %1131 = arith.mulf %1083, %1130 : vector<8x16xf32>
    %1132 = arith.addf %1128, %1131 : vector<8x16xf32>
    %1133 = tpu.concatenate %1132, %1042, %868 in 1 : vector<8x16xf32>, vector<8x16xf32>, vector<8x16xf32> -> vector<8x48xf32>
    %c3_729 = arith.constant 3 : index
    %c0_730 = arith.constant 0 : index
    %c0_731 = arith.constant 0 : index
    %c0_732 = arith.constant 0 : index
    %1134 = vector.load %arg3[%c3_729, %c0_730, %c0_731, %c0_732] : memref<4x3x48x16xf32, #tpu.memory_space<vmem>>, vector<1x1x48x16xf32>
    %1135 = vector.shape_cast %1134 : vector<1x1x48x16xf32> to vector<48x16xf32>
    %cst_733 = arith.constant dense<0.000000e+00> : vector<8x16xf32>
    %1136 = tpu.matmul %1133, %1135, %cst_733 {dimension_numbers = #tpu.dot_dimension_numbers<[1], [0], [0], [1], [0, 0, 1, 1], [], []>} : vector<8x48xf32>, vector<48x16xf32>, vector<8x16xf32> -> vector<8x16xf32>
    %cst_734 = arith.constant dense<0.000000e+00> : vector<8x48xf32>
    %1137 = tpu.matmul %1, %1133, %cst_734 {dimension_numbers = #tpu.dot_dimension_numbers<[1], [0], [0], [1], [0, 0, 1, 1], [], []>} : vector<8x8xf32>, vector<8x48xf32>, vector<8x48xf32> -> vector<8x48xf32>
    %c3_735 = arith.constant 3 : index
    %c1_736 = arith.constant 1 : index
    %c0_737 = arith.constant 0 : index
    %c0_738 = arith.constant 0 : index
    %1138 = vector.load %arg3[%c3_735, %c1_736, %c0_737, %c0_738] : memref<4x3x48x16xf32, #tpu.memory_space<vmem>>, vector<1x1x48x16xf32>
    %1139 = vector.shape_cast %1138 : vector<1x1x48x16xf32> to vector<48x16xf32>
    %cst_739 = arith.constant dense<0.000000e+00> : vector<8x16xf32>
    %1140 = tpu.matmul %1137, %1139, %cst_739 {dimension_numbers = #tpu.dot_dimension_numbers<[1], [0], [0], [1], [0, 0, 1, 1], [], []>} : vector<8x48xf32>, vector<48x16xf32>, vector<8x16xf32> -> vector<8x16xf32>
    %1141 = arith.addf %1136, %1140 : vector<8x16xf32>
    %cst_740 = arith.constant dense<0.000000e+00> : vector<8x48xf32>
    %1142 = tpu.matmul %3, %1133, %cst_740 {dimension_numbers = #tpu.dot_dimension_numbers<[1], [0], [0], [1], [0, 0, 1, 1], [], []>} : vector<8x8xf32>, vector<8x48xf32>, vector<8x48xf32> -> vector<8x48xf32>
    %c3_741 = arith.constant 3 : index
    %c2_742 = arith.constant 2 : index
    %c0_743 = arith.constant 0 : index
    %c0_744 = arith.constant 0 : index
    %1143 = vector.load %arg3[%c3_741, %c2_742, %c0_743, %c0_744] : memref<4x3x48x16xf32, #tpu.memory_space<vmem>>, vector<1x1x48x16xf32>
    %1144 = vector.shape_cast %1143 : vector<1x1x48x16xf32> to vector<48x16xf32>
    %cst_745 = arith.constant dense<0.000000e+00> : vector<8x16xf32>
    %1145 = tpu.matmul %1142, %1144, %cst_745 {dimension_numbers = #tpu.dot_dimension_numbers<[1], [0], [0], [1], [0, 0, 1, 1], [], []>} : vector<8x48xf32>, vector<48x16xf32>, vector<8x16xf32> -> vector<8x16xf32>
    %1146 = arith.addf %1141, %1145 : vector<8x16xf32>
    %c3_746 = arith.constant 3 : index
    %c0_747 = arith.constant 0 : index
    %c0_748 = arith.constant 0 : index
    %1147 = vector.load %arg4[%c3_746, %c0_747, %c0_748] : memref<4x1x16xf32, #tpu.memory_space<vmem>>, vector<1x1x16xf32>
    %1148 = vector.shape_cast %1147 : vector<1x1x16xf32> to vector<1x16xf32>
    %1149 = vector.broadcast %1148 : vector<1x16xf32> to vector<8x16xf32>
    %1150 = arith.addf %1146, %1149 : vector<8x16xf32>
    %cst_749 = arith.constant 0.000000e+00 : f32
    %1151 = vector.broadcast %cst_749 : f32 to vector<8x16xf32>
    %1152 = arith.cmpf ogt, %1150, %1151 : vector<8x16xf32>
    %cst_750 = arith.constant 0.00999999977 : f32
    %1153 = vector.broadcast %cst_750 : f32 to vector<8x16xf32>
    %1154 = arith.mulf %1153, %1150 : vector<8x16xf32>
    %1155 = arith.select %1152, %1150, %1154 : vector<8x16xi1>, vector<8x16xf32>
    %c3_751 = arith.constant 3 : index
    %c0_752 = arith.constant 0 : index
    %c0_753 = arith.constant 0 : index
    %c0_754 = arith.constant 0 : index
    %1156 = vector.load %arg5[%c3_751, %c0_752, %c0_753, %c0_754] : memref<4x3x8x16xf32, #tpu.memory_space<vmem>>, vector<1x1x8x16xf32>
    %1157 = vector.shape_cast %1156 : vector<1x1x8x16xf32> to vector<8x16xf32>
    %1158 = arith.addf %698, %1157 : vector<8x16xf32>
    %1159 = arith.addf %1158, %1155 : vector<8x16xf32>
    %c3_755 = arith.constant 3 : index
    %c1_756 = arith.constant 1 : index
    %c0_757 = arith.constant 0 : index
    %c0_758 = arith.constant 0 : index
    %1160 = vector.load %arg5[%c3_755, %c1_756, %c0_757, %c0_758] : memref<4x3x8x16xf32, #tpu.memory_space<vmem>>, vector<1x1x8x16xf32>
    %1161 = vector.shape_cast %1160 : vector<1x1x8x16xf32> to vector<8x16xf32>
    %1162 = arith.addf %868, %1161 : vector<8x16xf32>
    %1163 = arith.addf %1162, %1155 : vector<8x16xf32>
    %c3_759 = arith.constant 3 : index
    %c2_760 = arith.constant 2 : index
    %c0_761 = arith.constant 0 : index
    %c0_762 = arith.constant 0 : index
    %1164 = vector.load %arg5[%c3_759, %c2_760, %c0_761, %c0_762] : memref<4x3x8x16xf32, #tpu.memory_space<vmem>>, vector<1x1x8x16xf32>
    %1165 = vector.shape_cast %1164 : vector<1x1x8x16xf32> to vector<8x16xf32>
    %1166 = arith.addf %1042, %1165 : vector<8x16xf32>
    %1167 = arith.addf %1166, %1155 : vector<8x16xf32>
    %c3_763 = arith.constant 3 : index
    %c0_764 = arith.constant 0 : index
    %c0_765 = arith.constant 0 : index
    %1168 = vector.load %arg6[%c3_763, %c0_764, %c0_765] : memref<4x8x16xf32, #tpu.memory_space<vmem>>, vector<1x8x16xf32>
    %1169 = vector.shape_cast %1168 : vector<1x8x16xf32> to vector<8x16xf32>
    %1170 = arith.mulf %1159, %1169 : vector<8x16xf32>
    %cst_766 = arith.constant dense<0.000000e+00> : vector<8xf32>
    %1171 = vector.multi_reduction <add>, %1170, %cst_766 [1] : vector<8x16xf32> to vector<8xf32>
    %1172 = vector.shape_cast %1171 : vector<8xf32> to vector<8x1xf32>
    %cst_767 = arith.constant dense<0.000000e+00> : vector<1xf32>
    %1173 = vector.multi_reduction <add>, %1172, %cst_767 [0] : vector<8x1xf32> to vector<1xf32>
    %1174 = vector.shape_cast %1173 : vector<1xf32> to vector<1x1xf32>
    %c3_768 = arith.constant 3 : index
    %c0_769 = arith.constant 0 : index
    %c0_770 = arith.constant 0 : index
    %1175 = vector.load %arg7[%c3_768, %c0_769, %c0_770] : memref<4x1x1xf32, #tpu.memory_space<vmem>>, vector<1x1x1xf32>
    %1176 = vector.shape_cast %1175 : vector<1x1x1xf32> to vector<1x1xf32>
    %1177 = arith.addf %1174, %1176 : vector<1x1xf32>
    %1178 = arith.mulf %1163, %1169 : vector<8x16xf32>
    %cst_771 = arith.constant dense<0.000000e+00> : vector<8xf32>
    %1179 = vector.multi_reduction <add>, %1178, %cst_771 [1] : vector<8x16xf32> to vector<8xf32>
    %1180 = vector.shape_cast %1179 : vector<8xf32> to vector<8x1xf32>
    %cst_772 = arith.constant dense<0.000000e+00> : vector<1xf32>
    %1181 = vector.multi_reduction <add>, %1180, %cst_772 [0] : vector<8x1xf32> to vector<1xf32>
    %1182 = vector.shape_cast %1181 : vector<1xf32> to vector<1x1xf32>
    %c3_773 = arith.constant 3 : index
    %c0_774 = arith.constant 0 : index
    %c0_775 = arith.constant 0 : index
    %1183 = vector.load %arg7[%c3_773, %c0_774, %c0_775] : memref<4x1x1xf32, #tpu.memory_space<vmem>>, vector<1x1x1xf32>
    %1184 = vector.shape_cast %1183 : vector<1x1x1xf32> to vector<1x1xf32>
    %1185 = arith.addf %1182, %1184 : vector<1x1xf32>
    %1186 = arith.mulf %1167, %1169 : vector<8x16xf32>
    %cst_776 = arith.constant dense<0.000000e+00> : vector<8xf32>
    %1187 = vector.multi_reduction <add>, %1186, %cst_776 [1] : vector<8x16xf32> to vector<8xf32>
    %1188 = vector.shape_cast %1187 : vector<8xf32> to vector<8x1xf32>
    %cst_777 = arith.constant dense<0.000000e+00> : vector<1xf32>
    %1189 = vector.multi_reduction <add>, %1188, %cst_777 [0] : vector<8x1xf32> to vector<1xf32>
    %1190 = vector.shape_cast %1189 : vector<1xf32> to vector<1x1xf32>
    %c3_778 = arith.constant 3 : index
    %c0_779 = arith.constant 0 : index
    %c0_780 = arith.constant 0 : index
    %1191 = vector.load %arg7[%c3_778, %c0_779, %c0_780] : memref<4x1x1xf32, #tpu.memory_space<vmem>>, vector<1x1x1xf32>
    %1192 = vector.shape_cast %1191 : vector<1x1x1xf32> to vector<1x1xf32>
    %1193 = arith.addf %1190, %1192 : vector<1x1xf32>
    %1194 = arith.maximumf %1177, %1185 : vector<1x1xf32>
    %1195 = arith.maximumf %1194, %1193 : vector<1x1xf32>
    %1196 = arith.subf %1177, %1195 : vector<1x1xf32>
    %1197 = math.exp %1196 : vector<1x1xf32>
    %1198 = arith.subf %1185, %1195 : vector<1x1xf32>
    %1199 = math.exp %1198 : vector<1x1xf32>
    %1200 = arith.subf %1193, %1195 : vector<1x1xf32>
    %1201 = math.exp %1200 : vector<1x1xf32>
    %1202 = arith.addf %1197, %1199 : vector<1x1xf32>
    %1203 = arith.addf %1202, %1201 : vector<1x1xf32>
    %cst_781 = arith.constant 1.000000e+00 : f32
    %1204 = vector.broadcast %cst_781 : f32 to vector<1x1xf32>
    %1205 = arith.divf %1204, %1203 : vector<1x1xf32>
    %1206 = arith.mulf %1197, %1205 : vector<1x1xf32>
    %1207 = vector.broadcast %1206 : vector<1x1xf32> to vector<8x16xf32>
    %1208 = arith.mulf %1159, %1207 : vector<8x16xf32>
    %1209 = arith.mulf %1199, %1205 : vector<1x1xf32>
    %1210 = vector.broadcast %1209 : vector<1x1xf32> to vector<8x16xf32>
    %1211 = arith.mulf %1163, %1210 : vector<8x16xf32>
    %1212 = arith.addf %1208, %1211 : vector<8x16xf32>
    %1213 = arith.mulf %1201, %1205 : vector<1x1xf32>
    %1214 = vector.broadcast %1213 : vector<1x1xf32> to vector<8x16xf32>
    %1215 = arith.mulf %1167, %1214 : vector<8x16xf32>
    %1216 = arith.addf %1212, %1215 : vector<8x16xf32>
    %cst_782 = arith.constant dense<0.000000e+00> : vector<8x1xf32>
    %1217 = tpu.matmul %1216, %699, %cst_782 {dimension_numbers = #tpu.dot_dimension_numbers<[1], [0], [0], [1], [0, 0, 1, 1], [], []>} : vector<8x16xf32>, vector<16x1xf32>, vector<8x1xf32> -> vector<8x1xf32>
    %1218 = vector.broadcast %700 : vector<1x1xf32> to vector<8x1xf32>
    %1219 = arith.addf %1217, %1218 : vector<8x1xf32>
    %c0_783 = arith.constant 0 : index
    %c2_784 = arith.constant 2 : index
    %c0_785 = arith.constant 0 : index
    %c0_786 = arith.constant 0 : index
    %1220 = vector.load %arg12[%c0_783, %c2_784, %c0_785, %c0_786] : memref<1x4x8x1xf32, #tpu.memory_space<vmem>>, vector<1x1x8x1xf32>
    %1221 = vector.shape_cast %1220 : vector<1x1x8x1xf32> to vector<8x1xf32>
    %1222 = vector.shape_cast %1219 : vector<8x1xf32> to vector<1x1x8x1xf32>
    tpu.vector_store %arg12[%c0_783, %c2_784, %c0_785, %c0_786], %1222 {strides = array<i32>} : memref<1x4x8x1xf32, #tpu.memory_space<vmem>>, vector<1x1x8x1xf32>,
    %1223 = tpu.concatenate %698, %1132, %958 in 1 : vector<8x16xf32>, vector<8x16xf32>, vector<8x16xf32> -> vector<8x48xf32>
    %c2_787 = arith.constant 2 : index
    %c0_788 = arith.constant 0 : index
    %c0_789 = arith.constant 0 : index
    %c0_790 = arith.constant 0 : index
    %1224 = vector.load %arg3[%c2_787, %c0_788, %c0_789, %c0_790] : memref<4x3x48x16xf32, #tpu.memory_space<vmem>>, vector<1x1x48x16xf32>
    %1225 = vector.shape_cast %1224 : vector<1x1x48x16xf32> to vector<48x16xf32>
    %cst_791 = arith.constant dense<0.000000e+00> : vector<8x16xf32>
    %1226 = tpu.matmul %1223, %1225, %cst_791 {dimension_numbers = #tpu.dot_dimension_numbers<[1], [0], [0], [1], [0, 0, 1, 1], [], []>} : vector<8x48xf32>, vector<48x16xf32>, vector<8x16xf32> -> vector<8x16xf32>
    %cst_792 = arith.constant dense<0.000000e+00> : vector<8x48xf32>
    %1227 = tpu.matmul %1, %1223, %cst_792 {dimension_numbers = #tpu.dot_dimension_numbers<[1], [0], [0], [1], [0, 0, 1, 1], [], []>} : vector<8x8xf32>, vector<8x48xf32>, vector<8x48xf32> -> vector<8x48xf32>
    %c2_793 = arith.constant 2 : index
    %c1_794 = arith.constant 1 : index
    %c0_795 = arith.constant 0 : index
    %c0_796 = arith.constant 0 : index
    %1228 = vector.load %arg3[%c2_793, %c1_794, %c0_795, %c0_796] : memref<4x3x48x16xf32, #tpu.memory_space<vmem>>, vector<1x1x48x16xf32>
    %1229 = vector.shape_cast %1228 : vector<1x1x48x16xf32> to vector<48x16xf32>
    %cst_797 = arith.constant dense<0.000000e+00> : vector<8x16xf32>
    %1230 = tpu.matmul %1227, %1229, %cst_797 {dimension_numbers = #tpu.dot_dimension_numbers<[1], [0], [0], [1], [0, 0, 1, 1], [], []>} : vector<8x48xf32>, vector<48x16xf32>, vector<8x16xf32> -> vector<8x16xf32>
    %1231 = arith.addf %1226, %1230 : vector<8x16xf32>
    %cst_798 = arith.constant dense<0.000000e+00> : vector<8x48xf32>
    %1232 = tpu.matmul %3, %1223, %cst_798 {dimension_numbers = #tpu.dot_dimension_numbers<[1], [0], [0], [1], [0, 0, 1, 1], [], []>} : vector<8x8xf32>, vector<8x48xf32>, vector<8x48xf32> -> vector<8x48xf32>
    %c2_799 = arith.constant 2 : index
    %c2_800 = arith.constant 2 : index
    %c0_801 = arith.constant 0 : index
    %c0_802 = arith.constant 0 : index
    %1233 = vector.load %arg3[%c2_799, %c2_800, %c0_801, %c0_802] : memref<4x3x48x16xf32, #tpu.memory_space<vmem>>, vector<1x1x48x16xf32>
    %1234 = vector.shape_cast %1233 : vector<1x1x48x16xf32> to vector<48x16xf32>
    %cst_803 = arith.constant dense<0.000000e+00> : vector<8x16xf32>
    %1235 = tpu.matmul %1232, %1234, %cst_803 {dimension_numbers = #tpu.dot_dimension_numbers<[1], [0], [0], [1], [0, 0, 1, 1], [], []>} : vector<8x48xf32>, vector<48x16xf32>, vector<8x16xf32> -> vector<8x16xf32>
    %1236 = arith.addf %1231, %1235 : vector<8x16xf32>
    %c2_804 = arith.constant 2 : index
    %c0_805 = arith.constant 0 : index
    %c0_806 = arith.constant 0 : index
    %1237 = vector.load %arg4[%c2_804, %c0_805, %c0_806] : memref<4x1x16xf32, #tpu.memory_space<vmem>>, vector<1x1x16xf32>
    %1238 = vector.shape_cast %1237 : vector<1x1x16xf32> to vector<1x16xf32>
    %1239 = vector.broadcast %1238 : vector<1x16xf32> to vector<8x16xf32>
    %1240 = arith.addf %1236, %1239 : vector<8x16xf32>
    %cst_807 = arith.constant 0.000000e+00 : f32
    %1241 = vector.broadcast %cst_807 : f32 to vector<8x16xf32>
    %1242 = arith.cmpf ogt, %1240, %1241 : vector<8x16xf32>
    %cst_808 = arith.constant 0.00999999977 : f32
    %1243 = vector.broadcast %cst_808 : f32 to vector<8x16xf32>
    %1244 = arith.mulf %1243, %1240 : vector<8x16xf32>
    %1245 = arith.select %1242, %1240, %1244 : vector<8x16xi1>, vector<8x16xf32>
    %c2_809 = arith.constant 2 : index
    %c0_810 = arith.constant 0 : index
    %c0_811 = arith.constant 0 : index
    %c0_812 = arith.constant 0 : index
    %1246 = vector.load %arg5[%c2_809, %c0_810, %c0_811, %c0_812] : memref<4x3x8x16xf32, #tpu.memory_space<vmem>>, vector<1x1x8x16xf32>
    %1247 = vector.shape_cast %1246 : vector<1x1x8x16xf32> to vector<8x16xf32>
    %1248 = arith.addf %784, %1247 : vector<8x16xf32>
    %1249 = arith.addf %1248, %1245 : vector<8x16xf32>
    %c2_813 = arith.constant 2 : index
    %c1_814 = arith.constant 1 : index
    %c0_815 = arith.constant 0 : index
    %c0_816 = arith.constant 0 : index
    %1250 = vector.load %arg5[%c2_813, %c1_814, %c0_815, %c0_816] : memref<4x3x8x16xf32, #tpu.memory_space<vmem>>, vector<1x1x8x16xf32>
    %1251 = vector.shape_cast %1250 : vector<1x1x8x16xf32> to vector<8x16xf32>
    %1252 = arith.addf %958, %1251 : vector<8x16xf32>
    %1253 = arith.addf %1252, %1245 : vector<8x16xf32>
    %c2_817 = arith.constant 2 : index
    %c2_818 = arith.constant 2 : index
    %c0_819 = arith.constant 0 : index
    %c0_820 = arith.constant 0 : index
    %1254 = vector.load %arg5[%c2_817, %c2_818, %c0_819, %c0_820] : memref<4x3x8x16xf32, #tpu.memory_space<vmem>>, vector<1x1x8x16xf32>
    %1255 = vector.shape_cast %1254 : vector<1x1x8x16xf32> to vector<8x16xf32>
    %1256 = arith.addf %1132, %1255 : vector<8x16xf32>
    %1257 = arith.addf %1256, %1245 : vector<8x16xf32>
    %c2_821 = arith.constant 2 : index
    %c0_822 = arith.constant 0 : index
    %c0_823 = arith.constant 0 : index
    %1258 = vector.load %arg6[%c2_821, %c0_822, %c0_823] : memref<4x8x16xf32, #tpu.memory_space<vmem>>, vector<1x8x16xf32>
    %1259 = vector.shape_cast %1258 : vector<1x8x16xf32> to vector<8x16xf32>
    %1260 = arith.mulf %1249, %1259 : vector<8x16xf32>
    %cst_824 = arith.constant dense<0.000000e+00> : vector<8xf32>
    %1261 = vector.multi_reduction <add>, %1260, %cst_824 [1] : vector<8x16xf32> to vector<8xf32>
    %1262 = vector.shape_cast %1261 : vector<8xf32> to vector<8x1xf32>
    %cst_825 = arith.constant dense<0.000000e+00> : vector<1xf32>
    %1263 = vector.multi_reduction <add>, %1262, %cst_825 [0] : vector<8x1xf32> to vector<1xf32>
    %1264 = vector.shape_cast %1263 : vector<1xf32> to vector<1x1xf32>
    %c2_826 = arith.constant 2 : index
    %c0_827 = arith.constant 0 : index
    %c0_828 = arith.constant 0 : index
    %1265 = vector.load %arg7[%c2_826, %c0_827, %c0_828] : memref<4x1x1xf32, #tpu.memory_space<vmem>>, vector<1x1x1xf32>
    %1266 = vector.shape_cast %1265 : vector<1x1x1xf32> to vector<1x1xf32>
    %1267 = arith.addf %1264, %1266 : vector<1x1xf32>
    %1268 = arith.mulf %1253, %1259 : vector<8x16xf32>
    %cst_829 = arith.constant dense<0.000000e+00> : vector<8xf32>
    %1269 = vector.multi_reduction <add>, %1268, %cst_829 [1] : vector<8x16xf32> to vector<8xf32>
    %1270 = vector.shape_cast %1269 : vector<8xf32> to vector<8x1xf32>
    %cst_830 = arith.constant dense<0.000000e+00> : vector<1xf32>
    %1271 = vector.multi_reduction <add>, %1270, %cst_830 [0] : vector<8x1xf32> to vector<1xf32>
    %1272 = vector.shape_cast %1271 : vector<1xf32> to vector<1x1xf32>
    %c2_831 = arith.constant 2 : index
    %c0_832 = arith.constant 0 : index
    %c0_833 = arith.constant 0 : index
    %1273 = vector.load %arg7[%c2_831, %c0_832, %c0_833] : memref<4x1x1xf32, #tpu.memory_space<vmem>>, vector<1x1x1xf32>
    %1274 = vector.shape_cast %1273 : vector<1x1x1xf32> to vector<1x1xf32>
    %1275 = arith.addf %1272, %1274 : vector<1x1xf32>
    %1276 = arith.mulf %1257, %1259 : vector<8x16xf32>
    %cst_834 = arith.constant dense<0.000000e+00> : vector<8xf32>
    %1277 = vector.multi_reduction <add>, %1276, %cst_834 [1] : vector<8x16xf32> to vector<8xf32>
    %1278 = vector.shape_cast %1277 : vector<8xf32> to vector<8x1xf32>
    %cst_835 = arith.constant dense<0.000000e+00> : vector<1xf32>
    %1279 = vector.multi_reduction <add>, %1278, %cst_835 [0] : vector<8x1xf32> to vector<1xf32>
    %1280 = vector.shape_cast %1279 : vector<1xf32> to vector<1x1xf32>
    %c2_836 = arith.constant 2 : index
    %c0_837 = arith.constant 0 : index
    %c0_838 = arith.constant 0 : index
    %1281 = vector.load %arg7[%c2_836, %c0_837, %c0_838] : memref<4x1x1xf32, #tpu.memory_space<vmem>>, vector<1x1x1xf32>
    %1282 = vector.shape_cast %1281 : vector<1x1x1xf32> to vector<1x1xf32>
    %1283 = arith.addf %1280, %1282 : vector<1x1xf32>
    %1284 = arith.maximumf %1267, %1275 : vector<1x1xf32>
    %1285 = arith.maximumf %1284, %1283 : vector<1x1xf32>
    %1286 = arith.subf %1267, %1285 : vector<1x1xf32>
    %1287 = math.exp %1286 : vector<1x1xf32>
    %1288 = arith.subf %1275, %1285 : vector<1x1xf32>
    %1289 = math.exp %1288 : vector<1x1xf32>
    %1290 = arith.subf %1283, %1285 : vector<1x1xf32>
    %1291 = math.exp %1290 : vector<1x1xf32>
    %1292 = arith.addf %1287, %1289 : vector<1x1xf32>
    %1293 = arith.addf %1292, %1291 : vector<1x1xf32>
    %cst_839 = arith.constant 1.000000e+00 : f32
    %1294 = vector.broadcast %cst_839 : f32 to vector<1x1xf32>
    %1295 = arith.divf %1294, %1293 : vector<1x1xf32>
    %1296 = arith.mulf %1287, %1295 : vector<1x1xf32>
    %1297 = vector.broadcast %1296 : vector<1x1xf32> to vector<8x16xf32>
    %1298 = arith.mulf %1249, %1297 : vector<8x16xf32>
    %1299 = arith.mulf %1289, %1295 : vector<1x1xf32>
    %1300 = vector.broadcast %1299 : vector<1x1xf32> to vector<8x16xf32>
    %1301 = arith.mulf %1253, %1300 : vector<8x16xf32>
    %1302 = arith.addf %1298, %1301 : vector<8x16xf32>
    %1303 = arith.mulf %1291, %1295 : vector<1x1xf32>
    %1304 = vector.broadcast %1303 : vector<1x1xf32> to vector<8x16xf32>
    %1305 = arith.mulf %1257, %1304 : vector<8x16xf32>
    %1306 = arith.addf %1302, %1305 : vector<8x16xf32>
    %1307 = tpu.concatenate %1306, %1216, %1042 in 1 : vector<8x16xf32>, vector<8x16xf32>, vector<8x16xf32> -> vector<8x48xf32>
    %c3_840 = arith.constant 3 : index
    %c0_841 = arith.constant 0 : index
    %c0_842 = arith.constant 0 : index
    %c0_843 = arith.constant 0 : index
    %1308 = vector.load %arg3[%c3_840, %c0_841, %c0_842, %c0_843] : memref<4x3x48x16xf32, #tpu.memory_space<vmem>>, vector<1x1x48x16xf32>
    %1309 = vector.shape_cast %1308 : vector<1x1x48x16xf32> to vector<48x16xf32>
    %cst_844 = arith.constant dense<0.000000e+00> : vector<8x16xf32>
    %1310 = tpu.matmul %1307, %1309, %cst_844 {dimension_numbers = #tpu.dot_dimension_numbers<[1], [0], [0], [1], [0, 0, 1, 1], [], []>} : vector<8x48xf32>, vector<48x16xf32>, vector<8x16xf32> -> vector<8x16xf32>
    %cst_845 = arith.constant dense<0.000000e+00> : vector<8x48xf32>
    %1311 = tpu.matmul %1, %1307, %cst_845 {dimension_numbers = #tpu.dot_dimension_numbers<[1], [0], [0], [1], [0, 0, 1, 1], [], []>} : vector<8x8xf32>, vector<8x48xf32>, vector<8x48xf32> -> vector<8x48xf32>
    %c3_846 = arith.constant 3 : index
    %c1_847 = arith.constant 1 : index
    %c0_848 = arith.constant 0 : index
    %c0_849 = arith.constant 0 : index
    %1312 = vector.load %arg3[%c3_846, %c1_847, %c0_848, %c0_849] : memref<4x3x48x16xf32, #tpu.memory_space<vmem>>, vector<1x1x48x16xf32>
    %1313 = vector.shape_cast %1312 : vector<1x1x48x16xf32> to vector<48x16xf32>
    %cst_850 = arith.constant dense<0.000000e+00> : vector<8x16xf32>
    %1314 = tpu.matmul %1311, %1313, %cst_850 {dimension_numbers = #tpu.dot_dimension_numbers<[1], [0], [0], [1], [0, 0, 1, 1], [], []>} : vector<8x48xf32>, vector<48x16xf32>, vector<8x16xf32> -> vector<8x16xf32>
    %1315 = arith.addf %1310, %1314 : vector<8x16xf32>
    %cst_851 = arith.constant dense<0.000000e+00> : vector<8x48xf32>
    %1316 = tpu.matmul %3, %1307, %cst_851 {dimension_numbers = #tpu.dot_dimension_numbers<[1], [0], [0], [1], [0, 0, 1, 1], [], []>} : vector<8x8xf32>, vector<8x48xf32>, vector<8x48xf32> -> vector<8x48xf32>
    %c3_852 = arith.constant 3 : index
    %c2_853 = arith.constant 2 : index
    %c0_854 = arith.constant 0 : index
    %c0_855 = arith.constant 0 : index
    %1317 = vector.load %arg3[%c3_852, %c2_853, %c0_854, %c0_855] : memref<4x3x48x16xf32, #tpu.memory_space<vmem>>, vector<1x1x48x16xf32>
    %1318 = vector.shape_cast %1317 : vector<1x1x48x16xf32> to vector<48x16xf32>
    %cst_856 = arith.constant dense<0.000000e+00> : vector<8x16xf32>
    %1319 = tpu.matmul %1316, %1318, %cst_856 {dimension_numbers = #tpu.dot_dimension_numbers<[1], [0], [0], [1], [0, 0, 1, 1], [], []>} : vector<8x48xf32>, vector<48x16xf32>, vector<8x16xf32> -> vector<8x16xf32>
    %1320 = arith.addf %1315, %1319 : vector<8x16xf32>
    %c3_857 = arith.constant 3 : index
    %c0_858 = arith.constant 0 : index
    %c0_859 = arith.constant 0 : index
    %1321 = vector.load %arg4[%c3_857, %c0_858, %c0_859] : memref<4x1x16xf32, #tpu.memory_space<vmem>>, vector<1x1x16xf32>
    %1322 = vector.shape_cast %1321 : vector<1x1x16xf32> to vector<1x16xf32>
    %1323 = vector.broadcast %1322 : vector<1x16xf32> to vector<8x16xf32>
    %1324 = arith.addf %1320, %1323 : vector<8x16xf32>
    %cst_860 = arith.constant 0.000000e+00 : f32
    %1325 = vector.broadcast %cst_860 : f32 to vector<8x16xf32>
    %1326 = arith.cmpf ogt, %1324, %1325 : vector<8x16xf32>
    %cst_861 = arith.constant 0.00999999977 : f32
    %1327 = vector.broadcast %cst_861 : f32 to vector<8x16xf32>
    %1328 = arith.mulf %1327, %1324 : vector<8x16xf32>
    %1329 = arith.select %1326, %1324, %1328 : vector<8x16xi1>, vector<8x16xf32>
    %c3_862 = arith.constant 3 : index
    %c0_863 = arith.constant 0 : index
    %c0_864 = arith.constant 0 : index
    %c0_865 = arith.constant 0 : index
    %1330 = vector.load %arg5[%c3_862, %c0_863, %c0_864, %c0_865] : memref<4x3x8x16xf32, #tpu.memory_space<vmem>>, vector<1x1x8x16xf32>
    %1331 = vector.shape_cast %1330 : vector<1x1x8x16xf32> to vector<8x16xf32>
    %1332 = arith.addf %868, %1331 : vector<8x16xf32>
    %1333 = arith.addf %1332, %1329 : vector<8x16xf32>
    %c3_866 = arith.constant 3 : index
    %c1_867 = arith.constant 1 : index
    %c0_868 = arith.constant 0 : index
    %c0_869 = arith.constant 0 : index
    %1334 = vector.load %arg5[%c3_866, %c1_867, %c0_868, %c0_869] : memref<4x3x8x16xf32, #tpu.memory_space<vmem>>, vector<1x1x8x16xf32>
    %1335 = vector.shape_cast %1334 : vector<1x1x8x16xf32> to vector<8x16xf32>
    %1336 = arith.addf %1042, %1335 : vector<8x16xf32>
    %1337 = arith.addf %1336, %1329 : vector<8x16xf32>
    %c3_870 = arith.constant 3 : index
    %c2_871 = arith.constant 2 : index
    %c0_872 = arith.constant 0 : index
    %c0_873 = arith.constant 0 : index
    %1338 = vector.load %arg5[%c3_870, %c2_871, %c0_872, %c0_873] : memref<4x3x8x16xf32, #tpu.memory_space<vmem>>, vector<1x1x8x16xf32>
    %1339 = vector.shape_cast %1338 : vector<1x1x8x16xf32> to vector<8x16xf32>
    %1340 = arith.addf %1216, %1339 : vector<8x16xf32>
    %1341 = arith.addf %1340, %1329 : vector<8x16xf32>
    %c3_874 = arith.constant 3 : index
    %c0_875 = arith.constant 0 : index
    %c0_876 = arith.constant 0 : index
    %1342 = vector.load %arg6[%c3_874, %c0_875, %c0_876] : memref<4x8x16xf32, #tpu.memory_space<vmem>>, vector<1x8x16xf32>
    %1343 = vector.shape_cast %1342 : vector<1x8x16xf32> to vector<8x16xf32>
    %1344 = arith.mulf %1333, %1343 : vector<8x16xf32>
    %cst_877 = arith.constant dense<0.000000e+00> : vector<8xf32>
    %1345 = vector.multi_reduction <add>, %1344, %cst_877 [1] : vector<8x16xf32> to vector<8xf32>
    %1346 = vector.shape_cast %1345 : vector<8xf32> to vector<8x1xf32>
    %cst_878 = arith.constant dense<0.000000e+00> : vector<1xf32>
    %1347 = vector.multi_reduction <add>, %1346, %cst_878 [0] : vector<8x1xf32> to vector<1xf32>
    %1348 = vector.shape_cast %1347 : vector<1xf32> to vector<1x1xf32>
    %c3_879 = arith.constant 3 : index
    %c0_880 = arith.constant 0 : index
    %c0_881 = arith.constant 0 : index
    %1349 = vector.load %arg7[%c3_879, %c0_880, %c0_881] : memref<4x1x1xf32, #tpu.memory_space<vmem>>, vector<1x1x1xf32>
    %1350 = vector.shape_cast %1349 : vector<1x1x1xf32> to vector<1x1xf32>
    %1351 = arith.addf %1348, %1350 : vector<1x1xf32>
    %1352 = arith.mulf %1337, %1343 : vector<8x16xf32>
    %cst_882 = arith.constant dense<0.000000e+00> : vector<8xf32>
    %1353 = vector.multi_reduction <add>, %1352, %cst_882 [1] : vector<8x16xf32> to vector<8xf32>
    %1354 = vector.shape_cast %1353 : vector<8xf32> to vector<8x1xf32>
    %cst_883 = arith.constant dense<0.000000e+00> : vector<1xf32>
    %1355 = vector.multi_reduction <add>, %1354, %cst_883 [0] : vector<8x1xf32> to vector<1xf32>
    %1356 = vector.shape_cast %1355 : vector<1xf32> to vector<1x1xf32>
    %c3_884 = arith.constant 3 : index
    %c0_885 = arith.constant 0 : index
    %c0_886 = arith.constant 0 : index
    %1357 = vector.load %arg7[%c3_884, %c0_885, %c0_886] : memref<4x1x1xf32, #tpu.memory_space<vmem>>, vector<1x1x1xf32>
    %1358 = vector.shape_cast %1357 : vector<1x1x1xf32> to vector<1x1xf32>
    %1359 = arith.addf %1356, %1358 : vector<1x1xf32>
    %1360 = arith.mulf %1341, %1343 : vector<8x16xf32>
    %cst_887 = arith.constant dense<0.000000e+00> : vector<8xf32>
    %1361 = vector.multi_reduction <add>, %1360, %cst_887 [1] : vector<8x16xf32> to vector<8xf32>
    %1362 = vector.shape_cast %1361 : vector<8xf32> to vector<8x1xf32>
    %cst_888 = arith.constant dense<0.000000e+00> : vector<1xf32>
    %1363 = vector.multi_reduction <add>, %1362, %cst_888 [0] : vector<8x1xf32> to vector<1xf32>
    %1364 = vector.shape_cast %1363 : vector<1xf32> to vector<1x1xf32>
    %c3_889 = arith.constant 3 : index
    %c0_890 = arith.constant 0 : index
    %c0_891 = arith.constant 0 : index
    %1365 = vector.load %arg7[%c3_889, %c0_890, %c0_891] : memref<4x1x1xf32, #tpu.memory_space<vmem>>, vector<1x1x1xf32>
    %1366 = vector.shape_cast %1365 : vector<1x1x1xf32> to vector<1x1xf32>
    %1367 = arith.addf %1364, %1366 : vector<1x1xf32>
    %1368 = arith.maximumf %1351, %1359 : vector<1x1xf32>
    %1369 = arith.maximumf %1368, %1367 : vector<1x1xf32>
    %1370 = arith.subf %1351, %1369 : vector<1x1xf32>
    %1371 = math.exp %1370 : vector<1x1xf32>
    %1372 = arith.subf %1359, %1369 : vector<1x1xf32>
    %1373 = math.exp %1372 : vector<1x1xf32>
    %1374 = arith.subf %1367, %1369 : vector<1x1xf32>
    %1375 = math.exp %1374 : vector<1x1xf32>
    %1376 = arith.addf %1371, %1373 : vector<1x1xf32>
    %1377 = arith.addf %1376, %1375 : vector<1x1xf32>
    %cst_892 = arith.constant 1.000000e+00 : f32
    %1378 = vector.broadcast %cst_892 : f32 to vector<1x1xf32>
    %1379 = arith.divf %1378, %1377 : vector<1x1xf32>
    %1380 = arith.mulf %1371, %1379 : vector<1x1xf32>
    %1381 = vector.broadcast %1380 : vector<1x1xf32> to vector<8x16xf32>
    %1382 = arith.mulf %1333, %1381 : vector<8x16xf32>
    %1383 = arith.mulf %1373, %1379 : vector<1x1xf32>
    %1384 = vector.broadcast %1383 : vector<1x1xf32> to vector<8x16xf32>
    %1385 = arith.mulf %1337, %1384 : vector<8x16xf32>
    %1386 = arith.addf %1382, %1385 : vector<8x16xf32>
    %1387 = arith.mulf %1375, %1379 : vector<1x1xf32>
    %1388 = vector.broadcast %1387 : vector<1x1xf32> to vector<8x16xf32>
    %1389 = arith.mulf %1341, %1388 : vector<8x16xf32>
    %1390 = arith.addf %1386, %1389 : vector<8x16xf32>
    %cst_893 = arith.constant dense<0.000000e+00> : vector<8x1xf32>
    %1391 = tpu.matmul %1390, %699, %cst_893 {dimension_numbers = #tpu.dot_dimension_numbers<[1], [0], [0], [1], [0, 0, 1, 1], [], []>} : vector<8x16xf32>, vector<16x1xf32>, vector<8x1xf32> -> vector<8x1xf32>
    %1392 = vector.broadcast %700 : vector<1x1xf32> to vector<8x1xf32>
    %1393 = arith.addf %1391, %1392 : vector<8x1xf32>
    %c0_894 = arith.constant 0 : index
    %c3_895 = arith.constant 3 : index
    %c0_896 = arith.constant 0 : index
    %c0_897 = arith.constant 0 : index
    %1394 = vector.load %arg12[%c0_894, %c3_895, %c0_896, %c0_897] : memref<1x4x8x1xf32, #tpu.memory_space<vmem>>, vector<1x1x8x1xf32>
    %1395 = vector.shape_cast %1394 : vector<1x1x8x1xf32> to vector<8x1xf32>
    %1396 = vector.shape_cast %1393 : vector<8x1xf32> to vector<1x1x8x1xf32>
    tpu.vector_store %arg12[%c0_894, %c3_895, %c0_896, %c0_897], %1396 {strides = array<i32>} : memref<1x4x8x1xf32, #tpu.memory_space<vmem>>, vector<1x1x8x1xf32>,
    return
  }
  func.func @transform_0(%arg0: i32) -> (i32, i32, i32, i32) {
    %c0_i32 = arith.constant 0 : i32
    %c0_i32_0 = arith.constant 0 : i32
    %c0_i32_1 = arith.constant 0 : i32
    %c0_i32_2 = arith.constant 0 : i32
    return %arg0, %c0_i32, %c0_i32_0, %c0_i32_1 : i32, i32, i32, i32
  }
  func.func @transform_1(%arg0: i32) -> (i32, i32, i32) {
    %c0_i32 = arith.constant 0 : i32
    %c0_i32_0 = arith.constant 0 : i32
    %c0_i32_1 = arith.constant 0 : i32
    %c0_i32_2 = arith.constant 0 : i32
    return %c0_i32, %c0_i32_0, %c0_i32_1 : i32, i32, i32
  }
  func.func @transform_2(%arg0: i32) -> (i32, i32, i32, i32) {
    %c0_i32 = arith.constant 0 : i32
    %c0_i32_0 = arith.constant 0 : i32
    %c0_i32_1 = arith.constant 0 : i32
    %c0_i32_2 = arith.constant 0 : i32
    %c0_i32_3 = arith.constant 0 : i32
    return %c0_i32, %c0_i32_0, %c0_i32_1, %c0_i32_2 : i32, i32, i32, i32
  }
  func.func @transform_3(%arg0: i32) -> (i32, i32, i32) {
    %c0_i32 = arith.constant 0 : i32
    %c0_i32_0 = arith.constant 0 : i32
    %c0_i32_1 = arith.constant 0 : i32
    %c0_i32_2 = arith.constant 0 : i32
    return %c0_i32, %c0_i32_0, %c0_i32_1 : i32, i32, i32
  }
  func.func @transform_4(%arg0: i32) -> (i32, i32, i32, i32) {
    %c0_i32 = arith.constant 0 : i32
    %c0_i32_0 = arith.constant 0 : i32
    %c0_i32_1 = arith.constant 0 : i32
    %c0_i32_2 = arith.constant 0 : i32
    %c0_i32_3 = arith.constant 0 : i32
    return %c0_i32, %c0_i32_0, %c0_i32_1, %c0_i32_2 : i32, i32, i32, i32
  }
  func.func @transform_5(%arg0: i32) -> (i32, i32, i32) {
    %c0_i32 = arith.constant 0 : i32
    %c0_i32_0 = arith.constant 0 : i32
    %c0_i32_1 = arith.constant 0 : i32
    %c0_i32_2 = arith.constant 0 : i32
    return %c0_i32, %c0_i32_0, %c0_i32_1 : i32, i32, i32
  }
  func.func @transform_6(%arg0: i32) -> (i32, i32, i32) {
    %c0_i32 = arith.constant 0 : i32
    %c0_i32_0 = arith.constant 0 : i32
    %c0_i32_1 = arith.constant 0 : i32
    %c0_i32_2 = arith.constant 0 : i32
    return %c0_i32, %c0_i32_0, %c0_i32_1 : i32, i32, i32
  }
  func.func @transform_7(%arg0: i32) -> (i32, i32) {
    %c0_i32 = arith.constant 0 : i32
    %c0_i32_0 = arith.constant 0 : i32
    %c0_i32_1 = arith.constant 0 : i32
    return %c0_i32, %c0_i32_0 : i32, i32
  }
  func.func @transform_8(%arg0: i32) -> (i32, i32) {
    %c0_i32 = arith.constant 0 : i32
    %c0_i32_0 = arith.constant 0 : i32
    %c0_i32_1 = arith.constant 0 : i32
    return %c0_i32, %c0_i32_0 : i32, i32
  }
  func.func @transform_9(%arg0: i32) -> (i32, i32) {
    %c0_i32 = arith.constant 0 : i32
    %c0_i32_0 = arith.constant 0 : i32
    %c0_i32_1 = arith.constant 0 : i32
    return %c0_i32, %c0_i32_0 : i32, i32
  }
  func.func @transform_10(%arg0: i32) -> (i32, i32) {
    %c0_i32 = arith.constant 0 : i32
    %c0_i32_0 = arith.constant 0 : i32
    %c0_i32_1 = arith.constant 0 : i32
    return %c0_i32, %c0_i32_0 : i32, i32
  }
  func.func @transform_11(%arg0: i32) -> (i32, i32, i32, i32) {
    %c0_i32 = arith.constant 0 : i32
    %c0_i32_0 = arith.constant 0 : i32
    %c0_i32_1 = arith.constant 0 : i32
    %c0_i32_2 = arith.constant 0 : i32
    return %arg0, %c0_i32, %c0_i32_0, %c0_i32_1 : i32, i32, i32, i32
  }
}

</mosaic_0001>

<bundles_post_ra>
// kernel: _lambda_.1
= control target key start
LH: loop header
LB: loop body
LE: loop exit
PB: predicated region body
PF: predicated region fallthrough
CT: control target
= control target key end

     0   :  { %s6447_s0 = inlined_call_operand.vmem [shape: f32[2,4,8,2], index: 0, kind: input, shape index: {}]   ;;  %s6448_s1 = inlined_call_operand.vmem [shape: f32[2,8,8], index: 1, kind: input, shape index: {}]   ;;  %s6449_s2 = inlined_call_operand.hbm [shape: f32[4,3,48,16], index: 2, kind: input, shape index: {}]   ;;  %s6450_s3 = inlined_call_operand.vmem [shape: f32[4,1,16], index: 3, kind: input, shape index: {}]   ;;  %s6451_s4 = inlined_call_operand.hbm [shape: f32[4,3,8,16], index: 4, kind: input, shape index: {}]   ;;  %s6452_s5 = inlined_call_operand.vmem [shape: f32[4,8,16], index: 5, kind: input, shape index: {}]   ;;  %s6453_s6 = inlined_call_operand.vmem [shape: f32[4,1,1], index: 6, kind: input, shape index: {}]   ;;  %s6454_s7 = inlined_call_operand.vmem [shape: f32[2,16], index: 7, kind: input, shape index: {}]   ;;  %s6455_s8 = inlined_call_operand.vmem [shape: f32[1,16], index: 8, kind: input, shape index: {}]   ;;  %s6456_s9 = inlined_call_operand.vmem [shape: f32[16,1], index: 9, kind: input, shape index: {}]   ;;  %s6457_s10 = inlined_call_operand.<no memory space> [shape: f32[1,1], index: 10, kind: input, shape index: {}]   ;;  %s6458_s11 = inlined_call_operand.vmem [shape: f32[2,4,8,1], index: 11, kind: output, shape index: {}]  }
   0x1   :  { %v16_v0 = vstv %s6457_s10 }
   0x2   :  { %17 = vst [vmem:[#allocation2] sm:$0x1] %v16_v0 }
   0x3   :  { %18 = vsyncpa [#allocation4], 0 }
   0x4   :  { %19 = vsyncpa [#allocation6], 0  ;;  %s4986_s19 = smov 0  }
   0x5 LB: > { %s306_s22 = sshll.u32 %s6449_s2, 4  ;;  %s4456_s23 = sadd.s32 4294967295, %s4914_s19   ;;  %s4914_s19 = sphi %s4986_s19, %s25_s19   ;;  %s307_s22 = int_to_ptr.hbm [resolvable:$true] %s306_s22 }
   0x6   : > { %p4458_p0 = scmp.ge.s32.totalorder %s4914_s19, 1  ;;  %p292_p1 = scmp.lt.s32.totalorder %s4914_s19, 3 }
   0x7   : > { %p4622_p2 = scmp.eq.s32.totalorder %s4456_s23, 0  ;;  %s4916_s24 = smov [#allocation3]  }
   0x8   : > { %p4997_p3 = pnand %p4458_p0, %p292_p1  ;;  %s308_s25 = sshll.u32 %s4916_s24, 4  ;;  %s309_s25 = int_to_ptr.vmem [resolvable:$true] %s308_s25 }
   0x9   : > { %s323_s28 = sshll.u32 %s6451_s4, 4  ;;  %s4917_s29 = smov [#allocation5]   ;;  %s324_s28 = int_to_ptr.hbm [resolvable:$true] %s323_s28 }
   0xa   : > { %p4615_p4 = pneg %p4997_p3  ;;  %s325_s30 = sshll.u32 %s4917_s29, 4  ;;  %s326_s30 = int_to_ptr.vmem [resolvable:$true] %s325_s30 }
   0xb   : > { %s4918_s12 = smov 128   ;;  %s4919_s13 = smov 8  }
   0xc   : > { %p4616_p5 = pnand %p4622_p2, %p4615_p4  ;;  %367 = sbr.rel (%p4997_p3) target bundleno = 7998 (0x1f3e), region = 64 }
   0xe   : > { %4618 = dma.hbm_to_vmem [thread:$0]  (!%p4616_p5), %s307_s22, 9216, %s309_s25, [#allocation4], %s4918_s12, %s4918_s12, %s4919_s13  }
   0xf   : > { %4621 = dma.hbm_to_vmem [thread:$0]  (!%p4616_p5), %s324_s28, 1536, %s326_s30, [#allocation6], %s4918_s12, %s4918_s12, %s4919_s13  }
  0x11   : > { %4905 = dma.done.wait (%p4622_p2), [#allocation4], 9216  }
  0x12   : > { %4907 = vsyncadd (%p4622_p2), [#allocation4], 4294958080 }
  0x13   : > { %4909 = dma.done.wait (%p4622_p2), [#allocation6], 1536  }
  0x14   : > { %4911 = vsyncadd (%p4622_p2), [#allocation6], 4294965760  ;;  %p413_p6 = scmp.lt.s32.totalorder %s4456_s23, 1  ;;  %vm436_vm0 = vcmask 1041408   ;;  %vm432_vm1 = vcmask 15360   ;;  %v5029_v3 = vld [vmem:[#allocation3 + $0x28] sm:$0xff] }
  0x15   : > { %v5026_v1 = vld [vmem:[%s6454_s7] sm:$0x3]  ;;  %538 = vmatpush.msra.mxu3 %v5029_v3  ;;  %v5041_v6 = vld [vmem:[#allocation3 + $0x10] sm:$0xff]  ;;  %v5044_v7 = vld [vmem:[#allocation3 + $0x8] sm:$0xff]  ;;  %vm460_vm2 = vcmask 130048   ;;  %vm462_vm3 = vcmask 261120  }
  0x16   : > { %s6491_s23 = smov (!%p413_p6, %s4456_s23), 1  ;;  %4470 = vmatpush.msk.msra.mxu0 %vm436_vm0, %v5026_v1  ;;  %v5034_v4 = vld [vmem:[#allocation3 + $0x20] sm:$0xff]  ;;  %v5037_v5 = vld [vmem:[#allocation3 + $0x18] sm:$0xff]  ;;  %v5052_v10 = vld [vmem:[#allocation3 + $0x50] sm:$0xff]  ;;  %vm470_vm4 = vcmask 64512   ;;  %vm501_vm5 = vcmask 392192  }
  0x17   : > { %s4605_s14 = sshll.u32 %s6491_s23, 5  ;;  %539 = vmatpush.msra.mxu3 %v5034_v4  ;;  %v5047_v8 = vld [vmem:[#allocation3] sm:$0xff]  ;;  %v5050_v9 = vld [vmem:[#allocation3 + $0x58] sm:$0xff]  ;;  %6470 = vst [vmem:[#allocation9_spill] sm:$0xff] %v5052_v10  ;;  %v5055_v11 = vld [vmem:[#allocation3 + $0x48] sm:$0xff]  ;;  %v4920_v56 = vmov 0  }
  0x18   : > { %s5021_s17 = scalar_lea.vmem %s6447_s0, %s4605_s14  ;;  %515 = vmatpush.msra.mxu2 %v5050_v9  ;;  %v5058_v12 = vld [vmem:[#allocation3 + $0x40] sm:$0xff]  ;;  %v5061_v13 = vld [vmem:[#allocation3 + $0x38] sm:$0xff]  ;;  %v5082_v20 = vld [vmem:[#allocation3 + $0x88] sm:$0xff]  ;;  %4642 = vset.pattern.permute.xlu2 %v4920_v56  ;;  %s4921_s15 = smov 16  }
  0x19   : > { %v428_v2 = vld [vmem:[%s5021_s17] sm:$0xff]  ;;  %540 = vmatpush.msra.mxu3 %v5037_v5  ;;  %v5080_v19 = vld [vmem:[%s6448_s1 + $0x8] sm:$0xff]  ;;  %v5093_v22 = vld [vmem:[#allocation3 + $0x30] sm:$0xff]  ;;  %4641 = vset.pattern.permute.xlu1 %v4920_v56  ;;  %s4922_s24 = smov 32  }
  0x1a   : > { %4471 = vmatmul.msk.f32.vlgmr.msra.gmra.mxu0 %vm432_vm1, %v428_v2  ;;  %516 = vmatpush.msra.mxu2 %v5052_v10  ;;  %v5068_v14 = vld [vmem:[%s6455_s8] ss:$0 sm:$0xff]  ;;  %6471 = vst [vmem:[#allocation10_spill] sm:$0xff] %v5093_v22  ;;  %v5095_v23 = vld [vmem:[#allocation3 + $0x80] sm:$0xff]  ;;  %v5101_v25 = vld [vmem:[#allocation3 + $0x70] sm:$0xff] }
  0x1b   : > { %541 = vmatpush.msra.mxu3 %v5041_v6  ;;  %v5074_v17 = vld [vmem:[%s6448_s1] sm:$0xff]  ;;  %6473 = vst [vmem:[#allocation12_spill] sm:$0xff] %v5101_v25  ;;  %v5105_v26 = vld [vmem:[#allocation3 + $0x68] sm:$0xff]  ;;  %v5119_v38 = vld [vmem:[#allocation5 + $0x10] sm:$0xff]  ;;  %4643 = vset.pattern.permute.xlu0 %v4920_v56 }
  0x1c   : > { %517 = vmatpush.msra.mxu2 %v5055_v11  ;;  %v5099_v24 = vld [vmem:[#allocation3 + $0x78] sm:$0xff]  ;;  %6474 = vst [vmem:[#allocation13_spill] sm:$0xff] %v5105_v26  ;;  %v5108_v27 = vld [vmem:[#allocation3 + $0x60] sm:$0xff]  ;;  %v5134_v44 = vld [vmem:[#allocation5 + $0x8] sm:$0xff] }
  0x1d   : > { %542 = vmatpush.msra.mxu3 %v5044_v7  ;;  %6472 = vst [vmem:[#allocation11_spill] sm:$0xff] %v5099_v24  ;;  %v5116_v34 = vld [vmem:[%s6450_s3] ss:$0 sm:$0xff]  ;;  %v5121_v39 = vld [vmem:[#allocation5] sm:$0xff] }
  0x1e   : > { %518 = vmatpush.msra.mxu2 %v5058_v12  ;;  %6475 = vst [vmem:[#allocation14_spill] sm:$0xff] %v5108_v27  ;;  %v5126_v41 = vld [vmem:[%s6452_s5] sm:$0xff] }
  0x1f   : > { %543 = vmatpush.msra.mxu3 %v5047_v8 }
  0x20   : > { %519 = vmatpush.msra.mxu2 %v5061_v13 }
  0x22   : > { %520 = vmatpush.msra.mxu2 %v5093_v22 }
  0x97   : > { %v457_v15 = vpop.f32.mrf.mxu0 }
  0x98   : > { %v458_v16 = vadd.f32 %v5068_v14, %v457_v15 }
  0x9a   : > { %v461_v18 = vsel %vm460_vm2, %v458_v16, 0.0 }
  0x9b   : > { %4472 = vmatpush.msk.msra.mxu1 %vm462_vm3, %v461_v18  ;;  %4476 = vmatpush.msk.msrb.mxu0 %vm462_vm3, %v461_v18  ;;  %v463_v21 = vsel %vm462_vm3, %v461_v18, 0.0 }
  0x9c   : > { %4473 = vmatmul.msk.f32.vlgmr.msra.gmra.mxu1 %vm470_vm4, %v5074_v17  ;;  %4475 = vmatmul.msk.f32.vlgmr.msra.gmra.mxu3 %vm501_vm5, %v463_v21 }
  0x9d   : > { %4477 = vmatmul.msk.f32.vlgmr.msrb.gmra.mxu0 %vm470_vm4, %v5080_v19  ;;  %591 = vmatpush.msrb.mxu1 %v5082_v20 }
  0x9f   : > { %592 = vmatpush.msrb.mxu1 %v5095_v23 }
  0xa1   : > { %593 = vmatpush.msrb.mxu1 %v5099_v24 }
  0xa3   : > { %594 = vmatpush.msrb.mxu1 %v5101_v25 }
  0xa5   : > { %595 = vmatpush.msrb.mxu1 %v5105_v26 }
  0xa7   : > { %596 = vmatpush.msrb.mxu1 %v5108_v27 }
 0x119   : > { %v491_v28 = vpop.f32.mrf.mxu1 }
 0x11a   : > { %4474 = vmatmul.msk.f32.vlgmr.msra.gmra.mxu2 %vm501_vm5, %v491_v28  ;;  %v568_v29 = vpop.f32.mrf.mxu0 }
 0x11b   : > { %4478 = vmatmul.msk.f32.vlgmr.msrb.gmra.mxu1 %vm501_vm5, %v568_v29 }
 0x11f   : > { %v545_v30 = vpop.f32.mrf.mxu3 }
 0x198   : > { %v598_v32 = vpop.f32.mrf.mxu1 }
 0x19d   : > { %v522_v31 = vpop.f32.mrf.mxu2 }
 0x19e   : > { %v546_v33 = vadd.f32 %v545_v30, %v522_v31  ;;  %v5151_v30 = vld [vmem:[%s6453_s6] sm:$0x1] }
 0x1a0   : > { %v601_v35 = vadd.f32 %v598_v32, %v546_v33 }
 0x1a2   : > { %v606_v36 = vadd.f32 %v5116_v34, %v601_v35 }
 0x1a4   : > { %vm607_vm6 = vcmp.gt.f32.partialorder %v606_v36, 0.0  ;;  %v608_v37 = vmul.f32 0.01, %v606_v36 }
 0x1a6   : > { %v609_v40 = vsel %vm607_vm6, %v606_v36, %v608_v37 }
 0x1a7   : > { %v5129_v42 = vadd.f32 %v5119_v38, %v609_v40  ;;  %v5132_v43 = vadd.f32 %v5121_v39, %v609_v40  ;;  %v5143_v49 = vadd.f32 %v5134_v44, %v609_v40 }
 0x1a9   : > { %v645_v45 = vmul.f32 %v5126_v41, %v5129_v42  ;;  %v622_v46 = vmul.f32 %v5126_v41, %v5132_v43  ;;  %v634_v50 = vmul.f32 %v5126_v41, %v5143_v49 }
 0x1ab   : > { %v646_v47 = vsel %vm460_vm2, %v645_v45, 0.0  ;;  %v623_v48 = vsel %vm460_vm2, %v622_v46, 0.0  ;;  %v635_v51 = vsel %vm460_vm2, %v634_v50, 0.0 }
 0x1ac   : > { %647 = vadd.xlane.f32.xlu1 %v646_v47  ;;  %624 = vadd.xlane.f32.xlu0 %v623_v48 }
 0x1b4   : > { %636 = vadd.xlane.f32.xlu0 %v635_v51 }
 0x21f   : > { %v648_v52 = vpop.xlane.xlu1 %647  ;;  %v625_v53 = vpop.xlane.xlu0 %624 }
 0x220   : > { %v649_v54 = vrot.slane %v648_v52, 4  ;;  %v626_v55 = vrot.slane %v625_v53, 4 }
 0x222   : > { %v650_v57 = vadd.f32 %v649_v54, %v648_v52  ;;  %v627_v58 = vadd.f32 %v626_v55, %v625_v53 }
 0x224   : > { %v628_v59 = vrot.slane %v627_v58, 2  ;;  %v651_v60 = vrot.slane %v650_v57, 2 }
 0x226   : > { %v629_v62 = vadd.f32 %v628_v59, %v627_v58  ;;  %v652_v0 = vadd.f32 %v651_v60, %v650_v57 }
 0x227   : > { %v637_v61 = vpop.xlane.xlu0 %636 }
 0x228   : > { %v638_v63 = vrot.slane %v637_v61, 4  ;;  %v630_v15 = vrot.slane %v629_v62, 1  ;;  %v653_v18 = vrot.slane %v652_v0, 1 }
 0x22a   : > { %v639_v2 = vadd.f32 %v638_v63, %v637_v61  ;;  %v631_v28 = vadd.f32 %v630_v15, %v629_v62  ;;  %v654_v31 = vadd.f32 %v653_v18, %v652_v0 }
 0x22c   : > { %v640_v16 = vrot.slane %v639_v2, 2  ;;  %v633_v33 = vadd.f32 %v5151_v30, %v631_v28  ;;  %v655_v36 = vadd.f32 %v654_v31, %v5151_v30 }
 0x22e   : > { %v641_v21 = vadd.f32 %v640_v16, %v639_v2 }
 0x230   : > { %v642_v29 = vrot.slane %v641_v21, 1 }
 0x232   : > { %v643_v32 = vadd.f32 %v642_v29, %v641_v21 }
 0x234   : > { %v644_v35 = vadd.f32 %v643_v32, %v5151_v30  ;;  %v5156_v32 = vld [vmem:[#allocation3 + $0xb8] sm:$0xff] }
 0x235   : > { %782 = vmatpush.msrb.mxu3 %v5156_v32 }
 0x236   : > { %v656_v37 = vmax.f32 %v633_v33, %v644_v35 }
 0x238   : > { %v657_v40 = vmax.f32 %v656_v37, %v655_v36  ;;  %v5168_v37 = vld [vmem:[#allocation3 + $0x98] sm:$0xff] }
 0x23a   : > { %v658_v45 = vsub.f32 %v633_v33, %v657_v40  ;;  %v661_v46 = vsub.f32 %v644_v35, %v657_v40  ;;  %v664_v47 = vsub.f32 %v655_v36, %v657_v40  ;;  %v5158_v33 = vld [vmem:[#allocation3 + $0xb0] sm:$0xff]  ;;  %v5162_v35 = vld [vmem:[#allocation3 + $0xa8] sm:$0xff]  ;;  %v5165_v36 = vld [vmem:[#allocation3 + $0xa0] sm:$0xff] }
 0x23b   : > { %783 = vmatpush.msrb.mxu3 %v5158_v33  ;;  %v5171_v40 = vld [vmem:[#allocation3 + $0x90] sm:$0xff] }
 0x23c   : > { %v659_v48 = vmul.f32 1.442695, %v658_v45  ;;  %v662_v50 = vmul.f32 1.442695, %v661_v46  ;;  %v665_v51 = vmul.f32 1.442695, %v664_v47 }
 0x23d   : > { %784 = vmatpush.msrb.mxu3 %v5162_v35 }
 0x23e   : > { %4656 = vpow2.f32 %v659_v48 }
 0x23f   : > { %4658 = vpow2.f32 %v662_v50  ;;  %785 = vmatpush.msrb.mxu3 %v5165_v36 }
 0x240   : > { %4660 = vpow2.f32 %v665_v51 }
 0x241   : > { %786 = vmatpush.msrb.mxu3 %v5168_v37 }
 0x243   : > { %787 = vmatpush.msrb.mxu3 %v5171_v40 }
 0x244   : > { %v4657_v52 = vpop.eup %4656 }
 0x245   : > { %v4659_v53 = vpop.eup %4658  ;;  %1019 = vmatpush.msra.mxu3 %v5050_v9 }
 0x246   : > { %v667_v54 = vadd.f32 %v4659_v53, %v4657_v52  ;;  %v4661_v55 = vpop.eup %4660 }
 0x247   : > { %1020 = vmatpush.msra.mxu3 %v5052_v10 }
 0x248   : > { %v668_v56 = vadd.f32 %v4661_v55, %v667_v54 }
 0x249   : > { %1021 = vmatpush.msra.mxu3 %v5055_v11 }
 0x24a   : > { %4662 = vrcp.f32 %v668_v56  ;;  %v680_v60 = vand.u32 2147483648, %v668_v56  ;;  %v678_v62 = vand.u32 2147483647, %v668_v56  ;;  %vm674_vm8 = vweird.f32 %v668_v56 }
 0x24b   : > { %1022 = vmatpush.msra.mxu3 %v5058_v12 }
 0x24c   : > { %v681_v0 = vor.u32 1.1754944e-38, %v680_v60  ;;  %vm679_vm10 = vcmp.eq.f32.partialorder %v678_v62, 8.507059e+37  ;;  %v5217_v60 = vld [vmem:[#allocation3 + $0xd0] sm:$0xff]  ;;  %v5223_v62 = vld [vmem:[#allocation3 + $0xc8] sm:$0xff] }
 0x24d   : > { %1023 = vmatpush.msra.mxu3 %v5061_v13  ;;  %6477 = vst [vmem:[#allocation16_spill] sm:$0xff] %v5217_v60 }
 0x24e   : > { %6478 = vst [vmem:[#allocation17_spill] sm:$0xff] %v5223_v62 }
 0x24f   : > { %1024 = vmatpush.msra.mxu3 %v5093_v22 }
 0x250   : > { %v4663_v57 = vpop.eup %4662 }
 0x251   : > { %v670_v58 = vmul.f32 %v4663_v57, %v668_v56  ;;  %vm675_vm7 = vweird.f32 %v4663_v57  ;;  %v5205_v56 = vld [vmem:[#allocation3 + $0xe0] sm:$0xff] }
 0x252   : > { %vm676_vm9 = vmor %vm674_vm8, %vm675_vm7 }
 0x253   : > { %v671_v59 = vsub.f32 1.0, %v670_v58  ;;  %v5211_v58 = vld [vmem:[#allocation3 + $0xd8] sm:$0xff] }
 0x254   : > { %6476 = vst [vmem:[#allocation15_spill] sm:$0xff] %v5211_v58 }
 0x255   : > { %v672_v61 = vmul.f32 %v4663_v57, %v671_v59  ;;  %v5213_v59 = vld [vmem:[#allocation3 + $0x108] sm:$0xff] }
 0x257   : > { %v673_v63 = vadd.f32 %v4663_v57, %v672_v61  ;;  %v5219_v61 = vld [vmem:[#allocation3 + $0x100] sm:$0xff] }
 0x259   : > { %v677_v2 = vsel %vm676_vm9, %v4663_v57, %v673_v63  ;;  %v5209_v57 = vld [vmem:[#allocation3 + $0x110] sm:$0xff]  ;;  %v5225_v63 = vld [vmem:[#allocation3 + $0xf8] sm:$0xff] }
 0x25a   : > { %v682_v15 = vsel %vm679_vm10, %v681_v0, %v677_v2  ;;  %v5231_v0 = vld [vmem:[#allocation3 + $0xc0] sm:$0xff]  ;;  %v5233_v2 = vld [vmem:[#allocation3 + $0xf0] sm:$0xff] }
 0x25b   : > { %v692_v16 = vmul.f32 %v4659_v53, %v682_v15  ;;  %v684_v18 = vmul.f32 %v4657_v52, %v682_v15  ;;  %v701_v29 = vmul.f32 %v4661_v55, %v682_v15  ;;  %v5203_v55 = vld [vmem:[#allocation3 + $0x118] sm:$0xff]  ;;  %6479 = vst [vmem:[#allocation18_spill] sm:$0xff] %v5231_v0 }
 0x25d   : > { %v694_v21 = vperm.slane %v692_v16, 0  ;;  %v686_v28 = vperm.slane %v684_v18, 0  ;;  %v703_v31 = vperm.slane %v701_v29, 0 }
 0x25f   : > { %696 = vperm.xlu2 %4642, %v694_v21   ;;  %688 = vperm.xlu1 %4641, %v686_v28  }
 0x267   : > { %705 = vperm.xlu2 %4642, %v703_v31  }
 0x2b9   : > { %v697_v45 = vpop.permute.xlu2 %696 }
 0x2ba   : > { %v699_v48 = vmul.f32 %v697_v45, %v5143_v49 }
 0x2c1   : > { %v706_v46 = vpop.permute.xlu2 %705 }
 0x2c2   : > { %v708_v51 = vmul.f32 %v706_v46, %v5129_v42  ;;  %v4489_v42 = vld [vmem:[%s5021_s17 + $0x8] sm:$0xff] }
 0x2d1   : > { %v689_v47 = vpop.permute.xlu1 %688 }
 0x2d2   : > { %v691_v50 = vmul.f32 %v689_v47, %v5132_v43  ;;  %v5201_v43 = vld [vmem:[#allocation3 + $0xe8] sm:$0xff] }
 0x2d3   : > { %759 = vmatpush.msrb.mxu2 %v5201_v43 }
 0x2d4   : > { %v700_v52 = vadd.f32 %v699_v48, %v691_v50 }
 0x2d5   : > { %760 = vmatpush.msrb.mxu2 %v5205_v56 }
 0x2d6   : > { %v5183_v53 = vadd.f32 %v708_v51, %v700_v52  ;;  %v5287_v51 = vld [vmem:[#allocation5 + $0x28] sm:$0xff]  ;;  %v5289_v52 = vld [vmem:[#allocation5 + $0x20] sm:$0xff] }
 0x2d7   : > { %761 = vmatpush.msrb.mxu2 %v5211_v58 }
 0x2d8   : > { %981 = vrot.lane.b32.xlu0 %v5183_v53, %s4921_s15  ;;  %v710_v54 = vsel %vm460_vm2, %v5183_v53, 0.0 }
 0x2d9   : > { %4479 = vmatpush.msk.msra.mxu0 %vm462_vm3, %v710_v54  ;;  %4483 = vmatpush.msk.msra.mxu1 %vm462_vm3, %v710_v54  ;;  %v711_v49 = vsel %vm462_vm3, %v710_v54, 0.0 }
 0x2da   : > { %4480 = vmatmul.msk.f32.vlgmr.msra.gmra.mxu0 %vm470_vm4, %v5074_v17  ;;  %4482 = vmatmul.msk.f32.vlgmr.msrb.gmra.mxu3 %vm501_vm5, %v711_v49 }
 0x2db   : > { %4484 = vmatmul.msk.f32.vlgmr.msra.gmra.mxu1 %vm470_vm4, %v5080_v19  ;;  %832 = vmatpush.msrb.mxu0 %v5203_v55 }
 0x2dc   : > { %4490 = vmatpush.msk.msrb.mxu1 %vm436_vm0, %v5026_v1  ;;  %762 = vmatpush.msrb.mxu2 %v5217_v60 }
 0x2dd   : > { %833 = vmatpush.msrb.mxu0 %v5209_v57 }
 0x2de   : > { %763 = vmatpush.msrb.mxu2 %v5223_v62 }
 0x2df   : > { %834 = vmatpush.msrb.mxu0 %v5213_v59 }
 0x2e0   : > { %764 = vmatpush.msrb.mxu2 %v5231_v0 }
 0x2e1   : > { %835 = vmatpush.msrb.mxu0 %v5219_v61 }
 0x2e3   : > { %4491 = vmatmul.msk.f32.vlgmr.msrb.gmra.mxu1 %vm432_vm1, %v4489_v42  ;;  %836 = vmatpush.msrb.mxu0 %v5225_v63  ;;  %v5297_v42 = vld [vmem:[%s6452_s5 + $0x8] sm:$0xff] }
 0x2e5   : > { %837 = vmatpush.msrb.mxu0 %v5233_v2 }
 0x2e7   : > { %1042 = vmatpush.msra.mxu0 %v5029_v3 }
 0x2e9   : > { %1043 = vmatpush.msra.mxu0 %v5034_v4 }
 0x2eb   : > { %1044 = vmatpush.msra.mxu0 %v5037_v5 }
 0x2ed   : > { %1045 = vmatpush.msra.mxu0 %v5041_v6 }
 0x2ef   : > { %1046 = vmatpush.msra.mxu0 %v5044_v7 }
 0x2f1   : > { %1047 = vmatpush.msra.mxu0 %v5047_v8 }
 0x34a   : > { %v982_v28 = vpop.permute.xlu0 %981 }
 0x357   : > { %v736_v15 = vpop.f32.mrf.mxu0 }
 0x358   : > { %v809_v16 = vpop.f32.mrf.mxu1  ;;  %4481 = vmatmul.msk.f32.vlgmr.msrb.gmra.mxu2 %vm501_vm5, %v736_v15 }
 0x359   : > { %4485 = vmatmul.msk.f32.vlgmr.msrb.gmra.mxu0 %vm501_vm5, %v809_v16 }
 0x35a   : > { %1253 = vmatpush.msrb.mxu0 %v5156_v32 }
 0x35c   : > { %1254 = vmatpush.msrb.mxu0 %v5158_v33 }
 0x35e   : > { %1255 = vmatpush.msrb.mxu0 %v5162_v35 }
 0x360   : > { %v977_v18 = vpop.f32.mrf.mxu1  ;;  %1256 = vmatpush.msrb.mxu0 %v5165_v36 }
 0x361   : > { %v978_v21 = vadd.f32 %v5068_v14, %v977_v18 }
 0x362   : > { %1257 = vmatpush.msrb.mxu0 %v5168_v37 }
 0x363   : > { %v984_v29 = vsel %vm460_vm2, %v978_v21, %v982_v28 }
 0x364   : > { %4492 = vmatpush.msk.msra.mxu2 %vm462_vm3, %v984_v29  ;;  %4496 = vmatpush.msk.msra.mxu1 %vm462_vm3, %v984_v29  ;;  %v985_v31 = vsel %vm462_vm3, %v984_v29, 0.0 }
 0x365   : > { %4493 = vmatmul.msk.f32.vlgmr.msra.gmra.mxu2 %vm470_vm4, %v5074_v17  ;;  %4495 = vmatmul.msk.f32.vlgmr.msra.gmra.mxu0 %vm501_vm5, %v985_v31 }
 0x366   : > { %4497 = vmatmul.msk.f32.vlgmr.msra.gmra.mxu1 %vm470_vm4, %v5080_v19  ;;  %1085 = vmatpush.msrb.mxu2 %v5082_v20 }
 0x367   : > { %1258 = vmatpush.msrb.mxu0 %v5171_v40  ;;  %1230 = vmatpush.msrb.mxu1 %v5201_v43 }
 0x368   : > { %1086 = vmatpush.msrb.mxu2 %v5095_v23 }
 0x369   : > { %1469 = vmatpush.msra.mxu0 %v5050_v9  ;;  %1231 = vmatpush.msrb.mxu1 %v5205_v56 }
 0x36a   : > { %1087 = vmatpush.msrb.mxu2 %v5099_v24 }
 0x36b   : > { %1470 = vmatpush.msra.mxu0 %v5052_v10  ;;  %1232 = vmatpush.msrb.mxu1 %v5211_v58 }
 0x36c   : > { %1088 = vmatpush.msrb.mxu2 %v5101_v25 }
 0x36d   : > { %1471 = vmatpush.msra.mxu0 %v5055_v11  ;;  %1233 = vmatpush.msrb.mxu1 %v5217_v60  ;;  %v789_v11 = vpop.f32.mrf.mxu3 }
 0x36e   : > { %1089 = vmatpush.msrb.mxu2 %v5105_v26 }
 0x36f   : > { %1472 = vmatpush.msra.mxu0 %v5058_v12  ;;  %1234 = vmatpush.msrb.mxu1 %v5223_v62  ;;  %v5284_v12 = vld [vmem:[%s6450_s3 + $0x1] ss:$0 sm:$0xff] }
 0x370   : > { %1090 = vmatpush.msrb.mxu2 %v5108_v27 }
 0x371   : > { %1473 = vmatpush.msra.mxu0 %v5061_v13  ;;  %1235 = vmatpush.msrb.mxu1 %v5231_v0 }
 0x373   : > { %4507 = vmatpush.msk.msra.mxu1 %vm436_vm0, %v5026_v1  ;;  %1474 = vmatpush.msra.mxu0 %v5093_v22  ;;  %v5291_v1 = vld [vmem:[#allocation5 + $0x18] sm:$0xff] }
 0x3d6   : > { %v839_v47 = vpop.f32.mrf.mxu0 }
 0x3db   : > { %v766_v45 = vpop.f32.mrf.mxu2 }
 0x3dc   : > { %v790_v46 = vadd.f32 %v789_v11, %v766_v45 }
 0x3de   : > { %v842_v48 = vadd.f32 %v839_v47, %v790_v46 }
 0x3e0   : > { %v848_v50 = vadd.f32 %v5284_v12, %v842_v48 }
 0x3e2   : > { %v850_v13 = vmul.f32 0.01, %v848_v50  ;;  %vm849_vm11 = vcmp.gt.f32.partialorder %v848_v50, 0.0 }
 0x3e3   : > { %v1069_v54 = vpop.f32.mrf.mxu1 }
 0x3e4   : > { %4498 = vmatmul.msk.f32.vlgmr.msrb.gmra.mxu2 %vm501_vm5, %v1069_v54  ;;  %v851_v49 = vsel %vm849_vm11, %v848_v50, %v850_v13 }
 0x3e5   : > { %v5300_v15 = vadd.f32 %v5287_v51, %v851_v49  ;;  %v5303_v16 = vadd.f32 %v5289_v52, %v851_v49  ;;  %v5306_v18 = vadd.f32 %v5291_v1, %v851_v49 }
 0x3e7   : > { %v890_v21 = vmul.f32 %v5297_v42, %v5300_v15  ;;  %v879_v28 = vmul.f32 %v5297_v42, %v5303_v16  ;;  %v866_v29 = vmul.f32 %v5297_v42, %v5306_v18 }
 0x3e8   : > { %v1003_v31 = vpop.f32.mrf.mxu2 }
 0x3e9   : > { %4494 = vmatmul.msk.f32.vlgmr.msra.gmra.mxu3 %vm501_vm5, %v1003_v31  ;;  %v891_v11 = vsel %vm460_vm2, %v890_v21, 0.0  ;;  %v880_v45 = vsel %vm460_vm2, %v879_v28, 0.0  ;;  %v867_v46 = vsel %vm460_vm2, %v866_v29, 0.0 }
 0x3ea   : > { %892 = vadd.xlane.f32.xlu0 %v891_v11  ;;  %881 = vadd.xlane.f32.xlu1 %v880_v45  ;;  %v5321_v11 = vld [vmem:[%s6453_s6 + $0x1] sm:$0x1] }
 0x3eb   : > { %868 = vadd.xlane.f32.xlu2 %v867_v46 }
 0x45d   : > { %v893_v47 = vpop.xlane.xlu0 %892  ;;  %v882_v48 = vpop.xlane.xlu1 %881 }
 0x45e   : > { %v894_v50 = vrot.slane %v893_v47, 4  ;;  %v883_v13 = vrot.slane %v882_v48, 4  ;;  %v869_v54 = vpop.xlane.xlu2 %868 }
 0x45f   : > { %v870_v49 = vrot.slane %v869_v54, 4 }
 0x460   : > { %v895_v22 = vadd.f32 %v894_v50, %v893_v47  ;;  %v884_v0 = vadd.f32 %v883_v13, %v882_v48  ;;  %v1049_v48 = vpop.f32.mrf.mxu0 }
 0x461   : > { %v871_v62 = vadd.f32 %v870_v49, %v869_v54 }
 0x462   : > { %v896_v27 = vrot.slane %v895_v22, 2  ;;  %v885_v31 = vrot.slane %v884_v0, 2 }
 0x463   : > { %v872_v60 = vrot.slane %v871_v62, 2 }
 0x464   : > { %v897_v21 = vadd.f32 %v896_v27, %v895_v22  ;;  %v886_v26 = vadd.f32 %v885_v31, %v884_v0 }
 0x465   : > { %v873_v28 = vadd.f32 %v872_v60, %v871_v62 }
 0x466   : > { %v898_v58 = vrot.slane %v897_v21, 1  ;;  %v887_v29 = vrot.slane %v886_v26, 1 }
 0x467   : > { %v874_v45 = vrot.slane %v873_v28, 1  ;;  %v1092_v22 = vpop.f32.mrf.mxu2 }
 0x468   : > { %v888_v46 = vadd.f32 %v887_v29, %v886_v26  ;;  %v899_v25 = vadd.f32 %v898_v58, %v897_v21 }
 0x469   : > { %v875_v24 = vadd.f32 %v874_v45, %v873_v28 }
 0x46a   : > { %v889_v47 = vadd.f32 %v5321_v11, %v888_v46  ;;  %v900_v27 = vadd.f32 %v5321_v11, %v899_v25 }
 0x46b   : > { %v878_v50 = vadd.f32 %v5321_v11, %v875_v24 }
 0x46c   : > { %v1026_v13 = vpop.f32.mrf.mxu3 }
 0x46d   : > { %v901_v60 = vmax.f32 %v878_v50, %v889_v47  ;;  %v1050_v62 = vadd.f32 %v1049_v48, %v1026_v13 }
 0x46f   : > { %v902_v0 = vmax.f32 %v901_v60, %v900_v27  ;;  %v1095_v54 = vadd.f32 %v1092_v22, %v1050_v62  ;;  %v1102_v22 = vadd.f32 %v5183_v53, %v5119_v38 }
 0x471   : > { %v903_v49 = vsub.f32 %v878_v50, %v902_v0  ;;  %v909_v31 = vsub.f32 %v900_v27, %v902_v0  ;;  %v1096_v10 = vadd.f32 %v5116_v34, %v1095_v54  ;;  %v906_v26 = vsub.f32 %v889_v47, %v902_v0 }
 0x473   : > { %v904_v58 = vmul.f32 1.442695, %v903_v49  ;;  %vm1097_vm12 = vcmp.gt.f32.partialorder %v1096_v10, 0.0  ;;  %v1098_v21 = vmul.f32 0.01, %v1096_v10 }
 0x474   : > { %v907_v28 = vmul.f32 1.442695, %v906_v26  ;;  %v910_v29 = vmul.f32 1.442695, %v909_v31 }
 0x475   : > { %4664 = vpow2.f32 %v904_v58  ;;  %v1099_v24 = vsel %vm1097_vm12, %v1096_v10, %v1098_v21 }
 0x476   : > { %v5328_v45 = vadd.f32 %v1099_v24, %v5121_v39  ;;  %4666 = vpow2.f32 %v907_v28  ;;  %v5334_v34 = vadd.f32 %v1099_v24, %v5134_v44  ;;  %v5341_v60 = vadd.f32 %v1102_v22, %v1099_v24 }
 0x477   : > { %4668 = vpow2.f32 %v910_v29 }
 0x478   : > { %v1104_v25 = vmul.f32 %v5328_v45, %v5126_v41  ;;  %v1115_v10 = vmul.f32 %v5334_v34, %v5126_v41  ;;  %v1126_v44 = vmul.f32 %v5341_v60, %v5126_v41 }
 0x47a   : > { %v1105_v48 = vsel %vm460_vm2, %v1104_v25, 0.0  ;;  %v1116_v27 = vsel %vm460_vm2, %v1115_v10, 0.0  ;;  %v1127_v54 = vsel %vm460_vm2, %v1126_v44, 0.0 }
 0x47b   : > { %v4665_v46 = vpop.eup %4664  ;;  %1106 = vadd.xlane.f32.xlu2 %v1105_v48 }
 0x47c   : > { %v4667_v47 = vpop.eup %4666 }
 0x47d   : > { %v912_v50 = vadd.f32 %v4667_v47, %v4665_v46  ;;  %v4669_v13 = vpop.eup %4668 }
 0x47f   : > { %v913_v39 = vadd.f32 %v4669_v13, %v912_v50 }
 0x481   : > { %4670 = vrcp.f32 %v913_v39  ;;  %v925_v31 = vand.u32 2147483648, %v913_v39  ;;  %v923_v58 = vand.u32 2147483647, %v913_v39  ;;  %vm919_vm14 = vweird.f32 %v913_v39 }
 0x483   : > { %1117 = vadd.xlane.f32.xlu2 %v1116_v27  ;;  %v926_v21 = vor.u32 1.1754944e-38, %v925_v31  ;;  %vm924_vm6 = vcmp.eq.f32.partialorder %v923_v58, 8.507059e+37 }
 0x487   : > { %v4671_v62 = vpop.eup %4670 }
 0x488   : > { %v915_v0 = vmul.f32 %v4671_v62, %v913_v39  ;;  %vm920_vm13 = vweird.f32 %v4671_v62 }
 0x489   : > { %vm921_vm15 = vmor %vm919_vm14, %vm920_vm13 }
 0x48a   : > { %v916_v49 = vsub.f32 1.0, %v915_v0 }
 0x48b   : > { %1128 = vadd.xlane.f32.xlu2 %v1127_v54 }
 0x48c   : > { %v917_v26 = vmul.f32 %v4671_v62, %v916_v49 }
 0x48e   : > { %v918_v38 = vadd.f32 %v4671_v62, %v917_v26 }
 0x490   : > { %v922_v28 = vsel %vm921_vm15, %v4671_v62, %v918_v38 }
 0x491   : > { %v927_v29 = vsel %vm924_vm6, %v926_v21, %v922_v28 }
 0x492   : > { %v937_v24 = vmul.f32 %v4667_v47, %v927_v29  ;;  %v929_v25 = vmul.f32 %v4665_v46, %v927_v29  ;;  %v946_v50 = vmul.f32 %v4669_v13, %v927_v29 }
 0x494   : > { %v939_v41 = vperm.slane %v937_v24, 0  ;;  %v931_v48 = vperm.slane %v929_v25, 0  ;;  %v948_v10 = vperm.slane %v946_v50, 0 }
 0x496   : > { %941 = vperm.xlu0 %4643, %v939_v41   ;;  %933 = vperm.xlu1 %4641, %v931_v48  }
 0x49e   : > { %1431 = vrot.lane.b32.xlu0 %v5183_v53, %s4922_s24 }
 0x4a3   : > { %950 = vperm.xlu2 %4642, %v948_v10  }
 0x4ee   : > { %v1107_v22 = vpop.xlane.xlu2 %1106 }
 0x4ef   : > { %v1108_v39 = vrot.slane %v1107_v22, 4 }
 0x4f1   : > { %v1109_v27 = vadd.f32 %v1108_v39, %v1107_v22 }
 0x4f3   : > { %v1110_v0 = vrot.slane %v1109_v27, 2 }
 0x4f5   : > { %v1111_v46 = vadd.f32 %v1110_v0, %v1109_v27 }
 0x4f6   : > { %v1118_v44 = vpop.xlane.xlu2 %1117 }
 0x4f7   : > { %v1119_v62 = vrot.slane %v1118_v44, 4  ;;  %v1112_v13 = vrot.slane %v1111_v46, 1 }
 0x4f9   : > { %v1120_v54 = vadd.f32 %v1119_v62, %v1118_v44  ;;  %v1113_v29 = vadd.f32 %v1112_v13, %v1111_v46 }
 0x4fb   : > { %v1121_v47 = vrot.slane %v1120_v54, 2  ;;  %v1114_v48 = vadd.f32 %v1113_v29, %v5151_v30 }
 0x4fd   : > { %v1122_v49 = vadd.f32 %v1121_v47, %v1120_v54 }
 0x4fe   : > { %v1129_v31 = vpop.xlane.xlu2 %1128 }
 0x4ff   : > { %v1123_v26 = vrot.slane %v1122_v49, 1  ;;  %v1130_v58 = vrot.slane %v1129_v31, 4 }
 0x501   : > { %v1131_v38 = vadd.f32 %v1130_v58, %v1129_v31  ;;  %v1124_v21 = vadd.f32 %v1123_v26, %v1122_v49 }
 0x503   : > { %v1132_v28 = vrot.slane %v1131_v38, 2  ;;  %v1125_v25 = vadd.f32 %v1124_v21, %v5151_v30 }
 0x505   : > { %v1133_v24 = vadd.f32 %v1132_v28, %v1131_v38  ;;  %v1137_v10 = vmax.f32 %v1114_v48, %v1125_v25 }
 0x507   : > { %v1134_v41 = vrot.slane %v1133_v24, 1 }
 0x509   : > { %v1135_v50 = vadd.f32 %v1134_v41, %v1133_v24 }
 0x50b   : > { %v1136_v22 = vadd.f32 %v1135_v50, %v5151_v30  ;;  %v934_v50 = vpop.permute.xlu1 %933 }
 0x50d   : > { %v1138_v39 = vmax.f32 %v1137_v10, %v1136_v22 }
 0x50f   : > { %v1139_v27 = vsub.f32 %v1114_v48, %v1138_v39  ;;  %v1145_v44 = vsub.f32 %v1136_v22, %v1138_v39  ;;  %v1142_v62 = vsub.f32 %v1125_v25, %v1138_v39  ;;  %v942_v48 = vpop.permute.xlu0 %941 }
 0x511   : > { %v1140_v0 = vmul.f32 1.442695, %v1139_v27  ;;  %v1143_v54 = vmul.f32 1.442695, %v1142_v62  ;;  %v1146_v47 = vmul.f32 1.442695, %v1145_v44  ;;  %v944_v27 = vmul.f32 %v942_v48, %v5303_v16 }
 0x512   : > { %v936_v44 = vmul.f32 %v934_v50, %v5306_v18  ;;  %v6482_v48 = vld [vmem:[#allocation12_spill] sm:$0xff]  ;;  %v6483_v50 = vld [vmem:[#allocation15_spill] sm:$0xff] }
 0x513   : > { %4672 = vpow2.f32 %v1140_v0 }
 0x514   : > { %4674 = vpow2.f32 %v1143_v54  ;;  %v951_v54 = vpop.permute.xlu2 %950 }
 0x515   : > { %4676 = vpow2.f32 %v1146_v47  ;;  %v945_v47 = vadd.f32 %v944_v27, %v936_v44  ;;  %v6487_v27 = vld [vmem:[#allocation17_spill] sm:$0xff]  ;;  %v4786_v44 = vld [vmem:[#allocation3 + $0x38] sm:$0xff] }
 0x519   : > { %v4673_v46 = vpop.eup %4672 }
 0x51a   : > { %v4675_v49 = vpop.eup %4674 }
 0x51b   : > { %v1148_v31 = vadd.f32 %v4675_v49, %v4673_v46  ;;  %v4677_v26 = vpop.eup %4676 }
 0x51d   : > { %v1149_v58 = vadd.f32 %v4677_v26, %v1148_v31 }
 0x51f   : > { %4678 = vrcp.f32 %v1149_v58  ;;  %v1161_v30 = vand.u32 2147483648, %v1149_v58  ;;  %v1159_v29 = vand.u32 2147483647, %v1149_v58  ;;  %vm1155_vm8 = vweird.f32 %v1149_v58 }
 0x521   : > { %v1162_v25 = vor.u32 1.1754944e-38, %v1161_v30  ;;  %vm1160_vm10 = vcmp.eq.f32.partialorder %v1159_v29, 8.507059e+37 }
 0x525   : > { %v4679_v13 = vpop.eup %4678 }
 0x526   : > { %v1151_v38 = vmul.f32 %v4679_v13, %v1149_v58  ;;  %vm1156_vm7 = vweird.f32 %v4679_v13  ;;  %v953_v58 = vmul.f32 %v951_v54, %v5300_v15  ;;  %v4787_v54 = vld [vmem:[%s6454_s7] sm:$0x3] }
 0x527   : > { %vm1157_vm9 = vmor %vm1155_vm8, %vm1156_vm7 }
 0x528   : > { %v1152_v21 = vsub.f32 1.0, %v1151_v38 }
 0x52a   : > { %v1153_v28 = vmul.f32 %v4679_v13, %v1152_v21 }
 0x52c   : > { %v1154_v24 = vadd.f32 %v4679_v13, %v1153_v28 }
 0x52e   : > { %v1158_v41 = vsel %vm1157_vm9, %v4679_v13, %v1154_v24  ;;  %v5354_v13 = vadd.f32 %v953_v58, %v945_v47 }
 0x52f   : > { %v1163_v10 = vsel %vm1160_vm10, %v1162_v25, %v1158_v41  ;;  %v6480_v25 = vld [vmem:[#allocation9_spill] sm:$0xff]  ;;  %v6481_v41 = vld [vmem:[#allocation11_spill] sm:$0xff] }
 0x530   : > { %v1173_v22 = vmul.f32 %v4675_v49, %v1163_v10  ;;  %v1165_v39 = vmul.f32 %v4673_v46, %v1163_v10  ;;  %v1182_v31 = vmul.f32 %v4677_v26, %v1163_v10  ;;  %v6485_v10 = vld [vmem:[#allocation16_spill] sm:$0xff] }
 0x532   : > { %v1175_v62 = vperm.slane %v1173_v22, 0  ;;  %v1167_v0 = vperm.slane %v1165_v39, 0  ;;  %v1184_v38 = vperm.slane %v1182_v31, 0  ;;  %v4785_v22 = vld [vmem:[#allocation3 + $0x40] sm:$0xff]  ;;  %v6486_v39 = vld [vmem:[#allocation14_spill] sm:$0xff] }
 0x534   : > { %1177 = vperm.xlu2 %4642, %v1175_v62   ;;  %1169 = vperm.xlu1 %4641, %v1167_v0   ;;  %v6488_v62 = vld [vmem:[#allocation18_spill] sm:$0xff] }
 0x535   : > { %v6489_v0 = vld [vmem:[#allocation10_spill] sm:$0xff] }
 0x53c   : > { %1186 = vperm.xlu1 %4641, %v1184_v38   ;;  %1192 = vrot.lane.b32.xlu2 %v5354_v13, %s4921_s15 }
 0x58e   : > { %v1178_v16 = vpop.permute.xlu2 %1177 }
 0x58f   : > { %v1180_v49 = vmul.f32 %v1178_v16, %v5334_v34 }
 0x596   : > { %v1193_v15 = vpop.permute.xlu2 %1192 }
 0x5a6   : > { %v1170_v46 = vpop.permute.xlu1 %1169 }
 0x5a7   : > { %v1172_v18 = vmul.f32 %v1170_v46, %v5328_v45 }
 0x5a9   : > { %v1181_v30 = vadd.f32 %v1180_v49, %v1172_v18 }
 0x5ae   : > { %v1187_v21 = vpop.permute.xlu1 %1186 }
 0x5af   : > { %v1189_v28 = vmul.f32 %v1187_v21, %v5341_v60 }
 0x5b1   : > { %v5361_v26 = vadd.f32 %v1189_v28, %v1181_v30 }
 0x5b3   : > { %1428 = vrot.lane.b32.xlu1 %v5361_v26, %s4921_s15  ;;  %v1195_v29 = vsel %vm460_vm2, %v5361_v26, %v1193_v15 }
 0x5b4   : > { %4499 = vmatpush.msk.msrb.mxu3 %vm462_vm3, %v1195_v29  ;;  %4503 = vmatpush.msk.msra.mxu2 %vm462_vm3, %v1195_v29  ;;  %v1196_v45 = vsel %vm462_vm3, %v1195_v29, 0.0 }
 0x5b5   : > { %4500 = vmatmul.msk.f32.vlgmr.msrb.gmra.mxu3 %vm470_vm4, %v5074_v17  ;;  %4502 = vmatmul.msk.f32.vlgmr.msrb.gmra.mxu0 %vm501_vm5, %v1196_v45 }
 0x5b6   : > { %4504 = vmatmul.msk.f32.vlgmr.msra.gmra.mxu2 %vm470_vm4, %v5080_v19  ;;  %1296 = vmatpush.msra.mxu3 %v5203_v55 }
 0x5b8   : > { %1297 = vmatpush.msra.mxu3 %v5209_v57 }
 0x5ba   : > { %1298 = vmatpush.msra.mxu3 %v5213_v59 }
 0x5bc   : > { %1299 = vmatpush.msra.mxu3 %v5219_v61 }
 0x5be   : > { %1300 = vmatpush.msra.mxu3 %v5225_v63 }
 0x5c0   : > { %1301 = vmatpush.msra.mxu3 %v5233_v2 }
 0x5c2   : > { %1492 = vmatpush.msrb.mxu3 %v5029_v3  ;;  %v4506_v3 = vld [vmem:[%s5021_s17 + $0x10] sm:$0xff] }
 0x5c4   : > { %1493 = vmatpush.msrb.mxu3 %v5034_v4 }
 0x5c6   : > { %1494 = vmatpush.msrb.mxu3 %v5037_v5 }
 0x5c8   : > { %1495 = vmatpush.msrb.mxu3 %v5041_v6 }
 0x5ca   : > { %1496 = vmatpush.msrb.mxu3 %v5044_v7 }
 0x5cc   : > { %1497 = vmatpush.msrb.mxu3 %v5047_v8 }
 0x632   : > { %v1260_v5 = vpop.f32.mrf.mxu0 }
 0x638   : > { %v1214_v55 = vpop.f32.mrf.mxu3 }
 0x639   : > { %v1280_v57 = vpop.f32.mrf.mxu2  ;;  %4501 = vmatmul.msk.f32.vlgmr.msrb.gmra.mxu1 %vm501_vm5, %v1214_v55 }
 0x63a   : > { %4505 = vmatmul.msk.f32.vlgmr.msra.gmra.mxu3 %vm501_vm5, %v1280_v57 }
 0x63b   : > { %1707 = vmatpush.msra.mxu3 %v5156_v32 }
 0x63d   : > { %1708 = vmatpush.msra.mxu3 %v5158_v33  ;;  %v1429_v33 = vpop.permute.xlu1 %1428 }
 0x63f   : > { %1709 = vmatpush.msra.mxu3 %v5162_v35  ;;  %v1432_v35 = vpop.permute.xlu0 %1431 }
 0x641   : > { %4508 = vmatmul.msk.f32.vlgmr.msra.gmra.mxu1 %vm432_vm1, %v4506_v3  ;;  %1710 = vmatpush.msra.mxu3 %v5165_v36 }
 0x643   : > { %1711 = vmatpush.msra.mxu3 %v5168_v37 }
 0x645   : > { %1712 = vmatpush.msra.mxu3 %v5171_v40  ;;  %v1313_v40 = vadd.f32 %v5354_v13, %v5287_v51 }
 0x6b6   : > { %v1237_v4 = vpop.f32.mrf.mxu1 }
 0x6b7   : > { %v1261_v6 = vadd.f32 %v1260_v5, %v1237_v4 }
 0x6bd   : > { %v1303_v7 = vpop.f32.mrf.mxu3 }
 0x6be   : > { %v1306_v8 = vadd.f32 %v1303_v7, %v1261_v6  ;;  %v1424_v59 = vpop.f32.mrf.mxu1 }
 0x6bf   : > { %v1425_v32 = vadd.f32 %v5068_v14, %v1424_v59 }
 0x6c0   : > { %v1307_v61 = vadd.f32 %v5284_v12, %v1306_v8 }
 0x6c1   : > { %v1434_v63 = vsel %vm460_vm2, %v1425_v32, %v1429_v33 }
 0x6c2   : > { %vm1308_vm11 = vcmp.gt.f32.partialorder %v1307_v61, 0.0  ;;  %v1309_v36 = vmul.f32 0.01, %v1307_v61  ;;  %v1435_v37 = vsel %vm462_vm3, %v1434_v63, %v1432_v35 }
 0x6c3   : > { %1451 = vmatpush.msrb.mxu2 %v1435_v37  ;;  %4511 = vmatmul.msk.f32.vlgmr.msrb.gmra.mxu3 %vm501_vm5, %v1435_v37 }
 0x6c4   : > { %1517 = vmatpush.msrb.mxu1 %v1435_v37  ;;  %4509 = vmatmul.msk.f32.vlgmr.msrb.gmra.mxu2 %vm470_vm4, %v5074_v17  ;;  %v1310_v14 = vsel %vm1308_vm11, %v1307_v61, %v1309_v36 }
 0x6c5   : > { %4512 = vmatmul.msk.f32.vlgmr.msrb.gmra.mxu1 %vm470_vm4, %v5080_v19  ;;  %v5408_v2 = vadd.f32 %v1313_v40, %v1310_v14  ;;  %v5411_v34 = vadd.f32 %v1310_v14, %v5289_v52  ;;  %v5414_v60 = vadd.f32 %v1310_v14, %v5291_v1  ;;  %1535 = vmatpush.msra.mxu2 %v5082_v20 }
 0x6c6   : > { %1684 = vmatpush.msra.mxu1 %v5201_v43  ;;  %1924 = vmatpush.msrb.mxu3 %v5050_v9 }
 0x6c7   : > { %v1337_v17 = vmul.f32 %v5297_v42, %v5408_v2  ;;  %v1326_v19 = vmul.f32 %v5297_v42, %v5411_v34  ;;  %v1315_v24 = vmul.f32 %v5297_v42, %v5414_v60  ;;  %1536 = vmatpush.msra.mxu2 %v5095_v23  ;;  %v4784_v23 = vld [vmem:[#allocation3 + $0x48] sm:$0xff] }
 0x6c8   : > { %1685 = vmatpush.msra.mxu1 %v5205_v56  ;;  %1925 = vmatpush.msrb.mxu3 %v6480_v25  ;;  %v6484_v56 = vld [vmem:[#allocation13_spill] sm:$0xff] }
 0x6c9   : > { %v1338_v20 = vsel %vm460_vm2, %v1337_v17, 0.0  ;;  %v1327_v43 = vsel %vm460_vm2, %v1326_v19, 0.0  ;;  %v1316_v9 = vsel %vm460_vm2, %v1315_v24, 0.0  ;;  %1537 = vmatpush.msra.mxu2 %v6481_v41 }
 0x6ca   : > { %1339 = vadd.xlane.f32.xlu0 %v1338_v20  ;;  %1328 = vadd.xlane.f32.xlu1 %v1327_v43 }
 0x6cb   : > { %1317 = vadd.xlane.f32.xlu2 %v1316_v9  ;;  %1538 = vmatpush.msra.mxu2 %v6482_v48 }
 0x6cc   : > { %1686 = vmatpush.msra.mxu1 %v6483_v50  ;;  %1926 = vmatpush.msrb.mxu3 %v4784_v23 }
 0x6cd   : > { %1539 = vmatpush.msra.mxu2 %v6484_v56 }
 0x6ce   : > { %1687 = vmatpush.msra.mxu1 %v6485_v10  ;;  %1927 = vmatpush.msrb.mxu3 %v4785_v22  ;;  %v5452_v10 = vld [vmem:[%s6450_s3] ss:$0 sm:$0xff] }
 0x6cf   : > { %1540 = vmatpush.msra.mxu2 %v6486_v39 }
 0x6d0   : > { %1688 = vmatpush.msra.mxu1 %v6487_v27  ;;  %1928 = vmatpush.msrb.mxu3 %v4786_v44  ;;  %v5455_v44 = vld [vmem:[#allocation5 + $0x10] sm:$0xff] }
 0x6d2   : > { %1689 = vmatpush.msra.mxu1 %v6488_v62  ;;  %1929 = vmatpush.msrb.mxu3 %v6489_v0  ;;  %v1553_v62 = vadd.f32 %v5455_v44, %v5361_v26  ;;  %v5459_v0 = vld [vmem:[#allocation5 + $0x8] sm:$0xff] }
 0x6d4   : > { %4520 = vmatpush.msk.msrb.mxu1 %vm436_vm0, %v4787_v54  ;;  %v1551_v54 = vadd.f32 %v5459_v0, %v5183_v53 }
 0x73d   : > { %v1329_v58 = vpop.xlane.xlu1 %1328  ;;  %v1340_v18 = vpop.xlane.xlu0 %1339 }
 0x73e   : > { %v1318_v38 = vpop.xlane.xlu2 %1317  ;;  %v1330_v46 = vrot.slane %v1329_v58, 4  ;;  %v1341_v30 = vrot.slane %v1340_v18, 4 }
 0x73f   : > { %v1319_v16 = vrot.slane %v1318_v38, 4 }
 0x740   : > { %v1331_v49 = vadd.f32 %v1330_v46, %v1329_v58  ;;  %v1342_v29 = vadd.f32 %v1341_v30, %v1340_v18  ;;  %v5475_v18 = vld [vmem:[%s6452_s5] sm:$0xff] }
 0x741   : > { %v1320_v21 = vadd.f32 %v1319_v16, %v1318_v38  ;;  %v5467_v38 = vld [vmem:[#allocation5] sm:$0xff] }
 0x742   : > { %v1519_v47 = vpop.f32.mrf.mxu1  ;;  %v1332_v28 = vrot.slane %v1331_v49, 2  ;;  %v1343_v57 = vrot.slane %v1342_v29, 2 }
 0x743   : > { %4513 = vmatmul.msk.f32.vlgmr.msra.gmra.mxu2 %vm501_vm5, %v1519_v47  ;;  %v1321_v15 = vrot.slane %v1320_v21, 2 }
 0x744   : > { %v1333_v45 = vadd.f32 %v1332_v28, %v1331_v49  ;;  %v1344_v5 = vadd.f32 %v1343_v57, %v1342_v29 }
 0x745   : > { %v1322_v55 = vadd.f32 %v1321_v15, %v1320_v21 }
 0x746   : > { %v1334_v3 = vrot.slane %v1333_v45, 1  ;;  %v1345_v8 = vrot.slane %v1344_v5, 1  ;;  %v1499_v41 = vpop.f32.mrf.mxu3 }
 0x747   : > { %v1453_v31 = vpop.f32.mrf.mxu2  ;;  %v1323_v4 = vrot.slane %v1322_v55, 1 }
 0x748   : > { %4510 = vmatmul.msk.f32.vlgmr.msra.gmra.mxu0 %vm501_vm5, %v1453_v31  ;;  %v1335_v6 = vadd.f32 %v1334_v3, %v1333_v45  ;;  %v1346_v33 = vadd.f32 %v1345_v8, %v1344_v5 }
 0x749   : > { %v1324_v7 = vadd.f32 %v1323_v4, %v1322_v55 }
 0x74a   : > { %v1336_v59 = vadd.f32 %v5321_v11, %v1335_v6  ;;  %v1347_v35 = vadd.f32 %v5321_v11, %v1346_v33 }
 0x74b   : > { %v1325_v32 = vadd.f32 %v5321_v11, %v1324_v7 }
 0x74d   : > { %v1348_v61 = vmax.f32 %v1325_v32, %v1336_v59 }
 0x74f   : > { %v1349_v63 = vmax.f32 %v1348_v61, %v1347_v35 }
 0x751   : > { %v1350_v36 = vsub.f32 %v1325_v32, %v1349_v63  ;;  %v1353_v37 = vsub.f32 %v1336_v59, %v1349_v63  ;;  %v1356_v17 = vsub.f32 %v1347_v35, %v1349_v63 }
 0x753   : > { %v1351_v40 = vmul.f32 1.442695, %v1350_v36  ;;  %v1354_v14 = vmul.f32 1.442695, %v1353_v37  ;;  %v1357_v19 = vmul.f32 1.442695, %v1356_v17 }
 0x755   : > { %4680 = vpow2.f32 %v1351_v40 }
 0x756   : > { %4682 = vpow2.f32 %v1354_v14 }
 0x757   : > { %4684 = vpow2.f32 %v1357_v19 }
 0x75b   : > { %v4681_v24 = vpop.eup %4680 }
 0x75c   : > { %v4683_v25 = vpop.eup %4682 }
 0x75d   : > { %v1359_v20 = vadd.f32 %v4683_v25, %v4681_v24  ;;  %v4685_v43 = vpop.eup %4684 }
 0x75f   : > { %v1360_v9 = vadd.f32 %v4685_v43, %v1359_v20 }
 0x761   : > { %4686 = vrcp.f32 %v1360_v9  ;;  %v1372_v57 = vand.u32 2147483648, %v1360_v9  ;;  %vm1366_vm13 = vweird.f32 %v1360_v9  ;;  %v1370_v3 = vand.u32 2147483647, %v1360_v9 }
 0x763   : > { %v1373_v5 = vor.u32 1.1754944e-38, %v1372_v57  ;;  %vm1371_vm15 = vcmp.eq.f32.partialorder %v1370_v3, 8.507059e+37 }
 0x767   : > { %v4687_v56 = vpop.eup %4686 }
 0x768   : > { %v1362_v27 = vmul.f32 %v4687_v56, %v1360_v9  ;;  %vm1367_vm12 = vweird.f32 %v4687_v56 }
 0x769   : > { %vm1368_vm14 = vmor %vm1366_vm13, %vm1367_vm12 }
 0x76a   : > { %v1363_v16 = vsub.f32 1.0, %v1362_v27  ;;  %v5489_v27 = vld [vmem:[%s6453_s6] sm:$0x1] }
 0x76c   : > { %v1364_v45 = vmul.f32 %v4687_v56, %v1363_v16 }
 0x76e   : > { %v1365_v55 = vadd.f32 %v4687_v56, %v1364_v45 }
 0x770   : > { %v1369_v4 = vsel %vm1368_vm14, %v4687_v56, %v1365_v55 }
 0x771   : > { %v1374_v6 = vsel %vm1371_vm15, %v1373_v5, %v1369_v4 }
 0x772   : > { %v1393_v7 = vmul.f32 %v4685_v43, %v1374_v6  ;;  %v1376_v59 = vmul.f32 %v4681_v24, %v1374_v6  ;;  %v1384_v32 = vmul.f32 %v4683_v25, %v1374_v6 }
 0x774   : > { %v1395_v8 = vperm.slane %v1393_v7, 0  ;;  %v1378_v33 = vperm.slane %v1376_v59, 0  ;;  %v1386_v61 = vperm.slane %v1384_v32, 0 }
 0x7c5   : > { %v1476_v48 = vpop.f32.mrf.mxu0 }
 0x7c6   : > { %v1500_v50 = vadd.f32 %v1499_v41, %v1476_v48  ;;  %v1542_v11 = vpop.f32.mrf.mxu2 }
 0x7c8   : > { %v1545_v23 = vadd.f32 %v1542_v11, %v1500_v50 }
 0x7ca   : > { %v1546_v22 = vadd.f32 %v5452_v10, %v1545_v23 }
 0x7cc   : > { %vm1547_vm0 = vcmp.gt.f32.partialorder %v1546_v22, 0.0  ;;  %v1548_v39 = vmul.f32 0.01, %v1546_v22 }
 0x7ce   : > { %v1549_v47 = vsel %vm1547_vm0, %v1546_v22, %v1548_v39 }
 0x7cf   : > { %v5463_v31 = vadd.f32 %v1553_v62, %v1549_v47  ;;  %v5465_v58 = vadd.f32 %v1551_v54, %v1549_v47  ;;  %v5470_v46 = vadd.f32 %v5467_v38, %v1549_v47 }
 0x7d1   : > { %v1577_v49 = vmul.f32 %v5475_v18, %v5463_v31  ;;  %v1566_v21 = vmul.f32 %v5475_v18, %v5465_v58  ;;  %v1555_v30 = vmul.f32 %v5475_v18, %v5470_v46 }
 0x7d3   : > { %v1578_v28 = vsel %vm460_vm2, %v1577_v49, 0.0  ;;  %v1567_v15 = vsel %vm460_vm2, %v1566_v21, 0.0  ;;  %v1556_v29 = vsel %vm460_vm2, %v1555_v30, 0.0 }
 0x7d4   : > { %1579 = vadd.xlane.f32.xlu0 %v1578_v28  ;;  %1568 = vadd.xlane.f32.xlu1 %v1567_v15 }
 0x7d5   : > { %1557 = vadd.xlane.f32.xlu2 %v1556_v29 }
 0x7e8   : > { %1397 = vperm.xlu0 %4643, %v1395_v8  }
 0x7ed   : > { %1380 = vperm.xlu2 %4642, %v1378_v33   ;;  %1388 = vperm.xlu1 %4641, %v1386_v61  }
 0x847   : > { %v1580_v35 = vpop.xlane.xlu0 %1579  ;;  %v1569_v63 = vpop.xlane.xlu1 %1568 }
 0x848   : > { %v1581_v36 = vrot.slane %v1580_v35, 4  ;;  %v1570_v37 = vrot.slane %v1569_v63, 4  ;;  %v1558_v40 = vpop.xlane.xlu2 %1557 }
 0x849   : > { %v1559_v14 = vrot.slane %v1558_v40, 4 }
 0x84a   : > { %v1582_v17 = vadd.f32 %v1581_v36, %v1580_v35  ;;  %v1571_v19 = vadd.f32 %v1570_v37, %v1569_v63 }
 0x84b   : > { %v1560_v20 = vadd.f32 %v1559_v14, %v1558_v40 }
 0x84c   : > { %v1583_v9 = vrot.slane %v1582_v17, 2  ;;  %v1572_v41 = vrot.slane %v1571_v19, 2 }
 0x84d   : > { %v1561_v43 = vrot.slane %v1560_v20, 2 }
 0x84e   : > { %v1584_v48 = vadd.f32 %v1583_v9, %v1582_v17  ;;  %v1573_v24 = vadd.f32 %v1572_v41, %v1571_v19 }
 0x84f   : > { %v1562_v25 = vadd.f32 %v1561_v43, %v1560_v20 }
 0x850   : > { %v1585_v50 = vrot.slane %v1584_v48, 1  ;;  %v1574_v11 = vrot.slane %v1573_v24, 1  ;;  %v1381_v19 = vpop.permute.xlu2 %1380 }
 0x851   : > { %v1563_v23 = vrot.slane %v1562_v25, 1 }
 0x852   : > { %v1575_v56 = vadd.f32 %v1574_v11, %v1573_v24  ;;  %v1586_v22 = vadd.f32 %v1585_v50, %v1584_v48  ;;  %v1383_v48 = vmul.f32 %v1381_v19, %v5414_v60 }
 0x853   : > { %v1564_v39 = vadd.f32 %v1563_v23, %v1562_v25 }
 0x854   : > { %v1576_v62 = vadd.f32 %v5489_v27, %v1575_v56  ;;  %v1587_v47 = vadd.f32 %v5489_v27, %v1586_v22 }
 0x855   : > { %v1565_v54 = vadd.f32 %v5489_v27, %v1564_v39 }
 0x857   : > { %v1588_v16 = vmax.f32 %v1565_v54, %v1576_v62 }
 0x859   : > { %v1589_v49 = vmax.f32 %v1588_v16, %v1587_v47 }
 0x85a   : > { %v1398_v24 = vpop.permute.xlu0 %1397 }
 0x85b   : > { %v1590_v21 = vsub.f32 %v1565_v54, %v1589_v49  ;;  %v1593_v30 = vsub.f32 %v1576_v62, %v1589_v49  ;;  %v1596_v28 = vsub.f32 %v1587_v47, %v1589_v49  ;;  %v1400_v50 = vmul.f32 %v1398_v24, %v5408_v2 }
 0x85d   : > { %v1591_v15 = vmul.f32 1.442695, %v1590_v21  ;;  %v1594_v29 = vmul.f32 1.442695, %v1593_v30  ;;  %v1597_v45 = vmul.f32 1.442695, %v1596_v28 }
 0x85e   : > { %v5533_v21 = vld [vmem:[#allocation3 + $0x110] sm:$0xff]  ;;  %v5536_v30 = vld [vmem:[#allocation3 + $0x108] sm:$0xff]  ;;  %v5539_v28 = vld [vmem:[#allocation3 + $0x100] sm:$0xff] }
 0x85f   : > { %4688 = vpow2.f32 %v1591_v15  ;;  %v1389_v37 = vpop.permute.xlu1 %1388  ;;  %v5542_v15 = vld [vmem:[#allocation3 + $0xf8] sm:$0xff] }
 0x860   : > { %4690 = vpow2.f32 %v1594_v29  ;;  %v1391_v43 = vmul.f32 %v1389_v37, %v5411_v34  ;;  %v5545_v29 = vld [vmem:[#allocation3 + $0xf0] sm:$0xff] }
 0x861   : > { %4692 = vpow2.f32 %v1597_v45  ;;  %v4802_v45 = vld [vmem:[#allocation3 + $0x28] sm:$0xff] }
 0x862   : > { %v1392_v25 = vadd.f32 %v1391_v43, %v1383_v48 }
 0x864   : > { %v5497_v11 = vadd.f32 %v1400_v50, %v1392_v25 }
 0x865   : > { %v4689_v55 = vpop.eup %4688 }
 0x866   : > { %v4691_v57 = vpop.eup %4690 }
 0x867   : > { %v1599_v3 = vadd.f32 %v4691_v57, %v4689_v55  ;;  %v4693_v4 = vpop.eup %4692 }
 0x869   : > { %v1600_v5 = vadd.f32 %v4693_v4, %v1599_v3  ;;  %v4805_v3 = vld [vmem:[#allocation3 + $0x10] sm:$0xff] }
 0x86b   : > { %4694 = vrcp.f32 %v1600_v5  ;;  %v1612_v59 = vand.u32 2147483648, %v1600_v5  ;;  %v1610_v33 = vand.u32 2147483647, %v1600_v5  ;;  %vm1606_vm7 = vweird.f32 %v1600_v5 }
 0x86d   : > { %v1613_v35 = vor.u32 1.1754944e-38, %v1612_v59  ;;  %vm1611_vm9 = vcmp.eq.f32.partialorder %v1610_v33, 8.507059e+37  ;;  %v4808_v59 = vld [vmem:[#allocation3 + $0xb8] sm:$0xff]  ;;  %v4810_v33 = vld [vmem:[#allocation3 + $0xa8] sm:$0xff] }
 0x871   : > { %v4695_v6 = vpop.eup %4694 }
 0x872   : > { %v1602_v7 = vmul.f32 %v4695_v6, %v1600_v5  ;;  %vm1607_vm6 = vweird.f32 %v4695_v6  ;;  %v4807_v5 = vld [vmem:[#allocation3] sm:$0xff] }
 0x873   : > { %vm1608_vm8 = vmor %vm1606_vm7, %vm1607_vm6 }
 0x874   : > { %v1603_v8 = vsub.f32 1.0, %v1602_v7  ;;  %v4519_v7 = vld [vmem:[%s5021_s17 + $0x18] sm:$0xff]  ;;  %s5975_s17 = scalar_lea.vmem %s6458_s11, %s4605_s14 }
 0x876   : > { %v1604_v32 = vmul.f32 %v4695_v6, %v1603_v8 }
 0x878   : > { %v1605_v61 = vadd.f32 %v4695_v6, %v1604_v32  ;;  %v4809_v32 = vld [vmem:[#allocation3 + $0xb0] sm:$0xff] }
 0x87a   : > { %v1609_v63 = vsel %vm1608_vm8, %v4695_v6, %v1605_v61  ;;  %v4811_v61 = vld [vmem:[#allocation3 + $0xa0] sm:$0xff] }
 0x87b   : > { %v1614_v36 = vsel %vm1611_vm9, %v1613_v35, %v1609_v63  ;;  %v4812_v35 = vld [vmem:[#allocation3 + $0x98] sm:$0xff]  ;;  %v4813_v63 = vld [vmem:[#allocation3 + $0x90] sm:$0xff] }
 0x87c   : > { %v1633_v40 = vmul.f32 %v4693_v4, %v1614_v36  ;;  %v1624_v14 = vmul.f32 %v4691_v57, %v1614_v36  ;;  %v1616_v17 = vmul.f32 %v4689_v55, %v1614_v36  ;;  %v4803_v55 = vld [vmem:[#allocation3 + $0x20] sm:$0xff]  ;;  %v4804_v57 = vld [vmem:[#allocation3 + $0x18] sm:$0xff]  ;;  %v4806_v4 = vld [vmem:[#allocation3 + $0x8] sm:$0xff] }
 0x87e   : > { %v1635_v20 = vperm.slane %v1633_v40, 0  ;;  %v1626_v9 = vperm.slane %v1624_v14, 0  ;;  %v1618_v41 = vperm.slane %v1616_v17, 0 }
 0x880   : > { %1637 = vperm.xlu1 %4641, %v1635_v20   ;;  %1628 = vperm.xlu0 %4643, %v1626_v9   ;;  %v4814_v20 = vld [vmem:[%s6455_s8] ss:$0 sm:$0xff] }
 0x881   : > { %1620 = vperm.xlu2 %4642, %v1618_v41  }
 0x888   : > { %1646 = vrot.lane.b32.xlu0 %v5354_v13, %s4922_s24 }
 0x889   : > { %1643 = vrot.lane.b32.xlu2 %v5497_v11, %s4921_s15 }
 0x891   : > { %1886 = vrot.lane.b32.xlu2 %v5361_v26, %s4922_s24 }
 0x8db   : > { %v1621_v34 = vpop.permute.xlu2 %1620 }
 0x8dc   : > { %v1623_v60 = vmul.f32 %v1621_v34, %v5470_v46  ;;  %v5530_v46 = vld [vmem:[#allocation3 + $0x118] sm:$0xff]  ;;  %v1768_v34 = vadd.f32 %v5497_v11, %v5287_v51  ;;  %v4816_v51 = vld [vmem:[#allocation3 + $0xe8] sm:$0xff] }
 0x8e3   : > { %v1644_v54 = vpop.permute.xlu2 %1643 }
 0x8eb   : > { %v1887_v48 = vpop.permute.xlu2 %1886 }
 0x8f2   : > { %v1638_v23 = vpop.permute.xlu1 %1637  ;;  %v1629_v56 = vpop.permute.xlu0 %1628 }
 0x8f3   : > { %v1631_v22 = vmul.f32 %v1629_v56, %v5465_v58  ;;  %v1640_v2 = vmul.f32 %v1638_v23, %v5463_v31  ;;  %v5519_v31 = vld [vmem:[%s6448_s1] sm:$0xff]  ;;  %v5526_v58 = vld [vmem:[%s6448_s1 + $0x8] sm:$0xff]  ;;  %v1766_v23 = vadd.f32 %v5354_v13, %v5289_v52 }
 0x8f5   : > { %v1632_v39 = vadd.f32 %v1631_v22, %v1623_v60 }
 0x8f7   : > { %v5508_v62 = vadd.f32 %v1640_v2, %v1632_v39  ;;  %v4815_v2 = vld [vmem:[#allocation3 + $0x88] sm:$0xff] }
 0x8f9   : > { %1883 = vrot.lane.b32.xlu1 %v5508_v62, %s4921_s15  ;;  %v1649_v47 = vsel %vm460_vm2, %v5508_v62, %v1644_v54 }
 0x8fa   : > { %v1647_v16 = vpop.permute.xlu0 %1646 }
 0x8fb   : > { %v1650_v49 = vsel %vm462_vm3, %v1649_v47, %v1647_v16  ;;  %v4817_v47 = vld [vmem:[#allocation3 + $0x80] sm:$0xff] }
 0x8fc   : > { %1666 = vmatpush.msrb.mxu0 %v1650_v49  ;;  %4516 = vmatmul.msk.f32.vlgmr.msra.gmra.mxu3 %vm501_vm5, %v1650_v49 }
 0x8fd   : > { %1732 = vmatpush.msrb.mxu2 %v1650_v49  ;;  %4514 = vmatmul.msk.f32.vlgmr.msrb.gmra.mxu0 %vm470_vm4, %v5519_v31 }
 0x8fe   : > { %4517 = vmatmul.msk.f32.vlgmr.msrb.gmra.mxu2 %vm470_vm4, %v5526_v58  ;;  %1750 = vmatpush.msra.mxu0 %v5530_v46 }
 0x900   : > { %1751 = vmatpush.msra.mxu0 %v5533_v21 }
 0x902   : > { %1752 = vmatpush.msra.mxu0 %v5536_v30 }
 0x904   : > { %1753 = vmatpush.msra.mxu0 %v5539_v28 }
 0x906   : > { %1754 = vmatpush.msra.mxu0 %v5542_v15 }
 0x908   : > { %1755 = vmatpush.msra.mxu0 %v5545_v29 }
 0x90a   : > { %1947 = vmatpush.msrb.mxu0 %v4802_v45 }
 0x90c   : > { %1948 = vmatpush.msrb.mxu0 %v4803_v55  ;;  %v4819_v55 = vld [vmem:[#allocation3 + $0x78] sm:$0xff] }
 0x90e   : > { %1949 = vmatpush.msrb.mxu0 %v4804_v57  ;;  %v4820_v57 = vld [vmem:[#allocation3 + $0x70] sm:$0xff] }
 0x910   : > { %1950 = vmatpush.msrb.mxu0 %v4805_v3  ;;  %v4821_v3 = vld [vmem:[#allocation3 + $0xd8] sm:$0xff] }
 0x912   : > { %1951 = vmatpush.msrb.mxu0 %v4806_v4  ;;  %v4823_v4 = vld [vmem:[#allocation3 + $0xd0] sm:$0xff] }
 0x914   : > { %1952 = vmatpush.msrb.mxu0 %v4807_v5  ;;  %v4824_v5 = vld [vmem:[#allocation3 + $0x60] sm:$0xff] }
 0x96b   : > { %v1884_v41 = vpop.permute.xlu1 %1883 }
 0x97a   : > { %v1668_v6 = vpop.f32.mrf.mxu0 }
 0x97b   : > { %4515 = vmatmul.msk.f32.vlgmr.msra.gmra.mxu1 %vm501_vm5, %v1668_v6  ;;  %v4825_v6 = vld [vmem:[#allocation3 + $0xc8] sm:$0xff] }
 0x97f   : > { %v1714_v37 = vpop.f32.mrf.mxu3 }
 0x981   : > { %v1734_v8 = vpop.f32.mrf.mxu2 }
 0x982   : > { %4518 = vmatmul.msk.f32.vlgmr.msra.gmra.mxu0 %vm501_vm5, %v1734_v8 }
 0x983   : > { %4521 = vmatmul.msk.f32.vlgmr.msrb.gmra.mxu1 %vm432_vm1, %v4519_v7  ;;  %2163 = vmatpush.msra.mxu0 %v4808_v59  ;;  %v4826_v7 = vld [vmem:[#allocation3 + $0xc0] sm:$0xff] }
 0x985   : > { %2164 = vmatpush.msra.mxu0 %v4809_v32 }
 0x987   : > { %2165 = vmatpush.msra.mxu0 %v4810_v33 }
 0x989   : > { %2166 = vmatpush.msra.mxu0 %v4811_v61 }
 0x98b   : > { %2167 = vmatpush.msra.mxu0 %v4812_v35 }
 0x98d   : > { %2168 = vmatpush.msra.mxu0 %v4813_v63 }
 0x9f8   : > { %v1691_v36 = vpop.f32.mrf.mxu1 }
 0x9f9   : > { %v1715_v40 = vadd.f32 %v1714_v37, %v1691_v36 }
 0x9ff   : > { %v1757_v14 = vpop.f32.mrf.mxu0 }
 0xa00   : > { %v1760_v17 = vadd.f32 %v1757_v14, %v1715_v40  ;;  %v1879_v19 = vpop.f32.mrf.mxu1 }
 0xa01   : > { %v1880_v9 = vadd.f32 %v4814_v20, %v1879_v19 }
 0xa02   : > { %v1761_v43 = vadd.f32 %v5284_v12, %v1760_v17 }
 0xa03   : > { %v1889_v24 = vsel %vm460_vm2, %v1880_v9, %v1884_v41 }
 0xa04   : > { %vm1762_vm1 = vcmp.gt.f32.partialorder %v1761_v43, 0.0  ;;  %v1763_v25 = vmul.f32 0.01, %v1761_v43  ;;  %v1890_v50 = vsel %vm462_vm3, %v1889_v24, %v1887_v48 }
 0xa05   : > { %1906 = vmatpush.msra.mxu2 %v1890_v50  ;;  %4524 = vmatmul.msk.f32.vlgmr.msrb.gmra.mxu0 %vm501_vm5, %v1890_v50 }
 0xa06   : > { %1972 = vmatpush.msra.mxu1 %v1890_v50  ;;  %4522 = vmatmul.msk.f32.vlgmr.msra.gmra.mxu2 %vm470_vm4, %v5519_v31  ;;  %v1764_v12 = vsel %vm1762_vm1, %v1761_v43, %v1763_v25 }
 0xa07   : > { %v5565_v56 = vadd.f32 %v1768_v34, %v1764_v12  ;;  %v5567_v60 = vadd.f32 %v1766_v23, %v1764_v12  ;;  %v5570_v22 = vadd.f32 %v1764_v12, %v5291_v1  ;;  %4525 = vmatmul.msk.f32.vlgmr.msra.gmra.mxu1 %vm470_vm4, %v5526_v58  ;;  %1990 = vmatpush.msrb.mxu2 %v4815_v2  ;;  %v4818_v1 = vld [vmem:[#allocation3 + $0xe0] sm:$0xff] }
 0xa08   : > { %2140 = vmatpush.msrb.mxu1 %v4816_v51  ;;  %v5588_v23 = vld [vmem:[%s6453_s6 + $0x1] sm:$0x1] }
 0xa09   : > { %v1792_v52 = vmul.f32 %v5297_v42, %v5565_v56  ;;  %v1781_v39 = vmul.f32 %v5297_v42, %v5567_v60  ;;  %v1770_v54 = vmul.f32 %v5297_v42, %v5570_v22  ;;  %1991 = vmatpush.msrb.mxu2 %v4817_v47  ;;  %v4822_v42 = vld [vmem:[#allocation3 + $0x68] sm:$0xff] }
 0xa0a   : > { %2141 = vmatpush.msrb.mxu1 %v4818_v1 }
 0xa0b   : > { %v1793_v16 = vsel %vm460_vm2, %v1792_v52, 0.0  ;;  %v1782_v49 = vsel %vm460_vm2, %v1781_v39, 0.0  ;;  %v1771_v45 = vsel %vm460_vm2, %v1770_v54, 0.0  ;;  %1992 = vmatpush.msrb.mxu2 %v4819_v55 }
 0xa0c   : > { %1794 = vadd.xlane.f32.xlu2 %v1793_v16  ;;  %1783 = vadd.xlane.f32.xlu1 %v1782_v49 }
 0xa0d   : > { %1772 = vadd.xlane.f32.xlu0 %v1771_v45  ;;  %1993 = vmatpush.msrb.mxu2 %v4820_v57 }
 0xa0e   : > { %2142 = vmatpush.msrb.mxu1 %v4821_v3 }
 0xa0f   : > { %1994 = vmatpush.msrb.mxu2 %v4822_v42 }
 0xa10   : > { %2143 = vmatpush.msrb.mxu1 %v4823_v4 }
 0xa11   : > { %1995 = vmatpush.msrb.mxu2 %v4824_v5 }
 0xa12   : > { %2144 = vmatpush.msrb.mxu1 %v4825_v6 }
 0xa14   : > { %2145 = vmatpush.msrb.mxu1 %v4826_v7 }
 0xa7f   : > { %v1784_v32 = vpop.xlane.xlu1 %1783  ;;  %v1795_v63 = vpop.xlane.xlu2 %1794 }
 0xa80   : > { %v1773_v33 = vpop.xlane.xlu0 %1772  ;;  %v1785_v61 = vrot.slane %v1784_v32, 4  ;;  %v1796_v40 = vrot.slane %v1795_v63, 4 }
 0xa81   : > { %v1774_v35 = vrot.slane %v1773_v33, 4 }
 0xa82   : > { %v1786_v36 = vadd.f32 %v1785_v61, %v1784_v32  ;;  %v1797_v19 = vadd.f32 %v1796_v40, %v1795_v63  ;;  %v1954_v6 = vpop.f32.mrf.mxu0  ;;  %v2009_v63 = vadd.f32 %v5455_v44, %v5508_v62 }
 0xa83   : > { %v1775_v37 = vadd.f32 %v1774_v35, %v1773_v33 }
 0xa84   : > { %v1974_v8 = vpop.f32.mrf.mxu1  ;;  %v1787_v14 = vrot.slane %v1786_v36, 2  ;;  %v1798_v41 = vrot.slane %v1797_v19, 2 }
 0xa85   : > { %4526 = vmatmul.msk.f32.vlgmr.msrb.gmra.mxu2 %vm501_vm5, %v1974_v8  ;;  %v1776_v17 = vrot.slane %v1775_v37, 2 }
 0xa86   : > { %v1788_v20 = vadd.f32 %v1787_v14, %v1786_v36  ;;  %v1799_v24 = vadd.f32 %v1798_v41, %v1797_v19  ;;  %v2007_v36 = vadd.f32 %v5459_v0, %v5361_v26 }
 0xa87   : > { %v1777_v9 = vadd.f32 %v1776_v17, %v1775_v37  ;;  %v2005_v37 = vadd.f32 %v5467_v38, %v5183_v53 }
 0xa88   : > { %v1789_v43 = vrot.slane %v1788_v20, 1  ;;  %v1800_v34 = vrot.slane %v1799_v24, 1 }
 0xa89   : > { %v1908_v59 = vpop.f32.mrf.mxu2  ;;  %v1778_v48 = vrot.slane %v1777_v9, 1 }
 0xa8a   : > { %4523 = vmatmul.msk.f32.vlgmr.msrb.gmra.mxu3 %vm501_vm5, %v1908_v59  ;;  %v1790_v25 = vadd.f32 %v1789_v43, %v1788_v20  ;;  %v1801_v51 = vadd.f32 %v1800_v34, %v1799_v24 }
 0xa8b   : > { %v1779_v50 = vadd.f32 %v1778_v48, %v1777_v9 }
 0xa8c   : > { %v1791_v12 = vadd.f32 %v5588_v23, %v1790_v25  ;;  %v1802_v39 = vadd.f32 %v5588_v23, %v1801_v51 }
 0xa8d   : > { %v1780_v2 = vadd.f32 %v5588_v23, %v1779_v50 }
 0xa8f   : > { %v1803_v52 = vmax.f32 %v1780_v2, %v1791_v12 }
 0xa91   : > { %v1804_v54 = vmax.f32 %v1803_v52, %v1802_v39 }
 0xa93   : > { %v1808_v47 = vsub.f32 %v1791_v12, %v1804_v54  ;;  %v1805_v1 = vsub.f32 %v1780_v2, %v1804_v54  ;;  %v1811_v45 = vsub.f32 %v1802_v39, %v1804_v54 }
 0xa95   : > { %v1809_v16 = vmul.f32 1.442695, %v1808_v47  ;;  %v1806_v49 = vmul.f32 1.442695, %v1805_v1  ;;  %v1812_v55 = vmul.f32 1.442695, %v1811_v45 }
 0xa97   : > { %4696 = vpow2.f32 %v1809_v16 }
 0xa98   : > { %4698 = vpow2.f32 %v1806_v49 }
 0xa99   : > { %4700 = vpow2.f32 %v1812_v55 }
 0xa9d   : > { %v4697_v57 = vpop.eup %4696 }
 0xa9e   : > { %v4699_v3 = vpop.eup %4698 }
 0xa9f   : > { %v1814_v42 = vadd.f32 %v4699_v3, %v4697_v57  ;;  %v4701_v4 = vpop.eup %4700 }
 0xaa1   : > { %v1815_v5 = vadd.f32 %v4701_v4, %v1814_v42 }
 0xaa3   : > { %4702 = vrcp.f32 %v1815_v5  ;;  %v1827_v24 = vand.u32 2147483648, %v1815_v5  ;;  %vm1821_vm0 = vweird.f32 %v1815_v5  ;;  %v1825_v25 = vand.u32 2147483647, %v1815_v5 }
 0xaa5   : > { %v1828_v34 = vor.u32 1.1754944e-38, %v1827_v24  ;;  %vm1826_vm13 = vcmp.eq.f32.partialorder %v1825_v25, 8.507059e+37 }
 0xaa9   : > { %v4703_v33 = vpop.eup %4702 }
 0xaaa   : > { %v1817_v40 = vmul.f32 %v4703_v33, %v1815_v5  ;;  %vm1822_vm11 = vweird.f32 %v4703_v33 }
 0xaab   : > { %vm1823_vm12 = vmor %vm1821_vm0, %vm1822_vm11 }
 0xaac   : > { %v1818_v9 = vsub.f32 1.0, %v1817_v40 }
 0xaae   : > { %v1819_v43 = vmul.f32 %v4703_v33, %v1818_v9 }
 0xab0   : > { %v1820_v48 = vadd.f32 %v4703_v33, %v1819_v43 }
 0xab2   : > { %v1824_v50 = vsel %vm1823_vm12, %v4703_v33, %v1820_v48 }
 0xb08   : > { %v1997_v8 = vpop.f32.mrf.mxu2 }
 0xb0d   : > { %v1931_v7 = vpop.f32.mrf.mxu3 }
 0xb0e   : > { %v1955_v59 = vadd.f32 %v1954_v6, %v1931_v7 }
 0xb10   : > { %v2000_v32 = vadd.f32 %v1997_v8, %v1955_v59 }
 0xb12   : > { %v2001_v61 = vadd.f32 %v5452_v10, %v2000_v32 }
 0xb14   : > { %vm2002_vm10 = vcmp.gt.f32.partialorder %v2001_v61, 0.0  ;;  %v2003_v35 = vmul.f32 0.01, %v2001_v61 }
 0xb16   : > { %v2004_v14 = vsel %vm2002_vm10, %v2001_v61, %v2003_v35 }
 0xb17   : > { %v5600_v17 = vadd.f32 %v2009_v63, %v2004_v14  ;;  %v5602_v19 = vadd.f32 %v2007_v36, %v2004_v14  ;;  %v5604_v20 = vadd.f32 %v2005_v37, %v2004_v14 }
 0xb19   : > { %v2033_v10 = vmul.f32 %v5475_v18, %v5600_v17  ;;  %v2022_v44 = vmul.f32 %v5475_v18, %v5602_v19  ;;  %v2011_v0 = vmul.f32 %v5475_v18, %v5604_v20  ;;  %v1829_v18 = vsel %vm1826_vm13, %v1828_v34, %v1824_v50 }
 0xb1a   : > { %v1831_v12 = vmul.f32 %v4699_v3, %v1829_v18  ;;  %v1848_v2 = vmul.f32 %v4701_v4, %v1829_v18  ;;  %v1839_v52 = vmul.f32 %v4697_v57, %v1829_v18 }
 0xb1b   : > { %v2034_v53 = vsel %vm460_vm2, %v2033_v10, 0.0  ;;  %v2023_v38 = vsel %vm460_vm2, %v2022_v44, 0.0  ;;  %v2012_v41 = vsel %vm460_vm2, %v2011_v0, 0.0 }
 0xb1c   : > { %2035 = vadd.xlane.f32.xlu2 %v2034_v53  ;;  %2024 = vadd.xlane.f32.xlu1 %v2023_v38  ;;  %v1833_v51 = vperm.slane %v1831_v12, 0  ;;  %v1850_v39 = vperm.slane %v1848_v2, 0  ;;  %v1841_v54 = vperm.slane %v1839_v52, 0 }
 0xb1d   : > { %2013 = vadd.xlane.f32.xlu0 %v2012_v41 }
 0xb31   : > { %1835 = vperm.xlu0 %4643, %v1833_v51  }
 0xb34   : > { %1852 = vperm.xlu2 %4642, %v1850_v39  }
 0xb35   : > { %1843 = vperm.xlu1 %4641, %v1841_v54  }
 0xb8f   : > { %v2025_v47 = vpop.xlane.xlu1 %2024  ;;  %v2036_v1 = vpop.xlane.xlu2 %2035 }
 0xb90   : > { %v2026_v16 = vrot.slane %v2025_v47, 4  ;;  %v2014_v49 = vpop.xlane.xlu0 %2013  ;;  %v2037_v45 = vrot.slane %v2036_v1, 4 }
 0xb91   : > { %v2015_v55 = vrot.slane %v2014_v49, 4 }
 0xb92   : > { %v2027_v42 = vadd.f32 %v2026_v16, %v2025_v47  ;;  %v2038_v5 = vadd.f32 %v2037_v45, %v2036_v1 }
 0xb93   : > { %v2016_v6 = vadd.f32 %v2015_v55, %v2014_v49 }
 0xb94   : > { %v2028_v7 = vrot.slane %v2027_v42, 2  ;;  %v2039_v8 = vrot.slane %v2038_v5, 2 }
 0xb95   : > { %v2017_v3 = vrot.slane %v2016_v6, 2 }
 0xb96   : > { %v2029_v4 = vadd.f32 %v2028_v7, %v2027_v42  ;;  %v2040_v59 = vadd.f32 %v2039_v8, %v2038_v5 }
 0xb97   : > { %v2018_v57 = vadd.f32 %v2017_v3, %v2016_v6  ;;  %v1853_v24 = vpop.permute.xlu2 %1852 }
 0xb98   : > { %v2030_v32 = vrot.slane %v2029_v4, 1  ;;  %v2041_v33 = vrot.slane %v2040_v59, 1  ;;  %v1855_v18 = vmul.f32 %v1853_v24, %v5565_v56  ;;  %v5698_v24 = vld [vmem:[#allocation3 + $0x1a0] sm:$0xff] }
 0xb99   : > { %v2019_v61 = vrot.slane %v2018_v57, 1 }
 0xb9a   : > { %v2031_v35 = vadd.f32 %v2030_v32, %v2029_v4  ;;  %v2042_v36 = vadd.f32 %v2041_v33, %v2040_v59  ;;  %v5629_v59 = vld [vmem:[#allocation3 + $0x148] sm:$0xff]  ;;  %v5635_v32 = vld [vmem:[#allocation3 + $0x138] sm:$0xff]  ;;  %v5638_v33 = vld [vmem:[#allocation3 + $0x130] sm:$0xff] }
 0xb9b   : > { %v2020_v63 = vadd.f32 %v2019_v61, %v2018_v57  ;;  %2396 = vmatpush.msrb.mxu0 %v5629_v59  ;;  %v5632_v57 = vld [vmem:[#allocation3 + $0x140] sm:$0xff]  ;;  %v5640_v61 = vld [vmem:[#allocation3 + $0x128] sm:$0xff] }
 0xb9c   : > { %v2032_v37 = vadd.f32 %v5489_v27, %v2031_v35  ;;  %v2043_v10 = vadd.f32 %v5489_v27, %v2042_v36 }
 0xb9d   : > { %v2021_v40 = vadd.f32 %v5489_v27, %v2020_v63  ;;  %2397 = vmatpush.msrb.mxu0 %v5632_v57 }
 0xb9f   : > { %v2044_v14 = vmax.f32 %v2021_v40, %v2032_v37  ;;  %2398 = vmatpush.msrb.mxu0 %v5635_v32 }
 0xba1   : > { %v2045_v44 = vmax.f32 %v2044_v14, %v2043_v10  ;;  %2399 = vmatpush.msrb.mxu0 %v5638_v33 }
 0xba3   : > { %v2046_v0 = vsub.f32 %v2021_v40, %v2045_v44  ;;  %v2049_v9 = vsub.f32 %v2032_v37, %v2045_v44  ;;  %v2052_v53 = vsub.f32 %v2043_v10, %v2045_v44  ;;  %v1836_v43 = vpop.permute.xlu0 %1835  ;;  %2400 = vmatpush.msrb.mxu0 %v5640_v61 }
 0xba4   : > { %v1838_v50 = vmul.f32 %v1836_v43, %v5570_v22  ;;  %v5686_v43 = vld [vmem:[#allocation3 + $0x160] sm:$0xff] }
 0xba5   : > { %v2047_v38 = vmul.f32 1.442695, %v2046_v0  ;;  %v2050_v41 = vmul.f32 1.442695, %v2049_v9  ;;  %v2053_v48 = vmul.f32 1.442695, %v2052_v53 }
 0xba7   : > { %4704 = vpow2.f32 %v2047_v38  ;;  %v1844_v25 = vpop.permute.xlu1 %1843 }
 0xba8   : > { %4706 = vpow2.f32 %v2050_v41  ;;  %v1846_v34 = vmul.f32 %v1844_v25, %v5567_v60  ;;  %v5702_v25 = vld [vmem:[#allocation3 + $0x198] sm:$0xff] }
 0xba9   : > { %4708 = vpow2.f32 %v2053_v48  ;;  %v5692_v48 = vld [vmem:[#allocation3 + $0x1a8] sm:$0xff] }
 0xbaa   : > { %v1847_v27 = vadd.f32 %v1846_v34, %v1838_v50  ;;  %v5705_v50 = vld [vmem:[#allocation3 + $0x190] sm:$0xff]  ;;  %v5707_v34 = vld [vmem:[#allocation3 + $0x188] sm:$0xff] }
 0xbac   : > { %v5621_v12 = vadd.f32 %v1855_v18, %v1847_v27  ;;  %v5710_v18 = vld [vmem:[#allocation3 + $0x180] sm:$0xff] }
 0xbad   : > { %v4705_v2 = vpop.eup %4704 }
 0xbae   : > { %v4707_v51 = vpop.eup %4706  ;;  %2099 = vrot.lane.b32.xlu2 %v5621_v12, %s4921_s15 }
 0xbaf   : > { %v2055_v52 = vadd.f32 %v4707_v51, %v4705_v2  ;;  %v4709_v39 = vpop.eup %4708 }
 0xbb1   : > { %v2056_v54 = vadd.f32 %v4709_v39, %v2055_v52 }
 0xbb3   : > { %4710 = vrcp.f32 %v2056_v54  ;;  %v2068_v1 = vand.u32 2147483648, %v2056_v54  ;;  %v2066_v16 = vand.u32 2147483647, %v2056_v54  ;;  %vm2062_vm15 = vweird.f32 %v2056_v54 }
 0xbb5   : > { %v2069_v45 = vor.u32 1.1754944e-38, %v2068_v1  ;;  %vm2067_vm7 = vcmp.eq.f32.partialorder %v2066_v16, 8.507059e+37  ;;  %v4829_v1 = vld [vmem:[#allocation5 + $0x20] sm:$0xff]  ;;  %v4830_v16 = vld [vmem:[#allocation5 + $0x18] sm:$0xff] }
 0xbb6   : > { %2321 = vrot.lane.b32.xlu2 %v5508_v62, %s4922_s24 }
 0xbb9   : > { %v4711_v22 = vpop.eup %4710 }
 0xbba   : > { %v2058_v60 = vmul.f32 %v4711_v22, %v2056_v54  ;;  %vm2063_vm14 = vweird.f32 %v4711_v22 }
 0xbbb   : > { %vm2064_vm6 = vmor %vm2062_vm15, %vm2063_vm14 }
 0xbbc   : > { %v2059_v47 = vsub.f32 1.0, %v2058_v60 }
 0xbbe   : > { %v2060_v56 = vmul.f32 %v4711_v22, %v2059_v47 }
 0xbc0   : > { %v2061_v49 = vadd.f32 %v4711_v22, %v2060_v56  ;;  %v2223_v56 = vadd.f32 %v4829_v1, %v5497_v11 }
 0xbc2   : > { %v2065_v55 = vsel %vm2064_vm6, %v4711_v22, %v2061_v49  ;;  %v4828_v22 = vld [vmem:[%s6450_s3 + $0x1] ss:$0 sm:$0xff]  ;;  %v2221_v49 = vadd.f32 %v4830_v16, %v5354_v13 }
 0xbc3   : > { %v2070_v42 = vsel %vm2067_vm7, %v2069_v45, %v2065_v55  ;;  %v4831_v45 = vld [vmem:[#allocation5 + $0x28] sm:$0xff] }
 0xbc4   : > { %v2089_v5 = vmul.f32 %v4709_v39, %v2070_v42  ;;  %v2072_v6 = vmul.f32 %v4705_v2, %v2070_v42  ;;  %v2080_v3 = vmul.f32 %v4707_v51, %v2070_v42  ;;  %v2225_v55 = vadd.f32 %v4831_v45, %v5621_v12  ;;  %v5742_v45 = vld [vmem:[#allocation5 + $0x38] sm:$0xff] }
 0xbc6   : > { %v2091_v7 = vperm.slane %v2089_v5, 0  ;;  %v2074_v8 = vperm.slane %v2072_v6, 0  ;;  %v2082_v4 = vperm.slane %v2080_v3, 0  ;;  %v4832_v3 = vld [vmem:[%s6452_s5 + $0x8] sm:$0xff] }
 0xbc8   : > { %2093 = vperm.xlu1 %4641, %v2091_v7   ;;  %2076 = vperm.xlu0 %4643, %v2074_v8  }
 0xbd0   : > { %2084 = vperm.xlu0 %4643, %v2082_v4  }
 0xbd8   : > { %2102 = vrot.lane.b32.xlu0 %v5497_v11, %s4922_s24 }
 0xc08   : > { %v2100_v0 = vpop.permute.xlu2 %2099 }
 0xc3a   : > { %v2077_v35 = vpop.permute.xlu0 %2076  ;;  %v2094_v63 = vpop.permute.xlu1 %2093 }
 0xc3b   : > { %v2079_v37 = vmul.f32 %v2077_v35, %v5604_v20  ;;  %v2096_v14 = vmul.f32 %v2094_v63, %v5600_v17  ;;  %v5665_v17 = vld [vmem:[#allocation3 + $0x120] sm:$0xff]  ;;  %v2322_v20 = vpop.permute.xlu2 %2321 }
 0xc3c   : > { %2401 = vmatpush.msrb.mxu0 %v5665_v17 }
 0xc42   : > { %v2085_v36 = vpop.permute.xlu0 %2084 }
 0xc43   : > { %v2087_v40 = vmul.f32 %v2085_v36, %v5602_v19 }
 0xc45   : > { %v2088_v10 = vadd.f32 %v2087_v40, %v2079_v37 }
 0xc47   : > { %v5647_v44 = vadd.f32 %v2096_v14, %v2088_v10 }
 0xc49   : > { %2318 = vrot.lane.b32.xlu1 %v5647_v44, %s4921_s15  ;;  %v2105_v9 = vsel %vm460_vm2, %v5647_v44, %v2100_v0 }
 0xc4a   : > { %v2103_v53 = vpop.permute.xlu0 %2102 }
 0xc4b   : > { %v2106_v38 = vsel %vm462_vm3, %v2105_v9, %v2103_v53 }
 0xc4c   : > { %2122 = vmatpush.msra.mxu3 %v2106_v38  ;;  %4529 = vmatmul.msk.f32.vlgmr.msra.gmra.mxu0 %vm501_vm5, %v2106_v38 }
 0xc4d   : > { %2188 = vmatpush.msra.mxu2 %v2106_v38  ;;  %4527 = vmatmul.msk.f32.vlgmr.msra.gmra.mxu3 %vm470_vm4, %v5519_v31 }
 0xc4e   : > { %4530 = vmatmul.msk.f32.vlgmr.msra.gmra.mxu2 %vm470_vm4, %v5526_v58  ;;  %2206 = vmatpush.msrb.mxu3 %v5530_v46 }
 0xc50   : > { %2207 = vmatpush.msrb.mxu3 %v5533_v21 }
 0xc52   : > { %2208 = vmatpush.msrb.mxu3 %v5536_v30 }
 0xc54   : > { %2209 = vmatpush.msrb.mxu3 %v5539_v28  ;;  %v5678_v28 = vld [vmem:[#allocation3 + $0x178] sm:$0xff] }
 0xc55   : > { %2373 = vmatpush.msrb.mxu2 %v5678_v28 }
 0xc56   : > { %2210 = vmatpush.msrb.mxu3 %v5542_v15  ;;  %v5681_v15 = vld [vmem:[#allocation3 + $0x170] sm:$0xff] }
 0xc57   : > { %2374 = vmatpush.msrb.mxu2 %v5681_v15 }
 0xc58   : > { %2211 = vmatpush.msrb.mxu3 %v5545_v29  ;;  %v5683_v29 = vld [vmem:[#allocation3 + $0x168] sm:$0xff] }
 0xc59   : > { %2375 = vmatpush.msrb.mxu2 %v5683_v29 }
 0xc5b   : > { %2376 = vmatpush.msrb.mxu2 %v5686_v43 }
 0xcbb   : > { %v2319_v19 = vpop.permute.xlu1 %2318 }
 0xcbc   : > { %v2324_v41 = vsel %vm460_vm2, %v5354_v13, %v2319_v19 }
 0xcbd   : > { %v2325_v46 = vsel %vm462_vm3, %v2324_v41, %v2322_v20 }
 0xcbe   : > { %2348 = vmatpush.msra.mxu1 %v2325_v46  ;;  %4534 = vmatmul.msk.f32.vlgmr.msrb.gmra.mxu0 %vm501_vm5, %v2325_v46 }
 0xcbf   : > { %2421 = vmatpush.msra.mxu3 %v2325_v46 }
 0xcc9   : > { %v2170_v2 = vpop.f32.mrf.mxu0 }
 0xcd0   : > { %v2124_v21 = vpop.f32.mrf.mxu3 }
 0xcd1   : > { %v2190_v30 = vpop.f32.mrf.mxu2  ;;  %4528 = vmatmul.msk.f32.vlgmr.msrb.gmra.mxu1 %vm501_vm5, %v2124_v21 }
 0xcd2   : > { %4531 = vmatmul.msk.f32.vlgmr.msrb.gmra.mxu3 %vm501_vm5, %v2190_v30  ;;  %2446 = vmatpush.msrb.mxu1 %v5692_v48 }
 0xcd4   : > { %2447 = vmatpush.msrb.mxu1 %v5698_v24 }
 0xcd6   : > { %2448 = vmatpush.msrb.mxu1 %v5702_v25 }
 0xcd8   : > { %2449 = vmatpush.msrb.mxu1 %v5705_v50 }
 0xcd9   : > { %4532 = vmatmul.msk.f32.vlgmr.msra.gmra.mxu1 %vm470_vm4, %v5519_v31  ;;  %v5690_v31 = vld [vmem:[#allocation3 + $0x158] sm:$0xff] }
 0xcda   : > { %4535 = vmatmul.msk.f32.vlgmr.msra.gmra.mxu3 %vm470_vm4, %v5526_v58  ;;  %2377 = vmatpush.msrb.mxu2 %v5690_v31  ;;  %v5696_v58 = vld [vmem:[#allocation3 + $0x150] sm:$0xff] }
 0xcdb   : > { %2450 = vmatpush.msrb.mxu1 %v5707_v34 }
 0xcdc   : > { %2378 = vmatpush.msrb.mxu2 %v5696_v58 }
 0xcdd   : > { %2451 = vmatpush.msrb.mxu1 %v5710_v18 }
 0xd3b   : > { %v2403_v41 = vpop.f32.mrf.mxu0 }
 0xd4e   : > { %v2147_v27 = vpop.f32.mrf.mxu1 }
 0xd4f   : > { %v2171_v51 = vadd.f32 %v2170_v2, %v2147_v27 }
 0xd55   : > { %v2213_v52 = vpop.f32.mrf.mxu3 }
 0xd56   : > { %v2216_v39 = vadd.f32 %v2213_v52, %v2171_v51  ;;  %v2350_v54 = vpop.f32.mrf.mxu1  ;;  %v4647_v52 = vld [vmem:[%s6450_s3 + $0x2] ss:$0 sm:$0xff] }
 0xd57   : > { %4533 = vmatmul.msk.f32.vlgmr.msrb.gmra.mxu2 %vm501_vm5, %v2350_v54 }
 0xd58   : > { %v2217_v60 = vadd.f32 %v4828_v22, %v2216_v39 }
 0xd5a   : > { %vm2218_vm8 = vcmp.gt.f32.partialorder %v2217_v60, 0.0  ;;  %v2219_v47 = vmul.f32 0.01, %v2217_v60 }
 0xd5c   : > { %v2220_v42 = vsel %vm2218_vm8, %v2217_v60, %v2219_v47 }
 0xd5d   : > { %v2423_v5 = vpop.f32.mrf.mxu3  ;;  %v5721_v6 = vadd.f32 %v2223_v56, %v2220_v42  ;;  %v5723_v7 = vadd.f32 %v2221_v49, %v2220_v42  ;;  %v5725_v8 = vadd.f32 %v2225_v55, %v2220_v42  ;;  %v5740_v56 = vld [vmem:[#allocation5 + $0x30] sm:$0xff]  ;;  %v5744_v55 = vld [vmem:[#allocation5 + $0x40] sm:$0xff] }
 0xd5e   : > { %4536 = vmatmul.msk.f32.vlgmr.msrb.gmra.mxu1 %vm501_vm5, %v2423_v5 }
 0xd5f   : > { %v2238_v4 = vmul.f32 %v4832_v3, %v5721_v6  ;;  %v2227_v13 = vmul.f32 %v4832_v3, %v5723_v7  ;;  %v2249_v35 = vmul.f32 %v4832_v3, %v5725_v8 }
 0xd61   : > { %v2239_v63 = vsel %vm460_vm2, %v2238_v4, 0.0  ;;  %v2228_v36 = vsel %vm460_vm2, %v2227_v13, 0.0  ;;  %v2250_v37 = vsel %vm460_vm2, %v2249_v35, 0.0  ;;  %v2468_v13 = vadd.f32 %v5740_v56, %v5361_v26 }
 0xd62   : > { %2240 = vadd.xlane.f32.xlu1 %v2239_v63  ;;  %2229 = vadd.xlane.f32.xlu0 %v2228_v36  ;;  %v2472_v36 = vadd.f32 %v5742_v45, %v5508_v62 }
 0xd63   : > { %2251 = vadd.xlane.f32.xlu2 %v2250_v37  ;;  %v2476_v37 = vadd.f32 %v5744_v55, %v5647_v44 }
 0xdd5   : > { %v2241_v40 = vpop.xlane.xlu1 %2240  ;;  %v2230_v14 = vpop.xlane.xlu0 %2229 }
 0xdd6   : > { %v2242_v10 = vrot.slane %v2241_v40, 4  ;;  %v2231_v0 = vrot.slane %v2230_v14, 4  ;;  %v2252_v9 = vpop.xlane.xlu2 %2251 }
 0xdd7   : > { %v2253_v53 = vrot.slane %v2252_v9, 4 }
 0xdd8   : > { %v2243_v38 = vadd.f32 %v2242_v10, %v2241_v40  ;;  %v2232_v19 = vadd.f32 %v2231_v0, %v2230_v14  ;;  %v5758_v10 = vld [vmem:[%s6452_s5 + $0x10] sm:$0xff] }
 0xdd9   : > { %v2254_v20 = vadd.f32 %v2253_v53, %v2252_v9 }
 0xdda   : > { %v2244_v46 = vrot.slane %v2243_v38, 2  ;;  %v2233_v21 = vrot.slane %v2232_v19, 2  ;;  %v2380_v30 = vpop.f32.mrf.mxu2 }
 0xddb   : > { %v2255_v27 = vrot.slane %v2254_v20, 2  ;;  %v2404_v2 = vadd.f32 %v2403_v41, %v2380_v30  ;;  %v2453_v51 = vpop.f32.mrf.mxu1 }
 0xddc   : > { %v2245_v39 = vadd.f32 %v2244_v46, %v2243_v38  ;;  %v2234_v54 = vadd.f32 %v2233_v21, %v2232_v19 }
 0xddd   : > { %v2256_v22 = vadd.f32 %v2255_v27, %v2254_v20  ;;  %v2456_v60 = vadd.f32 %v2453_v51, %v2404_v2 }
 0xdde   : > { %v2246_v47 = vrot.slane %v2245_v39, 1  ;;  %v2235_v1 = vrot.slane %v2234_v54, 1 }
 0xddf   : > { %v2257_v16 = vrot.slane %v2256_v22, 1  ;;  %v2462_v49 = vadd.f32 %v4647_v52, %v2456_v60 }
 0xde0   : > { %v2247_v42 = vadd.f32 %v2246_v47, %v2245_v39  ;;  %v2236_v5 = vadd.f32 %v2235_v1, %v2234_v54 }
 0xde1   : > { %v2258_v3 = vadd.f32 %v2257_v16, %v2256_v22  ;;  %vm2463_vm9 = vcmp.gt.f32.partialorder %v2462_v49, 0.0  ;;  %v2464_v4 = vmul.f32 0.01, %v2462_v49 }
 0xde2   : > { %v2248_v35 = vadd.f32 %v5588_v23, %v2247_v42  ;;  %v2237_v63 = vadd.f32 %v5588_v23, %v2236_v5 }
 0xde3   : > { %v2259_v40 = vadd.f32 %v5588_v23, %v2258_v3  ;;  %v2465_v14 = vsel %vm2463_vm9, %v2462_v49, %v2464_v4 }
 0xde4   : > { %v2260_v0 = vmax.f32 %v2237_v63, %v2248_v35  ;;  %v5760_v26 = vadd.f32 %v2472_v36, %v2465_v14  ;;  %v5762_v9 = vadd.f32 %v2468_v13, %v2465_v14  ;;  %v5764_v53 = vadd.f32 %v2476_v37, %v2465_v14 }
 0xde6   : > { %v2261_v38 = vmax.f32 %v2260_v0, %v2259_v40  ;;  %v2493_v19 = vmul.f32 %v5758_v10, %v5760_v26  ;;  %v2480_v23 = vmul.f32 %v5758_v10, %v5762_v9  ;;  %v2504_v20 = vmul.f32 %v5758_v10, %v5764_v53 }
 0xde8   : > { %v2262_v41 = vsub.f32 %v2237_v63, %v2261_v38  ;;  %v2265_v46 = vsub.f32 %v2248_v35, %v2261_v38  ;;  %v2268_v21 = vsub.f32 %v2259_v40, %v2261_v38  ;;  %v2494_v30 = vsel %vm460_vm2, %v2493_v19, 0.0 }
 0xde9   : > { %2495 = vadd.xlane.f32.xlu1 %v2494_v30  ;;  %v2481_v27 = vsel %vm460_vm2, %v2480_v23, 0.0  ;;  %v2505_v2 = vsel %vm460_vm2, %v2504_v20, 0.0 }
 0xdea   : > { %v2263_v51 = vmul.f32 1.442695, %v2262_v41  ;;  %v2266_v52 = vmul.f32 1.442695, %v2265_v46  ;;  %2482 = vadd.xlane.f32.xlu0 %v2481_v27  ;;  %2506 = vadd.xlane.f32.xlu2 %v2505_v2  ;;  %v2269_v39 = vmul.f32 1.442695, %v2268_v21 }
 0xdec   : > { %4712 = vpow2.f32 %v2263_v51 }
 0xded   : > { %4714 = vpow2.f32 %v2266_v52 }
 0xdee   : > { %4716 = vpow2.f32 %v2269_v39 }
 0xdf2   : > { %v4713_v54 = vpop.eup %4712 }
 0xdf3   : > { %v4715_v22 = vpop.eup %4714 }
 0xdf4   : > { %v2271_v60 = vadd.f32 %v4715_v22, %v4713_v54  ;;  %v4717_v47 = vpop.eup %4716 }
 0xdf6   : > { %v2272_v1 = vadd.f32 %v4717_v47, %v2271_v60 }
 0xdf8   : > { %4718 = vrcp.f32 %v2272_v1  ;;  %v2284_v5 = vand.u32 2147483648, %v2272_v1  ;;  %v2282_v4 = vand.u32 2147483647, %v2272_v1  ;;  %vm2278_vm10 = vweird.f32 %v2272_v1 }
 0xdfa   : > { %v2285_v35 = vor.u32 1.1754944e-38, %v2284_v5  ;;  %vm2283_vm0 = vcmp.eq.f32.partialorder %v2282_v4, 8.507059e+37 }
 0xdfe   : > { %v4719_v16 = vpop.eup %4718 }
 0xdff   : > { %v2274_v49 = vmul.f32 %v4719_v16, %v2272_v1  ;;  %vm2279_vm1 = vweird.f32 %v4719_v16 }
 0xe00   : > { %vm2280_vm11 = vmor %vm2278_vm10, %vm2279_vm1  ;;  %vm2847_vm10 = vcmask 7168  }
 0xe01   : > { %v2275_v42 = vsub.f32 1.0, %v2274_v49 }
 0xe03   : > { %v2276_v3 = vmul.f32 %v4719_v16, %v2275_v42 }
 0xe05   : > { %v2277_v13 = vadd.f32 %v4719_v16, %v2276_v3 }
 0xe07   : > { %v2281_v63 = vsel %vm2280_vm11, %v4719_v16, %v2277_v13  ;;  %v4539_v16 = vld [vmem:[%s6453_s6 + $0x2] sm:$0x1] }
 0xe08   : > { %v2286_v36 = vsel %vm2283_vm0, %v2285_v35, %v2281_v63 }
 0xe09   : > { %v2305_v37 = vmul.f32 %v4717_v47, %v2286_v36  ;;  %v2296_v40 = vmul.f32 %v4715_v22, %v2286_v36  ;;  %v2288_v14 = vmul.f32 %v4713_v54, %v2286_v36 }
 0xe0b   : > { %v2307_v0 = vperm.slane %v2305_v37, 0  ;;  %v2298_v38 = vperm.slane %v2296_v40, 0  ;;  %v2290_v19 = vperm.slane %v2288_v14, 0 }
 0xe0d   : > { %2309 = vperm.xlu2 %4642, %v2307_v0   ;;  %2300 = vperm.xlu1 %4641, %v2298_v38  }
 0xe0e   : > { %2292 = vperm.xlu0 %4643, %v2290_v19  }
 0xe5c   : > { %v2496_v23 = vpop.xlane.xlu1 %2495 }
 0xe5d   : > { %v2497_v20 = vrot.slane %v2496_v23, 4  ;;  %v2483_v41 = vpop.xlane.xlu0 %2482  ;;  %v2507_v46 = vpop.xlane.xlu2 %2506 }
 0xe5e   : > { %v2484_v21 = vrot.slane %v2483_v41, 4  ;;  %v2508_v30 = vrot.slane %v2507_v46, 4 }
 0xe5f   : > { %v2498_v27 = vadd.f32 %v2497_v20, %v2496_v23 }
 0xe60   : > { %v2485_v2 = vadd.f32 %v2484_v21, %v2483_v41  ;;  %v2509_v51 = vadd.f32 %v2508_v30, %v2507_v46 }
 0xe61   : > { %v2499_v52 = vrot.slane %v2498_v27, 2 }
 0xe62   : > { %v2486_v39 = vrot.slane %v2485_v2, 2  ;;  %v2510_v60 = vrot.slane %v2509_v51, 2 }
 0xe63   : > { %v2500_v22 = vadd.f32 %v2499_v52, %v2498_v27 }
 0xe64   : > { %v2487_v54 = vadd.f32 %v2486_v39, %v2485_v2  ;;  %v2511_v47 = vadd.f32 %v2510_v60, %v2509_v51 }
 0xe65   : > { %v2501_v1 = vrot.slane %v2500_v22, 1 }
 0xe66   : > { %v2488_v49 = vrot.slane %v2487_v54, 1  ;;  %v2512_v42 = vrot.slane %v2511_v47, 1 }
 0xe67   : > { %v2502_v5 = vadd.f32 %v2501_v1, %v2500_v22 }
 0xe68   : > { %v2489_v3 = vadd.f32 %v2488_v49, %v2487_v54  ;;  %v2513_v4 = vadd.f32 %v2512_v42, %v2511_v47 }
 0xe69   : > { %v2503_v13 = vadd.f32 %v4539_v16, %v2502_v5 }
 0xe6a   : > { %v2492_v35 = vadd.f32 %v4539_v16, %v2489_v3  ;;  %v2514_v36 = vadd.f32 %v4539_v16, %v2513_v4 }
 0xe6c   : > { %v2515_v63 = vmax.f32 %v2492_v35, %v2503_v13 }
 0xe6e   : > { %v2516_v37 = vmax.f32 %v2515_v63, %v2514_v36 }
 0xe70   : > { %v2517_v40 = vsub.f32 %v2492_v35, %v2516_v37  ;;  %v2520_v14 = vsub.f32 %v2503_v13, %v2516_v37  ;;  %v2523_v0 = vsub.f32 %v2514_v36, %v2516_v37  ;;  %v2310_v37 = vpop.permute.xlu2 %2309 }
 0xe72   : > { %v2518_v38 = vmul.f32 1.442695, %v2517_v40  ;;  %v2521_v19 = vmul.f32 1.442695, %v2520_v14  ;;  %v2524_v23 = vmul.f32 1.442695, %v2523_v0  ;;  %v2312_v14 = vmul.f32 %v2310_v37, %v5725_v8 }
 0xe73   : > { %v5796_v8 = vld [vmem:[#allocation3 + $0x1c0] sm:$0xff] }
 0xe74   : > { %4720 = vpow2.f32 %v2518_v38  ;;  %v5787_v38 = vld [vmem:[#allocation3 + $0x1d8] sm:$0xff] }
 0xe75   : > { %4722 = vpow2.f32 %v2521_v19  ;;  %2648 = vmatpush.msra.mxu0 %v5787_v38  ;;  %v5798_v19 = vld [vmem:[#allocation3 + $0x1b8] sm:$0xff] }
 0xe76   : > { %4724 = vpow2.f32 %v2524_v23  ;;  %v5802_v23 = vld [vmem:[#allocation3 + $0x1b0] sm:$0xff] }
 0xe7a   : > { %v4721_v20 = vpop.eup %4720 }
 0xe7b   : > { %v4723_v41 = vpop.eup %4722 }
 0xe7c   : > { %v2526_v46 = vadd.f32 %v4723_v41, %v4721_v20  ;;  %v4725_v21 = vpop.eup %4724 }
 0xe7e   : > { %v2527_v30 = vadd.f32 %v4725_v21, %v2526_v46 }
 0xe7f   : > { %v2301_v16 = vpop.permute.xlu1 %2300 }
 0xe80   : > { %4726 = vrcp.f32 %v2527_v30  ;;  %v2539_v52 = vand.u32 2147483648, %v2527_v30  ;;  %v2537_v60 = vand.u32 2147483647, %v2527_v30  ;;  %vm2533_vm13 = vweird.f32 %v2527_v30  ;;  %v2293_v49 = vpop.permute.xlu0 %2292 }
 0xe81   : > { %v2303_v63 = vmul.f32 %v2301_v16, %v5721_v6  ;;  %v2295_v36 = vmul.f32 %v2293_v49, %v5723_v7  ;;  %v5790_v6 = vld [vmem:[#allocation3 + $0x1d0] sm:$0xff]  ;;  %v5793_v7 = vld [vmem:[#allocation3 + $0x1c8] sm:$0xff] }
 0xe82   : > { %v2540_v54 = vor.u32 1.1754944e-38, %v2539_v52  ;;  %vm2538_vm15 = vcmp.eq.f32.partialorder %v2537_v60, 8.507059e+37  ;;  %2649 = vmatpush.msra.mxu0 %v5790_v6  ;;  %v5845_v16 = vld [vmem:[#allocation3 + $0x230] sm:$0xff] }
 0xe83   : > { %v2304_v40 = vadd.f32 %v2303_v63, %v2295_v36  ;;  %v5847_v49 = vld [vmem:[#allocation3 + $0x1f0] sm:$0xff] }
 0xe84   : > { %2650 = vmatpush.msra.mxu0 %v5793_v7 }
 0xe85   : > { %v5781_v0 = vadd.f32 %v2312_v14, %v2304_v40 }
 0xe86   : > { %v4727_v27 = vpop.eup %4726  ;;  %2651 = vmatpush.msra.mxu0 %v5796_v8 }
 0xe87   : > { %v2529_v2 = vmul.f32 %v4727_v27, %v2527_v30  ;;  %vm2534_vm12 = vweird.f32 %v4727_v27 }
 0xe88   : > { %vm2535_vm14 = vmor %vm2533_vm13, %vm2534_vm12  ;;  %2652 = vmatpush.msra.mxu0 %v5798_v19 }
 0xe89   : > { %v2530_v51 = vsub.f32 1.0, %v2529_v2 }
 0xe8a   : > { %2653 = vmatpush.msra.mxu0 %v5802_v23 }
 0xe8b   : > { %v2531_v39 = vmul.f32 %v4727_v27, %v2530_v51 }
 0xe8d   : > { %v2532_v22 = vadd.f32 %v4727_v27, %v2531_v39 }
 0xe8f   : > { %v2536_v47 = vsel %vm2535_vm14, %v4727_v27, %v2532_v22 }
 0xe90   : > { %v2541_v1 = vsel %vm2538_vm15, %v2540_v54, %v2536_v47 }
 0xe91   : > { %v2560_v42 = vmul.f32 %v4725_v21, %v2541_v1  ;;  %v2551_v5 = vmul.f32 %v4723_v41, %v2541_v1  ;;  %v2543_v3 = vmul.f32 %v4721_v20, %v2541_v1  ;;  %v5805_v20 = vld [vmem:[#allocation3 + $0x208] sm:$0xff]  ;;  %v5807_v41 = vld [vmem:[#allocation3 + $0x200] sm:$0xff]  ;;  %v5819_v1 = vld [vmem:[#allocation3 + $0x238] sm:$0xff] }
 0xe92   : > { %2625 = vmatpush.msrb.mxu3 %v5805_v20 }
 0xe93   : > { %v2562_v4 = vperm.slane %v2560_v42, 0  ;;  %v2553_v13 = vperm.slane %v2551_v5, 0  ;;  %v2545_v35 = vperm.slane %v2543_v3, 0 }
 0xe94   : > { %2626 = vmatpush.msrb.mxu3 %v5807_v41 }
 0xe95   : > { %2564 = vperm.xlu1 %4641, %v2562_v4   ;;  %2555 = vperm.xlu2 %4642, %v2553_v13   ;;  %v5887_v4 = vld [vmem:[#allocation5 + $0x58] sm:$0xff]  ;;  %v5889_v13 = vld [vmem:[#allocation5 + $0x50] sm:$0xff] }
 0xe96   : > { %2547 = vperm.xlu0 %4643, %v2545_v35   ;;  %v5891_v35 = vld [vmem:[#allocation5 + $0x48] sm:$0xff]  ;;  %v2728_v36 = vadd.f32 %v5887_v4, %v5781_v0  ;;  %v2724_v37 = vadd.f32 %v5889_v13, %v5621_v12 }
 0xe97   : > { %v2720_v40 = vadd.f32 %v5891_v35, %v5497_v11 }
 0xe9d   : > { %2573 = vrot.lane.b32.xlu2 %v5621_v12, %s4922_s24 }
 0xe9e   : > { %2570 = vrot.lane.b32.xlu0 %v5781_v0, %s4921_s15 }
 0xeef   : > { %v2556_v46 = vpop.permute.xlu2 %2555 }
 0xef0   : > { %v2558_v30 = vmul.f32 %v2556_v46, %v5760_v26  ;;  %v5825_v26 = vld [vmem:[%s6448_s1] sm:$0xff] }
 0xef7   : > { %v2574_v22 = vpop.permute.xlu2 %2573 }
 0xf07   : > { %v2565_v2 = vpop.permute.xlu1 %2564 }
 0xf08   : > { %v2548_v21 = vpop.permute.xlu0 %2547  ;;  %v2567_v52 = vmul.f32 %v2565_v2, %v5764_v53  ;;  %v5843_v53 = vld [vmem:[#allocation3 + $0x1f8] sm:$0xff] }
 0xf09   : > { %v2550_v27 = vmul.f32 %v2548_v21, %v5762_v9  ;;  %v5832_v9 = vld [vmem:[%s6448_s1 + $0x8] sm:$0xff]  ;;  %2627 = vmatpush.msrb.mxu3 %v5843_v53 }
 0xf0b   : > { %v2559_v51 = vadd.f32 %v2558_v30, %v2550_v27  ;;  %2628 = vmatpush.msrb.mxu3 %v5847_v49 }
 0xf0d   : > { %v5814_v39 = vadd.f32 %v2567_v52, %v2559_v51 }
 0xf10   : > { %v2571_v60 = vpop.permute.xlu0 %2570 }
 0xf11   : > { %v2576_v54 = vsel %vm460_vm2, %v5814_v39, %v2571_v60 }
 0xf12   : > { %v2577_v47 = vsel %vm462_vm3, %v2576_v54, %v2574_v22 }
 0xf13   : > { %2600 = vmatpush.msra.mxu2 %v2577_v47  ;;  %4542 = vmatmul.msk.f32.vlgmr.msra.gmra.mxu0 %vm501_vm5, %v2577_v47 }
 0xf14   : > { %2673 = vmatpush.msra.mxu1 %v2577_v47  ;;  %4540 = vmatmul.msk.f32.vlgmr.msra.gmra.mxu2 %vm470_vm4, %v5825_v26 }
 0xf15   : > { %4543 = vmatmul.msk.f32.vlgmr.msra.gmra.mxu1 %vm470_vm4, %v5832_v9  ;;  %2698 = vmatpush.msrb.mxu2 %v5819_v1 }
 0xf16   : > { %2903 = vmatpush.msrb.mxu1 %v5678_v28  ;;  %v5851_v28 = vld [vmem:[#allocation3 + $0x228] sm:$0xff] }
 0xf17   : > { %2699 = vmatpush.msrb.mxu2 %v5845_v16 }
 0xf18   : > { %2904 = vmatpush.msrb.mxu1 %v5681_v15  ;;  %v5853_v15 = vld [vmem:[#allocation3 + $0x1e8] sm:$0xff] }
 0xf19   : > { %2700 = vmatpush.msrb.mxu2 %v5851_v28  ;;  %2629 = vmatpush.msrb.mxu3 %v5853_v15 }
 0xf1a   : > { %2905 = vmatpush.msrb.mxu1 %v5683_v29  ;;  %v5855_v29 = vld [vmem:[#allocation3 + $0x220] sm:$0xff] }
 0xf1b   : > { %2701 = vmatpush.msrb.mxu2 %v5855_v29 }
 0xf1c   : > { %2906 = vmatpush.msrb.mxu1 %v5686_v43  ;;  %v5861_v43 = vld [vmem:[#allocation3 + $0x1e0] sm:$0xff] }
 0xf1d   : > { %2630 = vmatpush.msrb.mxu3 %v5861_v43 }
 0xf1e   : > { %2907 = vmatpush.msrb.mxu1 %v5690_v31  ;;  %v5863_v31 = vld [vmem:[#allocation3 + $0x218] sm:$0xff] }
 0xf1f   : > { %2702 = vmatpush.msrb.mxu2 %v5863_v31 }
 0xf20   : > { %2908 = vmatpush.msrb.mxu1 %v5696_v58  ;;  %v5867_v58 = vld [vmem:[#allocation3 + $0x210] sm:$0xff] }
 0xf21   : > { %2703 = vmatpush.msrb.mxu2 %v5867_v58 }
 0xf23   : > { %2926 = vmatpush.msra.mxu2 %v5629_v59 }
 0xf25   : > { %2927 = vmatpush.msra.mxu2 %v5632_v57 }
 0xf27   : > { %2928 = vmatpush.msra.mxu2 %v5635_v32 }
 0xf29   : > { %2929 = vmatpush.msra.mxu2 %v5638_v33 }
 0xf2b   : > { %2930 = vmatpush.msra.mxu2 %v5640_v61  ;;  %v4648_v61 = vld [vmem:[%s6450_s3 + $0x3] ss:$0 sm:$0xff] }
 0xf2d   : > { %2931 = vmatpush.msra.mxu2 %v5665_v17 }
 0xf90   : > { %v2655_v59 = vpop.f32.mrf.mxu0 }
 0xf92   : > { %v2675_v42 = vpop.f32.mrf.mxu1 }
 0xf93   : > { %4544 = vmatmul.msk.f32.vlgmr.msrb.gmra.mxu2 %vm501_vm5, %v2675_v42 }
 0xf94   : > { %3168 = vmatpush.msrb.mxu2 %v5787_v38  ;;  %v5902_v38 = vld [vmem:[%s6452_s5 + $0x18] sm:$0xff] }
 0xf96   : > { %3169 = vmatpush.msrb.mxu2 %v5790_v6 }
 0xf97   : > { %v2602_v5 = vpop.f32.mrf.mxu2 }
 0xf98   : > { %4541 = vmatmul.msk.f32.vlgmr.msrb.gmra.mxu3 %vm501_vm5, %v2602_v5  ;;  %3170 = vmatpush.msrb.mxu2 %v5793_v7 }
 0xf9a   : > { %3171 = vmatpush.msrb.mxu2 %v5796_v8 }
 0xf9c   : > { %3172 = vmatpush.msrb.mxu2 %v5798_v19 }
 0xf9e   : > { %3173 = vmatpush.msrb.mxu2 %v5802_v23 }
0x1016   : > { %v2705_v32 = vpop.f32.mrf.mxu2 }
0x101b   : > { %v2632_v57 = vpop.f32.mrf.mxu3 }
0x101c   : > { %v2656_v33 = vadd.f32 %v2655_v59, %v2632_v57 }
0x101e   : > { %v2708_v17 = vadd.f32 %v2705_v32, %v2656_v33 }
0x1020   : > { %v2714_v3 = vadd.f32 %v4648_v61, %v2708_v17 }
0x1022   : > { %vm2715_vm6 = vcmp.gt.f32.partialorder %v2714_v3, 0.0  ;;  %v2716_v63 = vmul.f32 0.01, %v2714_v3 }
0x1024   : > { %v2717_v14 = vsel %vm2715_vm6, %v2714_v3, %v2716_v63 }
0x1025   : > { %v5904_v6 = vadd.f32 %v2728_v36, %v2717_v14  ;;  %v5906_v7 = vadd.f32 %v2724_v37, %v2717_v14  ;;  %v5908_v8 = vadd.f32 %v2720_v40, %v2717_v14  ;;  %v4547_v36 = vld [vmem:[%s6453_s6 + $0x3] sm:$0x1] }
0x1027   : > { %v2756_v19 = vmul.f32 %v5902_v38, %v5904_v6  ;;  %v2745_v23 = vmul.f32 %v5902_v38, %v5906_v7  ;;  %v2732_v46 = vmul.f32 %v5902_v38, %v5908_v8 }
0x1029   : > { %v2757_v21 = vsel %vm460_vm2, %v2756_v19, 0.0  ;;  %v2746_v30 = vsel %vm460_vm2, %v2745_v23, 0.0  ;;  %v2733_v27 = vsel %vm460_vm2, %v2732_v46, 0.0 }
0x102a   : > { %2758 = vadd.xlane.f32.xlu2 %v2757_v21  ;;  %2747 = vadd.xlane.f32.xlu0 %v2746_v30 }
0x102b   : > { %2734 = vadd.xlane.f32.xlu1 %v2733_v27 }
0x109d   : > { %v2759_v2 = vpop.xlane.xlu2 %2758  ;;  %v2748_v51 = vpop.xlane.xlu0 %2747 }
0x109e   : > { %v2760_v52 = vrot.slane %v2759_v2, 4  ;;  %v2749_v60 = vrot.slane %v2748_v51, 4  ;;  %v2735_v22 = vpop.xlane.xlu1 %2734 }
0x109f   : > { %v2736_v54 = vrot.slane %v2735_v22, 4 }
0x10a0   : > { %v2761_v47 = vadd.f32 %v2760_v52, %v2759_v2  ;;  %v2750_v42 = vadd.f32 %v2749_v60, %v2748_v51 }
0x10a1   : > { %v2737_v5 = vadd.f32 %v2736_v54, %v2735_v22 }
0x10a2   : > { %v2762_v59 = vrot.slane %v2761_v47, 2  ;;  %v2751_v57 = vrot.slane %v2750_v42, 2 }
0x10a3   : > { %v2738_v32 = vrot.slane %v2737_v5, 2 }
0x10a4   : > { %v2763_v33 = vadd.f32 %v2762_v59, %v2761_v47  ;;  %v2752_v61 = vadd.f32 %v2751_v57, %v2750_v42 }
0x10a5   : > { %v2739_v17 = vadd.f32 %v2738_v32, %v2737_v5 }
0x10a6   : > { %v2764_v3 = vrot.slane %v2763_v33, 1  ;;  %v2753_v63 = vrot.slane %v2752_v61, 1 }
0x10a7   : > { %v2740_v37 = vrot.slane %v2739_v17, 1 }
0x10a8   : > { %v2754_v40 = vadd.f32 %v2753_v63, %v2752_v61  ;;  %v2765_v14 = vadd.f32 %v2764_v3, %v2763_v33 }
0x10a9   : > { %v2741_v19 = vadd.f32 %v2740_v37, %v2739_v17 }
0x10aa   : > { %v2755_v23 = vadd.f32 %v4547_v36, %v2754_v40  ;;  %v2766_v21 = vadd.f32 %v4547_v36, %v2765_v14 }
0x10ab   : > { %v2744_v46 = vadd.f32 %v4547_v36, %v2741_v19 }
0x10ad   : > { %v2767_v30 = vmax.f32 %v2744_v46, %v2755_v23 }
0x10af   : > { %v2768_v27 = vmax.f32 %v2767_v30, %v2766_v21 }
0x10b1   : > { %v2769_v2 = vsub.f32 %v2744_v46, %v2768_v27  ;;  %v2772_v51 = vsub.f32 %v2755_v23, %v2768_v27  ;;  %v2775_v52 = vsub.f32 %v2766_v21, %v2768_v27 }
0x10b3   : > { %v2770_v60 = vmul.f32 1.442695, %v2769_v2  ;;  %v2773_v22 = vmul.f32 1.442695, %v2772_v51  ;;  %v2776_v54 = vmul.f32 1.442695, %v2775_v52 }
0x10b4   : > { %v5929_v2 = vld [vmem:[%s6456_s9 + $0x8] sm:$0xff]  ;;  %v5935_v51 = vld [vmem:[%s6456_s9] sm:$0xff] }
0x10b5   : > { %4728 = vpow2.f32 %v2770_v60  ;;  %2841 = vmatpush.msra.mxu3 %v5929_v2 }
0x10b6   : > { %4730 = vpow2.f32 %v2773_v22 }
0x10b7   : > { %4732 = vpow2.f32 %v2776_v54  ;;  %2842 = vmatpush.msra.mxu3 %v5935_v51 }
0x10bb   : > { %v4729_v47 = vpop.eup %4728 }
0x10bc   : > { %v4731_v42 = vpop.eup %4730 }
0x10bd   : > { %v2778_v5 = vadd.f32 %v4731_v42, %v4729_v47  ;;  %v4733_v59 = vpop.eup %4732 }
0x10bf   : > { %v2779_v57 = vadd.f32 %v4733_v59, %v2778_v5 }
0x10c1   : > { %4734 = vrcp.f32 %v2779_v57  ;;  %v2791_v17 = vand.u32 2147483648, %v2779_v57  ;;  %v2789_v63 = vand.u32 2147483647, %v2779_v57  ;;  %vm2785_vm8 = vweird.f32 %v2779_v57 }
0x10c3   : > { %v2792_v37 = vor.u32 1.1754944e-38, %v2791_v17  ;;  %vm2790_vm1 = vcmp.eq.f32.partialorder %v2789_v63, 8.507059e+37 }
0x10c7   : > { %v4735_v32 = vpop.eup %4734 }
0x10c8   : > { %v2781_v33 = vmul.f32 %v4735_v32, %v2779_v57  ;;  %vm2786_vm7 = vweird.f32 %v4735_v32 }
0x10c9   : > { %vm2787_vm9 = vmor %vm2785_vm8, %vm2786_vm7 }
0x10ca   : > { %v2782_v61 = vsub.f32 1.0, %v2781_v33 }
0x10cc   : > { %v2783_v3 = vmul.f32 %v4735_v32, %v2782_v61 }
0x10ce   : > { %v2784_v36 = vadd.f32 %v4735_v32, %v2783_v3 }
0x10d0   : > { %v2788_v40 = vsel %vm2787_vm9, %v4735_v32, %v2784_v36 }
0x10d1   : > { %v2793_v14 = vsel %vm2790_vm1, %v2792_v37, %v2788_v40 }
0x10d2   : > { %v2812_v19 = vmul.f32 %v4733_v59, %v2793_v14  ;;  %v2803_v23 = vmul.f32 %v4731_v42, %v2793_v14  ;;  %v2795_v46 = vmul.f32 %v4729_v47, %v2793_v14 }
0x10d4   : > { %v2814_v21 = vperm.slane %v2812_v19, 0  ;;  %v2805_v30 = vperm.slane %v2803_v23, 0  ;;  %v2797_v27 = vperm.slane %v2795_v46, 0 }
0x10d6   : > { %2816 = vperm.xlu2 %4642, %v2814_v21   ;;  %2807 = vperm.xlu0 %4643, %v2805_v30  }
0x10d7   : > { %2799 = vperm.xlu1 %4641, %v2797_v27  }
0x10de   : > { %2850 = vrot.lane.b32.xlu0 %v5814_v39, %s4921_s15 }
0x10df   : > { %2853 = vrot.lane.b32.xlu1 %v5647_v44, %s4922_s24 }
0x1130   : > { %v2817_v60 = vpop.permute.xlu2 %2816 }
0x1131   : > { %v2819_v42 = vmul.f32 %v2817_v60, %v5904_v6  ;;  %v3001_v6 = vadd.f32 %v5814_v39, %v5744_v55 }
0x1148   : > { %v2808_v52 = vpop.permute.xlu0 %2807 }
0x1149   : > { %v2810_v22 = vmul.f32 %v2808_v52, %v5906_v7  ;;  %v2800_v54 = vpop.permute.xlu1 %2799  ;;  %v2998_v7 = vadd.f32 %v5742_v45, %v5647_v44 }
0x114a   : > { %v2802_v47 = vmul.f32 %v2800_v54, %v5908_v8  ;;  %v2995_v8 = vadd.f32 %v5740_v56, %v5508_v62 }
0x114c   : > { %v2811_v5 = vadd.f32 %v2810_v22, %v2802_v47 }
0x114e   : > { %v5941_v59 = vadd.f32 %v2819_v42, %v2811_v5 }
0x1150   : > { %4548 = vmatmul.msk.f32.vlgmr.msra.gmra.mxu3 %vm460_vm2, %v5941_v59  ;;  %v2851_v57 = vpop.permute.xlu0 %2850 }
0x1151   : > { %v2856_v32 = vsel %vm460_vm2, %v5497_v11, %v2851_v57  ;;  %v2854_v33 = vpop.permute.xlu1 %2853  ;;  %v5967_v11 = vld [vmem:[#allocation2] ss:$0 sm:$0xff] }
0x1152   : > { %v2857_v61 = vsel %vm462_vm3, %v2856_v32, %v2854_v33  ;;  %v4556_v33 = vld [vmem:[%s6453_s6 + $0x2] sm:$0x1] }
0x1153   : > { %2879 = vmatpush.msrb.mxu0 %v2857_v61  ;;  %4551 = vmatmul.msk.f32.vlgmr.msra.gmra.mxu2 %vm501_vm5, %v2857_v61 }
0x1154   : > { %2951 = vmatpush.msrb.mxu3 %v2857_v61  ;;  %4549 = vmatmul.msk.f32.vlgmr.msrb.gmra.mxu0 %vm470_vm4, %v5825_v26 }
0x1155   : > { %2975 = vmatpush.msra.mxu0 %v5692_v48 }
0x1156   : > { %3145 = vmatpush.msra.mxu3 %v5805_v20 }
0x1157   : > { %2976 = vmatpush.msra.mxu0 %v5698_v24 }
0x1158   : > { %3146 = vmatpush.msra.mxu3 %v5807_v41  ;;  %v4650_v41 = vld [vmem:[%s6450_s3 + $0x2] ss:$0 sm:$0xff] }
0x1159   : > { %4552 = vmatmul.msk.f32.vlgmr.msrb.gmra.mxu3 %vm470_vm4, %v5832_v9  ;;  %2977 = vmatpush.msra.mxu0 %v5702_v25 }
0x115a   : > { %3147 = vmatpush.msra.mxu3 %v5843_v53 }
0x115b   : > { %2978 = vmatpush.msra.mxu0 %v5705_v50 }
0x115c   : > { %3148 = vmatpush.msra.mxu3 %v5847_v49 }
0x115d   : > { %2979 = vmatpush.msra.mxu0 %v5707_v34 }
0x115e   : > { %3149 = vmatpush.msra.mxu3 %v5853_v15 }
0x115f   : > { %2980 = vmatpush.msra.mxu0 %v5710_v18 }
0x1160   : > { %3150 = vmatpush.msra.mxu3 %v5861_v43 }
0x1162   : > { %3351 = vmatpush.msrb.mxu3 %v5929_v2 }
0x1164   : > { %3352 = vmatpush.msrb.mxu3 %v5935_v51 }
0x11d1   : > { %v2881_v48 = vpop.f32.mrf.mxu0 }
0x11d2   : > { %4550 = vmatmul.msk.f32.vlgmr.msrb.gmra.mxu1 %vm501_vm5, %v2881_v48 }
0x11d3   : > { %v2844_v24 = vpop.f32.mrf.mxu3 }
0x11d4   : > { %v2845_v25 = vadd.f32 %v5967_v11, %v2844_v24 }
0x11d6   : > { %2848 = vst.msk [vmem:[%s5975_s17] sm:$0xff] %vm2847_vm10, %v2845_v25  ;;  %v2933_v18 = vpop.f32.mrf.mxu2 }
0x11dc   : > { %v2953_v50 = vpop.f32.mrf.mxu3 }
0x11dd   : > { %4553 = vmatmul.msk.f32.vlgmr.msra.gmra.mxu0 %vm501_vm5, %v2953_v50 }
0x124f   : > { %v2910_v34 = vpop.f32.mrf.mxu1 }
0x1250   : > { %v2934_v20 = vadd.f32 %v2933_v18, %v2910_v34 }
0x125a   : > { %v2982_v53 = vpop.f32.mrf.mxu0 }
0x125b   : > { %v2985_v49 = vadd.f32 %v2982_v53, %v2934_v20 }
0x125d   : > { %v2990_v15 = vadd.f32 %v4650_v41, %v2985_v49 }
0x125f   : > { %vm2991_vm11 = vcmp.gt.f32.partialorder %v2990_v15, 0.0  ;;  %v2992_v43 = vmul.f32 0.01, %v2990_v15 }
0x1261   : > { %v2993_v17 = vsel %vm2991_vm11, %v2990_v15, %v2992_v43 }
0x1262   : > { %v5990_v3 = vadd.f32 %v3001_v6, %v2993_v17  ;;  %v5992_v63 = vadd.f32 %v2998_v7, %v2993_v17  ;;  %v5994_v36 = vadd.f32 %v2995_v8, %v2993_v17 }
0x1264   : > { %v3027_v37 = vmul.f32 %v5758_v10, %v5990_v3  ;;  %v3016_v40 = vmul.f32 %v5758_v10, %v5992_v63  ;;  %v3004_v55 = vmul.f32 %v5758_v10, %v5994_v36 }
0x1266   : > { %v3028_v45 = vsel %vm460_vm2, %v3027_v37, 0.0  ;;  %v3017_v62 = vsel %vm460_vm2, %v3016_v40, 0.0  ;;  %v3005_v56 = vsel %vm460_vm2, %v3004_v55, 0.0 }
0x1267   : > { %3029 = vadd.xlane.f32.xlu1 %v3028_v45  ;;  %3018 = vadd.xlane.f32.xlu0 %v3017_v62 }
0x1268   : > { %3006 = vadd.xlane.f32.xlu2 %v3005_v56 }
0x12da   : > { %v3030_v14 = vpop.xlane.xlu1 %3029  ;;  %v3019_v19 = vpop.xlane.xlu0 %3018 }
0x12db   : > { %v3031_v23 = vrot.slane %v3030_v14, 4  ;;  %v3020_v46 = vrot.slane %v3019_v19, 4  ;;  %v3007_v21 = vpop.xlane.xlu2 %3006 }
0x12dc   : > { %v3008_v30 = vrot.slane %v3007_v21, 4 }
0x12dd   : > { %v3032_v27 = vadd.f32 %v3031_v23, %v3030_v14  ;;  %v3021_v52 = vadd.f32 %v3020_v46, %v3019_v19 }
0x12de   : > { %v3009_v60 = vadd.f32 %v3008_v30, %v3007_v21 }
0x12df   : > { %v3033_v22 = vrot.slane %v3032_v27, 2  ;;  %v3022_v10 = vrot.slane %v3021_v52, 2 }
0x12e0   : > { %v3010_v54 = vrot.slane %v3009_v60, 2 }
0x12e1   : > { %v3034_v47 = vadd.f32 %v3033_v22, %v3032_v27  ;;  %v3023_v42 = vadd.f32 %v3022_v10, %v3021_v52 }
0x12e2   : > { %v3011_v5 = vadd.f32 %v3010_v54, %v3009_v60 }
0x12e3   : > { %v3035_v57 = vrot.slane %v3034_v47, 1  ;;  %v3024_v32 = vrot.slane %v3023_v42, 1 }
0x12e4   : > { %v3012_v61 = vrot.slane %v3011_v5, 1 }
0x12e5   : > { %v3025_v48 = vadd.f32 %v3024_v32, %v3023_v42  ;;  %v3036_v24 = vadd.f32 %v3035_v57, %v3034_v47 }
0x12e6   : > { %v3013_v25 = vadd.f32 %v3012_v61, %v3011_v5 }
0x12e7   : > { %v3026_v50 = vadd.f32 %v4556_v33, %v3025_v48  ;;  %v3037_v18 = vadd.f32 %v4556_v33, %v3036_v24 }
0x12e8   : > { %v3015_v34 = vadd.f32 %v4556_v33, %v3013_v25 }
0x12ea   : > { %v3038_v20 = vmax.f32 %v3015_v34, %v3026_v50 }
0x12ec   : > { %v3039_v41 = vmax.f32 %v3038_v20, %v3037_v18 }
0x12ee   : > { %v3040_v53 = vsub.f32 %v3015_v34, %v3039_v41  ;;  %v3043_v49 = vsub.f32 %v3026_v50, %v3039_v41  ;;  %v3046_v15 = vsub.f32 %v3037_v18, %v3039_v41 }
0x12f0   : > { %v3041_v43 = vmul.f32 1.442695, %v3040_v53  ;;  %v3044_v6 = vmul.f32 1.442695, %v3043_v49  ;;  %v3047_v7 = vmul.f32 1.442695, %v3046_v15  ;;  %v3240_v53 = vadd.f32 %v5889_v13, %v5781_v0 }
0x12f1   : > { %v3237_v49 = vadd.f32 %v5891_v35, %v5621_v12 }
0x12f2   : > { %4736 = vpow2.f32 %v3041_v43 }
0x12f3   : > { %4738 = vpow2.f32 %v3044_v6 }
0x12f4   : > { %4740 = vpow2.f32 %v3047_v7 }
0x12f8   : > { %v4737_v8 = vpop.eup %4736 }
0x12f9   : > { %v4739_v17 = vpop.eup %4738 }
0x12fa   : > { %v3049_v37 = vadd.f32 %v4739_v17, %v4737_v8  ;;  %v4741_v40 = vpop.eup %4740 }
0x12fc   : > { %v3050_v55 = vadd.f32 %v4741_v40, %v3049_v37 }
0x12fe   : > { %4742 = vrcp.f32 %v3050_v55  ;;  %v3062_v14 = vand.u32 2147483648, %v3050_v55  ;;  %v3060_v23 = vand.u32 2147483647, %v3050_v55  ;;  %vm3056_vm12 = vweird.f32 %v3050_v55 }
0x1300   : > { %v3063_v21 = vor.u32 1.1754944e-38, %v3062_v14  ;;  %vm3061_vm14 = vcmp.eq.f32.partialorder %v3060_v23, 8.507059e+37 }
0x1304   : > { %v4743_v45 = vpop.eup %4742 }
0x1305   : > { %v3052_v62 = vmul.f32 %v4743_v45, %v3050_v55  ;;  %vm3057_vm0 = vweird.f32 %v4743_v45 }
0x1306   : > { %vm3058_vm13 = vmor %vm3056_vm12, %vm3057_vm0 }
0x1307   : > { %v3053_v56 = vsub.f32 1.0, %v3052_v62 }
0x1309   : > { %v3054_v19 = vmul.f32 %v4743_v45, %v3053_v56 }
0x130b   : > { %v3055_v46 = vadd.f32 %v4743_v45, %v3054_v19 }
0x130d   : > { %v3059_v30 = vsel %vm3058_vm13, %v4743_v45, %v3055_v46 }
0x130e   : > { %v3064_v27 = vsel %vm3061_vm14, %v3063_v21, %v3059_v30 }
0x130f   : > { %v3083_v52 = vmul.f32 %v4741_v40, %v3064_v27  ;;  %v3074_v60 = vmul.f32 %v4739_v17, %v3064_v27  ;;  %v3066_v22 = vmul.f32 %v4737_v8, %v3064_v27 }
0x1311   : > { %v3085_v10 = vperm.slane %v3083_v52, 0  ;;  %v3076_v54 = vperm.slane %v3074_v60, 0  ;;  %v3068_v47 = vperm.slane %v3066_v22, 0 }
0x1313   : > { %3087 = vperm.xlu1 %4641, %v3085_v10   ;;  %3078 = vperm.xlu0 %4643, %v3076_v54   ;;  %v4564_v54 = vld [vmem:[%s6453_s6 + $0x3] sm:$0x1] }
0x1314   : > { %3070 = vperm.xlu2 %4642, %v3068_v47  }
0x131b   : > { %3092 = vrot.lane.b32.xlu0 %v5941_v59, %s4921_s15 }
0x131c   : > { %3095 = vrot.lane.b32.xlu2 %v5781_v0, %s4922_s24 }
0x136e   : > { %v3071_v42 = vpop.permute.xlu2 %3070 }
0x136f   : > { %v3073_v57 = vmul.f32 %v3071_v42, %v5994_v36 }
0x1376   : > { %v3096_v50 = vpop.permute.xlu2 %3095 }
0x1385   : > { %v3079_v5 = vpop.permute.xlu0 %3078  ;;  %v3088_v33 = vpop.permute.xlu1 %3087 }
0x1386   : > { %v3081_v32 = vmul.f32 %v3079_v5, %v5992_v63  ;;  %v3090_v48 = vmul.f32 %v3088_v33, %v5990_v3 }
0x1388   : > { %v3082_v61 = vadd.f32 %v3081_v32, %v3073_v57 }
0x138a   : > { %v6015_v24 = vadd.f32 %v3090_v48, %v3082_v61 }
0x138d   : > { %v3093_v25 = vpop.permute.xlu0 %3092 }
0x138e   : > { %v3098_v34 = vsel %vm460_vm2, %v6015_v24, %v3093_v25 }
0x138f   : > { %v3099_v18 = vsel %vm462_vm3, %v3098_v34, %v3096_v50 }
0x1390   : > { %3121 = vmatpush.msra.mxu1 %v3099_v18  ;;  %4559 = vmatmul.msk.f32.vlgmr.msrb.gmra.mxu2 %vm501_vm5, %v3099_v18 }
0x1391   : > { %3193 = vmatpush.msrb.mxu0 %v3099_v18  ;;  %4557 = vmatmul.msk.f32.vlgmr.msra.gmra.mxu1 %vm470_vm4, %v5825_v26 }
0x1392   : > { %4560 = vmatmul.msk.f32.vlgmr.msrb.gmra.mxu0 %vm470_vm4, %v5832_v9  ;;  %3217 = vmatpush.msrb.mxu1 %v5819_v1 }
0x1394   : > { %3218 = vmatpush.msrb.mxu1 %v5845_v16  ;;  %v4651_v16 = vld [vmem:[%s6450_s3 + $0x3] ss:$0 sm:$0xff] }
0x1396   : > { %3219 = vmatpush.msrb.mxu1 %v5851_v28 }
0x1398   : > { %3220 = vmatpush.msrb.mxu1 %v5855_v29 }
0x139a   : > { %3221 = vmatpush.msrb.mxu1 %v5863_v31 }
0x139c   : > { %3222 = vmatpush.msrb.mxu1 %v5867_v58  ;;  %v3243_v58 = vadd.f32 %v5941_v59, %v5887_v4 }
0x140e   : > { %v3123_v3 = vpop.f32.mrf.mxu1 }
0x140f   : > { %4558 = vmatmul.msk.f32.vlgmr.msra.gmra.mxu3 %vm501_vm5, %v3123_v3  ;;  %v3195_v63 = vpop.f32.mrf.mxu0 }
0x1410   : > { %4561 = vmatmul.msk.f32.vlgmr.msrb.gmra.mxu1 %vm501_vm5, %v3195_v63 }
0x1413   : > { %v3175_v36 = vpop.f32.mrf.mxu2 }
0x148d   : > { %v3224_v41 = vpop.f32.mrf.mxu1 }
0x1492   : > { %v3152_v20 = vpop.f32.mrf.mxu3 }
0x1493   : > { %v3176_v1 = vadd.f32 %v3175_v36, %v3152_v20 }
0x1495   : > { %v3227_v28 = vadd.f32 %v3224_v41, %v3176_v1 }
0x1497   : > { %v3232_v29 = vadd.f32 %v4651_v16, %v3227_v28 }
0x1499   : > { %vm3233_vm15 = vcmp.gt.f32.partialorder %v3232_v29, 0.0  ;;  %v3234_v31 = vmul.f32 0.01, %v3232_v29 }
0x149b   : > { %v3235_v15 = vsel %vm3233_vm15, %v3232_v29, %v3234_v31 }
0x149c   : > { %v6042_v43 = vadd.f32 %v3243_v58, %v3235_v15  ;;  %v6044_v6 = vadd.f32 %v3240_v53, %v3235_v15  ;;  %v6046_v7 = vadd.f32 %v3237_v49, %v3235_v15 }
0x149e   : > { %v3269_v8 = vmul.f32 %v5902_v38, %v6042_v43  ;;  %v3258_v17 = vmul.f32 %v5902_v38, %v6044_v6  ;;  %v3246_v4 = vmul.f32 %v5902_v38, %v6046_v7 }
0x14a0   : > { %v3270_v13 = vsel %vm460_vm2, %v3269_v8, 0.0  ;;  %v3259_v35 = vsel %vm460_vm2, %v3258_v17, 0.0  ;;  %v3247_v37 = vsel %vm460_vm2, %v3246_v4, 0.0 }
0x14a1   : > { %3271 = vadd.xlane.f32.xlu2 %v3270_v13  ;;  %3260 = vadd.xlane.f32.xlu0 %v3259_v35 }
0x14a2   : > { %3248 = vadd.xlane.f32.xlu1 %v3247_v37 }
0x1514   : > { %v3272_v40 = vpop.xlane.xlu2 %3271  ;;  %v3261_v55 = vpop.xlane.xlu0 %3260 }
0x1515   : > { %v3273_v45 = vrot.slane %v3272_v40, 4  ;;  %v3262_v62 = vrot.slane %v3261_v55, 4  ;;  %v3249_v56 = vpop.xlane.xlu1 %3248 }
0x1516   : > { %v3250_v14 = vrot.slane %v3249_v56, 4 }
0x1517   : > { %v3274_v19 = vadd.f32 %v3273_v45, %v3272_v40  ;;  %v3263_v23 = vadd.f32 %v3262_v62, %v3261_v55 }
0x1518   : > { %v3251_v46 = vadd.f32 %v3250_v14, %v3249_v56  ;;  %v6064_v56 = vld [vmem:[#allocation3 + $0x148] sm:$0xff]  ;;  %v6067_v14 = vld [vmem:[#allocation3 + $0x140] sm:$0xff] }
0x1519   : > { %v3275_v21 = vrot.slane %v3274_v19, 2  ;;  %v3264_v38 = vrot.slane %v3263_v23, 2  ;;  %3436 = vmatpush.msra.mxu1 %v6064_v56 }
0x151a   : > { %v3252_v30 = vrot.slane %v3251_v46, 2 }
0x151b   : > { %v3276_v27 = vadd.f32 %v3275_v21, %v3274_v19  ;;  %v3265_v52 = vadd.f32 %v3264_v38, %v3263_v23  ;;  %3437 = vmatpush.msra.mxu1 %v6067_v14  ;;  %v6070_v19 = vld [vmem:[#allocation3 + $0x138] sm:$0xff]  ;;  %v6073_v23 = vld [vmem:[#allocation3 + $0x130] sm:$0xff]  ;;  %v6079_v21 = vld [vmem:[#allocation3 + $0x120] sm:$0xff] }
0x151c   : > { %v3253_v60 = vadd.f32 %v3252_v30, %v3251_v46  ;;  %v6076_v46 = vld [vmem:[#allocation3 + $0x128] sm:$0xff]  ;;  %v6082_v38 = vld [vmem:[#allocation3 + $0x178] sm:$0xff]  ;;  %v6084_v30 = vld [vmem:[#allocation3 + $0x170] sm:$0xff] }
0x151d   : > { %v3277_v22 = vrot.slane %v3276_v27, 1  ;;  %v3266_v10 = vrot.slane %v3265_v52, 1  ;;  %3438 = vmatpush.msra.mxu1 %v6070_v19  ;;  %3413 = vmatpush.msra.mxu2 %v6082_v38 }
0x151e   : > { %v3254_v47 = vrot.slane %v3253_v60, 1 }
0x151f   : > { %v3267_v42 = vadd.f32 %v3266_v10, %v3265_v52  ;;  %v3278_v5 = vadd.f32 %v3277_v22, %v3276_v27  ;;  %3439 = vmatpush.msra.mxu1 %v6073_v23  ;;  %v6087_v27 = vld [vmem:[#allocation3 + $0x168] sm:$0xff]  ;;  %3414 = vmatpush.msra.mxu2 %v6084_v30  ;;  %v6090_v52 = vld [vmem:[#allocation3 + $0x160] sm:$0xff] }
0x1520   : > { %v3255_v57 = vadd.f32 %v3254_v47, %v3253_v60  ;;  %v6093_v60 = vld [vmem:[#allocation3 + $0x158] sm:$0xff] }
0x1521   : > { %v3268_v32 = vadd.f32 %v4564_v54, %v3267_v42  ;;  %v3279_v61 = vadd.f32 %v4564_v54, %v3278_v5  ;;  %3440 = vmatpush.msra.mxu1 %v6076_v46  ;;  %3415 = vmatpush.msra.mxu2 %v6087_v27 }
0x1522   : > { %v3257_v33 = vadd.f32 %v4564_v54, %v3255_v57 }
0x1523   : > { %3441 = vmatpush.msra.mxu1 %v6079_v21  ;;  %3416 = vmatpush.msra.mxu2 %v6090_v52 }
0x1524   : > { %v3280_v48 = vmax.f32 %v3257_v33, %v3268_v32 }
0x1525   : > { %3417 = vmatpush.msra.mxu2 %v6093_v60 }
0x1526   : > { %v3281_v25 = vmax.f32 %v3280_v48, %v3279_v61 }
0x1528   : > { %v3282_v50 = vsub.f32 %v3257_v33, %v3281_v25  ;;  %v3285_v34 = vsub.f32 %v3268_v32, %v3281_v25  ;;  %v3288_v18 = vsub.f32 %v3279_v61, %v3281_v25 }
0x152a   : > { %v3283_v3 = vmul.f32 1.442695, %v3282_v50  ;;  %v3286_v63 = vmul.f32 1.442695, %v3285_v34  ;;  %v3289_v36 = vmul.f32 1.442695, %v3288_v18 }
0x152b   : > { %v6130_v50 = vld [vmem:[#allocation3 + $0x180] sm:$0xff] }
0x152c   : > { %4744 = vpow2.f32 %v3283_v3 }
0x152d   : > { %4746 = vpow2.f32 %v3286_v63 }
0x152e   : > { %4748 = vpow2.f32 %v3289_v36 }
0x1532   : > { %v4745_v20 = vpop.eup %4744 }
0x1533   : > { %v4747_v41 = vpop.eup %4746 }
0x1534   : > { %v3291_v1 = vadd.f32 %v4747_v41, %v4745_v20  ;;  %v4749_v16 = vpop.eup %4748 }
0x1536   : > { %v3292_v28 = vadd.f32 %v4749_v16, %v3291_v1  ;;  %v4652_v1 = vld [vmem:[%s6450_s3 + $0x2] ss:$0 sm:$0xff] }
0x1538   : > { %4750 = vrcp.f32 %v3292_v28  ;;  %v3304_v53 = vand.u32 2147483648, %v3292_v28  ;;  %v3302_v15 = vand.u32 2147483647, %v3292_v28  ;;  %vm3298_vm7 = vweird.f32 %v3292_v28 }
0x153a   : > { %v3305_v17 = vor.u32 1.1754944e-38, %v3304_v53  ;;  %vm3303_vm9 = vcmp.eq.f32.partialorder %v3302_v15, 8.507059e+37 }
0x153e   : > { %v4751_v29 = vpop.eup %4750 }
0x153f   : > { %v3294_v31 = vmul.f32 %v4751_v29, %v3292_v28  ;;  %vm3299_vm6 = vweird.f32 %v4751_v29 }
0x1540   : > { %vm3300_vm8 = vmor %vm3298_vm7, %vm3299_vm6 }
0x1541   : > { %v3295_v58 = vsub.f32 1.0, %v3294_v31  ;;  %v6141_v31 = vld [vmem:[#allocation5 + $0x40] sm:$0xff] }
0x1543   : > { %v3296_v49 = vmul.f32 %v4751_v29, %v3295_v58  ;;  %v6143_v58 = vld [vmem:[#allocation5 + $0x38] sm:$0xff] }
0x1544   : > { %v3508_v15 = vadd.f32 %v6143_v58, %v5814_v39 }
0x1545   : > { %v3297_v8 = vadd.f32 %v4751_v29, %v3296_v49  ;;  %v3511_v49 = vadd.f32 %v6141_v31, %v6015_v24 }
0x1547   : > { %v3301_v4 = vsel %vm3300_vm8, %v4751_v29, %v3297_v8 }
0x1548   : > { %v3306_v13 = vsel %vm3303_vm9, %v3305_v17, %v3301_v4  ;;  %v6156_v4 = vld [vmem:[%s6452_s5 + $0x10] sm:$0xff] }
0x1549   : > { %v3325_v35 = vmul.f32 %v4749_v16, %v3306_v13  ;;  %v3316_v37 = vmul.f32 %v4747_v41, %v3306_v13  ;;  %v3308_v40 = vmul.f32 %v4745_v20, %v3306_v13 }
0x154b   : > { %v3327_v55 = vperm.slane %v3325_v35, 0  ;;  %v3318_v45 = vperm.slane %v3316_v37, 0  ;;  %v3310_v62 = vperm.slane %v3308_v40, 0 }
0x154d   : > { %3329 = vperm.xlu2 %4642, %v3327_v55   ;;  %3320 = vperm.xlu0 %4643, %v3318_v45  }
0x154e   : > { %3312 = vperm.xlu1 %4641, %v3310_v62  }
0x1555   : > { %3360 = vrot.lane.b32.xlu0 %v6015_v24, %s4921_s15 }
0x1556   : > { %3363 = vrot.lane.b32.xlu1 %v5814_v39, %s4922_s24 }
0x15a7   : > { %v3330_v10 = vpop.permute.xlu2 %3329 }
0x15a8   : > { %v3332_v5 = vmul.f32 %v3330_v10, %v6042_v43  ;;  %v6112_v43 = vld [vmem:[#allocation3 + $0x1a8] sm:$0xff] }
0x15bf   : > { %v3321_v22 = vpop.permute.xlu0 %3320 }
0x15c0   : > { %v3323_v54 = vmul.f32 %v3321_v22, %v6044_v6  ;;  %v3313_v47 = vpop.permute.xlu1 %3312  ;;  %v6115_v6 = vld [vmem:[#allocation3 + $0x150] sm:$0xff] }
0x15c1   : > { %v3315_v42 = vmul.f32 %v3313_v47, %v6046_v7  ;;  %3418 = vmatpush.msra.mxu2 %v6115_v6  ;;  %v6121_v7 = vld [vmem:[#allocation3 + $0x198] sm:$0xff] }
0x15c3   : > { %v3324_v57 = vadd.f32 %v3323_v54, %v3315_v42 }
0x15c5   : > { %v6100_v32 = vadd.f32 %v3332_v5, %v3324_v57 }
0x15c7   : > { %4565 = vmatmul.msk.f32.vlgmr.msrb.gmra.mxu3 %vm460_vm2, %v6100_v32  ;;  %v3361_v33 = vpop.permute.xlu0 %3360 }
0x15c8   : > { %v3366_v61 = vsel %vm460_vm2, %v5621_v12, %v3361_v33  ;;  %v3364_v48 = vpop.permute.xlu1 %3363  ;;  %v6118_v12 = vld [vmem:[#allocation3 + $0x1a0] sm:$0xff] }
0x15c9   : > { %v3367_v25 = vsel %vm462_vm3, %v3366_v61, %v3364_v48 }
0x15ca   : > { %3389 = vmatpush.msra.mxu0 %v3367_v25  ;;  %4569 = vmatmul.msk.f32.vlgmr.msra.gmra.mxu1 %vm501_vm5, %v3367_v25 }
0x15cb   : > { %3461 = vmatpush.msra.mxu3 %v3367_v25  ;;  %4567 = vmatmul.msk.f32.vlgmr.msra.gmra.mxu0 %vm470_vm4, %v5825_v26  ;;  %v6124_v26 = vld [vmem:[#allocation3 + $0x190] sm:$0xff] }
0x15cc   : > { %3485 = vmatpush.msrb.mxu0 %v6112_v43 }
0x15ce   : > { %3486 = vmatpush.msrb.mxu0 %v6118_v12 }
0x15cf   : > { %4570 = vmatmul.msk.f32.vlgmr.msra.gmra.mxu3 %vm470_vm4, %v5832_v9  ;;  %v6126_v9 = vld [vmem:[#allocation3 + $0x188] sm:$0xff] }
0x15d0   : > { %3487 = vmatpush.msrb.mxu0 %v6121_v7 }
0x15d2   : > { %3488 = vmatpush.msrb.mxu0 %v6124_v26 }
0x15d4   : > { %3489 = vmatpush.msrb.mxu0 %v6126_v9 }
0x15d6   : > { %3490 = vmatpush.msrb.mxu0 %v6130_v50 }
0x1647   : > { %v3443_v36 = vpop.f32.mrf.mxu1 }
0x1648   : > { %v3391_v34 = vpop.f32.mrf.mxu0 }
0x1649   : > { %4568 = vmatmul.msk.f32.vlgmr.msra.gmra.mxu2 %vm501_vm5, %v3391_v34 }
0x164a   : > { %v3354_v18 = vpop.f32.mrf.mxu3 }
0x164b   : > { %v3355_v3 = vadd.f32 %v5967_v11, %v3354_v18  ;;  %v6145_v11 = vld [vmem:[#allocation5 + $0x30] sm:$0xff] }
0x164c   : > { %v3505_v8 = vadd.f32 %v6145_v11, %v5647_v44 }
0x164d   : > { %4566 = vst.msk [vmem:[%s5975_s17 + $0x8] sm:$0xff] %vm2847_vm10, %v3355_v3 }
0x1652   : > { %v3463_v63 = vpop.f32.mrf.mxu3 }
0x1653   : > { %4571 = vmatmul.msk.f32.vlgmr.msrb.gmra.mxu0 %vm501_vm5, %v3463_v63 }
0x16cc   : > { %v3420_v20 = vpop.f32.mrf.mxu2 }
0x16cd   : > { %v3444_v41 = vadd.f32 %v3443_v36, %v3420_v20 }
0x16d0   : > { %v3492_v16 = vpop.f32.mrf.mxu0 }
0x16d1   : > { %v3495_v28 = vadd.f32 %v3492_v16, %v3444_v41 }
0x16d3   : > { %v3500_v29 = vadd.f32 %v4652_v1, %v3495_v28  ;;  %v4574_v1 = vld [vmem:[%s6453_s6 + $0x2] sm:$0x1] }
0x16d5   : > { %vm3501_vm1 = vcmp.gt.f32.partialorder %v3500_v29, 0.0  ;;  %v3502_v53 = vmul.f32 0.01, %v3500_v29 }
0x16d7   : > { %v3503_v17 = vsel %vm3501_vm1, %v3500_v29, %v3502_v53 }
0x16d8   : > { %v6158_v13 = vadd.f32 %v3511_v49, %v3503_v17  ;;  %v6160_v35 = vadd.f32 %v3508_v15, %v3503_v17  ;;  %v6162_v37 = vadd.f32 %v3505_v8, %v3503_v17 }
0x16da   : > { %v3537_v40 = vmul.f32 %v6156_v4, %v6158_v13  ;;  %v3526_v55 = vmul.f32 %v6156_v4, %v6160_v35  ;;  %v3514_v44 = vmul.f32 %v6156_v4, %v6162_v37 }
0x16dc   : > { %v3538_v45 = vsel %vm460_vm2, %v3537_v40, 0.0  ;;  %v3527_v62 = vsel %vm460_vm2, %v3526_v55, 0.0  ;;  %v3515_v22 = vsel %vm460_vm2, %v3514_v44, 0.0 }
0x16dd   : > { %3539 = vadd.xlane.f32.xlu1 %v3538_v45  ;;  %3528 = vadd.xlane.f32.xlu0 %v3527_v62 }
0x16de   : > { %3516 = vadd.xlane.f32.xlu2 %v3515_v22 }
0x1750   : > { %v3540_v10 = vpop.xlane.xlu1 %3539  ;;  %v3529_v54 = vpop.xlane.xlu0 %3528 }
0x1751   : > { %v3541_v47 = vrot.slane %v3540_v10, 4  ;;  %v3530_v42 = vrot.slane %v3529_v54, 4  ;;  %v3517_v5 = vpop.xlane.xlu2 %3516 }
0x1752   : > { %v3518_v57 = vrot.slane %v3517_v5, 4 }
0x1753   : > { %v3542_v33 = vadd.f32 %v3541_v47, %v3540_v10  ;;  %v3531_v61 = vadd.f32 %v3530_v42, %v3529_v54 }
0x1754   : > { %v3519_v48 = vadd.f32 %v3518_v57, %v3517_v5 }
0x1755   : > { %v3543_v25 = vrot.slane %v3542_v33, 2  ;;  %v3532_v34 = vrot.slane %v3531_v61, 2 }
0x1756   : > { %v3520_v18 = vrot.slane %v3519_v48, 2 }
0x1757   : > { %v3544_v3 = vadd.f32 %v3543_v25, %v3542_v33  ;;  %v3533_v63 = vadd.f32 %v3532_v34, %v3531_v61 }
0x1758   : > { %v3521_v36 = vadd.f32 %v3520_v18, %v3519_v48 }
0x1759   : > { %v3545_v20 = vrot.slane %v3544_v3, 1  ;;  %v3534_v41 = vrot.slane %v3533_v63, 1 }
0x175a   : > { %v3522_v16 = vrot.slane %v3521_v36, 1 }
0x175b   : > { %v3535_v28 = vadd.f32 %v3534_v41, %v3533_v63  ;;  %v3546_v29 = vadd.f32 %v3545_v20, %v3544_v3 }
0x175c   : > { %v3523_v53 = vadd.f32 %v3522_v16, %v3521_v36 }
0x175d   : > { %v3536_v49 = vadd.f32 %v4574_v1, %v3535_v28  ;;  %v3547_v8 = vadd.f32 %v4574_v1, %v3546_v29 }
0x175e   : > { %v3525_v15 = vadd.f32 %v4574_v1, %v3523_v53 }
0x1760   : > { %v3548_v17 = vmax.f32 %v3525_v15, %v3536_v49 }
0x1762   : > { %v3549_v40 = vmax.f32 %v3548_v17, %v3547_v8  ;;  %v6189_v17 = vld [vmem:[#allocation3 + $0x1c0] sm:$0xff] }
0x1764   : > { %v3550_v55 = vsub.f32 %v3525_v15, %v3549_v40  ;;  %v3553_v44 = vsub.f32 %v3536_v49, %v3549_v40  ;;  %v3556_v45 = vsub.f32 %v3547_v8, %v3549_v40  ;;  %v6180_v49 = vld [vmem:[#allocation3 + $0x1d8] sm:$0xff]  ;;  %v6183_v15 = vld [vmem:[#allocation3 + $0x1d0] sm:$0xff]  ;;  %v6186_v8 = vld [vmem:[#allocation3 + $0x1c8] sm:$0xff] }
0x1765   : > { %3678 = vmatpush.msrb.mxu1 %v6180_v49  ;;  %v6191_v40 = vld [vmem:[#allocation3 + $0x1b8] sm:$0xff] }
0x1766   : > { %v3551_v62 = vmul.f32 1.442695, %v3550_v55  ;;  %v3554_v22 = vmul.f32 1.442695, %v3553_v44  ;;  %v3557_v10 = vmul.f32 1.442695, %v3556_v45 }
0x1767   : > { %3679 = vmatpush.msrb.mxu1 %v6183_v15  ;;  %v6195_v55 = vld [vmem:[#allocation3 + $0x1b0] sm:$0xff]  ;;  %v6199_v44 = vld [vmem:[#allocation3 + $0x208] sm:$0xff]  ;;  %v6201_v45 = vld [vmem:[#allocation3 + $0x200] sm:$0xff] }
0x1768   : > { %4752 = vpow2.f32 %v3551_v62  ;;  %3655 = vmatpush.msrb.mxu3 %v6199_v44 }
0x1769   : > { %4754 = vpow2.f32 %v3554_v22  ;;  %3680 = vmatpush.msrb.mxu1 %v6186_v8 }
0x176a   : > { %4756 = vpow2.f32 %v3557_v10  ;;  %3656 = vmatpush.msrb.mxu3 %v6201_v45 }
0x176b   : > { %3681 = vmatpush.msrb.mxu1 %v6189_v17 }
0x176d   : > { %3682 = vmatpush.msrb.mxu1 %v6191_v40 }
0x176e   : > { %v4753_v54 = vpop.eup %4752 }
0x176f   : > { %v4755_v47 = vpop.eup %4754  ;;  %3683 = vmatpush.msrb.mxu1 %v6195_v55 }
0x1770   : > { %v3559_v42 = vadd.f32 %v4755_v47, %v4753_v54  ;;  %v4757_v5 = vpop.eup %4756 }
0x1771   : > { %3923 = vmatpush.msra.mxu1 %v6082_v38 }
0x1772   : > { %v3560_v57 = vadd.f32 %v4757_v5, %v3559_v42 }
0x1773   : > { %3924 = vmatpush.msra.mxu1 %v6084_v30 }
0x1774   : > { %4758 = vrcp.f32 %v3560_v57  ;;  %v3572_v25 = vand.u32 2147483648, %v3560_v57  ;;  %v3570_v18 = vand.u32 2147483647, %v3560_v57  ;;  %vm3566_vm0 = vweird.f32 %v3560_v57 }
0x1775   : > { %3925 = vmatpush.msra.mxu1 %v6087_v27 }
0x1776   : > { %v3573_v63 = vor.u32 1.1754944e-38, %v3572_v25  ;;  %vm3571_vm13 = vcmp.eq.f32.partialorder %v3570_v18, 8.507059e+37  ;;  %v6248_v25 = vld [vmem:[#allocation3 + $0x220] sm:$0xff]  ;;  %v6256_v18 = vld [vmem:[#allocation3 + $0x218] sm:$0xff] }
0x1777   : > { %3926 = vmatpush.msra.mxu1 %v6090_v52 }
0x1779   : > { %3927 = vmatpush.msra.mxu1 %v6093_v60 }
0x177a   : > { %v4759_v33 = vpop.eup %4758 }
0x177b   : > { %v3562_v61 = vmul.f32 %v4759_v33, %v3560_v57  ;;  %vm3567_vm11 = vweird.f32 %v4759_v33  ;;  %3928 = vmatpush.msra.mxu1 %v6115_v6  ;;  %v6218_v6 = vld [vmem:[#allocation3 + $0x238] sm:$0xff]  ;;  %v6238_v57 = vld [vmem:[#allocation3 + $0x230] sm:$0xff] }
0x177c   : > { %vm3568_vm12 = vmor %vm3566_vm0, %vm3567_vm11 }
0x177d   : > { %v3563_v48 = vsub.f32 1.0, %v3562_v61  ;;  %v6244_v61 = vld [vmem:[#allocation3 + $0x228] sm:$0xff] }
0x177f   : > { %v3564_v34 = vmul.f32 %v4759_v33, %v3563_v48  ;;  %v6246_v48 = vld [vmem:[#allocation3 + $0x1e8] sm:$0xff] }
0x1781   : > { %v3565_v3 = vadd.f32 %v4759_v33, %v3564_v34  ;;  %v6254_v34 = vld [vmem:[#allocation3 + $0x1e0] sm:$0xff] }
0x1783   : > { %v3569_v36 = vsel %vm3568_vm12, %v4759_v33, %v3565_v3  ;;  %v6240_v33 = vld [vmem:[#allocation3 + $0x1f0] sm:$0xff] }
0x1784   : > { %v3574_v20 = vsel %vm3571_vm13, %v3573_v63, %v3569_v36  ;;  %v6260_v3 = vld [vmem:[#allocation3 + $0x210] sm:$0xff]  ;;  %v6282_v36 = vld [vmem:[#allocation5 + $0x58] sm:$0xff] }
0x1785   : > { %v3593_v41 = vmul.f32 %v4757_v5, %v3574_v20  ;;  %v3584_v1 = vmul.f32 %v4755_v47, %v3574_v20  ;;  %v3576_v16 = vmul.f32 %v4753_v54, %v3574_v20  ;;  %v6284_v20 = vld [vmem:[#allocation5 + $0x50] sm:$0xff] }
0x1787   : > { %v3595_v28 = vperm.slane %v3593_v41, 0  ;;  %v3586_v29 = vperm.slane %v3584_v1, 0  ;;  %v3578_v53 = vperm.slane %v3576_v16, 0  ;;  %v6286_v41 = vld [vmem:[#allocation5 + $0x48] sm:$0xff]  ;;  %v3753_v16 = vadd.f32 %v6282_v36, %v6100_v32 }
0x1789   : > { %3597 = vperm.xlu1 %4641, %v3595_v28   ;;  %3588 = vperm.xlu0 %4643, %v3586_v29   ;;  %v3750_v28 = vadd.f32 %v6284_v20, %v5941_v59  ;;  %v3747_v29 = vadd.f32 %v6286_v41, %v5781_v0 }
0x178a   : > { %3580 = vperm.xlu2 %4642, %v3578_v53  }
0x1791   : > { %3602 = vrot.lane.b32.xlu0 %v6100_v32, %s4921_s15 }
0x1792   : > { %3605 = vrot.lane.b32.xlu2 %v5941_v59, %s4922_s24 }
0x17e4   : > { %v3581_v62 = vpop.permute.xlu2 %3580 }
0x17e5   : > { %v3583_v22 = vmul.f32 %v3581_v62, %v6162_v37  ;;  %v6236_v37 = vld [vmem:[#allocation3 + $0x1f8] sm:$0xff] }
0x17e6   : > { %3657 = vmatpush.msrb.mxu3 %v6236_v37 }
0x17e8   : > { %3658 = vmatpush.msrb.mxu3 %v6240_v33 }
0x17ea   : > { %3659 = vmatpush.msrb.mxu3 %v6246_v48 }
0x17ec   : > { %v3606_v27 = vpop.permute.xlu2 %3605  ;;  %3660 = vmatpush.msrb.mxu3 %v6254_v34 }
0x17ee   : > { %3861 = vmatpush.msra.mxu3 %v5929_v2 }
0x17f0   : > { %3862 = vmatpush.msra.mxu3 %v5935_v51 }
0x17fb   : > { %v3589_v38 = vpop.permute.xlu0 %3588  ;;  %v3598_v54 = vpop.permute.xlu1 %3597 }
0x17fc   : > { %v3591_v10 = vmul.f32 %v3589_v38, %v6160_v35  ;;  %v3600_v30 = vmul.f32 %v3598_v54, %v6158_v13  ;;  %v6224_v35 = vld [vmem:[%s6448_s1] sm:$0xff]  ;;  %v6231_v13 = vld [vmem:[%s6448_s1 + $0x8] sm:$0xff] }
0x17fe   : > { %v3592_v47 = vadd.f32 %v3591_v10, %v3583_v22 }
0x1800   : > { %v6213_v42 = vadd.f32 %v3600_v30, %v3592_v47 }
0x1803   : > { %v3603_v5 = vpop.permute.xlu0 %3602 }
0x1804   : > { %v3608_v52 = vsel %vm460_vm2, %v6213_v42, %v3603_v5 }
0x1805   : > { %v3609_v60 = vsel %vm462_vm3, %v3608_v52, %v3606_v27 }
0x1806   : > { %3631 = vmatpush.msrb.mxu2 %v3609_v60  ;;  %4577 = vmatmul.msk.f32.vlgmr.msrb.gmra.mxu1 %vm501_vm5, %v3609_v60 }
0x1807   : > { %3703 = vmatpush.msra.mxu0 %v3609_v60  ;;  %4575 = vmatmul.msk.f32.vlgmr.msrb.gmra.mxu2 %vm470_vm4, %v6224_v35 }
0x1808   : > { %4578 = vmatmul.msk.f32.vlgmr.msra.gmra.mxu0 %vm470_vm4, %v6231_v13  ;;  %3727 = vmatpush.msra.mxu2 %v6218_v6 }
0x180a   : > { %3728 = vmatpush.msra.mxu2 %v6238_v57 }
0x180c   : > { %3729 = vmatpush.msra.mxu2 %v6244_v61 }
0x180e   : > { %3730 = vmatpush.msra.mxu2 %v6248_v25 }
0x1810   : > { %3731 = vmatpush.msra.mxu2 %v6256_v18 }
0x1812   : > { %3732 = vmatpush.msra.mxu2 %v6260_v3 }
0x1814   : > { %3946 = vmatpush.msrb.mxu2 %v6064_v56 }
0x1816   : > { %3947 = vmatpush.msrb.mxu2 %v6067_v14 }
0x1818   : > { %3948 = vmatpush.msrb.mxu2 %v6070_v19 }
0x181a   : > { %3949 = vmatpush.msrb.mxu2 %v6073_v23  ;;  %v4653_v23 = vld [vmem:[%s6450_s3 + $0x3] ss:$0 sm:$0xff] }
0x181c   : > { %3950 = vmatpush.msrb.mxu2 %v6076_v46 }
0x181e   : > { %3951 = vmatpush.msrb.mxu2 %v6079_v21 }
0x1883   : > { %v3685_v51 = vpop.f32.mrf.mxu1 }
0x1885   : > { %v3705_v63 = vpop.f32.mrf.mxu0 }
0x1886   : > { %4579 = vmatmul.msk.f32.vlgmr.msra.gmra.mxu2 %vm501_vm5, %v3705_v63 }
0x1887   : > { %4188 = vmatpush.msra.mxu2 %v6180_v49  ;;  %v6297_v49 = vld [vmem:[%s6452_s5 + $0x18] sm:$0xff] }
0x1889   : > { %4189 = vmatpush.msra.mxu2 %v6183_v15 }
0x188a   : > { %v3633_v2 = vpop.f32.mrf.mxu2 }
0x188b   : > { %4576 = vmatmul.msk.f32.vlgmr.msrb.gmra.mxu3 %vm501_vm5, %v3633_v2  ;;  %4190 = vmatpush.msra.mxu2 %v6186_v8 }
0x188d   : > { %4191 = vmatpush.msra.mxu2 %v6189_v17 }
0x188f   : > { %4192 = vmatpush.msra.mxu2 %v6191_v40 }
0x1891   : > { %4193 = vmatpush.msra.mxu2 %v6195_v55 }
0x1909   : > { %v3734_v14 = vpop.f32.mrf.mxu2 }
0x190e   : > { %v3662_v56 = vpop.f32.mrf.mxu3 }
0x190f   : > { %v3686_v19 = vadd.f32 %v3685_v51, %v3662_v56 }
0x1911   : > { %v3737_v46 = vadd.f32 %v3734_v14, %v3686_v19 }
0x1913   : > { %v3742_v21 = vadd.f32 %v4653_v23, %v3737_v46 }
0x1915   : > { %vm3743_vm14 = vcmp.gt.f32.partialorder %v3742_v21, 0.0  ;;  %v3744_v1 = vmul.f32 0.01, %v3742_v21 }
0x1917   : > { %v3745_v53 = vsel %vm3743_vm14, %v3742_v21, %v3744_v1 }
0x1918   : > { %v6299_v15 = vadd.f32 %v3753_v16, %v3745_v53  ;;  %v6301_v8 = vadd.f32 %v3750_v28, %v3745_v53  ;;  %v6303_v17 = vadd.f32 %v3747_v29, %v3745_v53  ;;  %v4582_v16 = vld [vmem:[%s6453_s6 + $0x3] sm:$0x1] }
0x191a   : > { %v3779_v40 = vmul.f32 %v6297_v49, %v6299_v15  ;;  %v3768_v55 = vmul.f32 %v6297_v49, %v6301_v8  ;;  %v3756_v62 = vmul.f32 %v6297_v49, %v6303_v17 }
0x191c   : > { %v3780_v38 = vsel %vm460_vm2, %v3779_v40, 0.0  ;;  %v3769_v22 = vsel %vm460_vm2, %v3768_v55, 0.0  ;;  %v3757_v10 = vsel %vm460_vm2, %v3756_v62, 0.0 }
0x191d   : > { %3781 = vadd.xlane.f32.xlu1 %v3780_v38  ;;  %3770 = vadd.xlane.f32.xlu2 %v3769_v22 }
0x191e   : > { %3758 = vadd.xlane.f32.xlu0 %v3757_v10 }
0x1990   : > { %v3782_v54 = vpop.xlane.xlu1 %3781  ;;  %v3771_v47 = vpop.xlane.xlu2 %3770 }
0x1991   : > { %v3783_v30 = vrot.slane %v3782_v54, 4  ;;  %v3772_v5 = vrot.slane %v3771_v47, 4  ;;  %v3759_v27 = vpop.xlane.xlu0 %3758 }
0x1992   : > { %v3760_v52 = vrot.slane %v3759_v27, 4 }
0x1993   : > { %v3784_v60 = vadd.f32 %v3783_v30, %v3782_v54  ;;  %v3773_v63 = vadd.f32 %v3772_v5, %v3771_v47 }
0x1994   : > { %v3761_v2 = vadd.f32 %v3760_v52, %v3759_v27 }
0x1995   : > { %v3785_v51 = vrot.slane %v3784_v60, 2  ;;  %v3774_v56 = vrot.slane %v3773_v63, 2 }
0x1996   : > { %v3762_v14 = vrot.slane %v3761_v2, 2 }
0x1997   : > { %v3786_v19 = vadd.f32 %v3785_v51, %v3784_v60  ;;  %v3775_v23 = vadd.f32 %v3774_v56, %v3773_v63 }
0x1998   : > { %v3763_v46 = vadd.f32 %v3762_v14, %v3761_v2 }
0x1999   : > { %v3787_v21 = vrot.slane %v3786_v19, 1  ;;  %v3776_v1 = vrot.slane %v3775_v23, 1 }
0x199a   : > { %v3764_v28 = vrot.slane %v3763_v46, 1 }
0x199b   : > { %v3777_v29 = vadd.f32 %v3776_v1, %v3775_v23  ;;  %v3788_v53 = vadd.f32 %v3787_v21, %v3786_v19 }
0x199c   : > { %v3765_v40 = vadd.f32 %v3764_v28, %v3763_v46 }
0x199d   : > { %v3778_v55 = vadd.f32 %v4582_v16, %v3777_v29  ;;  %v3789_v38 = vadd.f32 %v4582_v16, %v3788_v53 }
0x199e   : > { %v3767_v62 = vadd.f32 %v4582_v16, %v3765_v40 }
0x19a0   : > { %v3790_v22 = vmax.f32 %v3767_v62, %v3778_v55 }
0x19a2   : > { %v3791_v10 = vmax.f32 %v3790_v22, %v3789_v38 }
0x19a4   : > { %v3792_v54 = vsub.f32 %v3767_v62, %v3791_v10  ;;  %v3795_v47 = vsub.f32 %v3778_v55, %v3791_v10  ;;  %v3798_v30 = vsub.f32 %v3789_v38, %v3791_v10 }
0x19a6   : > { %v3793_v5 = vmul.f32 1.442695, %v3792_v54  ;;  %v3796_v27 = vmul.f32 1.442695, %v3795_v47  ;;  %v3799_v52 = vmul.f32 1.442695, %v3798_v30 }
0x19a8   : > { %4760 = vpow2.f32 %v3793_v5 }
0x19a9   : > { %4762 = vpow2.f32 %v3796_v27 }
0x19aa   : > { %4764 = vpow2.f32 %v3799_v52 }
0x19ae   : > { %v4761_v60 = vpop.eup %4760 }
0x19af   : > { %v4763_v63 = vpop.eup %4762 }
0x19b0   : > { %v3801_v2 = vadd.f32 %v4763_v63, %v4761_v60  ;;  %v4765_v51 = vpop.eup %4764 }
0x19b2   : > { %v3802_v56 = vadd.f32 %v4765_v51, %v3801_v2 }
0x19b4   : > { %4766 = vrcp.f32 %v3802_v56  ;;  %v3814_v46 = vand.u32 2147483648, %v3802_v56  ;;  %v3812_v1 = vand.u32 2147483647, %v3802_v56  ;;  %vm3808_vm6 = vweird.f32 %v3802_v56 }
0x19b6   : > { %v3815_v28 = vor.u32 1.1754944e-38, %v3814_v46  ;;  %vm3813_vm8 = vcmp.eq.f32.partialorder %v3812_v1, 8.507059e+37 }
0x19ba   : > { %v4767_v14 = vpop.eup %4766 }
0x19bb   : > { %v3804_v19 = vmul.f32 %v4767_v14, %v3802_v56  ;;  %vm3809_vm15 = vweird.f32 %v4767_v14 }
0x19bc   : > { %vm3810_vm7 = vmor %vm3808_vm6, %vm3809_vm15 }
0x19bd   : > { %v3805_v23 = vsub.f32 1.0, %v3804_v19  ;;  %v4018_v19 = vadd.f32 %v6143_v58, %v6015_v24 }
0x19bf   : > { %v3806_v21 = vmul.f32 %v4767_v14, %v3805_v23  ;;  %v4015_v23 = vadd.f32 %v6145_v11, %v5814_v39 }
0x19c1   : > { %v3807_v16 = vadd.f32 %v4767_v14, %v3806_v21 }
0x19c3   : > { %v3811_v29 = vsel %vm3810_vm7, %v4767_v14, %v3807_v16 }
0x19c4   : > { %v3816_v53 = vsel %vm3813_vm8, %v3815_v28, %v3811_v29 }
0x19c5   : > { %v3835_v40 = vmul.f32 %v4765_v51, %v3816_v53  ;;  %v3826_v55 = vmul.f32 %v4763_v63, %v3816_v53  ;;  %v3818_v62 = vmul.f32 %v4761_v60, %v3816_v53 }
0x19c7   : > { %v3837_v38 = vperm.slane %v3835_v40, 0  ;;  %v3828_v22 = vperm.slane %v3826_v55, 0  ;;  %v3820_v10 = vperm.slane %v3818_v62, 0 }
0x19c9   : > { %3839 = vperm.xlu1 %4641, %v3837_v38   ;;  %3830 = vperm.xlu0 %4643, %v3828_v22  }
0x19ca   : > { %3822 = vperm.xlu2 %4642, %v3820_v10  }
0x19d1   : > { %3870 = vrot.lane.b32.xlu0 %v6213_v42, %s4921_s15 }
0x19d2   : > { %3873 = vrot.lane.b32.xlu2 %v6015_v24, %s4922_s24 }
0x1a24   : > { %v3823_v54 = vpop.permute.xlu2 %3822 }
0x1a25   : > { %v3825_v5 = vmul.f32 %v3823_v54, %v6303_v17  ;;  %v4021_v17 = vadd.f32 %v6213_v42, %v6141_v31 }
0x1a2c   : > { %v3874_v51 = vpop.permute.xlu2 %3873 }
0x1a3b   : > { %v3840_v47 = vpop.permute.xlu1 %3839  ;;  %v3831_v30 = vpop.permute.xlu0 %3830 }
0x1a3c   : > { %v3833_v27 = vmul.f32 %v3831_v30, %v6301_v8  ;;  %v3842_v52 = vmul.f32 %v3840_v47, %v6299_v15 }
0x1a3e   : > { %v3834_v60 = vadd.f32 %v3833_v27, %v3825_v5 }
0x1a40   : > { %v6324_v63 = vadd.f32 %v3842_v52, %v3834_v60 }
0x1a42   : > { %4583 = vmatmul.msk.f32.vlgmr.msra.gmra.mxu3 %vm460_vm2, %v6324_v63 }
0x1a43   : > { %v3871_v2 = vpop.permute.xlu0 %3870 }
0x1a44   : > { %v3876_v56 = vsel %vm460_vm2, %v5781_v0, %v3871_v2  ;;  %v4837_v0 = vld [vmem:[%s6456_s9 + $0x8] sm:$0xff]  ;;  %v4592_v2 = vld [vmem:[%s6453_s6 + $0x2] sm:$0x1] }
0x1a45   : > { %v3877_v14 = vsel %vm462_vm3, %v3876_v56, %v3874_v51 }
0x1a46   : > { %3899 = vmatpush.msrb.mxu0 %v3877_v14  ;;  %4587 = vmatmul.msk.f32.vlgmr.msrb.gmra.mxu2 %vm501_vm5, %v3877_v14 }
0x1a47   : > { %3971 = vmatpush.msrb.mxu3 %v3877_v14  ;;  %4585 = vmatmul.msk.f32.vlgmr.msrb.gmra.mxu0 %vm470_vm4, %v6224_v35 }
0x1a48   : > { %3995 = vmatpush.msra.mxu0 %v6112_v43  ;;  %v4838_v43 = vld [vmem:[%s6456_s9] sm:$0xff] }
0x1a49   : > { %4165 = vmatpush.msra.mxu3 %v6199_v44 }
0x1a4a   : > { %4588 = vmatmul.msk.f32.vlgmr.msrb.gmra.mxu3 %vm470_vm4, %v6231_v13  ;;  %3996 = vmatpush.msra.mxu0 %v6118_v12 }
0x1a4b   : > { %4166 = vmatpush.msra.mxu3 %v6201_v45 }
0x1a4c   : > { %3997 = vmatpush.msra.mxu0 %v6121_v7 }
0x1a4d   : > { %4167 = vmatpush.msra.mxu3 %v6236_v37 }
0x1a4e   : > { %3998 = vmatpush.msra.mxu0 %v6124_v26  ;;  %v6355_v26 = vld [vmem:[#allocation2] ss:$0 sm:$0xff] }
0x1a4f   : > { %4168 = vmatpush.msra.mxu3 %v6240_v33  ;;  %v4654_v33 = vld [vmem:[%s6450_s3 + $0x2] ss:$0 sm:$0xff] }
0x1a50   : > { %3999 = vmatpush.msra.mxu0 %v6126_v9 }
0x1a51   : > { %4169 = vmatpush.msra.mxu3 %v6246_v48 }
0x1a52   : > { %4000 = vmatpush.msra.mxu0 %v6130_v50 }
0x1a53   : > { %4170 = vmatpush.msra.mxu3 %v6254_v34 }
0x1a55   : > { %4371 = vmatpush.msrb.mxu3 %v4837_v0 }
0x1a57   : > { %4372 = vmatpush.msrb.mxu3 %v4838_v43 }
0x1ac4   : > { %v3901_v12 = vpop.f32.mrf.mxu0 }
0x1ac5   : > { %v3864_v7 = vpop.f32.mrf.mxu3  ;;  %4586 = vmatmul.msk.f32.vlgmr.msra.gmra.mxu1 %vm501_vm5, %v3901_v12 }
0x1ac6   : > { %v3865_v9 = vadd.f32 %v6355_v26, %v3864_v7 }
0x1ac8   : > { %4584 = vst.msk [vmem:[%s5975_s17 + $0x10] sm:$0xff] %vm2847_vm10, %v3865_v9 }
0x1ac9   : > { %v3953_v45 = vpop.f32.mrf.mxu2 }
0x1acd   : > { %v3973_v50 = vpop.f32.mrf.mxu3 }
0x1ace   : > { %4589 = vmatmul.msk.f32.vlgmr.msra.gmra.mxu0 %vm501_vm5, %v3973_v50 }
0x1b42   : > { %v3930_v44 = vpop.f32.mrf.mxu1 }
0x1b43   : > { %v3954_v37 = vadd.f32 %v3953_v45, %v3930_v44 }
0x1b4b   : > { %v4002_v48 = vpop.f32.mrf.mxu0 }
0x1b4c   : > { %v4005_v34 = vadd.f32 %v4002_v48, %v3954_v37 }
0x1b4e   : > { %v4010_v15 = vadd.f32 %v4654_v33, %v4005_v34 }
0x1b50   : > { %vm4011_vm9 = vcmp.gt.f32.partialorder %v4010_v15, 0.0  ;;  %v4012_v8 = vmul.f32 0.01, %v4010_v15 }
0x1b52   : > { %v4013_v46 = vsel %vm4011_vm9, %v4010_v15, %v4012_v8 }
0x1b53   : > { %v6370_v21 = vadd.f32 %v4021_v17, %v4013_v46  ;;  %v6372_v1 = vadd.f32 %v4018_v19, %v4013_v46  ;;  %v6374_v16 = vadd.f32 %v4015_v23, %v4013_v46 }
0x1b55   : > { %v4047_v28 = vmul.f32 %v6156_v4, %v6370_v21  ;;  %v4036_v29 = vmul.f32 %v6156_v4, %v6372_v1  ;;  %v4024_v31 = vmul.f32 %v6156_v4, %v6374_v16 }
0x1b57   : > { %v4048_v24 = vsel %vm460_vm2, %v4047_v28, 0.0  ;;  %v4037_v39 = vsel %vm460_vm2, %v4036_v29, 0.0  ;;  %v4025_v58 = vsel %vm460_vm2, %v4024_v31, 0.0 }
0x1b58   : > { %4049 = vadd.xlane.f32.xlu2 %v4048_v24  ;;  %4038 = vadd.xlane.f32.xlu0 %v4037_v39 }
0x1b59   : > { %4026 = vadd.xlane.f32.xlu1 %v4025_v58 }
0x1bcb   : > { %v4050_v11 = vpop.xlane.xlu2 %4049  ;;  %v4039_v42 = vpop.xlane.xlu0 %4038 }
0x1bcc   : > { %v4051_v53 = vrot.slane %v4050_v11, 4  ;;  %v4040_v40 = vrot.slane %v4039_v42, 4  ;;  %v4027_v55 = vpop.xlane.xlu1 %4026 }
0x1bcd   : > { %v4028_v62 = vrot.slane %v4027_v55, 4 }
0x1bce   : > { %v4052_v38 = vadd.f32 %v4051_v53, %v4050_v11  ;;  %v4041_v22 = vadd.f32 %v4040_v40, %v4039_v42 }
0x1bcf   : > { %v4029_v10 = vadd.f32 %v4028_v62, %v4027_v55 }
0x1bd0   : > { %v4053_v54 = vrot.slane %v4052_v38, 2  ;;  %v4042_v4 = vrot.slane %v4041_v22, 2 }
0x1bd1   : > { %v4030_v47 = vrot.slane %v4029_v10, 2 }
0x1bd2   : > { %v4054_v30 = vadd.f32 %v4053_v54, %v4052_v38  ;;  %v4043_v5 = vadd.f32 %v4042_v4, %v4041_v22 }
0x1bd3   : > { %v4031_v27 = vadd.f32 %v4030_v47, %v4029_v10 }
0x1bd4   : > { %v4055_v52 = vrot.slane %v4054_v30, 1  ;;  %v4044_v60 = vrot.slane %v4043_v5, 1 }
0x1bd5   : > { %v4032_v51 = vrot.slane %v4031_v27, 1 }
0x1bd6   : > { %v4045_v56 = vadd.f32 %v4044_v60, %v4043_v5  ;;  %v4056_v14 = vadd.f32 %v4055_v52, %v4054_v30 }
0x1bd7   : > { %v4033_v0 = vadd.f32 %v4032_v51, %v4031_v27 }
0x1bd8   : > { %v4046_v43 = vadd.f32 %v4592_v2, %v4045_v56  ;;  %v4057_v7 = vadd.f32 %v4592_v2, %v4056_v14 }
0x1bd9   : > { %v4035_v12 = vadd.f32 %v4592_v2, %v4033_v0  ;;  %v4260_v0 = vadd.f32 %v6284_v20, %v6100_v32 }
0x1bdb   : > { %v4058_v9 = vmax.f32 %v4035_v12, %v4046_v43 }
0x1bdd   : > { %v4059_v50 = vmax.f32 %v4058_v9, %v4057_v7 }
0x1bdf   : > { %v4060_v44 = vsub.f32 %v4035_v12, %v4059_v50  ;;  %v4063_v45 = vsub.f32 %v4046_v43, %v4059_v50  ;;  %v4066_v37 = vsub.f32 %v4057_v7, %v4059_v50  ;;  %v4257_v43 = vadd.f32 %v6286_v41, %v5941_v59 }
0x1be1   : > { %v4061_v33 = vmul.f32 1.442695, %v4060_v44  ;;  %v4064_v48 = vmul.f32 1.442695, %v4063_v45  ;;  %v4067_v34 = vmul.f32 1.442695, %v4066_v37 }
0x1be3   : > { %4768 = vpow2.f32 %v4061_v33 }
0x1be4   : > { %4770 = vpow2.f32 %v4064_v48 }
0x1be5   : > { %4772 = vpow2.f32 %v4067_v34 }
0x1be9   : > { %v4769_v15 = vpop.eup %4768 }
0x1bea   : > { %v4771_v8 = vpop.eup %4770 }
0x1beb   : > { %v4069_v17 = vadd.f32 %v4771_v8, %v4769_v15  ;;  %v4773_v19 = vpop.eup %4772 }
0x1bed   : > { %v4070_v23 = vadd.f32 %v4773_v19, %v4069_v17 }
0x1bef   : > { %4774 = vrcp.f32 %v4070_v23  ;;  %v4082_v31 = vand.u32 2147483648, %v4070_v23  ;;  %v4080_v39 = vand.u32 2147483647, %v4070_v23  ;;  %vm4076_vm11 = vweird.f32 %v4070_v23 }
0x1bf1   : > { %v4083_v11 = vor.u32 1.1754944e-38, %v4082_v31  ;;  %vm4081_vm12 = vcmp.eq.f32.partialorder %v4080_v39, 8.507059e+37  ;;  %v4600_v39 = vld [vmem:[%s6453_s6 + $0x3] sm:$0x1] }
0x1bf5   : > { %v4775_v46 = vpop.eup %4774 }
0x1bf6   : > { %v4072_v28 = vmul.f32 %v4775_v46, %v4070_v23  ;;  %vm4077_vm1 = vweird.f32 %v4775_v46 }
0x1bf7   : > { %vm4078_vm0 = vmor %vm4076_vm11, %vm4077_vm1 }
0x1bf8   : > { %v4073_v29 = vsub.f32 1.0, %v4072_v28 }
0x1bfa   : > { %v4074_v24 = vmul.f32 %v4775_v46, %v4073_v29 }
0x1bfc   : > { %v4075_v58 = vadd.f32 %v4775_v46, %v4074_v24 }
0x1bfe   : > { %v4079_v42 = vsel %vm4078_vm0, %v4775_v46, %v4075_v58 }
0x1bff   : > { %v4084_v53 = vsel %vm4081_vm12, %v4083_v11, %v4079_v42 }
0x1c00   : > { %v4103_v40 = vmul.f32 %v4773_v19, %v4084_v53  ;;  %v4094_v55 = vmul.f32 %v4771_v8, %v4084_v53  ;;  %v4086_v62 = vmul.f32 %v4769_v15, %v4084_v53 }
0x1c02   : > { %v4105_v38 = vperm.slane %v4103_v40, 0  ;;  %v4096_v22 = vperm.slane %v4094_v55, 0  ;;  %v4088_v10 = vperm.slane %v4086_v62, 0 }
0x1c04   : > { %4107 = vperm.xlu2 %4642, %v4105_v38   ;;  %4098 = vperm.xlu0 %4643, %v4096_v22  }
0x1c05   : > { %4090 = vperm.xlu1 %4641, %v4088_v10  }
0x1c0c   : > { %4112 = vrot.lane.b32.xlu0 %v6324_v63, %s4921_s15 }
0x1c0d   : > { %4115 = vrot.lane.b32.xlu1 %v6100_v32, %s4922_s24 }
0x1c5e   : > { %v4108_v30 = vpop.permute.xlu2 %4107 }
0x1c5f   : > { %v4110_v52 = vmul.f32 %v4108_v30, %v6370_v21 }
0x1c76   : > { %v4099_v54 = vpop.permute.xlu0 %4098 }
0x1c77   : > { %v4101_v4 = vmul.f32 %v4099_v54, %v6372_v1  ;;  %v4091_v47 = vpop.permute.xlu1 %4090 }
0x1c78   : > { %v4093_v5 = vmul.f32 %v4091_v47, %v6374_v16 }
0x1c7a   : > { %v4102_v27 = vadd.f32 %v4101_v4, %v4093_v5 }
0x1c7c   : > { %v4111_v60 = vadd.f32 %v4110_v52, %v4102_v27 }
0x1c7e   : > { %v4113_v2 = vpop.permute.xlu0 %4112 }
0x1c7f   : > { %v4118_v51 = vsel %vm460_vm2, %v4111_v60, %v4113_v2  ;;  %v4116_v56 = vpop.permute.xlu1 %4115 }
0x1c80   : > { %v4119_v14 = vsel %vm462_vm3, %v4118_v51, %v4116_v56 }
0x1c81   : > { %4141 = vmatpush.msrb.mxu1 %v4119_v14  ;;  %4595 = vmatmul.msk.f32.vlgmr.msra.gmra.mxu2 %vm501_vm5, %v4119_v14 }
0x1c82   : > { %4213 = vmatpush.msrb.mxu0 %v4119_v14  ;;  %4593 = vmatmul.msk.f32.vlgmr.msrb.gmra.mxu1 %vm470_vm4, %v6224_v35 }
0x1c83   : > { %4596 = vmatmul.msk.f32.vlgmr.msrb.gmra.mxu0 %vm470_vm4, %v6231_v13  ;;  %4237 = vmatpush.msra.mxu1 %v6218_v6 }
0x1c85   : > { %4238 = vmatpush.msra.mxu1 %v6238_v57  ;;  %v4655_v57 = vld [vmem:[%s6450_s3 + $0x3] ss:$0 sm:$0xff] }
0x1c87   : > { %4239 = vmatpush.msra.mxu1 %v6244_v61 }
0x1c89   : > { %4240 = vmatpush.msra.mxu1 %v6248_v25 }
0x1c8b   : > { %4241 = vmatpush.msra.mxu1 %v6256_v18 }
0x1c8d   : > { %4242 = vmatpush.msra.mxu1 %v6260_v3  ;;  %v4263_v3 = vadd.f32 %v6324_v63, %v6282_v36 }
0x1cff   : > { %v4143_v21 = vpop.f32.mrf.mxu1 }
0x1d00   : > { %4594 = vmatmul.msk.f32.vlgmr.msra.gmra.mxu3 %vm501_vm5, %v4143_v21  ;;  %v4215_v1 = vpop.f32.mrf.mxu0 }
0x1d01   : > { %4597 = vmatmul.msk.f32.vlgmr.msra.gmra.mxu1 %vm501_vm5, %v4215_v1 }
0x1d04   : > { %v4195_v35 = vpop.f32.mrf.mxu2 }
0x1d7e   : > { %v4244_v16 = vpop.f32.mrf.mxu1 }
0x1d83   : > { %v4172_v13 = vpop.f32.mrf.mxu3 }
0x1d84   : > { %v4196_v6 = vadd.f32 %v4195_v35, %v4172_v13 }
0x1d86   : > { %v4247_v61 = vadd.f32 %v4244_v16, %v4196_v6 }
0x1d88   : > { %v4252_v25 = vadd.f32 %v4655_v57, %v4247_v61 }
0x1d8a   : > { %vm4253_vm3 = vcmp.gt.f32.partialorder %v4252_v25, 0.0  ;;  %v4254_v18 = vmul.f32 0.01, %v4252_v25 }
0x1d8c   : > { %v4255_v12 = vsel %vm4253_vm3, %v4252_v25, %v4254_v18 }
0x1d8d   : > { %v6419_v7 = vadd.f32 %v4263_v3, %v4255_v12  ;;  %v6421_v9 = vadd.f32 %v4260_v0, %v4255_v12  ;;  %v6423_v50 = vadd.f32 %v4257_v43, %v4255_v12 }
0x1d8f   : > { %v4289_v44 = vmul.f32 %v6297_v49, %v6419_v7  ;;  %v4278_v45 = vmul.f32 %v6297_v49, %v6421_v9  ;;  %v4266_v36 = vmul.f32 %v6297_v49, %v6423_v50 }
0x1d91   : > { %v4290_v32 = vsel %vm460_vm2, %v4289_v44, 0.0  ;;  %v4279_v59 = vsel %vm460_vm2, %v4278_v45, 0.0  ;;  %v4267_v20 = vsel %vm460_vm2, %v4266_v36, 0.0 }
0x1d92   : > { %4291 = vadd.xlane.f32.xlu1 %v4290_v32  ;;  %4280 = vadd.xlane.f32.xlu0 %v4279_v59 }
0x1d93   : > { %4268 = vadd.xlane.f32.xlu2 %v4267_v20 }
0x1e05   : > { %v4292_v41 = vpop.xlane.xlu1 %4291  ;;  %v4281_v63 = vpop.xlane.xlu0 %4280 }
0x1e06   : > { %v4293_v37 = vrot.slane %v4292_v41, 4  ;;  %v4282_v33 = vrot.slane %v4281_v63, 4  ;;  %v4269_v48 = vpop.xlane.xlu2 %4268 }
0x1e07   : > { %v4270_v34 = vrot.slane %v4269_v48, 4 }
0x1e08   : > { %v4294_v15 = vadd.f32 %v4293_v37, %v4292_v41  ;;  %v4283_v8 = vadd.f32 %v4282_v33, %v4281_v63 }
0x1e09   : > { %v4271_v17 = vadd.f32 %v4270_v34, %v4269_v48 }
0x1e0a   : > { %v4295_v19 = vrot.slane %v4294_v15, 2  ;;  %v4284_v49 = vrot.slane %v4283_v8, 2 }
0x1e0b   : > { %v4272_v23 = vrot.slane %v4271_v17, 2 }
0x1e0c   : > { %v4296_v46 = vadd.f32 %v4295_v19, %v4294_v15  ;;  %v4285_v28 = vadd.f32 %v4284_v49, %v4283_v8 }
0x1e0d   : > { %v4273_v29 = vadd.f32 %v4272_v23, %v4271_v17 }
0x1e0e   : > { %v4297_v31 = vrot.slane %v4296_v46, 1  ;;  %v4286_v24 = vrot.slane %v4285_v28, 1 }
0x1e0f   : > { %v4274_v58 = vrot.slane %v4273_v29, 1 }
0x1e10   : > { %v4287_v11 = vadd.f32 %v4286_v24, %v4285_v28  ;;  %v4298_v42 = vadd.f32 %v4297_v31, %v4296_v46 }
0x1e11   : > { %v4275_v53 = vadd.f32 %v4274_v58, %v4273_v29 }
0x1e12   : > { %v4288_v40 = vadd.f32 %v4600_v39, %v4287_v11  ;;  %v4299_v62 = vadd.f32 %v4600_v39, %v4298_v42 }
0x1e13   : > { %v4277_v55 = vadd.f32 %v4600_v39, %v4275_v53 }
0x1e15   : > { %v4300_v38 = vmax.f32 %v4277_v55, %v4288_v40 }
0x1e17   : > { %v4301_v22 = vmax.f32 %v4300_v38, %v4299_v62 }
0x1e19   : > { %v4302_v10 = vsub.f32 %v4277_v55, %v4301_v22  ;;  %v4305_v54 = vsub.f32 %v4288_v40, %v4301_v22  ;;  %v4308_v4 = vsub.f32 %v4299_v62, %v4301_v22 }
0x1e1b   : > { %v4303_v47 = vmul.f32 1.442695, %v4302_v10  ;;  %v4306_v30 = vmul.f32 1.442695, %v4305_v54  ;;  %v4309_v5 = vmul.f32 1.442695, %v4308_v4 }
0x1e1d   : > { %4776 = vpow2.f32 %v4303_v47 }
0x1e1e   : > { %4778 = vpow2.f32 %v4306_v30 }
0x1e1f   : > { %4780 = vpow2.f32 %v4309_v5 }
0x1e23   : > { %v4777_v27 = vpop.eup %4776 }
0x1e24   : > { %v4779_v52 = vpop.eup %4778 }
0x1e25   : > { %v4311_v60 = vadd.f32 %v4779_v52, %v4777_v27  ;;  %v4781_v2 = vpop.eup %4780 }
0x1e27   : > { %v4312_v51 = vadd.f32 %v4781_v2, %v4311_v60 }
0x1e29   : > { %4782 = vrcp.f32 %v4312_v51  ;;  %v4324_v1 = vand.u32 2147483648, %v4312_v51  ;;  %v4322_v13 = vand.u32 2147483647, %v4312_v51  ;;  %vm4318_vm5 = vweird.f32 %v4312_v51 }
0x1e2b   : > { %v4325_v6 = vor.u32 1.1754944e-38, %v4324_v1  ;;  %vm4323_vm14 = vcmp.eq.f32.partialorder %v4322_v13, 8.507059e+37 }
0x1e2f   : > { %v4783_v56 = vpop.eup %4782 }
0x1e30   : > { %v4314_v14 = vmul.f32 %v4783_v56, %v4312_v51  ;;  %vm4319_vm4 = vweird.f32 %v4783_v56 }
0x1e31   : > { %vm4320_vm13 = vmor %vm4318_vm5, %vm4319_vm4 }
0x1e32   : > { %v4315_v21 = vsub.f32 1.0, %v4314_v14 }
0x1e34   : > { %v4316_v35 = vmul.f32 %v4783_v56, %v4315_v21 }
0x1e36   : > { %v4317_v16 = vadd.f32 %v4783_v56, %v4316_v35 }
0x1e38   : > { %v4321_v57 = vsel %vm4320_vm13, %v4783_v56, %v4317_v16 }
0x1e39   : > { %v4326_v61 = vsel %vm4323_vm14, %v4325_v6, %v4321_v57 }
0x1e3a   : > { %v4345_v25 = vmul.f32 %v4781_v2, %v4326_v61  ;;  %v4336_v18 = vmul.f32 %v4779_v52, %v4326_v61  ;;  %v4328_v3 = vmul.f32 %v4777_v27, %v4326_v61 }
0x1e3c   : > { %v4347_v0 = vperm.slane %v4345_v25, 0  ;;  %v4338_v43 = vperm.slane %v4336_v18, 0  ;;  %v4330_v12 = vperm.slane %v4328_v3, 0 }
0x1e3e   : > { %4349 = vperm.xlu1 %4641, %v4347_v0   ;;  %4340 = vperm.xlu0 %4643, %v4338_v43  }
0x1e3f   : > { %4332 = vperm.xlu2 %4642, %v4330_v12  }
0x1e99   : > { %v4333_v44 = vpop.permute.xlu2 %4332 }
0x1e9a   : > { %v4335_v32 = vmul.f32 %v4333_v44, %v6423_v50 }
0x1eb0   : > { %v4350_v45 = vpop.permute.xlu1 %4349  ;;  %v4341_v36 = vpop.permute.xlu0 %4340 }
0x1eb1   : > { %v4343_v59 = vmul.f32 %v4341_v36, %v6421_v9  ;;  %v4352_v20 = vmul.f32 %v4350_v45, %v6419_v7 }
0x1eb3   : > { %v4344_v41 = vadd.f32 %v4343_v59, %v4335_v32 }
0x1eb5   : > { %v4353_v63 = vadd.f32 %v4352_v20, %v4344_v41 }
0x1eb7   : > { %4601 = vmatmul.msk.f32.vlgmr.msrb.gmra.mxu3 %vm460_vm2, %v4353_v63 }
0x1f3a   : > { %v4374_v37 = vpop.f32.mrf.mxu3 }
0x1f3b   : > { %v4375_v33 = vadd.f32 %v6355_v26, %v4374_v37 }
0x1f3d   : > { %4602 = vst.msk [vmem:[%s5975_s17 + $0x18] sm:$0xff] %vm2847_vm10, %v4375_v33 }
0x1f3e PF: > { %s25_s19 = sadd.s32 1, %s4914_s19  }
0x1f3f   : > { %p22_p7 = scmp.ge.s32.totalorder %s25_s19, 4  }
0x1f41   :  { %24 = sbr.rel (!%p22_p7) target bundleno = 5 (0x5), region = 141 }
0x1f46   :  { %4400 = vsyncpa [#allocation4], 1 }
0x1f47   :  { %4402 = vsyncpa [#allocation4 + $0x1], 1 }
0x1f48   :  { %4403 = vsyncpa [#allocation6], 1 }

</bundles_post_ra>
